<compile_context>
chip_gen: v6e
topology: v6e:2x2x1
jax: 0.10.0
libtpu: 0.0.40
codegen_flags: <defaults>
</compile_context>

<pallas_src>
import functools
import math

import jax
import jax.numpy as jnp
from jax.experimental import pallas as pl
from jax.experimental.pallas import tpu as pltpu


# --------------------------------------------------------------------------
# Fused Conv3x3 (pad=1, stride=1) + bias + ReLU (+ optional 2x2/2 max-pool).
# One (image, row-tile, Cout-tile) block per grid step; the full Cin
# contraction happens inside the kernel as 3 MXU matmuls of depth 3*Cin.
# --------------------------------------------------------------------------
def _conv3x3_relu_kernel(x_main_ref, x_halo_ref, w_ref, b_ref, o_ref, *,
                         TH, W, pool):
    # x_main_ref: (1, TH, W+2, Cin)  padded rows [th*TH, th*TH+TH)
    # x_halo_ref: (1, 2,  W+2, Cin)  padded rows [th*TH+TH, th*TH+TH+2)
    # w_ref:      (3, 3*Cin, TCout)  bf16, laid out as (dy, dx*Cin+cin, cout)
    # b_ref:      (1, TCout)         f32
    # o_ref:      (1, TH, W, TCout)  or (1, TH//2, W//2, TCout) if pool
    cin3 = w_ref.shape[1]
    tcout = o_ref.shape[-1]

    # Row window for this tile: main block + 2-row halo -> (TH+2, W+2, Cin).
    x = jnp.concatenate([x_main_ref[0], x_halo_ref[0]], axis=0)

    acc = jnp.zeros((TH * W, tcout), jnp.float32)
    for dy in range(3):
        rows = x[dy:dy + TH]                                    # (TH, W+2, Cin)
        # Concatenate the three dx-shifted windows on the lane axis -> K=3*Cin.
        patch = jnp.concatenate(
            [rows[:, 0:W, :], rows[:, 1:W + 1, :], rows[:, 2:W + 2, :]],
            axis=-1).reshape(TH * W, cin3)                      # bf16
        acc = acc + jnp.dot(patch, w_ref[dy],
                            preferred_element_type=jnp.float32)

    out = jnp.maximum(acc + b_ref[...], 0.0)                    # f32 bias + ReLU
    out = out.reshape(TH, W, tcout)

    if pool:                                                    # fused 2x2 max-pool
        out = out.reshape(TH // 2, 2, W, tcout)
        out = jnp.maximum(out[:, 0], out[:, 1])                 # (TH//2, W, C)
        out = out.reshape(TH // 2, W // 2, 2, tcout)
        out = jnp.maximum(out[:, :, 0, :], out[:, :, 1, :])     # (TH//2, W//2, C)

    o_ref[0] = out.astype(o_ref.dtype)


def _pick_row_tile(H, W, max_pixels=2048):
    """Largest even divisor TH of H with TH*W <= max_pixels.
    Bounds the f32 accumulator and keeps per-step VMEM blocks small at real
    VGG resolutions (e.g. 224x224)."""
    if H % 2:
        return H
    th = 2
    for cand in range(2, H + 1, 2):
        if H % cand == 0 and cand * W <= max_pixels:
            th = cand
    return th


def conv3x3_relu(x_nhwc, w_hwio, b, *, pool=False):
    """3x3 'same' conv + bias + ReLU, optionally fused with 2x2/2 max-pool.

    x_nhwc: (N,H,W,Cin); w_hwio: (3,3,Cin,Cout); b: (Cout,).
    Returns bf16 NHWC of shape (N,H,W,Cout) or (N,H//2,W//2,Cout) if pool.
    """
    N, H, W, Cin = x_nhwc.shape
    Cout = w_hwio.shape[3]

    # Pad channels to a multiple of 8 (only the first RGB conv needs it);
    # zero weight/activation channels contribute nothing.
    pad_c = (-Cin) % 8
    if pad_c:
        x_nhwc = jnp.pad(x_nhwc, ((0, 0), (0, 0), (0, 0), (0, pad_c)))
        w_hwio = jnp.pad(w_hwio, ((0, 0), (0, 0), (0, pad_c), (0, 0)))
        Cin += pad_c

    # One spatial zero-pad per conv, done in bf16.
    # TODO(synk): fold the 1-px halo zeroing into the kernel to drop this
    # extra host-side HBM copy of the activation.
    xp = jnp.pad(x_nhwc, ((0, 0), (1, 1), (1, 1), (0, 0))).astype(jnp.bfloat16)
    wr = w_hwio.reshape(3, 3 * Cin, Cout).astype(jnp.bfloat16)
    b2 = b.reshape(1, Cout).astype(jnp.float32)

    TH = _pick_row_tile(H, W)
    if pool:
        assert H % 2 == 0 and W % 2 == 0 and TH % 2 == 0
    n_th = H // TH
    TCout = Cout if Cout <= 128 else 128      # Cout tiling for the 256-ch layer
    n_tc = Cout // TCout

    Ho, Wo = (H // 2, W // 2) if pool else (H, W)
    out_rows = TH // 2 if pool else TH

    kernel = functools.partial(_conv3x3_relu_kernel, TH=TH, W=W, pool=pool)
    return pl.pallas_call(
        kernel,
        out_shape=jax.ShapeDtypeStruct((N, Ho, Wo, Cout), jnp.bfloat16),
        grid=(N, n_th, n_tc),
        in_specs=[
            # Main TH-row window of the padded input (TH-row blocking).
            pl.BlockSpec((1, TH, W + 2, Cin), lambda n, th, tc: (n, th, 0, 0)),
            # 2-row halo window: same array, 2-row blocking, offset TH rows.
            pl.BlockSpec((1, 2, W + 2, Cin),
                         lambda n, th, tc: (n, th * (TH // 2) + TH // 2, 0, 0)),
            pl.BlockSpec((3, 3 * Cin, TCout), lambda n, th, tc: (0, 0, tc)),
            pl.BlockSpec((1, TCout), lambda n, th, tc: (0, tc)),
        ],
        out_specs=pl.BlockSpec((1, out_rows, Wo, TCout),
                               lambda n, th, tc: (n, th, 0, tc)),
        compiler_params=pltpu.CompilerParams(
            dimension_semantics=("parallel", "parallel", "parallel"),
            vmem_limit_bytes=64 * 1024 * 1024),
    )(xp, xp, wr, b2)


# --------------------------------------------------------------------------
# VGG19 slices 1-3 forward (pools fused into the preceding conv kernels).
# --------------------------------------------------------------------------
def vgg19_slices_forward(x_nchw, params):
    x = jnp.transpose(x_nchw, (0, 2, 3, 1))                      # NCHW -> NHWC

    (w11, b11), (w12, b12), (w21, b21), (w22, b22), (w31, b31) = params

    h_relu1 = conv3x3_relu(x, w11, b11)                          # slice1
    h = conv3x3_relu(h_relu1, w12, b12, pool=True)               # slice2: conv+relu+pool
    h_relu2 = conv3x3_relu(h, w21, b21)
    h = conv3x3_relu(h_relu2, w22, b22, pool=True)               # slice3: conv+relu+pool
    h_relu3 = conv3x3_relu(h, w31, b31)

    # Back to PyTorch's NCHW / float32 convention.
    return [jnp.transpose(t, (0, 3, 1, 2)).astype(jnp.float32)
            for t in (h_relu1, h_relu2, h_relu3)]


# --------------------------------------------------------------------------
# Pure-JAX f32 reference (for the numerical check).
# --------------------------------------------------------------------------
def _conv_ref(x, w, b):
    y = jax.lax.conv_general_dilated(
        x, w, window_strides=(1, 1), padding="SAME",
        dimension_numbers=("NHWC", "HWIO", "NHWC"))
    return jax.nn.relu(y + b)


def _pool_ref(x):
    return jax.lax.reduce_window(x, -jnp.inf, jax.lax.max,
                                 (1, 2, 2, 1), (1, 2, 2, 1), "VALID")


def vgg19_slices_reference(x_nchw, params):
    x = jnp.transpose(x_nchw, (0, 2, 3, 1)).astype(jnp.float32)
    (w11, b11), (w12, b12), (w21, b21), (w22, b22), (w31, b31) = params
    h1 = _conv_ref(x, w11, b11)
    h = _pool_ref(_conv_ref(h1, w12, b12))
    h2 = _conv_ref(h, w21, b21)
    h = _pool_ref(_conv_ref(h2, w22, b22))
    h3 = _conv_ref(h, w31, b31)
    return [jnp.transpose(t, (0, 3, 1, 2)) for t in (h1, h2, h3)]


def make_params(key):
    # Deterministic synthetic weights with VGG19 conv shapes (HWIO).
    shapes = [
        (3, 3, 3, 64),     # conv1_1
        (3, 3, 64, 64),    # conv1_2
        (3, 3, 64, 128),   # conv2_1
        (3, 3, 128, 128),  # conv2_2
        (3, 3, 128, 256),  # conv3_1
    ]
    params = []
    for i, s in enumerate(shapes):
        kw, kb = jax.random.split(jax.random.fold_in(key, i))
        fan_in = s[0] * s[1] * s[2]
        w = jax.random.normal(kw, s, jnp.float32) * (1.0 / math.sqrt(fan_in))
        b = jax.random.normal(kb, (s[3],), jnp.float32) * 0.01
        params.append((w, b))
    return params


if __name__ == "__main__":
    key = jax.random.PRNGKey(0)
    k_x, k_p = jax.random.split(key)

    # Small, VGG-consistent input: batch=2, 3 RGB channels, 16x16 spatial (NCHW).
    x = jax.random.normal(k_x, (2, 3, 16, 16), jnp.float32)
    params = make_params(k_p)

    fwd = jax.jit(vgg19_slices_forward)
    outs = fwd(x, params)
    jax.block_until_ready(outs)
    h_relu1, h_relu2, h_relu3 = outs

    assert h_relu1.shape == (2, 64, 16, 16)
    assert h_relu2.shape == (2, 128, 8, 8)
    assert h_relu3.shape == (2, 256, 4, 4)

    # Numerical check vs the pure-JAX f32 reference (loose tol: bf16 activations).
    refs = jax.jit(vgg19_slices_reference)(x, params)
    for got, ref in zip(outs, refs):
        assert jnp.allclose(got, ref, rtol=1e-1, atol=1e-1), (
            "max abs err = %f" % float(jnp.max(jnp.abs(got - ref))))

    print("KERNEL_OK")
</pallas_src>

<mosaic_0001>
module attributes {stable_mosaic.version = 11 : i64} {
  func.func @_conv3x3_relu_kernel(%arg0: i32, %arg1: i32, %arg2: i32, %arg3: memref<1x16x18x8xbf16, #tpu.memory_space<vmem>>, %arg4: memref<1x2x18x8xbf16, #tpu.memory_space<vmem>>, %arg5: memref<3x24x64xbf16, #tpu.memory_space<vmem>>, %arg6: memref<1x64xf32, #tpu.memory_space<vmem>>, %arg7: memref<1x16x16x64xbf16, #tpu.memory_space<vmem>>) attributes {dimension_semantics = [#tpu.dimension_semantics<parallel>, #tpu.dimension_semantics<parallel>, #tpu.dimension_semantics<parallel>], iteration_bounds = array<i64: 2, 1, 1>, scalar_prefetch = 0 : i64, scratch_operands = 0 : i64, tpu.core_type = #tpu.core_type<tc>, window_params = [{transform_indices = @transform_0, window_bounds = array<i64: 1, 16, 18, 8>}, {transform_indices = @transform_1, window_bounds = array<i64: 1, 2, 18, 8>}, {transform_indices = @transform_2, window_bounds = array<i64: 3, 24, 64>}, {transform_indices = @transform_3, window_bounds = array<i64: 1, 64>}, {transform_indices = @transform_4, window_bounds = array<i64: 1, 16, 16, 64>}]} {
    %c0 = arith.constant 0 : index
    %c0_0 = arith.constant 0 : index
    %c0_1 = arith.constant 0 : index
    %c0_2 = arith.constant 0 : index
    %0 = vector.load %arg3[%c0, %c0_0, %c0_1, %c0_2] : memref<1x16x18x8xbf16, #tpu.memory_space<vmem>>, vector<1x16x18x8xbf16>
    %1 = vector.shape_cast %0 : vector<1x16x18x8xbf16> to vector<16x18x8xbf16>
    %c0_3 = arith.constant 0 : index
    %c0_4 = arith.constant 0 : index
    %c0_5 = arith.constant 0 : index
    %c0_6 = arith.constant 0 : index
    %2 = vector.load %arg4[%c0_3, %c0_4, %c0_5, %c0_6] : memref<1x2x18x8xbf16, #tpu.memory_space<vmem>>, vector<1x2x18x8xbf16>
    %3 = vector.shape_cast %2 : vector<1x2x18x8xbf16> to vector<2x18x8xbf16>
    %4 = tpu.concatenate %1, %3 in 0 : vector<16x18x8xbf16>, vector<2x18x8xbf16> -> vector<18x18x8xbf16>
    %cst = arith.constant 0.000000e+00 : f32
    %5 = vector.broadcast %cst : f32 to vector<256x64xf32>
    %6 = vector.extract_strided_slice %4 {offsets = [0, 0, 0], sizes = [16, 18, 8], strides = [1, 1, 1]} : vector<18x18x8xbf16> to vector<16x18x8xbf16>
    %7 = vector.extract_strided_slice %6 {offsets = [0, 0, 0], sizes = [16, 16, 8], strides = [1, 1, 1]} : vector<16x18x8xbf16> to vector<16x16x8xbf16>
    %8 = vector.extract_strided_slice %6 {offsets = [0, 1, 0], sizes = [16, 16, 8], strides = [1, 1, 1]} : vector<16x18x8xbf16> to vector<16x16x8xbf16>
    %9 = vector.extract_strided_slice %6 {offsets = [0, 2, 0], sizes = [16, 16, 8], strides = [1, 1, 1]} : vector<16x18x8xbf16> to vector<16x16x8xbf16>
    %10 = tpu.concatenate %7, %8, %9 in 2 : vector<16x16x8xbf16>, vector<16x16x8xbf16>, vector<16x16x8xbf16> -> vector<16x16x24xbf16>
    %11 = vector.shape_cast %10 : vector<16x16x24xbf16> to vector<256x24xbf16>
    %c0_7 = arith.constant 0 : index
    %c0_8 = arith.constant 0 : index
    %c0_9 = arith.constant 0 : index
    %12 = vector.load %arg5[%c0_7, %c0_8, %c0_9] : memref<3x24x64xbf16, #tpu.memory_space<vmem>>, vector<1x24x64xbf16>
    %13 = vector.shape_cast %12 : vector<1x24x64xbf16> to vector<24x64xbf16>
    %cst_10 = arith.constant dense<0.000000e+00> : vector<256x64xf32>
    %14 = tpu.matmul %11, %13, %cst_10 {dimension_numbers = #tpu.dot_dimension_numbers<[1], [0], [0], [1], [0, 0, 1, 1], [], []>} : vector<256x24xbf16>, vector<24x64xbf16>, vector<256x64xf32> -> vector<256x64xf32>
    %15 = arith.addf %5, %14 : vector<256x64xf32>
    %16 = vector.extract_strided_slice %4 {offsets = [1, 0, 0], sizes = [16, 18, 8], strides = [1, 1, 1]} : vector<18x18x8xbf16> to vector<16x18x8xbf16>
    %17 = vector.extract_strided_slice %16 {offsets = [0, 0, 0], sizes = [16, 16, 8], strides = [1, 1, 1]} : vector<16x18x8xbf16> to vector<16x16x8xbf16>
    %18 = vector.extract_strided_slice %16 {offsets = [0, 1, 0], sizes = [16, 16, 8], strides = [1, 1, 1]} : vector<16x18x8xbf16> to vector<16x16x8xbf16>
    %19 = vector.extract_strided_slice %16 {offsets = [0, 2, 0], sizes = [16, 16, 8], strides = [1, 1, 1]} : vector<16x18x8xbf16> to vector<16x16x8xbf16>
    %20 = tpu.concatenate %17, %18, %19 in 2 : vector<16x16x8xbf16>, vector<16x16x8xbf16>, vector<16x16x8xbf16> -> vector<16x16x24xbf16>
    %21 = vector.shape_cast %20 : vector<16x16x24xbf16> to vector<256x24xbf16>
    %c1 = arith.constant 1 : index
    %c0_11 = arith.constant 0 : index
    %c0_12 = arith.constant 0 : index
    %22 = vector.load %arg5[%c1, %c0_11, %c0_12] : memref<3x24x64xbf16, #tpu.memory_space<vmem>>, vector<1x24x64xbf16>
    %23 = vector.shape_cast %22 : vector<1x24x64xbf16> to vector<24x64xbf16>
    %cst_13 = arith.constant dense<0.000000e+00> : vector<256x64xf32>
    %24 = tpu.matmul %21, %23, %cst_13 {dimension_numbers = #tpu.dot_dimension_numbers<[1], [0], [0], [1], [0, 0, 1, 1], [], []>} : vector<256x24xbf16>, vector<24x64xbf16>, vector<256x64xf32> -> vector<256x64xf32>
    %25 = arith.addf %15, %24 : vector<256x64xf32>
    %26 = vector.extract_strided_slice %4 {offsets = [2, 0, 0], sizes = [16, 18, 8], strides = [1, 1, 1]} : vector<18x18x8xbf16> to vector<16x18x8xbf16>
    %27 = vector.extract_strided_slice %26 {offsets = [0, 0, 0], sizes = [16, 16, 8], strides = [1, 1, 1]} : vector<16x18x8xbf16> to vector<16x16x8xbf16>
    %28 = vector.extract_strided_slice %26 {offsets = [0, 1, 0], sizes = [16, 16, 8], strides = [1, 1, 1]} : vector<16x18x8xbf16> to vector<16x16x8xbf16>
    %29 = vector.extract_strided_slice %26 {offsets = [0, 2, 0], sizes = [16, 16, 8], strides = [1, 1, 1]} : vector<16x18x8xbf16> to vector<16x16x8xbf16>
    %30 = tpu.concatenate %27, %28, %29 in 2 : vector<16x16x8xbf16>, vector<16x16x8xbf16>, vector<16x16x8xbf16> -> vector<16x16x24xbf16>
    %31 = vector.shape_cast %30 : vector<16x16x24xbf16> to vector<256x24xbf16>
    %c2 = arith.constant 2 : index
    %c0_14 = arith.constant 0 : index
    %c0_15 = arith.constant 0 : index
    %32 = vector.load %arg5[%c2, %c0_14, %c0_15] : memref<3x24x64xbf16, #tpu.memory_space<vmem>>, vector<1x24x64xbf16>
    %33 = vector.shape_cast %32 : vector<1x24x64xbf16> to vector<24x64xbf16>
    %cst_16 = arith.constant dense<0.000000e+00> : vector<256x64xf32>
    %34 = tpu.matmul %31, %33, %cst_16 {dimension_numbers = #tpu.dot_dimension_numbers<[1], [0], [0], [1], [0, 0, 1, 1], [], []>} : vector<256x24xbf16>, vector<24x64xbf16>, vector<256x64xf32> -> vector<256x64xf32>
    %35 = arith.addf %25, %34 : vector<256x64xf32>
    %c0_17 = arith.constant 0 : index
    %c0_18 = arith.constant 0 : index
    %36 = vector.load %arg6[%c0_17, %c0_18] : memref<1x64xf32, #tpu.memory_space<vmem>>, vector<1x64xf32>
    %37 = vector.broadcast %36 : vector<1x64xf32> to vector<256x64xf32>
    %38 = arith.addf %35, %37 : vector<256x64xf32>
    %cst_19 = arith.constant 0.000000e+00 : f32
    %39 = vector.broadcast %cst_19 : f32 to vector<256x64xf32>
    %40 = arith.maximumf %38, %39 : vector<256x64xf32>
    %41 = vector.shape_cast %40 : vector<256x64xf32> to vector<16x16x64xf32>
    %42 = arith.truncf %41 : vector<16x16x64xf32> to vector<16x16x64xbf16>
    %c0_20 = arith.constant 0 : index
    %c0_21 = arith.constant 0 : index
    %c0_22 = arith.constant 0 : index
    %c0_23 = arith.constant 0 : index
    %43 = vector.load %arg7[%c0_20, %c0_21, %c0_22, %c0_23] : memref<1x16x16x64xbf16, #tpu.memory_space<vmem>>, vector<1x16x16x64xbf16>
    %44 = vector.shape_cast %43 : vector<1x16x16x64xbf16> to vector<16x16x64xbf16>
    %45 = vector.shape_cast %42 : vector<16x16x64xbf16> to vector<1x16x16x64xbf16>
    tpu.vector_store %arg7[%c0_20, %c0_21, %c0_22, %c0_23], %45 {strides = array<i32>} : memref<1x16x16x64xbf16, #tpu.memory_space<vmem>>, vector<1x16x16x64xbf16>,
    return
  }
  func.func @transform_0(%arg0: i32, %arg1: i32, %arg2: i32) -> (i32, i32, i32, i32) {
    %c0_i32 = arith.constant 0 : i32
    %c0_i32_0 = arith.constant 0 : i32
    %c0_i32_1 = arith.constant 0 : i32
    return %arg0, %arg1, %c0_i32, %c0_i32_0 : i32, i32, i32, i32
  }
  func.func @transform_1(%arg0: i32, %arg1: i32, %arg2: i32) -> (i32, i32, i32, i32) {
    %c8_i32 = arith.constant 8 : i32
    %0 = arith.muli %arg1, %c8_i32 : i32
    %c8_i32_0 = arith.constant 8 : i32
    %1 = arith.addi %0, %c8_i32_0 : i32
    %c0_i32 = arith.constant 0 : i32
    %c0_i32_1 = arith.constant 0 : i32
    %c0_i32_2 = arith.constant 0 : i32
    return %arg0, %1, %c0_i32, %c0_i32_1 : i32, i32, i32, i32
  }
  func.func @transform_2(%arg0: i32, %arg1: i32, %arg2: i32) -> (i32, i32, i32) {
    %c0_i32 = arith.constant 0 : i32
    %c0_i32_0 = arith.constant 0 : i32
    %c0_i32_1 = arith.constant 0 : i32
    return %c0_i32, %c0_i32_0, %arg2 : i32, i32, i32
  }
  func.func @transform_3(%arg0: i32, %arg1: i32, %arg2: i32) -> (i32, i32) {
    %c0_i32 = arith.constant 0 : i32
    %c0_i32_0 = arith.constant 0 : i32
    return %c0_i32, %arg2 : i32, i32
  }
  func.func @transform_4(%arg0: i32, %arg1: i32, %arg2: i32) -> (i32, i32, i32, i32) {
    %c0_i32 = arith.constant 0 : i32
    %c0_i32_0 = arith.constant 0 : i32
    return %arg0, %arg1, %c0_i32, %arg2 : i32, i32, i32, i32
  }
}

module attributes {stable_mosaic.version = 11 : i64} {
  func.func @_conv3x3_relu_kernel(%arg0: i32, %arg1: i32, %arg2: i32, %arg3: memref<1x16x18x64xbf16, #tpu.memory_space<vmem>>, %arg4: memref<1x2x18x64xbf16, #tpu.memory_space<vmem>>, %arg5: memref<3x192x64xbf16, #tpu.memory_space<vmem>>, %arg6: memref<1x64xf32, #tpu.memory_space<vmem>>, %arg7: memref<1x8x8x64xbf16, #tpu.memory_space<vmem>>) attributes {dimension_semantics = [#tpu.dimension_semantics<parallel>, #tpu.dimension_semantics<parallel>, #tpu.dimension_semantics<parallel>], iteration_bounds = array<i64: 2, 1, 1>, scalar_prefetch = 0 : i64, scratch_operands = 0 : i64, tpu.core_type = #tpu.core_type<tc>, window_params = [{transform_indices = @transform_0, window_bounds = array<i64: 1, 16, 18, 64>}, {transform_indices = @transform_1, window_bounds = array<i64: 1, 2, 18, 64>}, {transform_indices = @transform_2, window_bounds = array<i64: 3, 192, 64>}, {transform_indices = @transform_3, window_bounds = array<i64: 1, 64>}, {transform_indices = @transform_4, window_bounds = array<i64: 1, 8, 8, 64>}]} {
    %c0 = arith.constant 0 : index
    %c0_0 = arith.constant 0 : index
    %c0_1 = arith.constant 0 : index
    %c0_2 = arith.constant 0 : index
    %0 = vector.load %arg3[%c0, %c0_0, %c0_1, %c0_2] : memref<1x16x18x64xbf16, #tpu.memory_space<vmem>>, vector<1x16x18x64xbf16>
    %1 = vector.shape_cast %0 : vector<1x16x18x64xbf16> to vector<16x18x64xbf16>
    %c0_3 = arith.constant 0 : index
    %c0_4 = arith.constant 0 : index
    %c0_5 = arith.constant 0 : index
    %c0_6 = arith.constant 0 : index
    %2 = vector.load %arg4[%c0_3, %c0_4, %c0_5, %c0_6] : memref<1x2x18x64xbf16, #tpu.memory_space<vmem>>, vector<1x2x18x64xbf16>
    %3 = vector.shape_cast %2 : vector<1x2x18x64xbf16> to vector<2x18x64xbf16>
    %4 = tpu.concatenate %1, %3 in 0 : vector<16x18x64xbf16>, vector<2x18x64xbf16> -> vector<18x18x64xbf16>
    %cst = arith.constant 0.000000e+00 : f32
    %5 = vector.broadcast %cst : f32 to vector<256x64xf32>
    %6 = vector.extract_strided_slice %4 {offsets = [0, 0, 0], sizes = [16, 18, 64], strides = [1, 1, 1]} : vector<18x18x64xbf16> to vector<16x18x64xbf16>
    %7 = vector.extract_strided_slice %6 {offsets = [0, 0, 0], sizes = [16, 16, 64], strides = [1, 1, 1]} : vector<16x18x64xbf16> to vector<16x16x64xbf16>
    %8 = vector.extract_strided_slice %6 {offsets = [0, 1, 0], sizes = [16, 16, 64], strides = [1, 1, 1]} : vector<16x18x64xbf16> to vector<16x16x64xbf16>
    %9 = vector.extract_strided_slice %6 {offsets = [0, 2, 0], sizes = [16, 16, 64], strides = [1, 1, 1]} : vector<16x18x64xbf16> to vector<16x16x64xbf16>
    %10 = tpu.concatenate %7, %8, %9 in 2 : vector<16x16x64xbf16>, vector<16x16x64xbf16>, vector<16x16x64xbf16> -> vector<16x16x192xbf16>
    %11 = vector.shape_cast %10 : vector<16x16x192xbf16> to vector<256x192xbf16>
    %c0_7 = arith.constant 0 : index
    %c0_8 = arith.constant 0 : index
    %c0_9 = arith.constant 0 : index
    %12 = vector.load %arg5[%c0_7, %c0_8, %c0_9] : memref<3x192x64xbf16, #tpu.memory_space<vmem>>, vector<1x192x64xbf16>
    %13 = vector.shape_cast %12 : vector<1x192x64xbf16> to vector<192x64xbf16>
    %cst_10 = arith.constant dense<0.000000e+00> : vector<256x64xf32>
    %14 = tpu.matmul %11, %13, %cst_10 {dimension_numbers = #tpu.dot_dimension_numbers<[1], [0], [0], [1], [0, 0, 1, 1], [], []>} : vector<256x192xbf16>, vector<192x64xbf16>, vector<256x64xf32> -> vector<256x64xf32>
    %15 = arith.addf %5, %14 : vector<256x64xf32>
    %16 = vector.extract_strided_slice %4 {offsets = [1, 0, 0], sizes = [16, 18, 64], strides = [1, 1, 1]} : vector<18x18x64xbf16> to vector<16x18x64xbf16>
    %17 = vector.extract_strided_slice %16 {offsets = [0, 0, 0], sizes = [16, 16, 64], strides = [1, 1, 1]} : vector<16x18x64xbf16> to vector<16x16x64xbf16>
    %18 = vector.extract_strided_slice %16 {offsets = [0, 1, 0], sizes = [16, 16, 64], strides = [1, 1, 1]} : vector<16x18x64xbf16> to vector<16x16x64xbf16>
    %19 = vector.extract_strided_slice %16 {offsets = [0, 2, 0], sizes = [16, 16, 64], strides = [1, 1, 1]} : vector<16x18x64xbf16> to vector<16x16x64xbf16>
    %20 = tpu.concatenate %17, %18, %19 in 2 : vector<16x16x64xbf16>, vector<16x16x64xbf16>, vector<16x16x64xbf16> -> vector<16x16x192xbf16>
    %21 = vector.shape_cast %20 : vector<16x16x192xbf16> to vector<256x192xbf16>
    %c1 = arith.constant 1 : index
    %c0_11 = arith.constant 0 : index
    %c0_12 = arith.constant 0 : index
    %22 = vector.load %arg5[%c1, %c0_11, %c0_12] : memref<3x192x64xbf16, #tpu.memory_space<vmem>>, vector<1x192x64xbf16>
    %23 = vector.shape_cast %22 : vector<1x192x64xbf16> to vector<192x64xbf16>
    %cst_13 = arith.constant dense<0.000000e+00> : vector<256x64xf32>
    %24 = tpu.matmul %21, %23, %cst_13 {dimension_numbers = #tpu.dot_dimension_numbers<[1], [0], [0], [1], [0, 0, 1, 1], [], []>} : vector<256x192xbf16>, vector<192x64xbf16>, vector<256x64xf32> -> vector<256x64xf32>
    %25 = arith.addf %15, %24 : vector<256x64xf32>
    %26 = vector.extract_strided_slice %4 {offsets = [2, 0, 0], sizes = [16, 18, 64], strides = [1, 1, 1]} : vector<18x18x64xbf16> to vector<16x18x64xbf16>
    %27 = vector.extract_strided_slice %26 {offsets = [0, 0, 0], sizes = [16, 16, 64], strides = [1, 1, 1]} : vector<16x18x64xbf16> to vector<16x16x64xbf16>
    %28 = vector.extract_strided_slice %26 {offsets = [0, 1, 0], sizes = [16, 16, 64], strides = [1, 1, 1]} : vector<16x18x64xbf16> to vector<16x16x64xbf16>
    %29 = vector.extract_strided_slice %26 {offsets = [0, 2, 0], sizes = [16, 16, 64], strides = [1, 1, 1]} : vector<16x18x64xbf16> to vector<16x16x64xbf16>
    %30 = tpu.concatenate %27, %28, %29 in 2 : vector<16x16x64xbf16>, vector<16x16x64xbf16>, vector<16x16x64xbf16> -> vector<16x16x192xbf16>
    %31 = vector.shape_cast %30 : vector<16x16x192xbf16> to vector<256x192xbf16>
    %c2 = arith.constant 2 : index
    %c0_14 = arith.constant 0 : index
    %c0_15 = arith.constant 0 : index
    %32 = vector.load %arg5[%c2, %c0_14, %c0_15] : memref<3x192x64xbf16, #tpu.memory_space<vmem>>, vector<1x192x64xbf16>
    %33 = vector.shape_cast %32 : vector<1x192x64xbf16> to vector<192x64xbf16>
    %cst_16 = arith.constant dense<0.000000e+00> : vector<256x64xf32>
    %34 = tpu.matmul %31, %33, %cst_16 {dimension_numbers = #tpu.dot_dimension_numbers<[1], [0], [0], [1], [0, 0, 1, 1], [], []>} : vector<256x192xbf16>, vector<192x64xbf16>, vector<256x64xf32> -> vector<256x64xf32>
    %35 = arith.addf %25, %34 : vector<256x64xf32>
    %c0_17 = arith.constant 0 : index
    %c0_18 = arith.constant 0 : index
    %36 = vector.load %arg6[%c0_17, %c0_18] : memref<1x64xf32, #tpu.memory_space<vmem>>, vector<1x64xf32>
    %37 = vector.broadcast %36 : vector<1x64xf32> to vector<256x64xf32>
    %38 = arith.addf %35, %37 : vector<256x64xf32>
    %cst_19 = arith.constant 0.000000e+00 : f32
    %39 = vector.broadcast %cst_19 : f32 to vector<256x64xf32>
    %40 = arith.maximumf %38, %39 : vector<256x64xf32>
    %41 = vector.shape_cast %40 : vector<256x64xf32> to vector<16x16x64xf32>
    %42 = vector.shape_cast %41 : vector<16x16x64xf32> to vector<8x2x16x64xf32>
    %43 = vector.extract_strided_slice %42 {offsets = [0, 0, 0, 0], sizes = [8, 1, 16, 64], strides = [1, 1, 1, 1]} : vector<8x2x16x64xf32> to vector<8x1x16x64xf32>
    %44 = vector.shape_cast %43 : vector<8x1x16x64xf32> to vector<8x16x64xf32>
    %45 = vector.extract_strided_slice %42 {offsets = [0, 1, 0, 0], sizes = [8, 1, 16, 64], strides = [1, 1, 1, 1]} : vector<8x2x16x64xf32> to vector<8x1x16x64xf32>
    %46 = vector.shape_cast %45 : vector<8x1x16x64xf32> to vector<8x16x64xf32>
    %47 = arith.maximumf %44, %46 : vector<8x16x64xf32>
    %48 = vector.shape_cast %47 : vector<8x16x64xf32> to vector<8x8x2x64xf32>
    %49 = vector.extract_strided_slice %48 {offsets = [0, 0, 0, 0], sizes = [8, 8, 1, 64], strides = [1, 1, 1, 1]} : vector<8x8x2x64xf32> to vector<8x8x1x64xf32>
    %50 = vector.shape_cast %49 : vector<8x8x1x64xf32> to vector<8x8x64xf32>
    %51 = vector.extract_strided_slice %48 {offsets = [0, 0, 1, 0], sizes = [8, 8, 1, 64], strides = [1, 1, 1, 1]} : vector<8x8x2x64xf32> to vector<8x8x1x64xf32>
    %52 = vector.shape_cast %51 : vector<8x8x1x64xf32> to vector<8x8x64xf32>
    %53 = arith.maximumf %50, %52 : vector<8x8x64xf32>
    %54 = arith.truncf %53 : vector<8x8x64xf32> to vector<8x8x64xbf16>
    %c0_20 = arith.constant 0 : index
    %c0_21 = arith.constant 0 : index
    %c0_22 = arith.constant 0 : index
    %c0_23 = arith.constant 0 : index
    %55 = vector.load %arg7[%c0_20, %c0_21, %c0_22, %c0_23] : memref<1x8x8x64xbf16, #tpu.memory_space<vmem>>, vector<1x8x8x64xbf16>
    %56 = vector.shape_cast %55 : vector<1x8x8x64xbf16> to vector<8x8x64xbf16>
    %57 = vector.shape_cast %54 : vector<8x8x64xbf16> to vector<1x8x8x64xbf16>
    tpu.vector_store %arg7[%c0_20, %c0_21, %c0_22, %c0_23], %57 {strides = array<i32>} : memref<1x8x8x64xbf16, #tpu.memory_space<vmem>>, vector<1x8x8x64xbf16>,
    return
  }
  func.func @transform_0(%arg0: i32, %arg1: i32, %arg2: i32) -> (i32, i32, i32, i32) {
    %c0_i32 = arith.constant 0 : i32
    %c0_i32_0 = arith.constant 0 : i32
    %c0_i32_1 = arith.constant 0 : i32
    return %arg0, %arg1, %c0_i32, %c0_i32_0 : i32, i32, i32, i32
  }
  func.func @transform_1(%arg0: i32, %arg1: i32, %arg2: i32) -> (i32, i32, i32, i32) {
    %c8_i32 = arith.constant 8 : i32
    %0 = arith.muli %arg1, %c8_i32 : i32
    %c8_i32_0 = arith.constant 8 : i32
    %1 = arith.addi %0, %c8_i32_0 : i32
    %c0_i32 = arith.constant 0 : i32
    %c0_i32_1 = arith.constant 0 : i32
    %c0_i32_2 = arith.constant 0 : i32
    return %arg0, %1, %c0_i32, %c0_i32_1 : i32, i32, i32, i32
  }
  func.func @transform_2(%arg0: i32, %arg1: i32, %arg2: i32) -> (i32, i32, i32) {
    %c0_i32 = arith.constant 0 : i32
    %c0_i32_0 = arith.constant 0 : i32
    %c0_i32_1 = arith.constant 0 : i32
    return %c0_i32, %c0_i32_0, %arg2 : i32, i32, i32
  }
  func.func @transform_3(%arg0: i32, %arg1: i32, %arg2: i32) -> (i32, i32) {
    %c0_i32 = arith.constant 0 : i32
    %c0_i32_0 = arith.constant 0 : i32
    return %c0_i32, %arg2 : i32, i32
  }
  func.func @transform_4(%arg0: i32, %arg1: i32, %arg2: i32) -> (i32, i32, i32, i32) {
    %c0_i32 = arith.constant 0 : i32
    %c0_i32_0 = arith.constant 0 : i32
    return %arg0, %arg1, %c0_i32, %arg2 : i32, i32, i32, i32
  }
}

module attributes {stable_mosaic.version = 11 : i64} {
  func.func @_conv3x3_relu_kernel(%arg0: i32, %arg1: i32, %arg2: i32, %arg3: memref<1x8x10x64xbf16, #tpu.memory_space<vmem>>, %arg4: memref<1x2x10x64xbf16, #tpu.memory_space<vmem>>, %arg5: memref<3x192x128xbf16, #tpu.memory_space<vmem>>, %arg6: memref<1x128xf32, #tpu.memory_space<vmem>>, %arg7: memref<1x8x8x128xbf16, #tpu.memory_space<vmem>>) attributes {dimension_semantics = [#tpu.dimension_semantics<parallel>, #tpu.dimension_semantics<parallel>, #tpu.dimension_semantics<parallel>], iteration_bounds = array<i64: 2, 1, 1>, scalar_prefetch = 0 : i64, scratch_operands = 0 : i64, tpu.core_type = #tpu.core_type<tc>, window_params = [{transform_indices = @transform_0, window_bounds = array<i64: 1, 8, 10, 64>}, {transform_indices = @transform_1, window_bounds = array<i64: 1, 2, 10, 64>}, {transform_indices = @transform_2, window_bounds = array<i64: 3, 192, 128>}, {transform_indices = @transform_3, window_bounds = array<i64: 1, 128>}, {transform_indices = @transform_4, window_bounds = array<i64: 1, 8, 8, 128>}]} {
    %c0 = arith.constant 0 : index
    %c0_0 = arith.constant 0 : index
    %c0_1 = arith.constant 0 : index
    %c0_2 = arith.constant 0 : index
    %0 = vector.load %arg3[%c0, %c0_0, %c0_1, %c0_2] : memref<1x8x10x64xbf16, #tpu.memory_space<vmem>>, vector<1x8x10x64xbf16>
    %1 = vector.shape_cast %0 : vector<1x8x10x64xbf16> to vector<8x10x64xbf16>
    %c0_3 = arith.constant 0 : index
    %c0_4 = arith.constant 0 : index
    %c0_5 = arith.constant 0 : index
    %c0_6 = arith.constant 0 : index
    %2 = vector.load %arg4[%c0_3, %c0_4, %c0_5, %c0_6] : memref<1x2x10x64xbf16, #tpu.memory_space<vmem>>, vector<1x2x10x64xbf16>
    %3 = vector.shape_cast %2 : vector<1x2x10x64xbf16> to vector<2x10x64xbf16>
    %4 = tpu.concatenate %1, %3 in 0 : vector<8x10x64xbf16>, vector<2x10x64xbf16> -> vector<10x10x64xbf16>
    %cst = arith.constant 0.000000e+00 : f32
    %5 = vector.broadcast %cst : f32 to vector<64x128xf32>
    %6 = vector.extract_strided_slice %4 {offsets = [0, 0, 0], sizes = [8, 10, 64], strides = [1, 1, 1]} : vector<10x10x64xbf16> to vector<8x10x64xbf16>
    %7 = vector.extract_strided_slice %6 {offsets = [0, 0, 0], sizes = [8, 8, 64], strides = [1, 1, 1]} : vector<8x10x64xbf16> to vector<8x8x64xbf16>
    %8 = vector.extract_strided_slice %6 {offsets = [0, 1, 0], sizes = [8, 8, 64], strides = [1, 1, 1]} : vector<8x10x64xbf16> to vector<8x8x64xbf16>
    %9 = vector.extract_strided_slice %6 {offsets = [0, 2, 0], sizes = [8, 8, 64], strides = [1, 1, 1]} : vector<8x10x64xbf16> to vector<8x8x64xbf16>
    %10 = tpu.concatenate %7, %8, %9 in 2 : vector<8x8x64xbf16>, vector<8x8x64xbf16>, vector<8x8x64xbf16> -> vector<8x8x192xbf16>
    %11 = vector.shape_cast %10 : vector<8x8x192xbf16> to vector<64x192xbf16>
    %c0_7 = arith.constant 0 : index
    %c0_8 = arith.constant 0 : index
    %c0_9 = arith.constant 0 : index
    %12 = vector.load %arg5[%c0_7, %c0_8, %c0_9] : memref<3x192x128xbf16, #tpu.memory_space<vmem>>, vector<1x192x128xbf16>
    %13 = vector.shape_cast %12 : vector<1x192x128xbf16> to vector<192x128xbf16>
    %cst_10 = arith.constant dense<0.000000e+00> : vector<64x128xf32>
    %14 = tpu.matmul %11, %13, %cst_10 {dimension_numbers = #tpu.dot_dimension_numbers<[1], [0], [0], [1], [0, 0, 1, 1], [], []>} : vector<64x192xbf16>, vector<192x128xbf16>, vector<64x128xf32> -> vector<64x128xf32>
    %15 = arith.addf %5, %14 : vector<64x128xf32>
    %16 = vector.extract_strided_slice %4 {offsets = [1, 0, 0], sizes = [8, 10, 64], strides = [1, 1, 1]} : vector<10x10x64xbf16> to vector<8x10x64xbf16>
    %17 = vector.extract_strided_slice %16 {offsets = [0, 0, 0], sizes = [8, 8, 64], strides = [1, 1, 1]} : vector<8x10x64xbf16> to vector<8x8x64xbf16>
    %18 = vector.extract_strided_slice %16 {offsets = [0, 1, 0], sizes = [8, 8, 64], strides = [1, 1, 1]} : vector<8x10x64xbf16> to vector<8x8x64xbf16>
    %19 = vector.extract_strided_slice %16 {offsets = [0, 2, 0], sizes = [8, 8, 64], strides = [1, 1, 1]} : vector<8x10x64xbf16> to vector<8x8x64xbf16>
    %20 = tpu.concatenate %17, %18, %19 in 2 : vector<8x8x64xbf16>, vector<8x8x64xbf16>, vector<8x8x64xbf16> -> vector<8x8x192xbf16>
    %21 = vector.shape_cast %20 : vector<8x8x192xbf16> to vector<64x192xbf16>
    %c1 = arith.constant 1 : index
    %c0_11 = arith.constant 0 : index
    %c0_12 = arith.constant 0 : index
    %22 = vector.load %arg5[%c1, %c0_11, %c0_12] : memref<3x192x128xbf16, #tpu.memory_space<vmem>>, vector<1x192x128xbf16>
    %23 = vector.shape_cast %22 : vector<1x192x128xbf16> to vector<192x128xbf16>
    %cst_13 = arith.constant dense<0.000000e+00> : vector<64x128xf32>
    %24 = tpu.matmul %21, %23, %cst_13 {dimension_numbers = #tpu.dot_dimension_numbers<[1], [0], [0], [1], [0, 0, 1, 1], [], []>} : vector<64x192xbf16>, vector<192x128xbf16>, vector<64x128xf32> -> vector<64x128xf32>
    %25 = arith.addf %15, %24 : vector<64x128xf32>
    %26 = vector.extract_strided_slice %4 {offsets = [2, 0, 0], sizes = [8, 10, 64], strides = [1, 1, 1]} : vector<10x10x64xbf16> to vector<8x10x64xbf16>
    %27 = vector.extract_strided_slice %26 {offsets = [0, 0, 0], sizes = [8, 8, 64], strides = [1, 1, 1]} : vector<8x10x64xbf16> to vector<8x8x64xbf16>
    %28 = vector.extract_strided_slice %26 {offsets = [0, 1, 0], sizes = [8, 8, 64], strides = [1, 1, 1]} : vector<8x10x64xbf16> to vector<8x8x64xbf16>
    %29 = vector.extract_strided_slice %26 {offsets = [0, 2, 0], sizes = [8, 8, 64], strides = [1, 1, 1]} : vector<8x10x64xbf16> to vector<8x8x64xbf16>
    %30 = tpu.concatenate %27, %28, %29 in 2 : vector<8x8x64xbf16>, vector<8x8x64xbf16>, vector<8x8x64xbf16> -> vector<8x8x192xbf16>
    %31 = vector.shape_cast %30 : vector<8x8x192xbf16> to vector<64x192xbf16>
    %c2 = arith.constant 2 : index
    %c0_14 = arith.constant 0 : index
    %c0_15 = arith.constant 0 : index
    %32 = vector.load %arg5[%c2, %c0_14, %c0_15] : memref<3x192x128xbf16, #tpu.memory_space<vmem>>, vector<1x192x128xbf16>
    %33 = vector.shape_cast %32 : vector<1x192x128xbf16> to vector<192x128xbf16>
    %cst_16 = arith.constant dense<0.000000e+00> : vector<64x128xf32>
    %34 = tpu.matmul %31, %33, %cst_16 {dimension_numbers = #tpu.dot_dimension_numbers<[1], [0], [0], [1], [0, 0, 1, 1], [], []>} : vector<64x192xbf16>, vector<192x128xbf16>, vector<64x128xf32> -> vector<64x128xf32>
    %35 = arith.addf %25, %34 : vector<64x128xf32>
    %c0_17 = arith.constant 0 : index
    %c0_18 = arith.constant 0 : index
    %36 = vector.load %arg6[%c0_17, %c0_18] : memref<1x128xf32, #tpu.memory_space<vmem>>, vector<1x128xf32>
    %37 = vector.broadcast %36 : vector<1x128xf32> to vector<64x128xf32>
    %38 = arith.addf %35, %37 : vector<64x128xf32>
    %cst_19 = arith.constant 0.000000e+00 : f32
    %39 = vector.broadcast %cst_19 : f32 to vector<64x128xf32>
    %40 = arith.maximumf %38, %39 : vector<64x128xf32>
    %41 = vector.shape_cast %40 : vector<64x128xf32> to vector<8x8x128xf32>
    %42 = arith.truncf %41 : vector<8x8x128xf32> to vector<8x8x128xbf16>
    %c0_20 = arith.constant 0 : index
    %c0_21 = arith.constant 0 : index
    %c0_22 = arith.constant 0 : index
    %c0_23 = arith.constant 0 : index
    %43 = vector.load %arg7[%c0_20, %c0_21, %c0_22, %c0_23] : memref<1x8x8x128xbf16, #tpu.memory_space<vmem>>, vector<1x8x8x128xbf16>
    %44 = vector.shape_cast %43 : vector<1x8x8x128xbf16> to vector<8x8x128xbf16>
    %45 = vector.shape_cast %42 : vector<8x8x128xbf16> to vector<1x8x8x128xbf16>
    tpu.vector_store %arg7[%c0_20, %c0_21, %c0_22, %c0_23], %45 {strides = array<i32>} : memref<1x8x8x128xbf16, #tpu.memory_space<vmem>>, vector<1x8x8x128xbf16>,
    return
  }
  func.func @transform_0(%arg0: i32, %arg1: i32, %arg2: i32) -> (i32, i32, i32, i32) {
    %c0_i32 = arith.constant 0 : i32
    %c0_i32_0 = arith.constant 0 : i32
    %c0_i32_1 = arith.constant 0 : i32
    return %arg0, %arg1, %c0_i32, %c0_i32_0 : i32, i32, i32, i32
  }
  func.func @transform_1(%arg0: i32, %arg1: i32, %arg2: i32) -> (i32, i32, i32, i32) {
    %c4_i32 = arith.constant 4 : i32
    %0 = arith.muli %arg1, %c4_i32 : i32
    %c4_i32_0 = arith.constant 4 : i32
    %1 = arith.addi %0, %c4_i32_0 : i32
    %c0_i32 = arith.constant 0 : i32
    %c0_i32_1 = arith.constant 0 : i32
    %c0_i32_2 = arith.constant 0 : i32
    return %arg0, %1, %c0_i32, %c0_i32_1 : i32, i32, i32, i32
  }
  func.func @transform_2(%arg0: i32, %arg1: i32, %arg2: i32) -> (i32, i32, i32) {
    %c0_i32 = arith.constant 0 : i32
    %c0_i32_0 = arith.constant 0 : i32
    %c0_i32_1 = arith.constant 0 : i32
    return %c0_i32, %c0_i32_0, %arg2 : i32, i32, i32
  }
  func.func @transform_3(%arg0: i32, %arg1: i32, %arg2: i32) -> (i32, i32) {
    %c0_i32 = arith.constant 0 : i32
    %c0_i32_0 = arith.constant 0 : i32
    return %c0_i32, %arg2 : i32, i32
  }
  func.func @transform_4(%arg0: i32, %arg1: i32, %arg2: i32) -> (i32, i32, i32, i32) {
    %c0_i32 = arith.constant 0 : i32
    %c0_i32_0 = arith.constant 0 : i32
    return %arg0, %arg1, %c0_i32, %arg2 : i32, i32, i32, i32
  }
}

module attributes {stable_mosaic.version = 11 : i64} {
  func.func @_conv3x3_relu_kernel(%arg0: i32, %arg1: i32, %arg2: i32, %arg3: memref<1x8x10x128xbf16, #tpu.memory_space<vmem>>, %arg4: memref<1x2x10x128xbf16, #tpu.memory_space<vmem>>, %arg5: memref<3x384x128xbf16, #tpu.memory_space<vmem>>, %arg6: memref<1x128xf32, #tpu.memory_space<vmem>>, %arg7: memref<1x4x4x128xbf16, #tpu.memory_space<vmem>>) attributes {dimension_semantics = [#tpu.dimension_semantics<parallel>, #tpu.dimension_semantics<parallel>, #tpu.dimension_semantics<parallel>], iteration_bounds = array<i64: 2, 1, 1>, scalar_prefetch = 0 : i64, scratch_operands = 0 : i64, tpu.core_type = #tpu.core_type<tc>, window_params = [{transform_indices = @transform_0, window_bounds = array<i64: 1, 8, 10, 128>}, {transform_indices = @transform_1, window_bounds = array<i64: 1, 2, 10, 128>}, {transform_indices = @transform_2, window_bounds = array<i64: 3, 384, 128>}, {transform_indices = @transform_3, window_bounds = array<i64: 1, 128>}, {transform_indices = @transform_4, window_bounds = array<i64: 1, 4, 4, 128>}]} {
    %c0 = arith.constant 0 : index
    %c0_0 = arith.constant 0 : index
    %c0_1 = arith.constant 0 : index
    %c0_2 = arith.constant 0 : index
    %0 = vector.load %arg3[%c0, %c0_0, %c0_1, %c0_2] : memref<1x8x10x128xbf16, #tpu.memory_space<vmem>>, vector<1x8x10x128xbf16>
    %1 = vector.shape_cast %0 : vector<1x8x10x128xbf16> to vector<8x10x128xbf16>
    %c0_3 = arith.constant 0 : index
    %c0_4 = arith.constant 0 : index
    %c0_5 = arith.constant 0 : index
    %c0_6 = arith.constant 0 : index
    %2 = vector.load %arg4[%c0_3, %c0_4, %c0_5, %c0_6] : memref<1x2x10x128xbf16, #tpu.memory_space<vmem>>, vector<1x2x10x128xbf16>
    %3 = vector.shape_cast %2 : vector<1x2x10x128xbf16> to vector<2x10x128xbf16>
    %4 = tpu.concatenate %1, %3 in 0 : vector<8x10x128xbf16>, vector<2x10x128xbf16> -> vector<10x10x128xbf16>
    %cst = arith.constant 0.000000e+00 : f32
    %5 = vector.broadcast %cst : f32 to vector<64x128xf32>
    %6 = vector.extract_strided_slice %4 {offsets = [0, 0, 0], sizes = [8, 10, 128], strides = [1, 1, 1]} : vector<10x10x128xbf16> to vector<8x10x128xbf16>
    %7 = vector.extract_strided_slice %6 {offsets = [0, 0, 0], sizes = [8, 8, 128], strides = [1, 1, 1]} : vector<8x10x128xbf16> to vector<8x8x128xbf16>
    %8 = vector.extract_strided_slice %6 {offsets = [0, 1, 0], sizes = [8, 8, 128], strides = [1, 1, 1]} : vector<8x10x128xbf16> to vector<8x8x128xbf16>
    %9 = vector.extract_strided_slice %6 {offsets = [0, 2, 0], sizes = [8, 8, 128], strides = [1, 1, 1]} : vector<8x10x128xbf16> to vector<8x8x128xbf16>
    %10 = tpu.concatenate %7, %8, %9 in 2 : vector<8x8x128xbf16>, vector<8x8x128xbf16>, vector<8x8x128xbf16> -> vector<8x8x384xbf16>
    %11 = vector.shape_cast %10 : vector<8x8x384xbf16> to vector<64x384xbf16>
    %c0_7 = arith.constant 0 : index
    %c0_8 = arith.constant 0 : index
    %c0_9 = arith.constant 0 : index
    %12 = vector.load %arg5[%c0_7, %c0_8, %c0_9] : memref<3x384x128xbf16, #tpu.memory_space<vmem>>, vector<1x384x128xbf16>
    %13 = vector.shape_cast %12 : vector<1x384x128xbf16> to vector<384x128xbf16>
    %cst_10 = arith.constant dense<0.000000e+00> : vector<64x128xf32>
    %14 = tpu.matmul %11, %13, %cst_10 {dimension_numbers = #tpu.dot_dimension_numbers<[1], [0], [0], [1], [0, 0, 1, 1], [], []>} : vector<64x384xbf16>, vector<384x128xbf16>, vector<64x128xf32> -> vector<64x128xf32>
    %15 = arith.addf %5, %14 : vector<64x128xf32>
    %16 = vector.extract_strided_slice %4 {offsets = [1, 0, 0], sizes = [8, 10, 128], strides = [1, 1, 1]} : vector<10x10x128xbf16> to vector<8x10x128xbf16>
    %17 = vector.extract_strided_slice %16 {offsets = [0, 0, 0], sizes = [8, 8, 128], strides = [1, 1, 1]} : vector<8x10x128xbf16> to vector<8x8x128xbf16>
    %18 = vector.extract_strided_slice %16 {offsets = [0, 1, 0], sizes = [8, 8, 128], strides = [1, 1, 1]} : vector<8x10x128xbf16> to vector<8x8x128xbf16>
    %19 = vector.extract_strided_slice %16 {offsets = [0, 2, 0], sizes = [8, 8, 128], strides = [1, 1, 1]} : vector<8x10x128xbf16> to vector<8x8x128xbf16>
    %20 = tpu.concatenate %17, %18, %19 in 2 : vector<8x8x128xbf16>, vector<8x8x128xbf16>, vector<8x8x128xbf16> -> vector<8x8x384xbf16>
    %21 = vector.shape_cast %20 : vector<8x8x384xbf16> to vector<64x384xbf16>
    %c1 = arith.constant 1 : index
    %c0_11 = arith.constant 0 : index
    %c0_12 = arith.constant 0 : index
    %22 = vector.load %arg5[%c1, %c0_11, %c0_12] : memref<3x384x128xbf16, #tpu.memory_space<vmem>>, vector<1x384x128xbf16>
    %23 = vector.shape_cast %22 : vector<1x384x128xbf16> to vector<384x128xbf16>
    %cst_13 = arith.constant dense<0.000000e+00> : vector<64x128xf32>
    %24 = tpu.matmul %21, %23, %cst_13 {dimension_numbers = #tpu.dot_dimension_numbers<[1], [0], [0], [1], [0, 0, 1, 1], [], []>} : vector<64x384xbf16>, vector<384x128xbf16>, vector<64x128xf32> -> vector<64x128xf32>
    %25 = arith.addf %15, %24 : vector<64x128xf32>
    %26 = vector.extract_strided_slice %4 {offsets = [2, 0, 0], sizes = [8, 10, 128], strides = [1, 1, 1]} : vector<10x10x128xbf16> to vector<8x10x128xbf16>
    %27 = vector.extract_strided_slice %26 {offsets = [0, 0, 0], sizes = [8, 8, 128], strides = [1, 1, 1]} : vector<8x10x128xbf16> to vector<8x8x128xbf16>
    %28 = vector.extract_strided_slice %26 {offsets = [0, 1, 0], sizes = [8, 8, 128], strides = [1, 1, 1]} : vector<8x10x128xbf16> to vector<8x8x128xbf16>
    %29 = vector.extract_strided_slice %26 {offsets = [0, 2, 0], sizes = [8, 8, 128], strides = [1, 1, 1]} : vector<8x10x128xbf16> to vector<8x8x128xbf16>
    %30 = tpu.concatenate %27, %28, %29 in 2 : vector<8x8x128xbf16>, vector<8x8x128xbf16>, vector<8x8x128xbf16> -> vector<8x8x384xbf16>
    %31 = vector.shape_cast %30 : vector<8x8x384xbf16> to vector<64x384xbf16>
    %c2 = arith.constant 2 : index
    %c0_14 = arith.constant 0 : index
    %c0_15 = arith.constant 0 : index
    %32 = vector.load %arg5[%c2, %c0_14, %c0_15] : memref<3x384x128xbf16, #tpu.memory_space<vmem>>, vector<1x384x128xbf16>
    %33 = vector.shape_cast %32 : vector<1x384x128xbf16> to vector<384x128xbf16>
    %cst_16 = arith.constant dense<0.000000e+00> : vector<64x128xf32>
    %34 = tpu.matmul %31, %33, %cst_16 {dimension_numbers = #tpu.dot_dimension_numbers<[1], [0], [0], [1], [0, 0, 1, 1], [], []>} : vector<64x384xbf16>, vector<384x128xbf16>, vector<64x128xf32> -> vector<64x128xf32>
    %35 = arith.addf %25, %34 : vector<64x128xf32>
    %c0_17 = arith.constant 0 : index
    %c0_18 = arith.constant 0 : index
    %36 = vector.load %arg6[%c0_17, %c0_18] : memref<1x128xf32, #tpu.memory_space<vmem>>, vector<1x128xf32>
    %37 = vector.broadcast %36 : vector<1x128xf32> to vector<64x128xf32>
    %38 = arith.addf %35, %37 : vector<64x128xf32>
    %cst_19 = arith.constant 0.000000e+00 : f32
    %39 = vector.broadcast %cst_19 : f32 to vector<64x128xf32>
    %40 = arith.maximumf %38, %39 : vector<64x128xf32>
    %41 = vector.shape_cast %40 : vector<64x128xf32> to vector<8x8x128xf32>
    %42 = vector.shape_cast %41 : vector<8x8x128xf32> to vector<4x2x8x128xf32>
    %43 = vector.extract_strided_slice %42 {offsets = [0, 0, 0, 0], sizes = [4, 1, 8, 128], strides = [1, 1, 1, 1]} : vector<4x2x8x128xf32> to vector<4x1x8x128xf32>
    %44 = vector.shape_cast %43 : vector<4x1x8x128xf32> to vector<4x8x128xf32>
    %45 = vector.extract_strided_slice %42 {offsets = [0, 1, 0, 0], sizes = [4, 1, 8, 128], strides = [1, 1, 1, 1]} : vector<4x2x8x128xf32> to vector<4x1x8x128xf32>
    %46 = vector.shape_cast %45 : vector<4x1x8x128xf32> to vector<4x8x128xf32>
    %47 = arith.maximumf %44, %46 : vector<4x8x128xf32>
    %48 = vector.shape_cast %47 : vector<4x8x128xf32> to vector<4x4x2x128xf32>
    %49 = vector.extract_strided_slice %48 {offsets = [0, 0, 0, 0], sizes = [4, 4, 1, 128], strides = [1, 1, 1, 1]} : vector<4x4x2x128xf32> to vector<4x4x1x128xf32>
    %50 = vector.shape_cast %49 : vector<4x4x1x128xf32> to vector<4x4x128xf32>
    %51 = vector.extract_strided_slice %48 {offsets = [0, 0, 1, 0], sizes = [4, 4, 1, 128], strides = [1, 1, 1, 1]} : vector<4x4x2x128xf32> to vector<4x4x1x128xf32>
    %52 = vector.shape_cast %51 : vector<4x4x1x128xf32> to vector<4x4x128xf32>
    %53 = arith.maximumf %50, %52 : vector<4x4x128xf32>
    %54 = arith.truncf %53 : vector<4x4x128xf32> to vector<4x4x128xbf16>
    %c0_20 = arith.constant 0 : index
    %c0_21 = arith.constant 0 : index
    %c0_22 = arith.constant 0 : index
    %c0_23 = arith.constant 0 : index
    %55 = vector.load %arg7[%c0_20, %c0_21, %c0_22, %c0_23] : memref<1x4x4x128xbf16, #tpu.memory_space<vmem>>, vector<1x4x4x128xbf16>
    %56 = vector.shape_cast %55 : vector<1x4x4x128xbf16> to vector<4x4x128xbf16>
    %57 = vector.shape_cast %54 : vector<4x4x128xbf16> to vector<1x4x4x128xbf16>
    tpu.vector_store %arg7[%c0_20, %c0_21, %c0_22, %c0_23], %57 {strides = array<i32>} : memref<1x4x4x128xbf16, #tpu.memory_space<vmem>>, vector<1x4x4x128xbf16>,
    return
  }
  func.func @transform_0(%arg0: i32, %arg1: i32, %arg2: i32) -> (i32, i32, i32, i32) {
    %c0_i32 = arith.constant 0 : i32
    %c0_i32_0 = arith.constant 0 : i32
    %c0_i32_1 = arith.constant 0 : i32
    return %arg0, %arg1, %c0_i32, %c0_i32_0 : i32, i32, i32, i32
  }
  func.func @transform_1(%arg0: i32, %arg1: i32, %arg2: i32) -> (i32, i32, i32, i32) {
    %c4_i32 = arith.constant 4 : i32
    %0 = arith.muli %arg1, %c4_i32 : i32
    %c4_i32_0 = arith.constant 4 : i32
    %1 = arith.addi %0, %c4_i32_0 : i32
    %c0_i32 = arith.constant 0 : i32
    %c0_i32_1 = arith.constant 0 : i32
    %c0_i32_2 = arith.constant 0 : i32
    return %arg0, %1, %c0_i32, %c0_i32_1 : i32, i32, i32, i32
  }
  func.func @transform_2(%arg0: i32, %arg1: i32, %arg2: i32) -> (i32, i32, i32) {
    %c0_i32 = arith.constant 0 : i32
    %c0_i32_0 = arith.constant 0 : i32
    %c0_i32_1 = arith.constant 0 : i32
    return %c0_i32, %c0_i32_0, %arg2 : i32, i32, i32
  }
  func.func @transform_3(%arg0: i32, %arg1: i32, %arg2: i32) -> (i32, i32) {
    %c0_i32 = arith.constant 0 : i32
    %c0_i32_0 = arith.constant 0 : i32
    return %c0_i32, %arg2 : i32, i32
  }
  func.func @transform_4(%arg0: i32, %arg1: i32, %arg2: i32) -> (i32, i32, i32, i32) {
    %c0_i32 = arith.constant 0 : i32
    %c0_i32_0 = arith.constant 0 : i32
    return %arg0, %arg1, %c0_i32, %arg2 : i32, i32, i32, i32
  }
}

module attributes {stable_mosaic.version = 11 : i64} {
  func.func @_conv3x3_relu_kernel(%arg0: i32, %arg1: i32, %arg2: i32, %arg3: memref<1x4x6x128xbf16, #tpu.memory_space<vmem>>, %arg4: memref<1x2x6x128xbf16, #tpu.memory_space<vmem>>, %arg5: memref<3x384x128xbf16, #tpu.memory_space<vmem>>, %arg6: memref<1x128xf32, #tpu.memory_space<vmem>>, %arg7: memref<1x4x4x128xbf16, #tpu.memory_space<vmem>>) attributes {dimension_semantics = [#tpu.dimension_semantics<parallel>, #tpu.dimension_semantics<parallel>, #tpu.dimension_semantics<parallel>], iteration_bounds = array<i64: 2, 1, 2>, scalar_prefetch = 0 : i64, scratch_operands = 0 : i64, tpu.core_type = #tpu.core_type<tc>, window_params = [{transform_indices = @transform_0, window_bounds = array<i64: 1, 4, 6, 128>}, {transform_indices = @transform_1, window_bounds = array<i64: 1, 2, 6, 128>}, {transform_indices = @transform_2, window_bounds = array<i64: 3, 384, 128>}, {transform_indices = @transform_3, window_bounds = array<i64: 1, 128>}, {transform_indices = @transform_4, window_bounds = array<i64: 1, 4, 4, 128>}]} {
    %c0 = arith.constant 0 : index
    %c0_0 = arith.constant 0 : index
    %c0_1 = arith.constant 0 : index
    %c0_2 = arith.constant 0 : index
    %0 = vector.load %arg3[%c0, %c0_0, %c0_1, %c0_2] : memref<1x4x6x128xbf16, #tpu.memory_space<vmem>>, vector<1x4x6x128xbf16>
    %1 = vector.shape_cast %0 : vector<1x4x6x128xbf16> to vector<4x6x128xbf16>
    %c0_3 = arith.constant 0 : index
    %c0_4 = arith.constant 0 : index
    %c0_5 = arith.constant 0 : index
    %c0_6 = arith.constant 0 : index
    %2 = vector.load %arg4[%c0_3, %c0_4, %c0_5, %c0_6] : memref<1x2x6x128xbf16, #tpu.memory_space<vmem>>, vector<1x2x6x128xbf16>
    %3 = vector.shape_cast %2 : vector<1x2x6x128xbf16> to vector<2x6x128xbf16>
    %4 = tpu.concatenate %1, %3 in 0 : vector<4x6x128xbf16>, vector<2x6x128xbf16> -> vector<6x6x128xbf16>
    %cst = arith.constant 0.000000e+00 : f32
    %5 = vector.broadcast %cst : f32 to vector<16x128xf32>
    %6 = vector.extract_strided_slice %4 {offsets = [0, 0, 0], sizes = [4, 6, 128], strides = [1, 1, 1]} : vector<6x6x128xbf16> to vector<4x6x128xbf16>
    %7 = vector.extract_strided_slice %6 {offsets = [0, 0, 0], sizes = [4, 4, 128], strides = [1, 1, 1]} : vector<4x6x128xbf16> to vector<4x4x128xbf16>
    %8 = vector.extract_strided_slice %6 {offsets = [0, 1, 0], sizes = [4, 4, 128], strides = [1, 1, 1]} : vector<4x6x128xbf16> to vector<4x4x128xbf16>
    %9 = vector.extract_strided_slice %6 {offsets = [0, 2, 0], sizes = [4, 4, 128], strides = [1, 1, 1]} : vector<4x6x128xbf16> to vector<4x4x128xbf16>
    %10 = tpu.concatenate %7, %8, %9 in 2 : vector<4x4x128xbf16>, vector<4x4x128xbf16>, vector<4x4x128xbf16> -> vector<4x4x384xbf16>
    %11 = vector.shape_cast %10 : vector<4x4x384xbf16> to vector<16x384xbf16>
    %c0_7 = arith.constant 0 : index
    %c0_8 = arith.constant 0 : index
    %c0_9 = arith.constant 0 : index
    %12 = vector.load %arg5[%c0_7, %c0_8, %c0_9] : memref<3x384x128xbf16, #tpu.memory_space<vmem>>, vector<1x384x128xbf16>
    %13 = vector.shape_cast %12 : vector<1x384x128xbf16> to vector<384x128xbf16>
    %cst_10 = arith.constant dense<0.000000e+00> : vector<16x128xf32>
    %14 = tpu.matmul %11, %13, %cst_10 {dimension_numbers = #tpu.dot_dimension_numbers<[1], [0], [0], [1], [0, 0, 1, 1], [], []>} : vector<16x384xbf16>, vector<384x128xbf16>, vector<16x128xf32> -> vector<16x128xf32>
    %15 = arith.addf %5, %14 : vector<16x128xf32>
    %16 = vector.extract_strided_slice %4 {offsets = [1, 0, 0], sizes = [4, 6, 128], strides = [1, 1, 1]} : vector<6x6x128xbf16> to vector<4x6x128xbf16>
    %17 = vector.extract_strided_slice %16 {offsets = [0, 0, 0], sizes = [4, 4, 128], strides = [1, 1, 1]} : vector<4x6x128xbf16> to vector<4x4x128xbf16>
    %18 = vector.extract_strided_slice %16 {offsets = [0, 1, 0], sizes = [4, 4, 128], strides = [1, 1, 1]} : vector<4x6x128xbf16> to vector<4x4x128xbf16>
    %19 = vector.extract_strided_slice %16 {offsets = [0, 2, 0], sizes = [4, 4, 128], strides = [1, 1, 1]} : vector<4x6x128xbf16> to vector<4x4x128xbf16>
    %20 = tpu.concatenate %17, %18, %19 in 2 : vector<4x4x128xbf16>, vector<4x4x128xbf16>, vector<4x4x128xbf16> -> vector<4x4x384xbf16>
    %21 = vector.shape_cast %20 : vector<4x4x384xbf16> to vector<16x384xbf16>
    %c1 = arith.constant 1 : index
    %c0_11 = arith.constant 0 : index
    %c0_12 = arith.constant 0 : index
    %22 = vector.load %arg5[%c1, %c0_11, %c0_12] : memref<3x384x128xbf16, #tpu.memory_space<vmem>>, vector<1x384x128xbf16>
    %23 = vector.shape_cast %22 : vector<1x384x128xbf16> to vector<384x128xbf16>
    %cst_13 = arith.constant dense<0.000000e+00> : vector<16x128xf32>
    %24 = tpu.matmul %21, %23, %cst_13 {dimension_numbers = #tpu.dot_dimension_numbers<[1], [0], [0], [1], [0, 0, 1, 1], [], []>} : vector<16x384xbf16>, vector<384x128xbf16>, vector<16x128xf32> -> vector<16x128xf32>
    %25 = arith.addf %15, %24 : vector<16x128xf32>
    %26 = vector.extract_strided_slice %4 {offsets = [2, 0, 0], sizes = [4, 6, 128], strides = [1, 1, 1]} : vector<6x6x128xbf16> to vector<4x6x128xbf16>
    %27 = vector.extract_strided_slice %26 {offsets = [0, 0, 0], sizes = [4, 4, 128], strides = [1, 1, 1]} : vector<4x6x128xbf16> to vector<4x4x128xbf16>
    %28 = vector.extract_strided_slice %26 {offsets = [0, 1, 0], sizes = [4, 4, 128], strides = [1, 1, 1]} : vector<4x6x128xbf16> to vector<4x4x128xbf16>
    %29 = vector.extract_strided_slice %26 {offsets = [0, 2, 0], sizes = [4, 4, 128], strides = [1, 1, 1]} : vector<4x6x128xbf16> to vector<4x4x128xbf16>
    %30 = tpu.concatenate %27, %28, %29 in 2 : vector<4x4x128xbf16>, vector<4x4x128xbf16>, vector<4x4x128xbf16> -> vector<4x4x384xbf16>
    %31 = vector.shape_cast %30 : vector<4x4x384xbf16> to vector<16x384xbf16>
    %c2 = arith.constant 2 : index
    %c0_14 = arith.constant 0 : index
    %c0_15 = arith.constant 0 : index
    %32 = vector.load %arg5[%c2, %c0_14, %c0_15] : memref<3x384x128xbf16, #tpu.memory_space<vmem>>, vector<1x384x128xbf16>
    %33 = vector.shape_cast %32 : vector<1x384x128xbf16> to vector<384x128xbf16>
    %cst_16 = arith.constant dense<0.000000e+00> : vector<16x128xf32>
    %34 = tpu.matmul %31, %33, %cst_16 {dimension_numbers = #tpu.dot_dimension_numbers<[1], [0], [0], [1], [0, 0, 1, 1], [], []>} : vector<16x384xbf16>, vector<384x128xbf16>, vector<16x128xf32> -> vector<16x128xf32>
    %35 = arith.addf %25, %34 : vector<16x128xf32>
    %c0_17 = arith.constant 0 : index
    %c0_18 = arith.constant 0 : index
    %36 = vector.load %arg6[%c0_17, %c0_18] : memref<1x128xf32, #tpu.memory_space<vmem>>, vector<1x128xf32>
    %37 = vector.broadcast %36 : vector<1x128xf32> to vector<16x128xf32>
    %38 = arith.addf %35, %37 : vector<16x128xf32>
    %cst_19 = arith.constant 0.000000e+00 : f32
    %39 = vector.broadcast %cst_19 : f32 to vector<16x128xf32>
    %40 = arith.maximumf %38, %39 : vector<16x128xf32>
    %41 = vector.shape_cast %40 : vector<16x128xf32> to vector<4x4x128xf32>
    %42 = arith.truncf %41 : vector<4x4x128xf32> to vector<4x4x128xbf16>
    %c0_20 = arith.constant 0 : index
    %c0_21 = arith.constant 0 : index
    %c0_22 = arith.constant 0 : index
    %c0_23 = arith.constant 0 : index
    %43 = vector.load %arg7[%c0_20, %c0_21, %c0_22, %c0_23] : memref<1x4x4x128xbf16, #tpu.memory_space<vmem>>, vector<1x4x4x128xbf16>
    %44 = vector.shape_cast %43 : vector<1x4x4x128xbf16> to vector<4x4x128xbf16>
    %45 = vector.shape_cast %42 : vector<4x4x128xbf16> to vector<1x4x4x128xbf16>
    tpu.vector_store %arg7[%c0_20, %c0_21, %c0_22, %c0_23], %45 {strides = array<i32>} : memref<1x4x4x128xbf16, #tpu.memory_space<vmem>>, vector<1x4x4x128xbf16>,
    return
  }
  func.func @transform_0(%arg0: i32, %arg1: i32, %arg2: i32) -> (i32, i32, i32, i32) {
    %c0_i32 = arith.constant 0 : i32
    %c0_i32_0 = arith.constant 0 : i32
    %c0_i32_1 = arith.constant 0 : i32
    return %arg0, %arg1, %c0_i32, %c0_i32_0 : i32, i32, i32, i32
  }
  func.func @transform_1(%arg0: i32, %arg1: i32, %arg2: i32) -> (i32, i32, i32, i32) {
    %c2_i32 = arith.constant 2 : i32
    %0 = arith.muli %arg1, %c2_i32 : i32
    %c2_i32_0 = arith.constant 2 : i32
    %1 = arith.addi %0, %c2_i32_0 : i32
    %c0_i32 = arith.constant 0 : i32
    %c0_i32_1 = arith.constant 0 : i32
    %c0_i32_2 = arith.constant 0 : i32
    return %arg0, %1, %c0_i32, %c0_i32_1 : i32, i32, i32, i32
  }
  func.func @transform_2(%arg0: i32, %arg1: i32, %arg2: i32) -> (i32, i32, i32) {
    %c0_i32 = arith.constant 0 : i32
    %c0_i32_0 = arith.constant 0 : i32
    %c0_i32_1 = arith.constant 0 : i32
    return %c0_i32, %c0_i32_0, %arg2 : i32, i32, i32
  }
  func.func @transform_3(%arg0: i32, %arg1: i32, %arg2: i32) -> (i32, i32) {
    %c0_i32 = arith.constant 0 : i32
    %c0_i32_0 = arith.constant 0 : i32
    return %c0_i32, %arg2 : i32, i32
  }
  func.func @transform_4(%arg0: i32, %arg1: i32, %arg2: i32) -> (i32, i32, i32, i32) {
    %c0_i32 = arith.constant 0 : i32
    %c0_i32_0 = arith.constant 0 : i32
    return %arg0, %arg1, %c0_i32, %arg2 : i32, i32, i32, i32
  }
}

</mosaic_0001>

<bundles_post_ra>
// kernel: vgg19_slices_forward.7
= control target key start
LH: loop header
LB: loop body
LE: loop exit
PB: predicated region body
PF: predicated region fallthrough
CT: control target
= control target key end

     0   :  { %s1647_s15 = smov 0   ;;  %s1649_s16 = smov 0   ;;  %s2018_s0 = inlined_call_operand.vmem [shape: bf16[2,10,10,64], index: 0, kind: input, shape index: {}, may-alias: {0,1}]   ;;  %s2019_s1 = inlined_call_operand.vmem [shape: bf16[2,10,10,64], index: 1, kind: input, shape index: {}, may-alias: {0,1}]   ;;  %s2020_s2 = inlined_call_operand.vmem [shape: bf16[3,192,128], index: 2, kind: input, shape index: {}]   ;;  %s2021_s3 = inlined_call_operand.vmem [shape: f32[1,128], index: 3, kind: input, shape index: {}]   ;;  %s2022_s4 = inlined_call_operand.vmem [shape: bf16[2,8,8,128], index: 4, kind: output, shape index: {}]  }
   0x1   :  { %s1651_s17 = smov 0  }
   0x2 LB: > { %s33_s18 = sadd.s32 1, %s1614_s16  ;;  %p1339_p0 = scmp.ge.s32.totalorder %s1618_s17, 1  ;;  %s1618_s17 = sphi %s1651_s17, %s14_s17   ;;  %s1614_s16 = sphi %s1649_s16, %s2024_s16   ;;  %s1610_s15 = sphi %s1647_s15, %s2023_s15  }
   0x3   : > { %p35_p1 = scmp.ge.s32.totalorder %s33_s18, 2  ;;  %p246_p2 = scmp.lt.s32.totalorder %s1618_s17, 3 }
   0x5   : > { %s2026_s18 = smov (%p35_p1, %s33_s18), 0  ;;  %p247_p3 = pnand %p1339_p0, %p246_p2 }
   0x6   : > { %p314_p4 = scmp.lt.s32.totalorder (!%p247_p3), %s1610_s15, 1  ;;  %s1621_s21 = smov (!%p247_p3), 64  }
   0x7   : > { %250 = sbr.rel (%p247_p3) target bundleno = 411 (0x19b), region = 36 }
   0xc   : > { %v1560_v0 = vld [vmem:[%s2020_s2 + $0x98] sm:$0xff]   ;;  %v1620_v1 = vmov 0   ;;  %s2028_s15 = smov (!%p314_p4, %s1610_s15), 1  ;;  %v1562_v3 = vld [vmem:[%s2020_s2 + $0x90] sm:$0xff]   ;;  %v1564_v5 = vld [vmem:[%s2020_s2 + $0x88] sm:$0xff]   ;;  %vm505_vm0 = vcmask 523264  }
   0xd   : > { %720 = vmatprep.subr.bf16.mxu0 %v1620_v1  ;;  %881 = vmatprep.subr.bf16.mxu1 %v1620_v1  ;;  %v1561_v2 = vld [vmem:[%s2020_s2 + $0x38] sm:$0xff]   ;;  %s1521_s25 = smul.u32 80, %s2028_s15  ;;  %v1563_v4 = vld [vmem:[%s2020_s2 + $0x30] sm:$0xff]   ;;  %v1565_v6 = vld [vmem:[%s2020_s2 + $0x28] sm:$0xff]   ;;  %s1473_s10 = sshll.u32 %s2028_s15, 5 }
   0xe   : > { %721 = vmatpush1.bf16.msra.mxu0 %v1560_v0  ;;  %882 = vmatpush1.bf16.msra.mxu1 %v1561_v2  ;;  %v1566_v34 = vld [vmem:[%s2020_s2 + $0x80] sm:$0xff]   ;;  %v1568_v57 = vld [vmem:[%s2020_s2 + $0x78] sm:$0xff]   ;;  %v1570_v2 = vld [vmem:[%s2020_s2 + $0x70] sm:$0xff]   ;;  %s362_s13 = scalar_lea.vmem %s2022_s4, %s1473_s10 }
   0xf   : > { %722 = vmatprep.subr.bf16.mxu0 %v1620_v1  ;;  %883 = vmatprep.subr.bf16.mxu1 %v1620_v1  ;;  %s1690_s6 = scalar_lea.vmem %s2018_s0, %s1521_s25  ;;  %s1692_s7 = sadd.s32 64, %s1521_s25  ;;  %v1567_v45 = vld [vmem:[%s2020_s2 + $0x20] sm:$0xff]   ;;  %v1569_v62 = vld [vmem:[%s2020_s2 + $0x18] sm:$0xff]  }
  0x10   : > { %v1698_v7 = vld [vmem:[%s1690_s6 + $0x10] sm:$0xf]  ;;  %v370_v8 = vld [vmem:[%s1690_s6 + $0x14] sm:$0x1]  ;;  %v1702_v9 = vld [vmem:[%s1690_s6] sm:$0xf]  ;;  %s340_s12 = scalar_lea.vmem %s2019_s1, %s1692_s7 }
  0x11   : > { %v1706_v10 = vcombine.low %v1698_v7, %v370_v8  ;;  %v366_v11 = vld [vmem:[%s1690_s6 + $0x4] sm:$0x1]  ;;  %v1710_v12 = vld [vmem:[%s1690_s6 + $0x18] sm:$0xf]  ;;  %v372_v13 = vld [vmem:[%s1690_s6 + $0x1c] sm:$0x1] }
  0x12   : > { %723 = vmatpush1.bf16.msra.mxu0 %v1562_v3  ;;  %884 = vmatpush1.bf16.msra.mxu1 %v1563_v4  ;;  %v1714_v14 = vcombine.low %v1702_v9, %v366_v11  ;;  %v1717_v15 = vcombine.low %v1710_v12, %v372_v13  ;;  %v1720_v16 = vld [vmem:[%s1690_s6 + $0x8] sm:$0xf]  ;;  %v368_v17 = vld [vmem:[%s1690_s6 + $0xc] sm:$0x1]  ;;  %v1724_v18 = vld [vmem:[%s1690_s6 + $0x20] sm:$0xf] }
  0x13   : > { %724 = vmatprep.subr.bf16.mxu0 %v1620_v1  ;;  %885 = vmatprep.subr.bf16.mxu1 %v1620_v1  ;;  %v440_v19 = vshrl.u32 %v1706_v10, 16  ;;  %v442_v20 = vshll.u32 %v1706_v10, 16  ;;  %v1730_v21 = vcombine.low %v1720_v16, %v368_v17  ;;  %v374_v22 = vld [vmem:[%s1690_s6 + $0x24] sm:$0x1]  ;;  %v1734_v23 = vld [vmem:[%s1690_s6 + $0x28] sm:$0xf] }
  0x14   : > { %v426_v24 = vshrl.u32 %v1714_v14, 16  ;;  %v428_v25 = vshll.u32 %v1714_v14, 16  ;;  %v447_v26 = vshrl.u32 %v1717_v15, 16  ;;  %v449_v27 = vshll.u32 %v1717_v15, 16  ;;  %v376_v28 = vld [vmem:[%s1690_s6 + $0x2c] sm:$0x1] }
  0x15   : > { %v444_v29 = vrot.slane %v442_v20, 1  ;;  %v433_v30 = vshrl.u32 %v1730_v21, 16  ;;  %v435_v31 = vshll.u32 %v1730_v21, 16  ;;  %v1745_v32 = vcombine.low %v1724_v18, %v374_v22  ;;  %v1748_v33 = vld [vmem:[%s1690_s6 + $0x30] sm:$0xf] }
  0x16   : > { %725 = vmatpush1.bf16.msra.mxu0 %v1564_v5  ;;  %886 = vmatpush1.bf16.msra.mxu1 %v1565_v6  ;;  %v430_v35 = vrot.slane %v428_v25, 1  ;;  %v451_v36 = vrot.slane %v449_v27, 1  ;;  %v1758_v37 = vcombine.low %v1734_v23, %v376_v28  ;;  %v378_v38 = vld [vmem:[%s1690_s6 + $0x34] sm:$0x1]  ;;  %v1762_v39 = vld [vmem:[%s1690_s6 + $0x38] sm:$0xf] }
  0x17   : > { %726 = vmatprep.subr.bf16.mxu0 %v1620_v1  ;;  %887 = vmatprep.subr.bf16.mxu1 %v1620_v1  ;;  %v445_v40 = vor.u32 %v444_v29, %v440_v19  ;;  %v437_v41 = vrot.slane %v435_v31, 1  ;;  %v454_v42 = vshrl.u32 %v1745_v32, 16  ;;  %v456_v43 = vshll.u32 %v1745_v32, 16  ;;  %v380_v44 = vld [vmem:[%s1690_s6 + $0x3c] sm:$0x1]  ;;  %v1571_v19 = vld [vmem:[%s2020_s2 + $0x10] sm:$0xff]  }
  0x18   : > { %v431_v46 = vor.u32 %v430_v35, %v426_v24  ;;  %v461_v47 = vshrl.u32 %v1758_v37, 16  ;;  %v463_v48 = vshll.u32 %v1758_v37, 16  ;;  %v1773_v49 = vld [vmem:[%s340_s12] sm:$0xf]  ;;  %v382_v50 = vld [vmem:[%s340_s12 + $0x4] sm:$0x1]  ;;  %v452_v51 = vor.u32 %v451_v36, %v447_v26 }
  0x19   : > { %485 = vrot.lane.b32.xlu1 %v445_v40, %s1621_s21  ;;  %v458_v52 = vrot.slane %v456_v43, 1  ;;  %v1778_v53 = vcombine.low %v1748_v33, %v378_v38  ;;  %v1781_v54 = vcombine.low %v1762_v39, %v380_v44  ;;  %v1783_v55 = vld [vmem:[%s340_s12 + $0x8] sm:$0xf]  ;;  %v384_v56 = vld [vmem:[%s340_s12 + $0xc] sm:$0x1]  ;;  %v438_v58 = vor.u32 %v437_v41, %v433_v30  ;;  %v1574_v31 = vld [vmem:[%s2020_s2 + $0x60] sm:$0xff]  }
  0x1a   : > { %727 = vmatpush1.bf16.msra.mxu0 %v1566_v34  ;;  %888 = vmatpush1.bf16.msra.mxu1 %v1567_v45  ;;  %v465_v59 = vrot.slane %v463_v48, 1  ;;  %v1790_v60 = vcombine.low %v1773_v49, %v382_v50  ;;  %v1793_v61 = vcombine.low %v1783_v55, %v384_v56  ;;  %v1572_v24 = vld [vmem:[%s2020_s2 + $0x68] sm:$0xff]   ;;  %v498_v30 = vrot.slane %v1730_v21, 1  ;;  %v1575_v38 = vld [vmem:[%s2020_s2] sm:$0xff]   ;;  %v1578_v48 = vld [vmem:[%s2020_s2 + $0xb0] sm:$0xff]  }
  0x1b   : > { %728 = vmatprep.subr.bf16.mxu0 %v1620_v1  ;;  %481 = vrot.lane.b32.xlu0 %v431_v46, %s1621_s21  ;;  %v468_v63 = vshrl.u32 %v1778_v53, 16  ;;  %v470_v0 = vshll.u32 %v1778_v53, 16  ;;  %v475_v3 = vshrl.u32 %v1781_v54, 16  ;;  %v477_v4 = vshll.u32 %v1781_v54, 16  ;;  %v1573_v26 = vld [vmem:[%s2020_s2 + $0x8] sm:$0xff]  }
  0x1c   : > { %889 = vmatprep.subr.bf16.mxu1 %v1620_v1  ;;  %v584_v5 = vshrl.u32 %v1790_v60, 16  ;;  %v586_v6 = vshll.u32 %v1790_v60, 16  ;;  %v466_v8 = vor.u32 %v465_v59, %v461_v47  ;;  %v952_v13 = vshrl.u32 %v1793_v61, 16  ;;  %v1581_v56 = vld [vmem:[%s2020_s2 + $0x48] sm:$0xff]  }
  0x1d   : > { %487 = vrot.lane.b32.xlu1 %v452_v51, %s1621_s21  ;;  %v472_v11 = vrot.slane %v470_v0, 1  ;;  %v954_v17 = vshll.u32 %v1793_v61, 16  ;;  %v459_v20 = vor.u32 %v458_v52, %v454_v42  ;;  %v479_v22 = vrot.slane %v477_v4, 1  ;;  %v1576_v42 = vld [vmem:[%s2020_s2 + $0xb8] sm:$0xff]   ;;  %v1579_v52 = vld [vmem:[%s2020_s2 + $0x50] sm:$0xff]  }
  0x1e   : > { %729 = vmatpush1.bf16.msra.mxu0 %v1568_v57  ;;  %890 = vmatpush1.bf16.msra.mxu1 %v1569_v62  ;;  %v588_v29 = vrot.slane %v586_v6, 1  ;;  %v499_v34 = vrot.slane %v1706_v10, 1  ;;  %v500_v35 = vrot.slane %v1717_v15, 1  ;;  %v497_v40 = vrot.slane %v1714_v14, 1  ;;  %v1582_v57 = vld [vmem:[%s2020_s2 + $0xa0] sm:$0xff]  }
  0x1f   : > { %730 = vmatprep.subr.bf16.mxu0 %v1620_v1  ;;  %483 = vrot.lane.b32.xlu0 %v438_v58, %s1621_s21  ;;  %v956_v25 = vrot.slane %v954_v17, 1  ;;  %v480_v27 = vor.u32 %v479_v22, %v475_v3  ;;  %v473_v28 = vor.u32 %v472_v11, %v468_v63  ;;  %v501_v15 = vrot.slane %v1745_v32, 1  ;;  %v1577_v32 = vld [vmem:[%s2020_s2 + $0x58] sm:$0xff]   ;;  %v1583_v58 = vld [vmem:[%s2020_s2 + $0x40] sm:$0xff]   ;;  %v1586_v17 = vld [vmem:[%s2020_s2 + $0xe8] sm:$0xff]  }
  0x20   : > { %891 = vmatprep.subr.bf16.mxu1 %v1620_v1  ;;  %v1378_v21 = vcombine.low %v498_v30, %v499_v34  ;;  %v589_v41 = vor.u32 %v588_v29, %v584_v5  ;;  %v1841_v10 = vcombine.low %v499_v34, %v500_v35  ;;  %v1402_v43 = vcombine.low %v497_v40, %v498_v30  ;;  %v1584_v5 = vld [vmem:[%s2020_s2 + $0xf8] sm:$0xff]  }
  0x21   : > { %491 = vrot.lane.b32.xlu1 %v466_v8, %s1621_s21  ;;  %v957_v36 = vor.u32 %v956_v25, %v952_v13  ;;  %v502_v14 = vrot.slane %v1758_v37, 1  ;;  %v1380_v44 = vcombine.low %v500_v35, %v501_v15  ;;  %v503_v45 = vrot.slane %v1778_v53, 1  ;;  %v1592_v35 = vld [vmem:[%s2020_s2 + $0x118] sm:$0xff]  }
  0x22   : > { %731 = vmatpush1.bf16.msra.mxu0 %v1570_v2  ;;  %892 = vmatpush1.bf16.msra.mxu1 %v1571_v19  ;;  %v504_v47 = vrot.slane %v1781_v54, 1  ;;  %v592_v51 = vrot.slane %v1790_v60, 1  ;;  %v1580_v54 = vld [vmem:[%s2020_s2 + $0xa8] sm:$0xff]   ;;  %v960_v59 = vrot.slane %v1793_v61, 1 }
  0x23   : > { %732 = vmatprep.subr.bf16.mxu0 %v1620_v1  ;;  %489 = vrot.lane.b32.xlu0 %v459_v20, %s1621_s21  ;;  %v1855_v46 = vcombine.low %v501_v15, %v502_v14  ;;  %v1860_v37 = vcombine.low %v502_v14, %v503_v45  ;;  %v1587_v20 = vld [vmem:[%s2020_s2 + $0xe0] sm:$0xff]  }
  0x24   : > { %893 = vmatprep.subr.bf16.mxu1 %v1620_v1  ;;  %1397 = vmatprep.mubr.msk.bf16.mxu0 %vm505_vm0, %v1378_v21  ;;  %v1866_v50 = vcombine.low %v503_v45, %v504_v47  ;;  %v1873_v53 = vcombine.low %v504_v47, %v592_v51  ;;  %v1895_v60 = vcombine.low %v592_v51, %v960_v59  ;;  %v1595_v21 = vld [vmem:[%s2020_s2 + $0x100] sm:$0xff]  }
  0x25   : > { %495 = vrot.lane.b32.xlu1 %v480_v27, %s1621_s21  ;;  %1421 = vmatprep.mubr.msk.bf16.mxu1 %vm505_vm0, %v1402_v43 }
  0x26   : > { %733 = vmatpush1.bf16.msra.mxu0 %v1572_v24  ;;  %894 = vmatpush1.bf16.msra.mxu1 %v1573_v26 }
  0x27   : > { %734 = vmatprep.subr.bf16.mxu0 %v1620_v1  ;;  %493 = vrot.lane.b32.xlu0 %v473_v28, %s1621_s21  ;;  %v1589_v28 = vld [vmem:[%s2020_s2 + $0xd0] sm:$0xff]  }
  0x28   : > { %895 = vmatprep.subr.bf16.mxu1 %v1620_v1 }
  0x29   : > { %958 = vrot.lane.b32.xlu1 %v957_v36, %s1621_s21  ;;  %v1593_v36 = vld [vmem:[%s2020_s2 + $0x110] sm:$0xff]  }
  0x2a   : > { %735 = vmatpush1.bf16.msra.mxu0 %v1574_v31  ;;  %896 = vmatpush1.bf16.msra.mxu1 %v1575_v38  ;;  %v1594_v38 = vld [vmem:[%s2020_s2 + $0x108] sm:$0xff]  }
  0x2b   : > { %744 = vmatprep.subr.bf16.mxu0 %v1620_v1  ;;  %590 = vrot.lane.b32.xlu0 %v589_v41, %s1621_s21 }
  0x2c   : > { %905 = vmatprep.subr.bf16.mxu1 %v1620_v1 }
  0x2e   : > { %745 = vmatpush2.bf16.msra.mxu0 %v1576_v42  ;;  %906 = vmatpush2.bf16.msra.mxu1 %v1577_v32 }
  0x2f   : > { %746 = vmatprep.subr.bf16.mxu0 %v1620_v1  ;;  %907 = vmatprep.subr.bf16.mxu1 %v1620_v1 }
  0x32   : > { %747 = vmatpush2.bf16.msra.mxu0 %v1578_v48  ;;  %908 = vmatpush2.bf16.msra.mxu1 %v1579_v52 }
  0x33   : > { %748 = vmatprep.subr.bf16.mxu0 %v1620_v1  ;;  %909 = vmatprep.subr.bf16.mxu1 %v1620_v1 }
  0x36   : > { %749 = vmatpush2.bf16.msra.mxu0 %v1580_v54  ;;  %910 = vmatpush2.bf16.msra.mxu1 %v1581_v56 }
  0x37   : > { %750 = vmatprep.subr.bf16.mxu0 %v1620_v1  ;;  %911 = vmatprep.subr.bf16.mxu1 %v1620_v1 }
  0x3a   : > { %751 = vmatpush2.bf16.msra.mxu0 %v1582_v57  ;;  %912 = vmatpush2.bf16.msra.mxu1 %v1583_v58 }
  0x3b   : > { %1070 = vmatprep.subr.bf16.mxu0 %v1620_v1  ;;  %1497 = vmatprep.subr.bf16.mxu1 %v1620_v1 }
  0x8b   : > { %v486_v63 = vpop.permute.xlu1 %485 }
  0x8c   : > { %v514_v0 = vsel %vm505_vm0, %v1698_v7, %v486_v63  ;;  %v1585_v7 = vld [vmem:[%s2020_s2 + $0xf0] sm:$0xff]  }
  0x8d   : > { %v482_v62 = vpop.permute.xlu0 %481 }
  0x8e   : > { %v508_v3 = vsel %vm505_vm0, %v1702_v9, %v482_v62 }
  0x8f   : > { %v488_v8 = vpop.permute.xlu1 %487 }
  0x91   : > { %v484_v2 = vpop.permute.xlu0 %483 }
  0x92   : > { %v511_v4 = vsel %vm505_vm0, %v1720_v16, %v484_v2  ;;  %v517_v16 = vsel %vm505_vm0, %v1710_v12, %v488_v8 }
  0x93   : > { %v1377_v6 = vcombine.low %v511_v4, %v514_v0  ;;  %v1401_v61 = vcombine.low %v508_v3, %v511_v4  ;;  %v492_v19 = vpop.permute.xlu1 %491 }
  0x94   : > { %v523_v22 = vsel %vm505_vm0, %v1734_v23, %v492_v19  ;;  %v1588_v23 = vld [vmem:[%s2020_s2 + $0xd8] sm:$0xff]  }
  0x95   : > { %753 = vmatmul.mubr.bf16.vlgmr.msra.gmra.mxu0 %v1377_v6  ;;  %914 = vmatmul.mubr.bf16.vlgmr.msra.gmra.mxu1 %v1401_v61  ;;  %v490_v11 = vpop.permute.xlu0 %489 }
  0x96   : > { %1071 = vmatpush1.bf16.msra.mxu0 %v1584_v5  ;;  %1509 = vmatpush1.bf16.msra.mxu1 %v1584_v5  ;;  %v520_v9 = vsel %vm505_vm0, %v1724_v18, %v490_v11  ;;  %v1921_v18 = vcombine.low %v514_v0, %v517_v16 }
  0x97   : > { %1072 = vmatprep.subr.bf16.mxu0 %v1620_v1  ;;  %1498 = vmatprep.subr.bf16.mxu1 %v1620_v1  ;;  %v1379_v13 = vcombine.low %v517_v16, %v520_v9  ;;  %v1939_v25 = vcombine.low %v520_v9, %v523_v22 }
  0x98   : > { %1398 = vmatprep.mubr.msk.bf16.mxu0 %vm505_vm0, %v1380_v44  ;;  %1422 = vmatprep.mubr.msk.bf16.mxu1 %vm505_vm0, %v1841_v10 }
  0x99   : > { %v494_v12 = vpop.permute.xlu0 %493 }
  0x9a   : > { %1073 = vmatpush1.bf16.msra.mxu0 %v1585_v7  ;;  %1510 = vmatpush1.bf16.msra.mxu1 %v1585_v7  ;;  %v526_v24 = vsel %vm505_vm0, %v1748_v33, %v494_v12  ;;  %v496_v33 = vpop.permute.xlu1 %495 }
  0x9b   : > { %1074 = vmatprep.subr.bf16.mxu0 %v1620_v1  ;;  %1499 = vmatprep.subr.bf16.mxu1 %v1620_v1  ;;  %v1381_v26 = vcombine.low %v523_v22, %v526_v24  ;;  %v529_v29 = vsel %vm505_vm0, %v1762_v39, %v496_v33  ;;  %v1590_v39 = vld [vmem:[%s2020_s2 + $0xc8] sm:$0xff]  }
  0x9c   : > { %v1407_v31 = vcombine.low %v526_v24, %v529_v29 }
  0x9d   : > { %761 = vmatmul.mubr.bf16.gmra.mxu0 %v1379_v13  ;;  %922 = vmatmul.mubr.bf16.gmra.mxu1 %v1921_v18  ;;  %v591_v27 = vpop.permute.xlu0 %590  ;;  %v1468_v13 = vld [vmem:[%s2021_s3] ss:$0 sm:$0xff] }
  0x9e   : > { %1075 = vmatpush1.bf16.msra.mxu0 %v1586_v17  ;;  %1511 = vmatpush1.bf16.msra.mxu1 %v1586_v17  ;;  %v595_v30 = vsel %vm505_vm0, %v1773_v49, %v591_v27  ;;  %v1591_v49 = vld [vmem:[%s2020_s2 + $0xc0] sm:$0xff]   ;;  %v959_v40 = vpop.permute.xlu1 %958 }
  0x9f   : > { %1076 = vmatprep.subr.bf16.mxu0 %v1620_v1  ;;  %1500 = vmatprep.subr.bf16.mxu1 %v1620_v1  ;;  %v1383_v34 = vcombine.low %v529_v29, %v595_v30  ;;  %v963_v41 = vsel %vm505_vm0, %v1783_v55, %v959_v40 }
  0xa0   : > { %1423 = vmatprep.mubr.msk.bf16.mxu1 %vm505_vm0, %v1855_v46  ;;  %1399 = vmatprep.mubr.msk.bf16.mxu0 %vm505_vm0, %v1860_v37 }
  0xa2   : > { %1077 = vmatpush1.bf16.msra.mxu0 %v1587_v20  ;;  %1512 = vmatpush1.bf16.msra.mxu1 %v1587_v20 }
  0xa3   : > { %1078 = vmatprep.subr.bf16.mxu0 %v1620_v1  ;;  %1501 = vmatprep.subr.bf16.mxu1 %v1620_v1 }
  0xa5   : > { %930 = vmatmul.mubr.bf16.gmra.mxu1 %v1939_v25  ;;  %769 = vmatmul.mubr.bf16.gmra.mxu0 %v1381_v26 }
  0xa6   : > { %1079 = vmatpush1.bf16.msra.mxu0 %v1588_v23  ;;  %1513 = vmatpush1.bf16.msra.mxu1 %v1588_v23 }
  0xa7   : > { %1080 = vmatprep.subr.bf16.mxu0 %v1620_v1  ;;  %1502 = vmatprep.subr.bf16.mxu1 %v1620_v1 }
  0xa8   : > { %1424 = vmatprep.mubr.msk.bf16.mxu1 %vm505_vm0, %v1866_v50  ;;  %1400 = vmatprep.mubr.msk.bf16.mxu0 %vm505_vm0, %v1873_v53 }
  0xaa   : > { %1081 = vmatpush1.bf16.msra.mxu0 %v1589_v28  ;;  %1514 = vmatpush1.bf16.msra.mxu1 %v1589_v28 }
  0xab   : > { %1082 = vmatprep.subr.bf16.mxu0 %v1620_v1  ;;  %1503 = vmatprep.subr.bf16.mxu1 %v1620_v1 }
  0xad   : > { %938 = vmatmul.mubr.bf16.gmra.mxu1 %v1407_v31  ;;  %777 = vmatmul.mubr.bf16.gmra.mxu0 %v1383_v34 }
  0xae   : > { %1083 = vmatpush1.bf16.msra.mxu0 %v1590_v39  ;;  %1515 = vmatpush1.bf16.msra.mxu1 %v1590_v39 }
  0xaf   : > { %1084 = vmatprep.subr.bf16.mxu0 %v1620_v1  ;;  %1504 = vmatprep.subr.bf16.mxu1 %v1620_v1 }
  0xb0   : > { %1464 = vmatprep.mubr.msk.bf16.mxu0 %vm505_vm0, %v1841_v10  ;;  %1466 = vmatprep.mubr.msk.bf16.mxu1 %vm505_vm0, %v1866_v50  ;;  %v1450_v10 = vcombine.low %v595_v30, %v963_v41 }
  0xb2   : > { %1085 = vmatpush1.bf16.msra.mxu0 %v1591_v49  ;;  %1516 = vmatpush1.bf16.msra.mxu1 %v1591_v49 }
  0xb3   : > { %1094 = vmatprep.subr.bf16.mxu0 %v1620_v1  ;;  %1505 = vmatprep.subr.bf16.mxu1 %v1620_v1 }
  0xb6   : > { %1095 = vmatpush2.bf16.msra.mxu0 %v1592_v35  ;;  %1517 = vmatpush2.bf16.msra.mxu1 %v1592_v35 }
  0xb7   : > { %1096 = vmatprep.subr.bf16.mxu0 %v1620_v1  ;;  %1506 = vmatprep.subr.bf16.mxu1 %v1620_v1 }
  0xba   : > { %1097 = vmatpush2.bf16.msra.mxu0 %v1593_v36  ;;  %1518 = vmatpush2.bf16.msra.mxu1 %v1593_v36 }
  0xbb   : > { %1098 = vmatprep.subr.bf16.mxu0 %v1620_v1  ;;  %1507 = vmatprep.subr.bf16.mxu1 %v1620_v1 }
  0xbe   : > { %1099 = vmatpush2.bf16.msra.mxu0 %v1594_v38  ;;  %1519 = vmatpush2.bf16.msra.mxu1 %v1594_v38 }
  0xbf   : > { %1100 = vmatprep.subr.bf16.mxu0 %v1620_v1  ;;  %1508 = vmatprep.subr.bf16.mxu1 %v1620_v1 }
  0xc2   : > { %1101 = vmatpush2.bf16.msra.mxu0 %v1595_v21  ;;  %1520 = vmatpush2.bf16.msra.mxu1 %v1595_v21 }
  0xc5   : > { %1103 = vmatmul.mubr.bf16.vlgmr.msra.gmra.mxu0 %v1921_v18  ;;  %1119 = vmatmul.mubr.bf16.vlgmr.msra.gmra.mxu1 %v1407_v31 }
  0xc6   : > { %1465 = vmatprep.mubr.msk.bf16.mxu0 %vm505_vm0, %v1855_v46  ;;  %1467 = vmatprep.mubr.msk.bf16.mxu1 %vm505_vm0, %v1895_v60 }
  0xcd   : > { %1111 = vmatmul.mubr.bf16.gmra.mxu0 %v1939_v25  ;;  %1127 = vmatmul.mubr.bf16.gmra.mxu1 %v1450_v10 }
 0x155   : > { %v754_v1 = vpop.f32.mrf.mxu0  ;;  %v915_v15 = vpop.f32.mrf.mxu1 }
 0x156   : > { %v916_v8 = vadd.f32 %v915_v15, %v754_v1 }
 0x157   : > { %v756_v42 = vpop.f32.mrf.mxu0  ;;  %v917_v43 = vpop.f32.mrf.mxu1 }
 0x159   : > { %v757_v14 = vpop.f32.mrf.mxu0  ;;  %v918_v44 = vpop.f32.mrf.mxu1 }
 0x15a   : > { %v919_v12 = vadd.f32 %v918_v44, %v757_v14 }
 0x15b   : > { %v759_v45 = vpop.f32.mrf.mxu0  ;;  %v920_v32 = vpop.f32.mrf.mxu1 }
 0x15d   : > { %v762_v47 = vpop.f32.mrf.mxu0  ;;  %v923_v46 = vpop.f32.mrf.mxu1 }
 0x15e   : > { %v924_v29 = vadd.f32 %v923_v46, %v762_v47 }
 0x15f   : > { %v764_v37 = vpop.f32.mrf.mxu0  ;;  %v925_v48 = vpop.f32.mrf.mxu1 }
 0x161   : > { %v765_v50 = vpop.f32.mrf.mxu0  ;;  %v926_v51 = vpop.f32.mrf.mxu1 }
 0x162   : > { %v927_v15 = vadd.f32 %v926_v51, %v765_v50 }
 0x163   : > { %v928_v52 = vpop.f32.mrf.mxu1  ;;  %v767_v55 = vpop.f32.mrf.mxu0 }
 0x165   : > { %v931_v53 = vpop.f32.mrf.mxu1  ;;  %v770_v54 = vpop.f32.mrf.mxu0 }
 0x166   : > { %v932_v11 = vadd.f32 %v931_v53, %v770_v54 }
 0x167   : > { %v933_v56 = vpop.f32.mrf.mxu1  ;;  %v772_v57 = vpop.f32.mrf.mxu0 }
 0x169   : > { %v934_v58 = vpop.f32.mrf.mxu1  ;;  %v773_v59 = vpop.f32.mrf.mxu0 }
 0x16a   : > { %v935_v20 = vadd.f32 %v934_v58, %v773_v59 }
 0x16b   : > { %v936_v60 = vpop.f32.mrf.mxu1  ;;  %v775_v62 = vpop.f32.mrf.mxu0 }
 0x16d   : > { %v939_v63 = vpop.f32.mrf.mxu1  ;;  %v778_v0 = vpop.f32.mrf.mxu0 }
 0x16e   : > { %v940_v30 = vadd.f32 %v939_v63, %v778_v0 }
 0x16f   : > { %v941_v2 = vpop.f32.mrf.mxu1  ;;  %v780_v3 = vpop.f32.mrf.mxu0 }
 0x171   : > { %v942_v4 = vpop.f32.mrf.mxu1  ;;  %v781_v5 = vpop.f32.mrf.mxu0 }
 0x172   : > { %v943_v42 = vadd.f32 %v942_v4, %v781_v5 }
 0x173   : > { %v944_v6 = vpop.f32.mrf.mxu1  ;;  %v783_v61 = vpop.f32.mrf.mxu0 }
 0x185   : > { %v1104_v7 = vpop.f32.mrf.mxu0  ;;  %v1120_v9 = vpop.f32.mrf.mxu1 }
 0x186   : > { %v1135_v16 = vadd.f32 %v1104_v7, %v916_v8  ;;  %v1139_v17 = vadd.f32 %v1120_v9, %v932_v11 }
 0x187   : > { %v1106_v18 = vpop.f32.mrf.mxu0  ;;  %v1122_v19 = vpop.f32.mrf.mxu1 }
 0x188   : > { %v1150_v22 = vadd.f32 %v1468_v13, %v1135_v16  ;;  %v1154_v24 = vadd.f32 %v1468_v13, %v1139_v17 }
 0x189   : > { %v1107_v25 = vpop.f32.mrf.mxu0  ;;  %v1123_v26 = vpop.f32.mrf.mxu1 }
 0x18a   : > { %v1136_v23 = vadd.f32 %v1107_v25, %v919_v12  ;;  %v1140_v33 = vadd.f32 %v1123_v26, %v935_v20  ;;  %v1158_v39 = vmax.f32 %v1150_v22, 0.0  ;;  %v1162_v49 = vmax.f32 %v1154_v24, 0.0 }
 0x18b   : > { %v1109_v27 = vpop.f32.mrf.mxu0  ;;  %v1125_v28 = vpop.f32.mrf.mxu1 }
 0x18c   : > { %v1151_v31 = vadd.f32 %v1468_v13, %v1136_v23  ;;  %v1155_v34 = vadd.f32 %v1468_v13, %v1140_v33 }
 0x18d   : > { %v1112_v35 = vpop.f32.mrf.mxu0  ;;  %v1128_v36 = vpop.f32.mrf.mxu1 }
 0x18e   : > { %v1159_v38 = vmax.f32 %v1151_v31, 0.0  ;;  %v1163_v21 = vmax.f32 %v1155_v34, 0.0  ;;  %v1137_v40 = vadd.f32 %v1112_v35, %v924_v29  ;;  %v1141_v41 = vadd.f32 %v1128_v36, %v940_v30 }
 0x18f   : > { %v1114_v10 = vpop.f32.mrf.mxu0  ;;  %v1130_v1 = vpop.f32.mrf.mxu1 }
 0x190   : > { %v1477_v43 = vpack.c.bf16 %v1159_v38, %v1158_v39  ;;  %v1487_v14 = vpack.c.bf16 %v1163_v21, %v1162_v49  ;;  %v1152_v32 = vadd.f32 %v1468_v13, %v1137_v40  ;;  %v1156_v47 = vadd.f32 %v1468_v13, %v1141_v41 }
 0x191   : > { %v1115_v44 = vpop.f32.mrf.mxu0  ;;  %v1131_v45 = vpop.f32.mrf.mxu1 }
 0x192   : > { %1478 = vst [vmem:[%s362_s13] sm:$0xff] %v1477_v43   ;;  %1495 = vst [vmem:[%s362_s13 + $0x10] sm:$0xff] %v1487_v14   ;;  %v1138_v46 = vadd.f32 %v1115_v44, %v927_v15  ;;  %v1142_v37 = vadd.f32 %v1131_v45, %v943_v42  ;;  %v1160_v54 = vmax.f32 %v1152_v32, 0.0  ;;  %v1164_v56 = vmax.f32 %v1156_v47, 0.0 }
 0x193   : > { %v1117_v48 = vpop.f32.mrf.mxu0  ;;  %v1133_v52 = vpop.f32.mrf.mxu1 }
 0x194   : > { %v1153_v55 = vadd.f32 %v1468_v13, %v1138_v46  ;;  %v1157_v53 = vadd.f32 %v1468_v13, %v1142_v37 }
 0x196   : > { %v1161_v57 = vmax.f32 %v1153_v55, 0.0  ;;  %v1165_v58 = vmax.f32 %v1157_v53, 0.0 }
 0x198   : > { %v1482_v50 = vpack.c.bf16 %v1161_v57, %v1160_v54  ;;  %v1492_v51 = vpack.c.bf16 %v1165_v58, %v1164_v56 }
 0x19a   : > { %1494 = vst [vmem:[%s362_s13 + $0x8] sm:$0xff] %v1482_v50   ;;  %1496 = vst [vmem:[%s362_s13 + $0x18] sm:$0xff] %v1492_v51  }
 0x19b PF: > { %s14_s17 = sadd.s32 1, %s1618_s17   ;;  %s2023_s15 = smov %s1614_s16 }
 0x19c   : > { %p11_p5 = scmp.ge.s32.totalorder %s14_s17, 4   ;;  %s2024_s16 = smov %s2026_s18 }
 0x19e   :  { %13 = sbr.rel (!%p11_p5) target bundleno = 2 (0x2), region = 77 }

// kernel: vgg19_slices_forward.5
= control target key start
LH: loop header
LB: loop body
LE: loop exit
PB: predicated region body
PF: predicated region fallthrough
CT: control target
= control target key end

     0   :  { %9 = vsyncpa [#allocation3], 0  ;;  %s2492_s15 = smov 0   ;;  %s2494_s16 = smov 0   ;;  %s3147_s0 = inlined_call_operand.vmem [shape: bf16[2,18,18,8], index: 0, kind: input, shape index: {}, may-alias: {0,1}]   ;;  %s3148_s1 = inlined_call_operand.vmem [shape: bf16[2,18,18,8], index: 1, kind: input, shape index: {}, may-alias: {0,1}]   ;;  %s3149_s2 = inlined_call_operand.vmem [shape: bf16[3,24,64], index: 2, kind: input, shape index: {}]   ;;  %s3150_s3 = inlined_call_operand.hbm [shape: f32[1,64], index: 3, kind: input, shape index: {}]   ;;  %s3151_s4 = inlined_call_operand.vmem [shape: bf16[2,16,16,64], index: 4, kind: output, shape index: {}]  }
   0x1   :  { %s2496_s17 = smov 0  }
   0x2 LB: > { %s1980_s18 = sadd.s32 4294967295, %s2462_s17   ;;  %s34_s19 = sadd.s32 1, %s2458_s16  ;;  %s2462_s17 = sphi %s2496_s17, %s15_s17   ;;  %s2458_s16 = sphi %s2494_s16, %s3155_s16   ;;  %s2454_s15 = sphi %s2492_s15, %s3154_s15  }
   0x3   : > { %p36_p0 = scmp.ge.s32.totalorder %s34_s19, 2  ;;  %p1982_p1 = scmp.ge.s32.totalorder %s2462_s17, 1 }
   0x4   : > { %p181_p2 = scmp.lt.s32.totalorder %s2462_s17, 3  ;;  %p2517_p4 = scmp.eq.s32.totalorder %s1980_s18, 0 }
   0x5   : > { %s3157_s19 = smov (%p36_p0, %s34_s19), 0  ;;  %s2464_s22 = smov [#allocation2]  }
   0x6   : > { %p2513_p3 = pnand %p1982_p1, %p181_p2  ;;  %s203_s23 = sshll.u32 %s2464_s22, 4  ;;  %s204_s23 = int_to_ptr.vmem [resolvable:$true] %s203_s23 }
   0x7   : > { %s2421_s24 = scalar_lea.vmem %s204_s23, 16  ;;  %s2428_s25 = scalar_lea.vmem %s204_s23, 32 }
   0x8   : > { %p2334_p5 = pneg %p2513_p3  ;;  %p2422_p8 = scmp.ne.s32.totalorder %s204_s23, %s2421_s24 }
   0x9   : > { %p2429_p11 = scmp.lt.s32.totalorder %s204_s23, %s204_s23  ;;  %p2430_p12 = scmp.lt.s32.totalorder %s2428_s25, %s2421_s24 }
   0xa   : > { %p2335_p6 = pnand %p2517_p4, %p2334_p5 }
   0xb   : > { %p2431_p13 = por %p2430_p12, %p2429_p11 }
   0xc   : > { %p2412_p7 = pneg %p2335_p6 }
   0xe   : > { %p2424_p9 = pnand %p2422_p8, %p2412_p7 }
  0x10   : > { %p2425_p10 = pneg %p2424_p9 }
  0x12   : > { %p2432_p0 = pnand %p2431_p13, %p2425_p10 }
  0x14   : > { %2435 = shalt.err (!%p2432_p0)
}
  0x15   : > { %2337 = dma.hbm_to_vmem [thread:$0]  (!%p2335_p6), %s3150_s3, 16, %s204_s23, [#allocation3]  }
  0x16   : > { %258 = sbr.rel (%p2513_p3) target bundleno = 487 (0x1e7), region = 36 }
  0x1b   : > { %2449 = dma.done.wait (%p2517_p4), [#allocation3], 16  }
  0x1c   : > { %2451 = vsyncadd (%p2517_p4), [#allocation3], 4294967280  ;;  %p324_p1 = scmp.lt.s32.totalorder %s2454_s15, 1  ;;  %vm780_vm0 = vcmask 1046528   ;;  %vm555_vm1 = vsmask.f32 7424 }
  0x1d   : > { %s2465_s6 = smov 16   ;;  %s2466_s7 = smov 8   ;;  %vm1007_vm2 = vcmask 1043456   ;;  %vm861_vm3 = vcmask 64512   ;;  %vm894_vm4 = vcmask 130048   ;;  %vm974_vm5 = vcmask 195584  }
  0x1e   : > { %s3159_s15 = smov (!%p324_p1, %s2454_s15), 1  ;;  %vm1788_vm6 = vcmask 519168  }
  0x1f   : > { %s2328_s28 = smul.u32 216, %s3159_s15 }
  0x21   : > { %s2544_s5 = scalar_lea.vmem %s3147_s0, %s2328_s28  ;;  %s2124_s8 = sadd.s32 192, %s2328_s28 }
  0x22   : > { %v2547_v0 = vld [vmem:[%s2544_s5 + $0x78] sm:$0xff]   ;;  %v2369_v1 = vld [vmem:[%s2544_s5 + $0x80] ss:$0 sps:$4 sm:$0x11]   ;;  %v2551_v2 = vld [vmem:[%s2544_s5 + $0x6c] sm:$0xff]   ;;  %s2675_s11 = scalar_lea.vmem %s3148_s1, %s2124_s8  ;;  %s2125_s28 = sshll.u32 %s3159_s15, 7 }
  0x23   : > { %v811_v3 = vrot.slane %v2547_v0, 1  ;;  %v812_v4 = vrot.slane %v2369_v1, 1  ;;  %v2371_v5 = vld [vmem:[%s2544_s5 + $0x74] ss:$0 sps:$4 sm:$0x11]   ;;  %v2556_v6 = vld [vmem:[%s2544_s5 + $0x18] sm:$0xff]  }
  0x24   : > { %v808_v7 = vrot.slane %v2551_v2, 1  ;;  %v2560_v8 = vld [vmem:[%s2544_s5 + $0xc] sm:$0xff]   ;;  %v809_v10 = vrot.slane %v2371_v5, 1  ;;  %v2373_v11 = vld [vmem:[%s2544_s5 + $0x20] ss:$0 sps:$4 sm:$0x11]  }
  0x25   : > { %v813_v9 = vsel %vm780_vm0, %v811_v3, %v812_v4  ;;  %v787_v12 = vrot.slane %v2556_v6, 1  ;;  %v784_v13 = vrot.slane %v2560_v8, 1  ;;  %v788_v15 = vrot.slane %v2373_v11, 1  ;;  %v2375_v16 = vld [vmem:[%s2544_s5 + $0x14] ss:$0 sps:$4 sm:$0x11]  }
  0x26   : > { %849 = vrot.lane.b32.xlu0 %v813_v9, %s2465_s6  ;;  %v810_v14 = vsel %vm780_vm0, %v808_v7, %v809_v10  ;;  %v665_v17 = vshrl.u32 %v2551_v2, 16  ;;  %v667_v18 = vshll.u32 %v2551_v2, 16  ;;  %v672_v19 = vshll.u32 %v2371_v5, 16  ;;  %v2576_v25 = vld [vmem:[%s2544_s5 + $0x84] sm:$0xff]   ;;  %v2589_v39 = vld [vmem:[%s2544_s5 + $0x90] sm:$0xff]   ;;  %v2616_v9 = vld [vmem:[%s2544_s5 + $0x9c] sm:$0xff]  }
  0x27   : > { %847 = vrot.lane.b32.xlu1 %v810_v14, %s2465_s6  ;;  %v569_v20 = vshrl.u32 %v2560_v8, 16  ;;  %v789_v21 = vsel %vm780_vm0, %v787_v12, %v788_v15  ;;  %v785_v22 = vrot.slane %v2375_v16, 1  ;;  %v571_v23 = vshll.u32 %v2560_v8, 16  ;;  %v2582_v34 = vld [vmem:[%s2544_s5 + $0x8c] ss:$0 sps:$4 sm:$0x11]  }
  0x28   : > { %v576_v24 = vshll.u32 %v2375_v16, 16  ;;  %v669_v26 = vrot.slane %v667_v18, 1  ;;  %v674_v27 = vrot.slane %v672_v19, 1  ;;  %v677_v28 = vshrl.u32 %v2547_v0, 16  ;;  %v2593_v44 = vld [vmem:[%s2544_s5 + $0x24] sm:$0xff]   ;;  %v2611_v3 = vld [vmem:[%s2544_s5 + $0x30] sm:$0xff]  }
  0x29   : > { %v679_v29 = vshll.u32 %v2547_v0, 16  ;;  %v786_v30 = vsel %vm780_vm0, %v784_v13, %v785_v22  ;;  %v573_v31 = vrot.slane %v571_v23, 1  ;;  %v684_v33 = vshll.u32 %v2369_v1, 16  ;;  %v2379_v52 = vld [vmem:[%s2544_s5 + $0x98] ss:$0 sps:$4 sm:$0x11]  }
  0x2a   : > { %v578_v32 = vrot.slane %v576_v24, 1  ;;  %831 = vrot.lane.b32.xlu0 %v786_v30, %s2465_s6  ;;  %v670_v35 = vor.u32 %v669_v26, %v665_v17  ;;  %v581_v37 = vshrl.u32 %v2556_v6, 16  ;;  %v583_v38 = vshll.u32 %v2556_v6, 16  ;;  %v2608_v1 = vld [vmem:[%s2544_s5 + $0x2c] ss:$0 sps:$4 sm:$0x11]  }
  0x2b   : > { %833 = vrot.lane.b32.xlu1 %v789_v21, %s2465_s6  ;;  %v681_v36 = vrot.slane %v679_v29, 1  ;;  %v574_v40 = vor.u32 %v573_v31, %v569_v20  ;;  %v686_v41 = vrot.slane %v684_v33, 1  ;;  %v588_v42 = vshll.u32 %v2373_v11, 16  ;;  %v2383_v15 = vld [vmem:[%s2544_s5 + $0x38] ss:$0 sps:$4 sm:$0x11]  }
  0x2c   : > { %v689_v43 = vshrl.u32 %v2576_v25, 16  ;;  %v675_v45 = vsel %vm555_vm1, %v670_v35, %v674_v27  ;;  %v585_v47 = vrot.slane %v583_v38, 1  ;;  %v691_v48 = vshll.u32 %v2576_v25, 16  ;;  %v2385_v23 = vld [vmem:[%s2544_s5 + $0xa4] ss:$0 sps:$4 sm:$0x11]  }
  0x2d   : > { %v682_v46 = vor.u32 %v681_v36, %v677_v28  ;;  %v579_v49 = vsel %vm555_vm1, %v574_v40, %v578_v32  ;;  %v590_v50 = vrot.slane %v588_v42, 1  ;;  %v696_v51 = vshll.u32 %v2582_v34, 16  ;;  %v2636_v33 = vld [vmem:[%s2544_s5 + $0xa8] sm:$0xff]   ;;  %v2646_v42 = vld [vmem:[%s2544_s5 + $0x3c] sm:$0xff]  }
  0x2e   : > { %v701_v53 = vshrl.u32 %v2589_v39, 16  ;;  %766 = vrot.lane.b32.xlu0 %v675_v45, %s2466_s7  ;;  %v586_v54 = vor.u32 %v585_v47, %v581_v37  ;;  %v693_v55 = vrot.slane %v691_v48, 1  ;;  %v703_v56 = vshll.u32 %v2589_v39, 16  ;;  %v2642_v37 = vld [vmem:[%s2544_s5 + $0xb0] ss:$0 sps:$4 sm:$0x11]  }
  0x2f   : > { %750 = vrot.lane.b32.xlu1 %v579_v49, %s2466_s7  ;;  %v687_v57 = vsel %vm555_vm1, %v682_v46, %v686_v41  ;;  %v698_v58 = vrot.slane %v696_v51, 1  ;;  %v708_v59 = vshll.u32 %v2379_v52, 16  ;;  %v814_v63 = vrot.slane %v2576_v25, 1 }
  0x30   : > { %v591_v60 = vsel %vm555_vm1, %v586_v54, %v590_v50  ;;  %v694_v61 = vor.u32 %v693_v55, %v689_v43  ;;  %v705_v62 = vrot.slane %v703_v56, 1  ;;  %v593_v5 = vshrl.u32 %v2593_v44, 16  ;;  %v2655_v50 = vld [vmem:[%s2544_s5 + $0x44] ss:$0 sps:$4 sm:$0x11]  }
  0x31   : > { %v710_v4 = vrot.slane %v708_v59, 1  ;;  %v595_v7 = vshll.u32 %v2593_v44, 16  ;;  %v815_v11 = vrot.slane %v2582_v34, 1  ;;  %v600_v12 = vshll.u32 %v2608_v1, 16 }
  0x32   : > { %768 = vrot.lane.b32.xlu0 %v687_v57, %s2466_s7  ;;  %v706_v10 = vor.u32 %v705_v62, %v701_v53  ;;  %v699_v13 = vsel %vm555_vm1, %v694_v61, %v698_v58  ;;  %v605_v16 = vshrl.u32 %v2611_v3, 16  ;;  %v607_v17 = vshll.u32 %v2611_v3, 16  ;;  %v2391_v59 = vld [vmem:[%s2544_s5 + $0x50] ss:$0 sps:$4 sm:$0x11]  }
  0x33   : > { %752 = vrot.lane.b32.xlu1 %v591_v60, %s2466_s7  ;;  %v597_v14 = vrot.slane %v595_v7, 1  ;;  %v602_v19 = vrot.slane %v600_v12, 1  ;;  %v612_v22 = vshll.u32 %v2383_v15, 16  ;;  %v817_v24 = vrot.slane %v2589_v39, 1 }
  0x34   : > { %v711_v18 = vsel %vm555_vm1, %v706_v10, %v710_v4  ;;  %v609_v21 = vrot.slane %v607_v17, 1  ;;  %v818_v26 = vrot.slane %v2379_v52, 1  ;;  %v790_v27 = vrot.slane %v2593_v44, 1  ;;  %v2659_v52 = vld [vmem:[%s2544_s5 + $0x48] sm:$0xff]   ;;  %v2689_v17 = vld [vmem:[%s2675_s11] sm:$0xff]  }
  0x35   : > { %v598_v20 = vor.u32 %v597_v14, %v593_v5  ;;  %v715_v28 = vshll.u32 %v2616_v9, 16  ;;  %v816_v29 = vsel %vm780_vm0, %v814_v63, %v815_v11  ;;  %v614_v32 = vrot.slane %v612_v22, 1  ;;  %v2678_v5 = vld [vmem:[%s2544_s5 + $0xb4] sm:$0xff]   ;;  %v2681_v7 = vld [vmem:[%s2544_s5 + $0xbc] ss:$0 sps:$4 sm:$0x11]  }
  0x36   : > { %770 = vrot.lane.b32.xlu0 %v699_v13, %s2466_s7  ;;  %v610_v31 = vor.u32 %v609_v21, %v605_v16  ;;  %v791_v34 = vrot.slane %v2608_v1, 1  ;;  %v793_v35 = vrot.slane %v2611_v3, 1  ;;  %v713_v36 = vshrl.u32 %v2616_v9, 16 }
  0x37   : > { %772 = vrot.lane.b32.xlu1 %v711_v18, %s2466_s7  ;;  %v603_v30 = vsel %vm555_vm1, %v598_v20, %v602_v19  ;;  %v717_v38 = vrot.slane %v715_v28, 1  ;;  %v720_v40 = vshll.u32 %v2385_v23, 16  ;;  %v727_v41 = vshll.u32 %v2636_v33, 16 }
  0x38   : > { %v819_v43 = vsel %vm780_vm0, %v817_v24, %v818_v26  ;;  %v725_v45 = vshrl.u32 %v2636_v33, 16  ;;  %v732_v46 = vshll.u32 %v2642_v37, 16  ;;  %v615_v47 = vsel %vm555_vm1, %v610_v31, %v614_v32  ;;  %v2703_v31 = vld [vmem:[%s2544_s5 + $0x54] sm:$0xff]   ;;  %v2706_v32 = vld [vmem:[%s2675_s11 + $0x8] ss:$0 sps:$4 sm:$0x11]  }
  0x39   : > { %v794_v48 = vrot.slane %v2383_v15, 1  ;;  %v729_v49 = vrot.slane %v727_v41, 1  ;;  %v619_v51 = vshll.u32 %v2646_v42, 16  ;;  %v718_v53 = vor.u32 %v717_v38, %v713_v36  ;;  %v2715_v41 = vld [vmem:[%s2544_s5 + $0x5c] ss:$0 sps:$4 sm:$0x11]  }
  0x3a   : > { %851 = vrot.lane.b32.xlu0 %v816_v29, %s2465_s6  ;;  %v722_v54 = vrot.slane %v720_v40, 1  ;;  %v734_v56 = vrot.slane %v732_v46, 1  ;;  %v617_v57 = vshrl.u32 %v2646_v42, 16  ;;  %v792_v60 = vsel %vm780_vm0, %v790_v27, %v791_v34 }
  0x3b   : > { %754 = vrot.lane.b32.xlu1 %v603_v30, %s2466_s7  ;;  %v730_v55 = vor.u32 %v729_v49, %v725_v45  ;;  %v621_v58 = vrot.slane %v619_v51, 1  ;;  %v795_v61 = vsel %vm780_vm0, %v793_v35, %v794_v48  ;;  %v624_v62 = vshll.u32 %v2655_v50, 16  ;;  %v2726_v51 = vld [vmem:[%s2544_s5] sm:$0xff]  }
  0x3c   : > { %v631_v63 = vshll.u32 %v2659_v52, 16  ;;  %v820_v1 = vrot.slane %v2616_v9, 1  ;;  %v821_v4 = vrot.slane %v2385_v23, 1  ;;  %v723_v10 = vsel %vm555_vm1, %v718_v53, %v722_v54  ;;  %v2730_v54 = vld [vmem:[%s2544_s5 + $0x68] ss:$0 sps:$4 sm:$0x11]  }
  0x3d   : > { %v735_v11 = vsel %vm555_vm1, %v730_v55, %v734_v56  ;;  %v629_v12 = vshrl.u32 %v2659_v52, 16  ;;  %v622_v13 = vor.u32 %v621_v58, %v617_v57  ;;  %v626_v14 = vrot.slane %v624_v62, 1  ;;  %v2733_v55 = vld [vmem:[%s2544_s5 + $0x8] ss:$0 sps:$4 sm:$0x11]  }
  0x3e   : > { %853 = vrot.lane.b32.xlu0 %v819_v43, %s2465_s6  ;;  %v633_v15 = vrot.slane %v631_v63, 1  ;;  %v636_v16 = vshll.u32 %v2391_v59, 16  ;;  %v822_v18 = vsel %vm780_vm0, %v820_v1, %v821_v4  ;;  %v823_v19 = vrot.slane %v2636_v33, 1 }
  0x3f   : > { %756 = vrot.lane.b32.xlu1 %v615_v47, %s2466_s7  ;;  %v824_v20 = vrot.slane %v2642_v37, 1  ;;  %v739_v21 = vshll.u32 %v2678_v5, 16  ;;  %v796_v22 = vrot.slane %v2646_v42, 1  ;;  %v797_v23 = vrot.slane %v2655_v50, 1  ;;  %v2721_v47 = vld [vmem:[%s2544_s5 + $0x60] sm:$0xff]   ;;  %s3018_s5 = scalar_lea.vmem %s3151_s4, %s2125_s28 }
  0x40   : > { %v799_v24 = vrot.slane %v2659_v52, 1  ;;  %v744_v26 = vshll.u32 %v2681_v7, 16  ;;  %v627_v27 = vsel %vm555_vm1, %v622_v13, %v626_v14  ;;  %v634_v28 = vor.u32 %v633_v15, %v629_v12  ;;  %v2405_v15 = vld [vmem:[%s3149_s2 + $0xc] sm:$0xff]  }
  0x41   : > { %v638_v29 = vrot.slane %v636_v16, 1  ;;  %v800_v30 = vrot.slane %v2391_v59, 1  ;;  %v941_v34 = vshll.u32 %v2689_v17, 16  ;;  %v737_v35 = vshrl.u32 %v2678_v5, 16 }
  0x42   : > { %835 = vrot.lane.b32.xlu0 %v792_v60, %s2465_s6  ;;  %v741_v36 = vrot.slane %v739_v21, 1  ;;  %v826_v37 = vrot.slane %v2678_v5, 1  ;;  %v827_v38 = vrot.slane %v2681_v7, 1  ;;  %v746_v40 = vrot.slane %v744_v26, 1  ;;  %v2402_v60 = vld [vmem:[%s3149_s2 + $0x14] ss:$0 sps:$4 sm:$0xff]  }
  0x43   : > { %837 = vrot.lane.b32.xlu1 %v795_v61, %s2465_s6  ;;  %v825_v43 = vsel %vm780_vm0, %v823_v19, %v824_v20  ;;  %v639_v45 = vsel %vm555_vm1, %v634_v28, %v638_v29  ;;  %v643_v46 = vshll.u32 %v2703_v31, 16  ;;  %v939_v48 = vshrl.u32 %v2689_v17, 16  ;;  %2324 = vmatprep.subr.msk.bf16.mxu0 %vm1007_vm2, %v2402_v60  ;;  %v2406_v21 = vld [vmem:[%s3149_s2 + $0x8] ss:$0 sps:$4 sm:$0xff]  }
  0x44   : > { %v943_v49 = vrot.slane %v941_v34, 1  ;;  %v946_v50 = vshll.u32 %v2706_v32, 16  ;;  %v798_v53 = vsel %vm780_vm0, %v796_v22, %v797_v23  ;;  %v801_v56 = vsel %vm780_vm0, %v799_v24, %v800_v30  ;;  %2325 = vmatprep.subr.msk.bf16.mxu1 %vm1007_vm2, %v2402_v60  ;;  %v2407_v23 = vld [vmem:[%s3149_s2 + $0x20] ss:$0 sps:$4 sm:$0xff]  }
  0x45   : > { %v742_v57 = vor.u32 %v741_v36, %v737_v35  ;;  %v648_v58 = vshll.u32 %v2715_v41, 16  ;;  %v781_v59 = vrot.slane %v2726_v51, 1  ;;  %v641_v61 = vshrl.u32 %v2703_v31, 16  ;;  %v2781_v35 = vld [vmem:[%s2675_s11 + $0xc] sm:$0xff]  }
  0x46   : > { %774 = vrot.lane.b32.xlu0 %v723_v10, %s2466_s7  ;;  %v645_v62 = vrot.slane %v643_v46, 1  ;;  %v655_v63 = vshll.u32 %v2721_v47, 16  ;;  %v782_v1 = vrot.slane %v2733_v55, 1  ;;  %v1009_v4 = vsel %vm1007_vm2, %v2402_v60, 0 }
  0x47   : > { %776 = vrot.lane.b32.xlu1 %v735_v11, %s2466_s7  ;;  %v828_v7 = vsel %vm780_vm0, %v826_v37, %v827_v38  ;;  %2213 = vmatpush3.bf16.msra.mxu0 %v1009_v4  ;;  %v747_v11 = vsel %vm555_vm1, %v742_v57, %v746_v40  ;;  %v948_v12 = vrot.slane %v946_v50, 1  ;;  %v650_v13 = vrot.slane %v648_v58, 1  ;;  %v2404_v50 = vld [vmem:[%s2675_s11 + $0x14] ss:$0 sps:$4 sm:$0x11]  }
  0x48   : > { %v2751_v10 = vsel %vm780_vm0, %v781_v59, %v782_v1  ;;  %2322 = vmatpush3.bf16.msra.mxu1 %v1009_v4  ;;  %v653_v14 = vshrl.u32 %v2721_v47, 16  ;;  %v944_v16 = vor.u32 %v943_v49, %v939_v48  ;;  %v657_v19 = vrot.slane %v655_v63, 1  ;;  %2214 = vmatprep.subr.bf16.mxu0 %v2405_v15 }
  0x49   : > { %v660_v20 = vshll.u32 %v2730_v54, 16  ;;  %v952_v22 = vrot.slane %v2689_v17, 1  ;;  %2321 = vmatprep.subr.bf16.mxu1 %v2405_v15  ;;  %v953_v24 = vrot.slane %v2706_v32, 1  ;;  %v2770_v26 = vsel %vm1007_vm2, %v2406_v21, 0 }
  0x4a   : > { %855 = vrot.lane.b32.xlu0 %v822_v18, %s2465_s6  ;;  %v646_v18 = vor.u32 %v645_v62, %v641_v61  ;;  %v2776_v28 = vsel %vm1007_vm2, %v2407_v23, 0  ;;  %v949_v29 = vsel %vm555_vm1, %v944_v16, %v948_v12  ;;  %v658_v34 = vor.u32 %v657_v19, %v653_v14 }
  0x4b   : > { %758 = vrot.lane.b32.xlu1 %v627_v27, %s2466_s7  ;;  %2215 = vmatpush3.bf16.msra.mxu0 %v2405_v15  ;;  %v559_v27 = vshll.u32 %v2726_v51, 16  ;;  %v662_v32 = vrot.slane %v660_v20, 1  ;;  %v802_v36 = vrot.slane %v2703_v31, 1  ;;  %v803_v37 = vrot.slane %v2715_v41, 1 }
  0x4c   : > { %2323 = vmatpush3.bf16.msra.mxu1 %v2405_v15  ;;  %v651_v30 = vsel %vm555_vm1, %v646_v18, %v650_v13  ;;  %2327 = vmatprep.subr.msk.bf16.mxu0 %vm1007_vm2, %v2407_v23  ;;  %v805_v38 = vrot.slane %v2721_v47, 1  ;;  %v806_v40 = vrot.slane %v2730_v54, 1  ;;  %v954_v46 = vsel %vm780_vm0, %v952_v22, %v953_v24  ;;  %v2408_v23 = vld [vmem:[%s3149_s2] sm:$0xff]   ;;  %v2409_v24 = vld [vmem:[%s3149_s2 + $0x18] sm:$0xff]  }
  0x4d   : > { %2326 = vmatprep.subr.msk.bf16.mxu1 %vm1007_vm2, %v2406_v21  ;;  %v663_v48 = vsel %vm555_vm1, %v658_v34, %v662_v32  ;;  %v564_v49 = vshll.u32 %v2733_v55, 16  ;;  %v1358_v41 = vshll.u32 %v2781_v35, 16  ;;  %v1356_v58 = vshrl.u32 %v2781_v35, 16 }
  0x4e   : > { %857 = vrot.lane.b32.xlu0 %v825_v43, %s2465_s6  ;;  %v557_v43 = vshrl.u32 %v2726_v51, 16  ;;  %v807_v54 = vsel %vm780_vm0, %v805_v38, %v806_v40  ;;  %v1363_v60 = vshll.u32 %v2404_v50, 16  ;;  %v1369_v55 = vrot.slane %v2781_v35, 1 }
  0x4f   : > { %760 = vrot.lane.b32.xlu1 %v639_v45, %s2466_s7  ;;  %v561_v45 = vrot.slane %v559_v27, 1  ;;  %v566_v57 = vrot.slane %v564_v49, 1  ;;  %v1360_v59 = vrot.slane %v1358_v41, 1  ;;  %v1370_v1 = vrot.slane %v2404_v50, 1 }
  0x50   : > { %v1365_v63 = vrot.slane %v1363_v60, 1 }
  0x51   : > { %v1361_v62 = vor.u32 %v1360_v59, %v1356_v58 }
  0x52   : > { %839 = vrot.lane.b32.xlu0 %v798_v53, %s2465_s6  ;;  %v804_v53 = vsel %vm780_vm0, %v802_v36, %v803_v37 }
  0x53   : > { %841 = vrot.lane.b32.xlu1 %v801_v56, %s2465_s6  ;;  %v562_v56 = vor.u32 %v561_v45, %v557_v43  ;;  %v1366_v4 = vsel %vm555_vm1, %v1361_v62, %v1365_v63 }
  0x55   : > { %v567_v61 = vsel %vm555_vm1, %v562_v56, %v566_v57 }
  0x56   : > { %778 = vrot.lane.b32.xlu0 %v747_v11, %s2466_s7 }
  0x57   : > { %859 = vrot.lane.b32.xlu1 %v828_v7, %s2465_s6  ;;  %v1371_v7 = vsel %vm780_vm0, %v1369_v55, %v1370_v1 }
  0x5a   : > { %950 = vrot.lane.b32.xlu0 %v949_v29, %s2466_s7 }
  0x5b   : > { %762 = vrot.lane.b32.xlu1 %v651_v30, %s2466_s7 }
  0x5e   : > { %955 = vrot.lane.b32.xlu0 %v954_v46, %s2465_s6 }
  0x5f   : > { %764 = vrot.lane.b32.xlu1 %v663_v48, %s2466_s7 }
  0x62   : > { %843 = vrot.lane.b32.xlu0 %v804_v53, %s2465_s6 }
  0x63   : > { %845 = vrot.lane.b32.xlu1 %v807_v54, %s2465_s6 }
  0x66   : > { %748 = vrot.lane.b32.xlu0 %v567_v61, %s2466_s7 }
  0x67   : > { %829 = vrot.lane.b32.xlu1 %v2751_v10, %s2465_s6 }
  0x6a   : > { %1367 = vrot.lane.b32.xlu0 %v1366_v4, %s2466_s7 }
  0x6b   : > { %1372 = vrot.lane.b32.xlu1 %v1371_v7, %s2465_s6 }
  0x98   : > { %v850_v11 = vpop.permute.xlu0 %849 }
  0x99   : > { %v848_v12 = vpop.permute.xlu1 %847 }
  0x9c   : > { %v832_v14 = vpop.permute.xlu0 %831 }
  0x9d   : > { %v834_v13 = vpop.permute.xlu1 %833 }
  0xa0   : > { %v767_v15 = vpop.permute.xlu0 %766 }
  0xa1   : > { %v751_v16 = vpop.permute.xlu1 %750  ;;  %v881_v10 = vsel %vm861_vm3, %v2551_v2, %v767_v15 }
  0xa2   : > { %v865_v18 = vsel %vm861_vm3, %v2560_v8, %v751_v16  ;;  %v2821_v20 = vsel %vm894_vm4, %v881_v10, %v848_v12 }
  0xa3   : > { %v2818_v19 = vsel %vm894_vm4, %v865_v18, %v832_v14  ;;  %2232 = vmatprep.mubr.msk.bf16.mxu1 %vm974_vm5, %v2821_v20 }
  0xa4   : > { %2216 = vmatprep.mubr.msk.bf16.mxu0 %vm974_vm5, %v2818_v19  ;;  %v769_v21 = vpop.permute.xlu0 %768 }
  0xa5   : > { %v753_v22 = vpop.permute.xlu1 %752  ;;  %v883_v2 = vsel %vm861_vm3, %v2547_v0, %v769_v21 }
  0xa6   : > { %v867_v8 = vsel %vm861_vm3, %v2556_v6, %v753_v22  ;;  %v2841_v29 = vsel %vm894_vm4, %v883_v2, %v850_v11 }
  0xa7   : > { %v2838_v27 = vsel %vm894_vm4, %v867_v8, %v834_v13  ;;  %2233 = vmatmul.mubr.msk.bf16.vlgmr.msra.gmra.mxu1 %vm974_vm5, %v2841_v29 }
  0xa8   : > { %2217 = vmatmul.mubr.msk.bf16.vlgmr.msra.gmra.mxu0 %vm974_vm5, %v2838_v27  ;;  %v771_v0 = vpop.permute.xlu0 %770  ;;  %2249 = vmatpush3.bf16.msra.mxu1 %v2770_v26 }
  0xa9   : > { %v773_v6 = vpop.permute.xlu1 %772  ;;  %2285 = vmatpush3.bf16.msra.mxu0 %v2776_v28  ;;  %2250 = vmatprep.subr.bf16.mxu1 %v2408_v23  ;;  %v885_v30 = vsel %vm861_vm3, %v2576_v25, %v771_v0 }
  0xaa   : > { %2286 = vmatprep.subr.bf16.mxu0 %v2409_v24  ;;  %v887_v26 = vsel %vm861_vm3, %v2589_v39, %v773_v6 }
  0xac   : > { %v852_v34 = vpop.permute.xlu0 %851  ;;  %2251 = vmatpush3.bf16.msra.mxu1 %v2408_v23 }
  0xad   : > { %v755_v32 = vpop.permute.xlu1 %754  ;;  %2287 = vmatpush3.bf16.msra.mxu0 %v2409_v24  ;;  %v2852_v36 = vsel %vm894_vm4, %v885_v30, %v852_v34 }
  0xae   : > { %2236 = vmatprep.mubr.msk.bf16.mxu1 %vm974_vm5, %v2852_v36  ;;  %v869_v25 = vsel %vm861_vm3, %v2593_v44, %v755_v32 }
  0xb0   : > { %v854_v37 = vpop.permute.xlu0 %853 }
  0xb1   : > { %v757_v28 = vpop.permute.xlu1 %756  ;;  %v2859_v38 = vsel %vm894_vm4, %v887_v26, %v854_v37 }
  0xb2   : > { %2237 = vmatmul.mubr.msk.bf16.gmra.mxu1 %vm974_vm5, %v2859_v38  ;;  %v871_v40 = vsel %vm861_vm3, %v2611_v3, %v757_v28 }
  0xb4   : > { %v836_v43 = vpop.permute.xlu0 %835 }
  0xb5   : > { %v838_v45 = vpop.permute.xlu1 %837  ;;  %v902_v46 = vsel %vm894_vm4, %v869_v25, %v836_v43 }
  0xb6   : > { %v904_v39 = vsel %vm894_vm4, %v871_v40, %v838_v45  ;;  %2220 = vmatprep.mubr.msk.bf16.mxu0 %vm974_vm5, %v902_v46 }
  0xb7   : > { %2221 = vmatmul.mubr.msk.bf16.gmra.mxu0 %vm974_vm5, %v904_v39 }
  0xb8   : > { %v775_v48 = vpop.permute.xlu0 %774 }
  0xb9   : > { %v777_v49 = vpop.permute.xlu1 %776  ;;  %v889_v50 = vsel %vm861_vm3, %v2616_v9, %v775_v48 }
  0xba   : > { %v891_v3 = vsel %vm861_vm3, %v2636_v33, %v777_v49 }
  0xbc   : > { %v856_v41 = vpop.permute.xlu0 %855 }
  0xbd   : > { %v759_v44 = vpop.permute.xlu1 %758  ;;  %v2874_v53 = vsel %vm894_vm4, %v889_v50, %v856_v41 }
  0xbe   : > { %2240 = vmatprep.mubr.msk.bf16.mxu1 %vm974_vm5, %v2874_v53  ;;  %v873_v9 = vsel %vm861_vm3, %v2646_v42, %v759_v44 }
  0xc0   : > { %v858_v54 = vpop.permute.xlu0 %857 }
  0xc1   : > { %v761_v56 = vpop.permute.xlu1 %760  ;;  %v2881_v57 = vsel %vm894_vm4, %v891_v3, %v858_v54 }
  0xc2   : > { %2241 = vmatmul.mubr.msk.bf16.gmra.mxu1 %vm974_vm5, %v2881_v57  ;;  %v875_v58 = vsel %vm861_vm3, %v2659_v52, %v761_v56 }
  0xc4   : > { %v840_v59 = vpop.permute.xlu0 %839 }
  0xc5   : > { %v842_v60 = vpop.permute.xlu1 %841  ;;  %v906_v55 = vsel %vm894_vm4, %v873_v9, %v840_v59 }
  0xc6   : > { %v908_v33 = vsel %vm894_vm4, %v875_v58, %v842_v60  ;;  %2224 = vmatprep.mubr.msk.bf16.mxu0 %vm974_vm5, %v906_v55  ;;  %v3010_v60 = vld [vmem:[#allocation2] ss:$0 sm:$0xff] }
  0xc7   : > { %2225 = vmatmul.mubr.msk.bf16.gmra.mxu0 %vm974_vm5, %v908_v33 }
  0xc8   : > { %v779_v61 = vpop.permute.xlu0 %778 }
  0xc9   : > { %v860_v62 = vpop.permute.xlu1 %859  ;;  %v893_v63 = vsel %vm861_vm3, %v2678_v5, %v779_v61 }
  0xca   : > { %v926_v42 = vsel %vm894_vm4, %v893_v63, %v860_v62 }
  0xcb   : > { %2244 = vmatprep.mubr.msk.bf16.mxu1 %vm974_vm5, %v926_v42 }
  0xcc   : > { %v951_v52 = vpop.permute.xlu0 %950 }
  0xcd   : > { %v763_v1 = vpop.permute.xlu1 %762  ;;  %v958_v4 = vsel %vm861_vm3, %v2689_v17, %v951_v52 }
  0xce   : > { %v877_v13 = vsel %vm861_vm3, %v2703_v31, %v763_v1 }
  0xd0   : > { %v956_v7 = vpop.permute.xlu0 %955 }
  0xd1   : > { %v765_v11 = vpop.permute.xlu1 %764  ;;  %v960_v12 = vsel %vm894_vm4, %v958_v4, %v956_v7 }
  0xd2   : > { %2245 = vmatmul.mubr.msk.bf16.gmra.mxu1 %vm974_vm5, %v960_v12  ;;  %v879_v5 = vsel %vm861_vm3, %v2721_v47, %v765_v11 }
  0xd4   : > { %v844_v14 = vpop.permute.xlu0 %843 }
  0xd5   : > { %v846_v15 = vpop.permute.xlu1 %845  ;;  %v910_v16 = vsel %vm894_vm4, %v877_v13, %v844_v14 }
  0xd6   : > { %v912_v10 = vsel %vm894_vm4, %v879_v5, %v846_v15  ;;  %2228 = vmatprep.mubr.msk.bf16.mxu0 %vm974_vm5, %v910_v16 }
  0xd7   : > { %2229 = vmatmul.mubr.msk.bf16.gmra.mxu0 %vm974_vm5, %v912_v10 }
  0xd8   : > { %2288 = vmatprep.mubr.msk.bf16.mxu0 %vm974_vm5, %v2838_v27  ;;  %v749_v17 = vpop.permute.xlu0 %748 }
  0xd9   : > { %v830_v18 = vpop.permute.xlu1 %829  ;;  %v863_v31 = vsel %vm861_vm3, %v2726_v51, %v749_v17 }
  0xda   : > { %v896_v47 = vsel %vm894_vm4, %v863_v31, %v830_v18 }
  0xdb   : > { %2252 = vmatprep.mubr.msk.bf16.mxu1 %vm974_vm5, %v896_v47 }
  0xdc   : > { %2253 = vmatmul.mubr.msk.bf16.vlgmr.msra.gmra.mxu1 %vm974_vm5, %v2818_v19  ;;  %v1368_v21 = vpop.permute.xlu0 %1367 }
  0xdd   : > { %v1373_v22 = vpop.permute.xlu1 %1372  ;;  %2256 = vmatprep.mubr.msk.bf16.mxu1 %vm974_vm5, %v2838_v27  ;;  %v1375_v2 = vsel %vm861_vm3, %v2781_v35, %v1368_v21 }
  0xde   : > { %v1377_v8 = vsel %vm894_vm4, %v1375_v2, %v1373_v22 }
  0xdf   : > { %2289 = vmatmul.mubr.msk.bf16.vlgmr.msra.gmra.mxu0 %vm974_vm5, %v902_v46 }
  0xe0   : > { %2292 = vmatprep.mubr.msk.bf16.mxu0 %vm974_vm5, %v904_v39 }
  0xe4   : > { %2257 = vmatmul.mubr.msk.bf16.gmra.mxu1 %vm974_vm5, %v902_v46 }
  0xe5   : > { %2260 = vmatprep.mubr.msk.bf16.mxu1 %vm974_vm5, %v904_v39 }
  0xe7   : > { %2293 = vmatmul.mubr.msk.bf16.gmra.mxu0 %vm974_vm5, %v906_v55 }
  0xe8   : > { %2296 = vmatprep.mubr.msk.bf16.mxu0 %vm974_vm5, %v908_v33 }
  0xec   : > { %2261 = vmatmul.mubr.msk.bf16.gmra.mxu1 %vm974_vm5, %v906_v55 }
  0xed   : > { %2264 = vmatprep.mubr.msk.bf16.mxu1 %vm974_vm5, %v908_v33 }
  0xef   : > { %2297 = vmatmul.mubr.msk.bf16.gmra.mxu0 %vm974_vm5, %v910_v16 }
  0xf0   : > { %2300 = vmatprep.mubr.msk.bf16.mxu0 %vm974_vm5, %v912_v10 }
  0xf4   : > { %2265 = vmatmul.mubr.msk.bf16.gmra.mxu1 %vm974_vm5, %v910_v16 }
  0xf5   : > { %2268 = vmatprep.mubr.msk.bf16.mxu1 %vm974_vm5, %v912_v10 }
  0xf7   : > { %2301 = vmatmul.mubr.msk.bf16.gmra.mxu0 %vm974_vm5, %v2821_v20 }
  0xf8   : > { %2304 = vmatprep.mubr.msk.bf16.mxu0 %vm974_vm5, %v2841_v29 }
  0xfc   : > { %2269 = vmatmul.mubr.msk.bf16.gmra.mxu1 %vm974_vm5, %v2821_v20 }
  0xfd   : > { %2272 = vmatprep.mubr.msk.bf16.mxu1 %vm974_vm5, %v2841_v29 }
  0xff   : > { %2305 = vmatmul.mubr.msk.bf16.gmra.mxu0 %vm974_vm5, %v2852_v36 }
 0x100   : > { %2308 = vmatprep.mubr.msk.bf16.mxu0 %vm974_vm5, %v2859_v38 }
 0x104   : > { %2273 = vmatmul.mubr.msk.bf16.gmra.mxu1 %vm974_vm5, %v2852_v36 }
 0x105   : > { %2276 = vmatprep.mubr.msk.bf16.mxu1 %vm974_vm5, %v2859_v38 }
 0x107   : > { %2309 = vmatmul.mubr.msk.bf16.gmra.mxu0 %vm974_vm5, %v2874_v53 }
 0x108   : > { %2312 = vmatprep.mubr.msk.bf16.mxu0 %vm974_vm5, %v2881_v57 }
 0x10c   : > { %2277 = vmatmul.mubr.msk.bf16.gmra.mxu1 %vm974_vm5, %v2874_v53 }
 0x10d   : > { %2280 = vmatprep.mubr.msk.bf16.mxu1 %vm974_vm5, %v2881_v57 }
 0x10f   : > { %2313 = vmatmul.mubr.msk.bf16.gmra.mxu0 %vm974_vm5, %v926_v42 }
 0x110   : > { %2316 = vmatprep.mubr.msk.bf16.mxu0 %vm974_vm5, %v960_v12 }
 0x114   : > { %2281 = vmatmul.mubr.msk.bf16.gmra.mxu1 %vm974_vm5, %v926_v42 }
 0x117   : > { %2317 = vmatmul.mubr.msk.bf16.gmra.mxu0 %vm974_vm5, %v1377_v8 }
 0x167   : > { %v2962_v51 = vpop.f32.mrf.mxu1 }
 0x168   : > { %v2218_v19 = vpop.f32.mrf.mxu0 }
 0x169   : > { %v2964_v35 = vpop.f32.mrf.mxu1 }
 0x16a   : > { %v1045_v23 = vpop.f32.mrf.mxu0 }
 0x16b   : > { %v2966_v20 = vpop.f32.mrf.mxu1 }
 0x16c   : > { %v2219_v27 = vpop.f32.mrf.mxu0 }
 0x16d   : > { %v2968_v24 = vpop.f32.mrf.mxu1 }
 0x16e   : > { %v1048_v0 = vpop.f32.mrf.mxu0 }
 0x172   : > { %v2970_v29 = vpop.f32.mrf.mxu1 }
 0x174   : > { %v2972_v6 = vpop.f32.mrf.mxu1 }
 0x176   : > { %v2974_v34 = vpop.f32.mrf.mxu1 }
 0x177   : > { %v2222_v30 = vpop.f32.mrf.mxu0 }
 0x178   : > { %v2976_v36 = vpop.f32.mrf.mxu1 }
 0x179   : > { %v1061_v32 = vpop.f32.mrf.mxu0 }
 0x17b   : > { %v2223_v26 = vpop.f32.mrf.mxu0 }
 0x17d   : > { %v1064_v28 = vpop.f32.mrf.mxu0 }
 0x182   : > { %v2978_v37 = vpop.f32.mrf.mxu1 }
 0x184   : > { %v2980_v38 = vpop.f32.mrf.mxu1 }
 0x186   : > { %v2984_v40 = vpop.f32.mrf.mxu1 }
 0x187   : > { %v2982_v25 = vpop.f32.mrf.mxu0 }
 0x188   : > { %v2988_v45 = vpop.f32.mrf.mxu1 }
 0x189   : > { %v2986_v43 = vpop.f32.mrf.mxu0 }
 0x18b   : > { %v2990_v46 = vpop.f32.mrf.mxu0 }
 0x18d   : > { %v2996_v49 = vpop.f32.mrf.mxu0 }
 0x192   : > { %v2992_v39 = vpop.f32.mrf.mxu1 }
 0x194   : > { %v2994_v48 = vpop.f32.mrf.mxu1 }
 0x196   : > { %v2998_v50 = vpop.f32.mrf.mxu1 }
 0x197   : > { %v3000_v41 = vpop.f32.mrf.mxu0 }
 0x198   : > { %v3004_v53 = vpop.f32.mrf.mxu1 }
 0x199   : > { %v3002_v44 = vpop.f32.mrf.mxu0 }
 0x19b   : > { %v3006_v3 = vpop.f32.mrf.mxu0 }
 0x19c   : > { %v2254_v54 = vpop.f32.mrf.mxu1 }
 0x19d   : > { %v1229_v56 = vadd.f32 %v2254_v54, %v2218_v19  ;;  %v3008_v57 = vpop.f32.mrf.mxu0 }
 0x19e   : > { %v1220_v9 = vpop.f32.mrf.mxu1 }
 0x19f   : > { %v1221_v58 = vadd.f32 %v1220_v9, %v1045_v23  ;;  %v2290_v59 = vpop.f32.mrf.mxu0 }
 0x1a0   : > { %v1559_v55 = vadd.f32 %v2290_v59, %v1229_v56  ;;  %v2255_v33 = vpop.f32.mrf.mxu1 }
 0x1a1   : > { %v1232_v61 = vadd.f32 %v2255_v33, %v2219_v27  ;;  %v1430_v62 = vpop.f32.mrf.mxu0 }
 0x1a2   : > { %v1598_v63 = vadd.f32 %v3010_v60, %v1559_v55  ;;  %v1557_v42 = vadd.f32 %v1430_v62, %v1221_v58  ;;  %v1223_v52 = vpop.f32.mrf.mxu1 }
 0x1a3   : > { %v1224_v1 = vadd.f32 %v1223_v52, %v1048_v0  ;;  %v2291_v4 = vpop.f32.mrf.mxu0 }
 0x1a4   : > { %v1630_v7 = vmax.f32 %v1598_v63, 0.0  ;;  %v1596_v11 = vadd.f32 %v3010_v60, %v1557_v42  ;;  %v1560_v12 = vadd.f32 %v2291_v4, %v1232_v61  ;;  %v2258_v13 = vpop.f32.mrf.mxu1 }
 0x1a5   : > { %v1245_v5 = vadd.f32 %v2258_v13, %v2222_v30  ;;  %v1433_v14 = vpop.f32.mrf.mxu0 }
 0x1a6   : > { %v2128_v15 = vpack.c.bf16 %v1630_v7, %v1630_v7  ;;  %v1628_v16 = vmax.f32 %v1596_v11, 0.0  ;;  %v1599_v10 = vadd.f32 %v3010_v60, %v1560_v12  ;;  %v1558_v17 = vadd.f32 %v1433_v14, %v1224_v1  ;;  %v1236_v18 = vpop.f32.mrf.mxu1 }
 0x1a7   : > { %v1237_v31 = vadd.f32 %v1236_v18, %v1061_v32  ;;  %v2294_v47 = vpop.f32.mrf.mxu0 }
 0x1a8   : > { %1791 = vst.msk [vmem:[%s3018_s5 + $0x8] sm:$0xf] %vm1788_vm6, %v2128_v15  ;;  %v2126_v21 = vpack.c.bf16 %v1628_v16, %v1628_v16  ;;  %v1631_v22 = vmax.f32 %v1599_v10, 0.0  ;;  %v1597_v2 = vadd.f32 %v3010_v60, %v1558_v17  ;;  %v1563_v8 = vadd.f32 %v2294_v47, %v1245_v5  ;;  %v2259_v19 = vpop.f32.mrf.mxu1 }
 0x1a9   : > { %v1248_v23 = vadd.f32 %v2259_v19, %v2223_v26  ;;  %v1446_v27 = vpop.f32.mrf.mxu0 }
 0x1aa   : > { %1789 = vst.msk [vmem:[%s3018_s5] sm:$0xf] %vm1788_vm6, %v2126_v21  ;;  %v2129_v0 = vpack.c.bf16 %v1631_v22, %v1631_v22  ;;  %v1629_v30 = vmax.f32 %v1597_v2, 0.0  ;;  %v1602_v54 = vadd.f32 %v3010_v60, %v1563_v8  ;;  %v1561_v32 = vadd.f32 %v1446_v27, %v1237_v31  ;;  %v1239_v56 = vpop.f32.mrf.mxu1 }
 0x1ab   : > { %v1240_v9 = vadd.f32 %v1239_v56, %v1064_v28  ;;  %v2295_v58 = vpop.f32.mrf.mxu0 }
 0x1ac   : > { %1792 = vst.msk [vmem:[%s3018_s5 + $0xc] sm:$0xf] %vm1788_vm6, %v2129_v0  ;;  %v2127_v59 = vpack.c.bf16 %v1629_v30, %v1629_v30  ;;  %v1634_v55 = vmax.f32 %v1602_v54, 0.0  ;;  %v1600_v33 = vadd.f32 %v3010_v60, %v1561_v32  ;;  %v1564_v26 = vadd.f32 %v2295_v58, %v1248_v23  ;;  %v2262_v61 = vpop.f32.mrf.mxu1 }
 0x1ad   : > { %v1261_v62 = vadd.f32 %v2262_v61, %v2982_v25  ;;  %v1449_v63 = vpop.f32.mrf.mxu0 }
 0x1ae   : > { %1790 = vst.msk [vmem:[%s3018_s5 + $0x4] sm:$0xf] %vm1788_vm6, %v2127_v59  ;;  %v2132_v42 = vpack.c.bf16 %v1634_v55, %v1634_v55  ;;  %v1632_v52 = vmax.f32 %v1600_v33, 0.0  ;;  %v1603_v28 = vadd.f32 %v3010_v60, %v1564_v26  ;;  %v1562_v1 = vadd.f32 %v1449_v63, %v1240_v9  ;;  %v1252_v4 = vpop.f32.mrf.mxu1 }
 0x1af   : > { %v1253_v7 = vadd.f32 %v1252_v4, %v2986_v43  ;;  %v2298_v11 = vpop.f32.mrf.mxu0 }
 0x1b0   : > { %1795 = vst.msk [vmem:[%s3018_s5 + $0x18] sm:$0xf] %vm1788_vm6, %v2132_v42  ;;  %v2130_v12 = vpack.c.bf16 %v1632_v52, %v1632_v52  ;;  %v1635_v13 = vmax.f32 %v1603_v28, 0.0  ;;  %v1601_v25 = vadd.f32 %v3010_v60, %v1562_v1  ;;  %v1567_v5 = vadd.f32 %v2298_v11, %v1261_v62  ;;  %v2263_v14 = vpop.f32.mrf.mxu1 }
 0x1b1   : > { %v1264_v15 = vadd.f32 %v2263_v14, %v2990_v46  ;;  %v1462_v16 = vpop.f32.mrf.mxu0 }
 0x1b2   : > { %1793 = vst.msk [vmem:[%s3018_s5 + $0x10] sm:$0xf] %vm1788_vm6, %v2130_v12  ;;  %v2133_v10 = vpack.c.bf16 %v1635_v13, %v1635_v13  ;;  %v1633_v17 = vmax.f32 %v1601_v25, 0.0  ;;  %v1606_v43 = vadd.f32 %v3010_v60, %v1567_v5  ;;  %v1565_v18 = vadd.f32 %v1462_v16, %v1253_v7  ;;  %v1255_v31 = vpop.f32.mrf.mxu1 }
 0x1b3   : > { %v1256_v47 = vadd.f32 %v1255_v31, %v2996_v49  ;;  %v2299_v21 = vpop.f32.mrf.mxu0 }
 0x1b4   : > { %1796 = vst.msk [vmem:[%s3018_s5 + $0x1c] sm:$0xf] %vm1788_vm6, %v2133_v10  ;;  %v2131_v22 = vpack.c.bf16 %v1633_v17, %v1633_v17  ;;  %v1638_v2 = vmax.f32 %v1606_v43, 0.0  ;;  %v1604_v46 = vadd.f32 %v3010_v60, %v1565_v18  ;;  %v1568_v8 = vadd.f32 %v2299_v21, %v1264_v15  ;;  %v2266_v19 = vpop.f32.mrf.mxu1 }
 0x1b5   : > { %v1277_v23 = vadd.f32 %v2266_v19, %v3000_v41  ;;  %v1465_v27 = vpop.f32.mrf.mxu0 }
 0x1b6   : > { %1794 = vst.msk [vmem:[%s3018_s5 + $0x14] sm:$0xf] %vm1788_vm6, %v2131_v22  ;;  %v2136_v0 = vpack.c.bf16 %v1638_v2, %v1638_v2  ;;  %v1636_v30 = vmax.f32 %v1604_v46, 0.0  ;;  %v1607_v49 = vadd.f32 %v3010_v60, %v1568_v8  ;;  %v1566_v54 = vadd.f32 %v1465_v27, %v1256_v47  ;;  %v1268_v32 = vpop.f32.mrf.mxu1 }
 0x1b7   : > { %v1269_v56 = vadd.f32 %v1268_v32, %v3002_v44  ;;  %v2302_v9 = vpop.f32.mrf.mxu0 }
 0x1b8   : > { %1799 = vst.msk [vmem:[%s3018_s5 + $0x28] sm:$0xf] %vm1788_vm6, %v2136_v0  ;;  %v2134_v58 = vpack.c.bf16 %v1636_v30, %v1636_v30  ;;  %v1639_v59 = vmax.f32 %v1607_v49, 0.0  ;;  %v1605_v41 = vadd.f32 %v3010_v60, %v1566_v54  ;;  %v1571_v55 = vadd.f32 %v2302_v9, %v1277_v23  ;;  %v2267_v33 = vpop.f32.mrf.mxu1 }
 0x1b9   : > { %v1280_v26 = vadd.f32 %v2267_v33, %v3006_v3  ;;  %v1478_v61 = vpop.f32.mrf.mxu0 }
 0x1ba   : > { %1797 = vst.msk [vmem:[%s3018_s5 + $0x20] sm:$0xf] %vm1788_vm6, %v2134_v58  ;;  %v2137_v62 = vpack.c.bf16 %v1639_v59, %v1639_v59  ;;  %v1637_v63 = vmax.f32 %v1605_v41, 0.0  ;;  %v1610_v44 = vadd.f32 %v3010_v60, %v1571_v55  ;;  %v1569_v42 = vadd.f32 %v1478_v61, %v1269_v56  ;;  %v1271_v52 = vpop.f32.mrf.mxu1 }
 0x1bb   : > { %v1272_v28 = vadd.f32 %v1271_v52, %v3008_v57  ;;  %v2303_v1 = vpop.f32.mrf.mxu0 }
 0x1bc   : > { %1800 = vst.msk [vmem:[%s3018_s5 + $0x2c] sm:$0xf] %vm1788_vm6, %v2137_v62  ;;  %v2135_v4 = vpack.c.bf16 %v1637_v63, %v1637_v63  ;;  %v1642_v7 = vmax.f32 %v1610_v44, 0.0  ;;  %v1608_v3 = vadd.f32 %v3010_v60, %v1569_v42  ;;  %v1572_v11 = vadd.f32 %v2303_v1, %v1280_v26  ;;  %v2270_v12 = vpop.f32.mrf.mxu1 }
 0x1bd   : > { %v1293_v13 = vadd.f32 %v2270_v12, %v2962_v51  ;;  %v1481_v25 = vpop.f32.mrf.mxu0 }
 0x1be   : > { %1798 = vst.msk [vmem:[%s3018_s5 + $0x24] sm:$0xf] %vm1788_vm6, %v2135_v4  ;;  %v2140_v5 = vpack.c.bf16 %v1642_v7, %v1642_v7  ;;  %v1640_v14 = vmax.f32 %v1608_v3, 0.0  ;;  %v1611_v57 = vadd.f32 %v3010_v60, %v1572_v11  ;;  %v1570_v15 = vadd.f32 %v1481_v25, %v1272_v28  ;;  %v1284_v16 = vpop.f32.mrf.mxu1 }
 0x1bf   : > { %v1285_v10 = vadd.f32 %v1284_v16, %v2964_v35  ;;  %v2306_v17 = vpop.f32.mrf.mxu0 }
 0x1c0   : > { %1803 = vst.msk [vmem:[%s3018_s5 + $0x38] sm:$0xf] %vm1788_vm6, %v2140_v5  ;;  %v2138_v43 = vpack.c.bf16 %v1640_v14, %v1640_v14  ;;  %v1643_v18 = vmax.f32 %v1611_v57, 0.0  ;;  %v1609_v51 = vadd.f32 %v3010_v60, %v1570_v15  ;;  %v1575_v31 = vadd.f32 %v2306_v17, %v1293_v13  ;;  %v2271_v47 = vpop.f32.mrf.mxu1 }
 0x1c1   : > { %v1296_v21 = vadd.f32 %v2271_v47, %v2966_v20  ;;  %v1494_v22 = vpop.f32.mrf.mxu0 }
 0x1c2   : > { %1801 = vst.msk [vmem:[%s3018_s5 + $0x30] sm:$0xf] %vm1788_vm6, %v2138_v43  ;;  %v2141_v2 = vpack.c.bf16 %v1643_v18, %v1643_v18  ;;  %v1641_v46 = vmax.f32 %v1609_v51, 0.0  ;;  %v1614_v35 = vadd.f32 %v3010_v60, %v1575_v31  ;;  %v1573_v8 = vadd.f32 %v1494_v22, %v1285_v10  ;;  %v1287_v19 = vpop.f32.mrf.mxu1 }
 0x1c3   : > { %v1288_v23 = vadd.f32 %v1287_v19, %v2968_v24  ;;  %v2307_v27 = vpop.f32.mrf.mxu0 }
 0x1c4   : > { %1804 = vst.msk [vmem:[%s3018_s5 + $0x3c] sm:$0xf] %vm1788_vm6, %v2141_v2  ;;  %v2139_v0 = vpack.c.bf16 %v1641_v46, %v1641_v46  ;;  %v1646_v30 = vmax.f32 %v1614_v35, 0.0  ;;  %v1612_v20 = vadd.f32 %v3010_v60, %v1573_v8  ;;  %v1576_v49 = vadd.f32 %v2307_v27, %v1296_v21  ;;  %v2274_v54 = vpop.f32.mrf.mxu1 }
 0x1c5   : > { %v1309_v32 = vadd.f32 %v2274_v54, %v2970_v29  ;;  %v1497_v56 = vpop.f32.mrf.mxu0 }
 0x1c6   : > { %1802 = vst.msk [vmem:[%s3018_s5 + $0x34] sm:$0xf] %vm1788_vm6, %v2139_v0  ;;  %v2144_v9 = vpack.c.bf16 %v1646_v30, %v1646_v30  ;;  %v1644_v58 = vmax.f32 %v1612_v20, 0.0  ;;  %v1615_v24 = vadd.f32 %v3010_v60, %v1576_v49  ;;  %v1574_v59 = vadd.f32 %v1497_v56, %v1288_v23  ;;  %v1300_v41 = vpop.f32.mrf.mxu1 }
 0x1c7   : > { %v1301_v55 = vadd.f32 %v1300_v41, %v2972_v6  ;;  %v2310_v33 = vpop.f32.mrf.mxu0 }
 0x1c8   : > { %1807 = vst.msk [vmem:[%s3018_s5 + $0x48] sm:$0xf] %vm1788_vm6, %v2144_v9  ;;  %v2142_v26 = vpack.c.bf16 %v1644_v58, %v1644_v58  ;;  %v1647_v61 = vmax.f32 %v1615_v24, 0.0  ;;  %v1613_v29 = vadd.f32 %v3010_v60, %v1574_v59  ;;  %v1579_v62 = vadd.f32 %v2310_v33, %v1309_v32  ;;  %v2275_v63 = vpop.f32.mrf.mxu1 }
 0x1c9   : > { %v1312_v44 = vadd.f32 %v2275_v63, %v2974_v34  ;;  %v1510_v42 = vpop.f32.mrf.mxu0 }
 0x1ca   : > { %1805 = vst.msk [vmem:[%s3018_s5 + $0x40] sm:$0xf] %vm1788_vm6, %v2142_v26  ;;  %v2145_v52 = vpack.c.bf16 %v1647_v61, %v1647_v61  ;;  %v1645_v28 = vmax.f32 %v1613_v29, 0.0  ;;  %v1618_v6 = vadd.f32 %v3010_v60, %v1579_v62  ;;  %v1577_v1 = vadd.f32 %v1510_v42, %v1301_v55  ;;  %v1303_v4 = vpop.f32.mrf.mxu1 }
 0x1cb   : > { %v1304_v7 = vadd.f32 %v1303_v4, %v2976_v36  ;;  %v2311_v3 = vpop.f32.mrf.mxu0 }
 0x1cc   : > { %1808 = vst.msk [vmem:[%s3018_s5 + $0x4c] sm:$0xf] %vm1788_vm6, %v2145_v52  ;;  %v2143_v11 = vpack.c.bf16 %v1645_v28, %v1645_v28  ;;  %v1650_v12 = vmax.f32 %v1618_v6, 0.0  ;;  %v1616_v34 = vadd.f32 %v3010_v60, %v1577_v1  ;;  %v1580_v13 = vadd.f32 %v2311_v3, %v1312_v44  ;;  %v2278_v25 = vpop.f32.mrf.mxu1 }
 0x1cd   : > { %v1325_v5 = vadd.f32 %v2278_v25, %v2978_v37  ;;  %v1513_v14 = vpop.f32.mrf.mxu0 }
 0x1ce   : > { %1806 = vst.msk [vmem:[%s3018_s5 + $0x44] sm:$0xf] %vm1788_vm6, %v2143_v11  ;;  %v2148_v57 = vpack.c.bf16 %v1650_v12, %v1650_v12  ;;  %v1648_v15 = vmax.f32 %v1616_v34, 0.0  ;;  %v1619_v36 = vadd.f32 %v3010_v60, %v1580_v13  ;;  %v1578_v16 = vadd.f32 %v1513_v14, %v1304_v7  ;;  %v1316_v10 = vpop.f32.mrf.mxu1 }
 0x1cf   : > { %v1317_v17 = vadd.f32 %v1316_v10, %v2980_v38  ;;  %v2314_v43 = vpop.f32.mrf.mxu0 }
 0x1d0   : > { %1811 = vst.msk [vmem:[%s3018_s5 + $0x58] sm:$0xf] %vm1788_vm6, %v2148_v57  ;;  %v2146_v18 = vpack.c.bf16 %v1648_v15, %v1648_v15  ;;  %v1651_v51 = vmax.f32 %v1619_v36, 0.0  ;;  %v1617_v37 = vadd.f32 %v3010_v60, %v1578_v16  ;;  %v1583_v31 = vadd.f32 %v2314_v43, %v1325_v5  ;;  %v2279_v47 = vpop.f32.mrf.mxu1 }
 0x1d1   : > { %v1328_v21 = vadd.f32 %v2279_v47, %v2984_v40  ;;  %v1526_v22 = vpop.f32.mrf.mxu0 }
 0x1d2   : > { %1809 = vst.msk [vmem:[%s3018_s5 + $0x50] sm:$0xf] %vm1788_vm6, %v2146_v18  ;;  %v2149_v2 = vpack.c.bf16 %v1651_v51, %v1651_v51  ;;  %v1649_v46 = vmax.f32 %v1617_v37, 0.0  ;;  %v1622_v38 = vadd.f32 %v3010_v60, %v1583_v31  ;;  %v1581_v35 = vadd.f32 %v1526_v22, %v1317_v17  ;;  %v1319_v8 = vpop.f32.mrf.mxu1 }
 0x1d3   : > { %v1320_v19 = vadd.f32 %v1319_v8, %v2988_v45  ;;  %v2315_v23 = vpop.f32.mrf.mxu0 }
 0x1d4   : > { %1812 = vst.msk [vmem:[%s3018_s5 + $0x5c] sm:$0xf] %vm1788_vm6, %v2149_v2  ;;  %v2147_v27 = vpack.c.bf16 %v1649_v46, %v1649_v46  ;;  %v1654_v0 = vmax.f32 %v1622_v38, 0.0  ;;  %v1620_v40 = vadd.f32 %v3010_v60, %v1581_v35  ;;  %v1584_v30 = vadd.f32 %v2315_v23, %v1328_v21  ;;  %v2282_v20 = vpop.f32.mrf.mxu1 }
 0x1d5   : > { %v1341_v49 = vadd.f32 %v2282_v20, %v2992_v39  ;;  %v1529_v54 = vpop.f32.mrf.mxu0 }
 0x1d6   : > { %1810 = vst.msk [vmem:[%s3018_s5 + $0x54] sm:$0xf] %vm1788_vm6, %v2147_v27  ;;  %v2152_v32 = vpack.c.bf16 %v1654_v0, %v1654_v0  ;;  %v1652_v56 = vmax.f32 %v1620_v40, 0.0  ;;  %v1623_v45 = vadd.f32 %v3010_v60, %v1584_v30  ;;  %v1582_v9 = vadd.f32 %v1529_v54, %v1320_v19  ;;  %v1332_v58 = vpop.f32.mrf.mxu1 }
 0x1d7   : > { %v1333_v24 = vadd.f32 %v1332_v58, %v2994_v48  ;;  %v2318_v59 = vpop.f32.mrf.mxu0 }
 0x1d8   : > { %1815 = vst.msk [vmem:[%s3018_s5 + $0x68] sm:$0xf] %vm1788_vm6, %v2152_v32  ;;  %v2150_v41 = vpack.c.bf16 %v1652_v56, %v1652_v56  ;;  %v1655_v55 = vmax.f32 %v1623_v45, 0.0  ;;  %v1621_v39 = vadd.f32 %v3010_v60, %v1582_v9  ;;  %v1587_v33 = vadd.f32 %v2318_v59, %v1341_v49  ;;  %v2283_v26 = vpop.f32.mrf.mxu1 }
 0x1d9   : > { %v1344_v61 = vadd.f32 %v2283_v26, %v2998_v50  ;;  %v1542_v29 = vpop.f32.mrf.mxu0 }
 0x1da   : > { %1813 = vst.msk [vmem:[%s3018_s5 + $0x60] sm:$0xf] %vm1788_vm6, %v2150_v41  ;;  %v2153_v62 = vpack.c.bf16 %v1655_v55, %v1655_v55  ;;  %v1653_v63 = vmax.f32 %v1621_v39, 0.0  ;;  %v1626_v48 = vadd.f32 %v3010_v60, %v1587_v33  ;;  %v1585_v44 = vadd.f32 %v1542_v29, %v1333_v24  ;;  %v1335_v42 = vpop.f32.mrf.mxu1 }
 0x1db   : > { %v1336_v52 = vadd.f32 %v1335_v42, %v3004_v53  ;;  %v2319_v28 = vpop.f32.mrf.mxu0 }
 0x1dc   : > { %1816 = vst.msk [vmem:[%s3018_s5 + $0x6c] sm:$0xf] %vm1788_vm6, %v2153_v62  ;;  %v2151_v6 = vpack.c.bf16 %v1653_v63, %v1653_v63  ;;  %v1658_v1 = vmax.f32 %v1626_v48, 0.0  ;;  %v1624_v50 = vadd.f32 %v3010_v60, %v1585_v44  ;;  %v1588_v4 = vadd.f32 %v2319_v28, %v1344_v61 }
 0x1dd   : > { %v1545_v7 = vpop.f32.mrf.mxu0 }
 0x1de   : > { %1814 = vst.msk [vmem:[%s3018_s5 + $0x64] sm:$0xf] %vm1788_vm6, %v2151_v6  ;;  %v2156_v3 = vpack.c.bf16 %v1658_v1, %v1658_v1  ;;  %v1656_v11 = vmax.f32 %v1624_v50, 0.0  ;;  %v1627_v12 = vadd.f32 %v3010_v60, %v1588_v4  ;;  %v1586_v34 = vadd.f32 %v1545_v7, %v1336_v52 }
 0x1e0   : > { %1819 = vst.msk [vmem:[%s3018_s5 + $0x78] sm:$0xf] %vm1788_vm6, %v2156_v3  ;;  %v2154_v53 = vpack.c.bf16 %v1656_v11, %v1656_v11  ;;  %v1659_v13 = vmax.f32 %v1627_v12, 0.0  ;;  %v1625_v25 = vadd.f32 %v3010_v60, %v1586_v34 }
 0x1e2   : > { %1817 = vst.msk [vmem:[%s3018_s5 + $0x70] sm:$0xf] %vm1788_vm6, %v2154_v53  ;;  %v2157_v5 = vpack.c.bf16 %v1659_v13, %v1659_v13  ;;  %v1657_v14 = vmax.f32 %v1625_v25, 0.0 }
 0x1e4   : > { %1820 = vst.msk [vmem:[%s3018_s5 + $0x7c] sm:$0xf] %vm1788_vm6, %v2157_v5  ;;  %v2155_v57 = vpack.c.bf16 %v1657_v14, %v1657_v14 }
 0x1e6   : > { %1818 = vst.msk [vmem:[%s3018_s5 + $0x74] sm:$0xf] %vm1788_vm6, %v2155_v57 }
 0x1e7 PF: > { %s15_s17 = sadd.s32 1, %s2462_s17   ;;  %s3154_s15 = smov %s2458_s16 }
 0x1e8   : > { %p12_p2 = scmp.ge.s32.totalorder %s15_s17, 4   ;;  %s3155_s16 = smov %s3157_s19 }
 0x1ea   :  { %14 = sbr.rel (!%p12_p2) target bundleno = 2 (0x2), region = 80 }
 0x1ef   :  { %1859 = vsyncpa [#allocation3], 1 }
 0x1f0   :  { %1861 = vsyncpa [#allocation3 + $0x1], 1 }

// kernel: vgg19_slices_forward.6
= control target key start
LH: loop header
LB: loop body
LE: loop exit
PB: predicated region body
PF: predicated region fallthrough
CT: control target
= control target key end

     0   :  { %s3651_s15 = smov 0   ;;  %s3653_s16 = smov 0   ;;  %s4663_s0 = inlined_call_operand.vmem [shape: bf16[2,18,18,64], index: 0, kind: input, shape index: {}, may-alias: {0,1}]   ;;  %s4664_s1 = inlined_call_operand.vmem [shape: bf16[2,18,18,64], index: 1, kind: input, shape index: {}, may-alias: {0,1}]   ;;  %s4665_s2 = inlined_call_operand.vmem [shape: bf16[3,192,64], index: 2, kind: input, shape index: {}]   ;;  %s4666_s3 = inlined_call_operand.vmem [shape: f32[1,64], index: 3, kind: input, shape index: {}]   ;;  %s4667_s4 = inlined_call_operand.vmem [shape: bf16[2,8,8,64], index: 4, kind: output, shape index: {}]  }
   0x1   :  { %s3655_s17 = smov 0  }
   0x2 LB: > { %s33_s18 = sadd.s32 1, %s3617_s16  ;;  %p3101_p0 = scmp.ge.s32.totalorder %s3621_s17, 1  ;;  %s3621_s17 = sphi %s3655_s17, %s14_s17   ;;  %s3617_s16 = sphi %s3653_s16, %s4669_s16   ;;  %s3613_s15 = sphi %s3651_s15, %s4668_s15  }
   0x3   : > { %p35_p1 = scmp.ge.s32.totalorder %s33_s18, 2  ;;  %p246_p2 = scmp.lt.s32.totalorder %s3621_s17, 3 }
   0x5   : > { %s4671_s18 = smov (%p35_p1, %s33_s18), 0  ;;  %p247_p3 = pnand %p3101_p0, %p246_p2 }
   0x6   : > { %p314_p4 = scmp.lt.s32.totalorder (!%p247_p3), %s3613_s15, 1  ;;  %s3624_s10 = smov (!%p247_p3), 64  }
   0x7   : > { %250 = sbr.rel (%p247_p3) target bundleno = 574 (0x23e), region = 36 }
   0xc   : > { %v3560_v0 = vld [vmem:[%s4665_s2 + $0x98] sm:$0xff]   ;;  %v3623_v1 = vmov 0   ;;  %s4673_s15 = smov (!%p314_p4, %s3613_s15), 1  ;;  %v3561_v2 = vld [vmem:[%s4665_s2 + $0x90] sm:$0xff]   ;;  %vm547_vm0 = vsmask.f32 7424 }
   0xd   : > { %3472 = vmatprep.subr.bf16.mxu1 %v3623_v1  ;;  %1067 = vmatprep.subr.bf16.mxu0 %v3623_v1  ;;  %s3496_s23 = smul.u32 216, %s4673_s15  ;;  %v3562_v3 = vld [vmem:[%s4665_s2 + $0x88] sm:$0xff]   ;;  %v3563_v6 = vld [vmem:[%s4665_s2 + $0x80] sm:$0xff]   ;;  %v3564_v18 = vld [vmem:[%s4665_s2 + $0x78] sm:$0xff]   ;;  %vm772_vm1 = vcmask 1046528   ;;  %vm821_vm2 = vcmask 523264  }
   0xe   : > { %3484 = vmatpush1.bf16.msra.mxu1 %v3560_v0  ;;  %1068 = vmatpush1.bf16.msra.mxu0 %v3560_v0  ;;  %v3565_v34 = vld [vmem:[%s4665_s2 + $0x70] sm:$0xff]   ;;  %vm2801_vm3 = vcmask 1041409   ;;  %vm2804_vm4 = vcmask 1042434   ;;  %vm2807_vm5 = vcmask 1043459   ;;  %vm2810_vm6 = vcmask 1044484  }
   0xf   : > { %3473 = vmatprep.subr.bf16.mxu1 %v3623_v1  ;;  %1069 = vmatprep.subr.bf16.mxu0 %v3623_v1  ;;  %s3685_s26 = scalar_lea.vmem %s4663_s0, %s3496_s23  ;;  %s3704_s5 = sadd.s32 192, %s3496_s23  ;;  %vm2813_vm7 = vcmask 1045509   ;;  %vm2816_vm8 = vcmask 1046534   ;;  %vm2819_vm9 = vcmask 1047559   ;;  %vm2935_vm10 = vcmask 519168  }
  0x10   : > { %v3693_v4 = vld [vmem:[%s3685_s26 + $0x6c] sm:$0xff]   ;;  %v3696_v5 = vld [vmem:[%s3685_s26 + $0x74] ss:$0 sps:$4 sm:$0x11]   ;;  %v3718_v17 = vld [vmem:[%s3685_s26 + $0x78] sm:$0xff]   ;;  %s3849_s13 = scalar_lea.vmem %s4664_s1, %s3704_s5 }
  0x11   : > { %v3702_v7 = vld [vmem:[%s3685_s26 + $0xc] sm:$0xff]   ;;  %v657_v8 = vshrl.u32 %v3693_v4, 16  ;;  %v659_v9 = vshll.u32 %v3693_v4, 16  ;;  %v664_v10 = vshll.u32 %v3696_v5, 16  ;;  %v669_v23 = vshrl.u32 %v3718_v17, 16  ;;  %v3729_v25 = vld [vmem:[%s3685_s26 + $0x18] sm:$0xff]  }
  0x12   : > { %3485 = vmatpush1.bf16.msra.mxu1 %v3561_v2  ;;  %1070 = vmatpush1.bf16.msra.mxu0 %v3561_v2  ;;  %v3710_v11 = vld [vmem:[%s3685_s26 + $0x14] ss:$0 sps:$4 sm:$0x11]   ;;  %v561_v12 = vshrl.u32 %v3702_v7, 16  ;;  %v563_v13 = vshll.u32 %v3702_v7, 16  ;;  %v671_v24 = vshll.u32 %v3718_v17, 16 }
  0x13   : > { %3474 = vmatprep.subr.bf16.mxu1 %v3623_v1  ;;  %1071 = vmatprep.subr.bf16.mxu0 %v3623_v1  ;;  %v661_v14 = vrot.slane %v659_v9, 1  ;;  %v666_v15 = vrot.slane %v664_v10, 1  ;;  %v568_v16 = vshll.u32 %v3710_v11, 16  ;;  %v3724_v20 = vld [vmem:[%s3685_s26 + $0x80] ss:$0 sps:$4 sm:$0x11]  }
  0x14   : > { %v565_v19 = vrot.slane %v563_v13, 1  ;;  %v676_v27 = vshll.u32 %v3724_v20, 16  ;;  %v3733_v28 = vld [vmem:[%s3685_s26 + $0x20] ss:$0 sps:$4 sm:$0x11]   ;;  %v673_v30 = vrot.slane %v671_v24, 1 }
  0x15   : > { %v662_v21 = vor.u32 %v661_v14, %v657_v8  ;;  %v570_v22 = vrot.slane %v568_v16, 1  ;;  %v573_v31 = vshrl.u32 %v3729_v25, 16  ;;  %v575_v32 = vshll.u32 %v3729_v25, 16  ;;  %v3741_v33 = vld [vmem:[%s3685_s26 + $0x84] sm:$0xff]   ;;  %v3769_v52 = vld [vmem:[%s3685_s26 + $0x90] sm:$0xff]   ;;  %v3790_v8 = vld [vmem:[%s3685_s26 + $0x9c] sm:$0xff]  }
  0x16   : > { %3486 = vmatpush1.bf16.msra.mxu1 %v3562_v3  ;;  %1072 = vmatpush1.bf16.msra.mxu0 %v3562_v3  ;;  %v566_v26 = vor.u32 %v565_v19, %v561_v12  ;;  %v678_v36 = vrot.slane %v676_v27, 1  ;;  %v580_v37 = vshll.u32 %v3733_v28, 16  ;;  %v674_v38 = vor.u32 %v673_v30, %v669_v23  ;;  %v3750_v40 = vld [vmem:[%s3685_s26 + $0x8c] ss:$0 sps:$4 sm:$0x11]   ;;  %v3755_v44 = vld [vmem:[%s3685_s26 + $0x24] sm:$0xff]  }
  0x17   : > { %3475 = vmatprep.subr.bf16.mxu1 %v3623_v1  ;;  %1073 = vmatprep.subr.bf16.mxu0 %v3623_v1  ;;  %v667_v29 = vsel %vm547_vm0, %v662_v21, %v666_v15  ;;  %v577_v39 = vrot.slane %v575_v32, 1  ;;  %v681_v41 = vshrl.u32 %v3741_v33, 16  ;;  %v683_v42 = vshll.u32 %v3741_v33, 16  ;;  %v3764_v49 = vld [vmem:[%s3685_s26 + $0x2c] ss:$0 sps:$4 sm:$0x11]  }
  0x18   : > { %758 = vrot.lane.b32.xlu0 %v667_v29, %s3624_s10  ;;  %v571_v35 = vsel %vm547_vm0, %v566_v26, %v570_v22  ;;  %v582_v43 = vrot.slane %v580_v37, 1  ;;  %v679_v45 = vsel %vm547_vm0, %v674_v38, %v678_v36  ;;  %v688_v48 = vshll.u32 %v3750_v40, 16  ;;  %v3773_v56 = vld [vmem:[%s3685_s26 + $0x30] sm:$0xff]   ;;  %v3777_v59 = vld [vmem:[%s3685_s26 + $0x98] ss:$0 sps:$4 sm:$0x11]  }
  0x19   : > { %v578_v46 = vor.u32 %v577_v39, %v573_v31  ;;  %v685_v47 = vrot.slane %v683_v42, 1  ;;  %760 = vrot.lane.b32.xlu1 %v679_v45, %s3624_s10  ;;  %v585_v50 = vshrl.u32 %v3755_v44, 16  ;;  %v587_v51 = vshll.u32 %v3755_v44, 16  ;;  %v3793_v10 = vld [vmem:[%s3685_s26 + $0x38] ss:$0 sps:$4 sm:$0x11]  }
  0x1a   : > { %3487 = vmatpush1.bf16.msra.mxu1 %v3563_v6  ;;  %1074 = vmatpush1.bf16.msra.mxu0 %v3563_v6  ;;  %v690_v55 = vrot.slane %v688_v48, 1  ;;  %v592_v58 = vshll.u32 %v3764_v49, 16  ;;  %v693_v60 = vshrl.u32 %v3769_v52, 16  ;;  %v695_v62 = vshll.u32 %v3769_v52, 16  ;;  %v3806_v29 = vld [vmem:[%s3685_s26 + $0x3c] sm:$0xff]   ;;  %v3813_v31 = vld [vmem:[%s3685_s26 + $0xa8] sm:$0xff]  }
  0x1b   : > { %3476 = vmatprep.subr.bf16.mxu1 %v3623_v1  ;;  %1075 = vmatprep.subr.bf16.mxu0 %v3623_v1  ;;  %v583_v53 = vsel %vm547_vm0, %v578_v46, %v582_v43  ;;  %v686_v54 = vor.u32 %v685_v47, %v681_v41  ;;  %v589_v57 = vrot.slane %v587_v51, 1  ;;  %v597_v63 = vshrl.u32 %v3773_v56, 16  ;;  %v3810_v30 = vld [vmem:[%s3685_s26 + $0x44] ss:$0 sps:$4 sm:$0x11]   ;;  %v3827_v45 = vld [vmem:[%s3685_s26 + $0x48] sm:$0xff]  }
  0x1c   : > { %742 = vrot.lane.b32.xlu0 %v571_v35, %s3624_s10  ;;  %v594_v2 = vrot.slane %v592_v58, 1  ;;  %v700_v3 = vshll.u32 %v3777_v59, 16  ;;  %v599_v6 = vshll.u32 %v3773_v56, 16  ;;  %v697_v9 = vrot.slane %v695_v62, 1 }
  0x1d   : > { %v691_v61 = vsel %vm547_vm0, %v686_v54, %v690_v55  ;;  %744 = vrot.lane.b32.xlu1 %v583_v53, %s3624_s10  ;;  %v590_v0 = vor.u32 %v589_v57, %v585_v50  ;;  %v604_v16 = vshll.u32 %v3793_v10, 16  ;;  %v705_v19 = vshrl.u32 %v3790_v8, 16  ;;  %v3821_v39 = vld [vmem:[%s3685_s26 + $0xb0] ss:$0 sps:$4 sm:$0x11]   ;;  %v3837_v55 = vld [vmem:[%s3685_s26 + $0xb4] sm:$0xff]  }
  0x1e   : > { %3488 = vmatpush1.bf16.msra.mxu1 %v3564_v18  ;;  %1076 = vmatpush1.bf16.msra.mxu0 %v3564_v18  ;;  %v702_v13 = vrot.slane %v700_v3, 1  ;;  %v601_v14 = vrot.slane %v599_v6, 1  ;;  %v698_v15 = vor.u32 %v697_v9, %v693_v60  ;;  %v3798_v18 = vld [vmem:[%s3685_s26 + $0xa4] ss:$0 sps:$4 sm:$0x11]   ;;  %v707_v21 = vshll.u32 %v3790_v8, 16 }
  0x1f   : > { %3477 = vmatprep.subr.bf16.mxu1 %v3623_v1  ;;  %1077 = vmatprep.subr.bf16.mxu0 %v3623_v1  ;;  %v595_v12 = vsel %vm547_vm0, %v590_v0, %v594_v2  ;;  %v606_v24 = vrot.slane %v604_v16, 1  ;;  %v712_v27 = vshll.u32 %v3798_v18, 16  ;;  %v609_v36 = vshrl.u32 %v3806_v29, 16  ;;  %v3832_v50 = vld [vmem:[%s3685_s26 + $0x50] ss:$0 sps:$4 sm:$0x11]  }
  0x20   : > { %762 = vrot.lane.b32.xlu0 %v691_v61, %s3624_s10  ;;  %v602_v22 = vor.u32 %v601_v14, %v597_v63  ;;  %v703_v23 = vsel %vm547_vm0, %v698_v15, %v702_v13  ;;  %v709_v26 = vrot.slane %v707_v21, 1  ;;  %v611_v37 = vshll.u32 %v3806_v29, 16  ;;  %v3841_v63 = vld [vmem:[%s3685_s26 + $0xbc] ss:$0 sps:$4 sm:$0x11]   ;;  %v3853_v9 = vld [vmem:[%s3685_s26 + $0x54] sm:$0xff]  }
  0x21   : > { %746 = vrot.lane.b32.xlu1 %v595_v12, %s3624_s10  ;;  %v714_v35 = vrot.slane %v712_v27, 1  ;;  %v616_v38 = vshll.u32 %v3810_v30, 16  ;;  %v717_v41 = vshrl.u32 %v3813_v31, 16  ;;  %v719_v43 = vshll.u32 %v3813_v31, 16  ;;  %v3869_v27 = vld [vmem:[%s3685_s26 + $0x60] sm:$0xff]  }
  0x22   : > { %3489 = vmatpush1.bf16.msra.mxu1 %v3565_v34  ;;  %1078 = vmatpush1.bf16.msra.mxu0 %v3565_v34  ;;  %v607_v32 = vsel %vm547_vm0, %v602_v22, %v606_v24  ;;  %v710_v34 = vor.u32 %v709_v26, %v705_v19  ;;  %v613_v46 = vrot.slane %v611_v37, 1  ;;  %v724_v48 = vshll.u32 %v3821_v39, 16  ;;  %v3860_v16 = vld [vmem:[%s3685_s26 + $0x5c] ss:$0 sps:$4 sm:$0x11]   ;;  %v3865_v22 = vld [vmem:[%s3849_s13] sm:$0xff]  }
  0x23   : > { %3478 = vmatprep.subr.bf16.mxu1 %v3623_v1  ;;  %1079 = vmatprep.subr.bf16.mxu0 %v3623_v1  ;;  %v618_v47 = vrot.slane %v616_v38, 1  ;;  %v721_v51 = vrot.slane %v719_v43, 1  ;;  %v621_v53 = vshrl.u32 %v3827_v45, 16  ;;  %v623_v54 = vshll.u32 %v3827_v45, 16 }
  0x24   : > { %764 = vrot.lane.b32.xlu0 %v703_v23, %s3624_s10  ;;  %v715_v42 = vsel %vm547_vm0, %v710_v34, %v714_v35  ;;  %v614_v57 = vor.u32 %v613_v46, %v609_v36  ;;  %v726_v58 = vrot.slane %v724_v48, 1  ;;  %v628_v60 = vshll.u32 %v3832_v50, 16  ;;  %v3873_v35 = vld [vmem:[%s3849_s13 + $0x8] ss:$0 sps:$4 sm:$0x11]   ;;  %v3884_v48 = vld [vmem:[%s3685_s26] sm:$0xff]  }
  0x25   : > { %748 = vrot.lane.b32.xlu1 %v607_v32, %s3624_s10  ;;  %v722_v61 = vor.u32 %v721_v51, %v717_v41  ;;  %v625_v62 = vrot.slane %v623_v54, 1  ;;  %v729_v0 = vshrl.u32 %v3837_v55, 16  ;;  %v731_v2 = vshll.u32 %v3837_v55, 16 }
  0x26   : > { %v619_v3 = vsel %vm547_vm0, %v614_v57, %v618_v47  ;;  %v630_v6 = vrot.slane %v628_v60, 1  ;;  %v736_v15 = vshll.u32 %v3841_v63, 16  ;;  %v633_v19 = vshrl.u32 %v3853_v9, 16 }
  0x27   : > { %v727_v12 = vsel %vm547_vm0, %v722_v61, %v726_v58  ;;  %v626_v13 = vor.u32 %v625_v62, %v621_v53  ;;  %v733_v14 = vrot.slane %v731_v2, 1  ;;  %v635_v21 = vshll.u32 %v3853_v9, 16  ;;  %v3887_v53 = vld [vmem:[%s3685_s26 + $0x68] ss:$0 sps:$4 sm:$0x11]  }
  0x28   : > { %766 = vrot.lane.b32.xlu0 %v715_v42, %s3624_s10  ;;  %v738_v26 = vrot.slane %v736_v15, 1  ;;  %v640_v34 = vshll.u32 %v3860_v16, 16  ;;  %v903_v36 = vshrl.u32 %v3865_v22, 16  ;;  %v905_v38 = vshll.u32 %v3865_v22, 16 }
  0x29   : > { %750 = vrot.lane.b32.xlu1 %v619_v3, %s3624_s10  ;;  %v631_v23 = vsel %vm547_vm0, %v626_v13, %v630_v6  ;;  %v734_v24 = vor.u32 %v733_v14, %v729_v0  ;;  %v637_v32 = vrot.slane %v635_v21, 1  ;;  %v645_v41 = vshrl.u32 %v3869_v27, 16  ;;  %v3893_v62 = vld [vmem:[%s3685_s26 + $0x8] ss:$0 sps:$4 sm:$0x11]   ;;  %v3567_v21 = vld [vmem:[%s4665_s2 + $0x60] sm:$0xff]  }
  0x2a   : > { %v642_v43 = vrot.slane %v640_v34, 1  ;;  %v910_v46 = vshll.u32 %v3873_v35, 16  ;;  %v647_v47 = vshll.u32 %v3869_v27, 16  ;;  %v907_v51 = vrot.slane %v905_v38, 1  ;;  %v3566_v6 = vld [vmem:[%s4665_s2 + $0x68] sm:$0xff]   ;;  %v3568_v38 = vld [vmem:[%s4665_s2 + $0xb8] sm:$0xff]  }
  0x2b   : > { %v739_v37 = vsel %vm547_vm0, %v734_v24, %v738_v26  ;;  %v638_v42 = vor.u32 %v637_v32, %v633_v19  ;;  %v652_v61 = vshll.u32 %v3887_v53, 16  ;;  %v549_v0 = vshrl.u32 %v3884_v48, 16  ;;  %3490 = vmatpush1.bf16.msra.mxu1 %v3566_v6  ;;  %1080 = vmatpush1.bf16.msra.mxu0 %v3566_v6  ;;  %v3572_v6 = vld [vmem:[%s4665_s2 + $0x38] sm:$0xff]  }
  0x2c   : > { %768 = vrot.lane.b32.xlu0 %v727_v12, %s3624_s10  ;;  %v912_v57 = vrot.slane %v910_v46, 1  ;;  %v649_v58 = vrot.slane %v647_v47, 1  ;;  %v908_v60 = vor.u32 %v907_v51, %v903_v36  ;;  %v551_v2 = vshll.u32 %v3884_v48, 16  ;;  %3479 = vmatprep.subr.bf16.mxu1 %v3623_v1  ;;  %v3949_v46 = vld [vmem:[%s3849_s13 + $0xc] sm:$0xff]  }
  0x2d   : > { %752 = vrot.lane.b32.xlu1 %v631_v23, %s3624_s10  ;;  %v643_v54 = vsel %vm547_vm0, %v638_v42, %v642_v43  ;;  %v800_v12 = vrot.slane %v3693_v4, 1  ;;  %v654_v14 = vrot.slane %v652_v61, 1  ;;  %v556_v19 = vshll.u32 %v3893_v62, 16  ;;  %1081 = vmatprep.subr.bf16.mxu0 %v3623_v1  ;;  %v3570_v42 = vld [vmem:[%s4665_s2 + $0xa8] sm:$0xff]   ;;  %v3571_v43 = vld [vmem:[%s4665_s2 + $0xa0] sm:$0xff]  }
  0x2e   : > { %v650_v3 = vor.u32 %v649_v58, %v645_v41  ;;  %v913_v13 = vsel %vm547_vm0, %v908_v60, %v912_v57  ;;  %v553_v15 = vrot.slane %v551_v2, 1  ;;  %v801_v23 = vrot.slane %v3696_v5, 1  ;;  %v3952_v47 = vld [vmem:[%s3849_s13 + $0x14] ss:$0 sps:$4 sm:$0x11]  }
  0x2f   : > { %v558_v32 = vrot.slane %v556_v19, 1  ;;  %v776_v36 = vrot.slane %v3702_v7, 1  ;;  %v777_v5 = vrot.slane %v3710_v11, 1  ;;  %3491 = vmatpush1.bf16.msra.mxu1 %v3567_v21  ;;  %1082 = vmatpush1.bf16.msra.mxu0 %v3567_v21  ;;  %v3569_v11 = vld [vmem:[%s4665_s2 + $0xb0] sm:$0xff]   ;;  %v1473_v51 = vshrl.u32 %v3949_v46, 16 }
  0x30   : > { %770 = vrot.lane.b32.xlu0 %v739_v37, %s3624_s10  ;;  %v655_v24 = vsel %vm547_vm0, %v650_v3, %v654_v14  ;;  %v554_v26 = vor.u32 %v553_v15, %v549_v0  ;;  %v3913_v34 = vsel %vm772_vm1, %v800_v12, %v801_v23  ;;  %3480 = vmatprep.subr.bf16.mxu1 %v3623_v1  ;;  %v1480_v57 = vshll.u32 %v3952_v47, 16  ;;  %v3574_v21 = vld [vmem:[%s4665_s2 + $0x30] sm:$0xff]  }
  0x31   : > { %754 = vrot.lane.b32.xlu1 %v643_v54, %s3624_s10  ;;  %3184 = vmatprep.mubr.msk.bf16.mxu1 %vm821_vm2, %v3913_v34  ;;  %v3926_v41 = vsel %vm772_vm1, %v776_v36, %v777_v5  ;;  %v1475_v54 = vshll.u32 %v3949_v46, 16  ;;  %v803_v2 = vrot.slane %v3718_v17, 1  ;;  %v804_v3 = vrot.slane %v3724_v20, 1  ;;  %v3573_v20 = vld [vmem:[%s4665_s2 + $0xf8] sm:$0xff]  }
  0x32   : > { %v559_v37 = vsel %vm547_vm0, %v554_v26, %v558_v32  ;;  %1091 = vmatprep.subr.bf16.mxu0 %v3623_v1  ;;  %3176 = vmatprep.mubr.msk.bf16.mxu0 %vm821_vm2, %v3926_v41  ;;  %v1482_v60 = vrot.slane %v1480_v57, 1  ;;  %v779_v15 = vrot.slane %v3729_v25, 1  ;;  %v780_v19 = vrot.slane %v3733_v28, 1 }
  0x33   : > { %3492 = vmatpush2.bf16.msra.mxu1 %v3568_v38  ;;  %1092 = vmatpush2.bf16.msra.mxu0 %v3568_v38  ;;  %v1477_v58 = vrot.slane %v1475_v54, 1  ;;  %v806_v26 = vrot.slane %v3741_v33, 1  ;;  %v807_v32 = vrot.slane %v3750_v40, 1  ;;  %v782_v40 = vrot.slane %v3755_v44, 1 }
  0x34   : > { %914 = vrot.lane.b32.xlu0 %v913_v13, %s3624_s10  ;;  %3481 = vmatprep.subr.bf16.mxu1 %v3623_v1  ;;  %v3965_v13 = vsel %vm772_vm1, %v803_v2, %v804_v3  ;;  %v783_v38 = vrot.slane %v3764_v49, 1  ;;  %v809_v49 = vrot.slane %v3769_v52, 1  ;;  %v3581_v3 = vld [vmem:[%s4665_s2 + $0xd8] sm:$0xff]  }
  0x35   : > { %756 = vrot.lane.b32.xlu1 %v655_v24, %s3624_s10  ;;  %1093 = vmatprep.subr.bf16.mxu0 %v3623_v1  ;;  %v1478_v61 = vor.u32 %v1477_v58, %v1473_v51  ;;  %v3988_v24 = vsel %vm772_vm1, %v779_v15, %v780_v19  ;;  %v3579_v58 = vld [vmem:[%s4665_s2 + $0xe0] sm:$0xff]   ;;  %v813_v15 = vrot.slane %v3798_v18, 1 }
  0x36   : > { %v4030_v54 = vsel %vm772_vm1, %v782_v40, %v783_v38 }
  0x37   : > { %3493 = vmatpush2.bf16.msra.mxu1 %v3569_v11  ;;  %1094 = vmatpush2.bf16.msra.mxu0 %v3569_v11  ;;  %v1483_v0 = vsel %vm547_vm0, %v1478_v61, %v1482_v60  ;;  %v3580_v61 = vld [vmem:[%s4665_s2 + $0x18] sm:$0xff]  }
  0x38   : > { %740 = vrot.lane.b32.xlu0 %v559_v37, %s3624_s10  ;;  %3482 = vmatprep.subr.bf16.mxu1 %v3623_v1  ;;  %v3576_v37 = vld [vmem:[%s4665_s2 + $0x28] sm:$0xff]  }
  0x39   : > { %1095 = vmatprep.subr.bf16.mxu0 %v3623_v1  ;;  %1484 = vrot.lane.b32.xlu1 %v1483_v0, %s3624_s10  ;;  %v786_v0 = vrot.slane %v3793_v10, 1  ;;  %s3407_s10 = sshll.u32 %s4673_s15, 5 }
  0x3a   : > { %s4427_s12 = scalar_lea.vmem %s4667_s4, %s3407_s10 }
  0x3b   : > { %3494 = vmatpush2.bf16.msra.mxu1 %v3570_v42  ;;  %1096 = vmatpush2.bf16.msra.mxu0 %v3570_v42  ;;  %v3577_v42 = vld [vmem:[%s4665_s2 + $0xe8] sm:$0xff]  }
  0x3c   : > { %3483 = vmatprep.subr.bf16.mxu1 %v3623_v1  ;;  %1097 = vmatprep.subr.bf16.mxu0 %v3623_v1 }
  0x3f   : > { %3495 = vmatpush2.bf16.msra.mxu1 %v3571_v43  ;;  %1098 = vmatpush2.bf16.msra.mxu0 %v3571_v43  ;;  %v3578_v43 = vld [vmem:[%s4665_s2 + $0x20] sm:$0xff]  }
  0x40   : > { %1303 = vmatprep.subr.bf16.mxu1 %v3623_v1  ;;  %1592 = vmatprep.subr.bf16.mxu0 %v3623_v1 }
  0x8a   : > { %v759_v12 = vpop.permute.xlu0 %758 }
  0x8b   : > { %v3969_v14 = vsel %vm821_vm2, %v3693_v4, %v759_v12  ;;  %v761_v23 = vpop.permute.xlu1 %760  ;;  %v812_v12 = vrot.slane %v3790_v8, 1 }
  0x8c   : > { %1164 = vmatmul.mubr.bf16.vlgmr.msra.gmra.mxu1 %v3969_v14  ;;  %v3995_v36 = vsel %vm821_vm2, %v3718_v17, %v761_v23  ;;  %v4008_v17 = vsel %vm772_vm1, %v806_v26, %v807_v32  ;;  %v789_v23 = vrot.slane %v3810_v30, 1  ;;  %v3585_v32 = vld [vmem:[%s4665_s2 + $0xc8] sm:$0xff]  }
  0x8d   : > { %1304 = vmatpush1.bf16.msra.mxu1 %v3572_v6  ;;  %3185 = vmatprep.mubr.msk.bf16.mxu1 %vm821_vm2, %v3965_v13  ;;  %v4084_v18 = vsel %vm772_vm1, %v812_v12, %v813_v15 }
  0x8e   : > { %v743_v4 = vpop.permute.xlu0 %742  ;;  %1305 = vmatprep.subr.bf16.mxu1 %v3623_v1 }
  0x8f   : > { %v3985_v28 = vsel %vm821_vm2, %v3702_v7, %v743_v4  ;;  %v3575_v7 = vld [vmem:[%s4665_s2 + $0xf0] sm:$0xff]   ;;  %v745_v5 = vpop.permute.xlu1 %744  ;;  %v788_v4 = vrot.slane %v3806_v29, 1 }
  0x90   : > { %1100 = vmatmul.mubr.bf16.vlgmr.msra.gmra.mxu0 %v3985_v28  ;;  %v4015_v11 = vsel %vm821_vm2, %v3729_v25, %v745_v5  ;;  %v810_v25 = vrot.slane %v3777_v59, 1  ;;  %v3586_v5 = vld [vmem:[%s4665_s2] sm:$0xff]  }
  0x91   : > { %1593 = vmatpush1.bf16.msra.mxu0 %v3573_v20  ;;  %1306 = vmatpush1.bf16.msra.mxu1 %v3574_v21  ;;  %v3583_v20 = vld [vmem:[%s4665_s2 + $0xd0] sm:$0xff]   ;;  %v4103_v30 = vsel %vm772_vm1, %v788_v4, %v789_v23 }
  0x92   : > { %1594 = vmatprep.subr.bf16.mxu0 %v3623_v1  ;;  %3177 = vmatprep.mubr.msk.bf16.mxu0 %vm821_vm2, %v3988_v24  ;;  %v763_v51 = vpop.permute.xlu0 %762  ;;  %v4044_v59 = vsel %vm772_vm1, %v809_v49, %v810_v25 }
  0x93   : > { %1307 = vmatprep.subr.bf16.mxu1 %v3623_v1  ;;  %v4035_v57 = vsel %vm821_vm2, %v3741_v33, %v763_v51  ;;  %v747_v60 = vpop.permute.xlu1 %746  ;;  %v785_v33 = vrot.slane %v3773_v56, 1  ;;  %v3588_v51 = vld [vmem:[%s4665_s2 + $0x58] sm:$0xff]  }
  0x94   : > { %1172 = vmatmul.mubr.bf16.gmra.mxu1 %v3995_v36  ;;  %v4055_v2 = vsel %vm821_vm2, %v3755_v44, %v747_v60  ;;  %v3582_v44 = vld [vmem:[%s4665_s2 + $0x10] sm:$0xff]   ;;  %v818_v60 = vrot.slane %v3837_v55, 1 }
  0x95   : > { %1595 = vmatpush1.bf16.msra.mxu0 %v3575_v7  ;;  %1308 = vmatpush1.bf16.msra.mxu1 %v3576_v37  ;;  %v4064_v10 = vsel %vm772_vm1, %v785_v33, %v786_v0  ;;  %v815_v37 = vrot.slane %v3813_v31, 1 }
  0x96   : > { %1596 = vmatprep.subr.bf16.mxu0 %v3623_v1  ;;  %3186 = vmatprep.mubr.msk.bf16.mxu1 %vm821_vm2, %v4008_v17  ;;  %v765_v6 = vpop.permute.xlu0 %764 }
  0x97   : > { %1309 = vmatprep.subr.bf16.mxu1 %v3623_v1  ;;  %v4075_v19 = vsel %vm821_vm2, %v3769_v52, %v765_v6  ;;  %v749_v21 = vpop.permute.xlu1 %748  ;;  %v3584_v52 = vld [vmem:[%s4665_s2 + $0x8] sm:$0xff]   ;;  %v794_v6 = vrot.slane %v3853_v9, 1 }
  0x98   : > { %1108 = vmatmul.mubr.bf16.gmra.mxu0 %v4015_v11  ;;  %v4095_v26 = vsel %vm821_vm2, %v3773_v56, %v749_v21  ;;  %v816_v56 = vrot.slane %v3821_v39, 1  ;;  %v3587_v39 = vld [vmem:[%s4665_s2 + $0xc0] sm:$0xff]   ;;  %v916_v21 = vrot.slane %v3865_v22, 1 }
  0x99   : > { %1597 = vmatpush1.bf16.msra.mxu0 %v3577_v42  ;;  %1310 = vmatpush1.bf16.msra.mxu1 %v3578_v43  ;;  %v791_v43 = vrot.slane %v3827_v45, 1 }
  0x9a   : > { %3178 = vmatprep.mubr.msk.bf16.mxu0 %vm821_vm2, %v4030_v54  ;;  %1598 = vmatprep.subr.bf16.mxu0 %v3623_v1  ;;  %v767_v7 = vpop.permute.xlu0 %766  ;;  %v4123_v42 = vsel %vm772_vm1, %v815_v37, %v816_v56  ;;  %v798_v37 = vrot.slane %v3887_v53, 1 }
  0x9b   : > { %1311 = vmatprep.subr.bf16.mxu1 %v3623_v1  ;;  %v4115_v40 = vsel %vm821_vm2, %v3790_v8, %v767_v7  ;;  %v751_v38 = vpop.permute.xlu1 %750  ;;  %v792_v8 = vrot.slane %v3832_v50, 1  ;;  %v3589_v50 = vld [vmem:[%s4665_s2 + $0x118] sm:$0xff]   ;;  %v797_v7 = vrot.slane %v3869_v27, 1 }
  0x9c   : > { %1180 = vmatmul.mubr.bf16.gmra.mxu1 %v4035_v57  ;;  %v4135_v49 = vsel %vm821_vm2, %v3806_v29, %v751_v38  ;;  %v819_v29 = vrot.slane %v3841_v63, 1  ;;  %v3591_v63 = vld [vmem:[%s4665_s2 + $0x110] sm:$0xff]   ;;  %v774_v38 = vrot.slane %v3893_v62, 1 }
  0x9d   : > { %1599 = vmatpush1.bf16.msra.mxu0 %v3579_v58  ;;  %3187 = vmatprep.mubr.msk.bf16.mxu1 %vm821_vm2, %v4044_v59  ;;  %v4143_v58 = vsel %vm772_vm1, %v791_v43, %v792_v8 }
  0x9e   : > { %1312 = vmatpush1.bf16.msra.mxu1 %v3580_v61  ;;  %1600 = vmatprep.subr.bf16.mxu0 %v3623_v1  ;;  %v769_v25 = vpop.permute.xlu0 %768  ;;  %v3590_v61 = vld [vmem:[%s4665_s2 + $0x50] sm:$0xff]  }
  0x9f   : > { %1313 = vmatprep.subr.bf16.mxu1 %v3623_v1  ;;  %v4155_v33 = vsel %vm821_vm2, %v3813_v31, %v769_v25  ;;  %v753_v0 = vpop.permute.xlu1 %752  ;;  %v3592_v31 = vld [vmem:[%s4665_s2 + $0x48] sm:$0xff]  }
  0xa0   : > { %1116 = vmatmul.mubr.bf16.gmra.mxu0 %v4055_v2  ;;  %v4175_v12 = vsel %vm821_vm2, %v3827_v45, %v753_v0  ;;  %v3594_v45 = vld [vmem:[%s4665_s2 + $0x40] sm:$0xff]  }
  0xa1   : > { %1601 = vmatpush1.bf16.msra.mxu0 %v3581_v3  ;;  %3179 = vmatprep.mubr.msk.bf16.mxu0 %vm821_vm2, %v4064_v10  ;;  %v4163_v3 = vsel %vm772_vm1, %v818_v60, %v819_v29 }
  0xa2   : > { %1314 = vmatpush1.bf16.msra.mxu1 %v3582_v44  ;;  %1602 = vmatprep.subr.bf16.mxu0 %v3623_v1  ;;  %v795_v44 = vrot.slane %v3860_v16, 1  ;;  %v3593_v16 = vld [vmem:[%s4665_s2 + $0x108] sm:$0xff]   ;;  %v771_v15 = vpop.permute.xlu0 %770 }
  0xa3   : > { %1315 = vmatprep.subr.bf16.mxu1 %v3623_v1  ;;  %v4195_v4 = vsel %vm821_vm2, %v3837_v55, %v771_v15  ;;  %v755_v23 = vpop.permute.xlu1 %754 }
  0xa4   : > { %1188 = vmatmul.mubr.bf16.gmra.mxu1 %v4075_v19  ;;  %v844_v55 = vsel %vm821_vm2, %v3853_v9, %v755_v23 }
  0xa5   : > { %3188 = vmatprep.mubr.msk.bf16.mxu1 %vm821_vm2, %v4084_v18  ;;  %1603 = vmatpush1.bf16.msra.mxu0 %v3583_v20  ;;  %v4183_v20 = vsel %vm772_vm1, %v794_v6, %v795_v44 }
  0xa6   : > { %1316 = vmatpush1.bf16.msra.mxu1 %v3584_v52  ;;  %1604 = vmatprep.subr.bf16.mxu0 %v3623_v1  ;;  %v917_v52 = vrot.slane %v3873_v35, 1  ;;  %v3595_v35 = vld [vmem:[%s4665_s2 + $0x100] sm:$0xff]   ;;  %v915_v56 = vpop.permute.xlu0 %914 }
  0xa7   : > { %1317 = vmatprep.subr.bf16.mxu1 %v3623_v1  ;;  %v757_v53 = vpop.permute.xlu1 %756 }
  0xa8   : > { %1124 = vmatmul.mubr.bf16.gmra.mxu0 %v4095_v26  ;;  %v847_v43 = vsel %vm821_vm2, %v3869_v27, %v757_v53  ;;  %v1487_v27 = vrot.slane %v3952_v47, 1 }
  0xa9   : > { %3180 = vmatprep.mubr.msk.bf16.mxu0 %vm821_vm2, %v4103_v30  ;;  %1605 = vmatpush1.bf16.msra.mxu0 %v3585_v32  ;;  %v4203_v32 = vsel %vm772_vm1, %v916_v21, %v917_v52 }
  0xaa   : > { %1318 = vmatpush1.bf16.msra.mxu1 %v3586_v5  ;;  %1606 = vmatprep.subr.bf16.mxu0 %v3623_v1  ;;  %v799_v5 = vsel %vm772_vm1, %v797_v7, %v798_v37  ;;  %v741_v8 = vpop.permute.xlu0 %740 }
  0xab   : > { %1327 = vmatprep.subr.bf16.mxu1 %v3623_v1  ;;  %v823_v62 = vsel %vm821_vm2, %v3884_v48, %v741_v8 }
  0xac   : > { %1196 = vmatmul.mubr.bf16.gmra.mxu1 %v4115_v40 }
  0xad   : > { %3189 = vmatprep.mubr.msk.bf16.mxu1 %vm821_vm2, %v4123_v42  ;;  %1607 = vmatpush1.bf16.msra.mxu0 %v3587_v39  ;;  %v773_v39 = vrot.slane %v3884_v48, 1 }
  0xae   : > { %1328 = vmatpush2.bf16.msra.mxu1 %v3588_v51  ;;  %1616 = vmatprep.subr.bf16.mxu0 %v3623_v1 }
  0xaf   : > { %1329 = vmatprep.subr.bf16.mxu1 %v3623_v1  ;;  %v775_v9 = vsel %vm772_vm1, %v773_v39, %v774_v38 }
  0xb0   : > { %1132 = vmatmul.mubr.bf16.gmra.mxu0 %v4135_v49 }
  0xb1   : > { %3181 = vmatprep.mubr.msk.bf16.mxu0 %vm821_vm2, %v4143_v58  ;;  %1617 = vmatpush2.bf16.msra.mxu0 %v3589_v50 }
  0xb2   : > { %1330 = vmatpush2.bf16.msra.mxu1 %v3590_v61  ;;  %1618 = vmatprep.subr.bf16.mxu0 %v3623_v1 }
  0xb3   : > { %1331 = vmatprep.subr.bf16.mxu1 %v3623_v1 }
  0xb4   : > { %1204 = vmatmul.mubr.bf16.gmra.mxu1 %v4155_v33 }
  0xb5   : > { %3190 = vmatprep.mubr.msk.bf16.mxu1 %vm821_vm2, %v4163_v3  ;;  %1619 = vmatpush2.bf16.msra.mxu0 %v3591_v63 }
  0xb6   : > { %1332 = vmatpush2.bf16.msra.mxu1 %v3592_v31  ;;  %1620 = vmatprep.subr.bf16.mxu0 %v3623_v1 }
  0xb7   : > { %1333 = vmatprep.subr.bf16.mxu1 %v3623_v1 }
  0xb8   : > { %1140 = vmatmul.mubr.bf16.gmra.mxu0 %v4175_v12 }
  0xb9   : > { %3182 = vmatprep.mubr.msk.bf16.mxu0 %vm821_vm2, %v4183_v20  ;;  %1621 = vmatpush2.bf16.msra.mxu0 %v3593_v16 }
  0xba   : > { %1334 = vmatpush2.bf16.msra.mxu1 %v3594_v45  ;;  %1622 = vmatprep.subr.bf16.mxu0 %v3623_v1  ;;  %v4218_v1 = vsel %vm821_vm2, %v3865_v22, %v915_v56  ;;  %v1486_v22 = vrot.slane %v3949_v46, 1 }
  0xbc   : > { %1212 = vmatmul.mubr.bf16.gmra.mxu1 %v4195_v4  ;;  %v1488_v48 = vsel %vm772_vm1, %v1486_v22, %v1487_v27 }
  0xbd   : > { %3191 = vmatprep.mubr.msk.bf16.mxu1 %vm821_vm2, %v4203_v32  ;;  %1623 = vmatpush2.bf16.msra.mxu0 %v3595_v35 }
  0xc0   : > { %1148 = vmatmul.mubr.bf16.gmra.mxu0 %v844_v55 }
  0xc1   : > { %3183 = vmatprep.mubr.msk.bf16.mxu0 %vm821_vm2, %v799_v5 }
  0xc4   : > { %1220 = vmatmul.mubr.bf16.gmra.mxu1 %v4218_v1 }
  0xc5   : > { %3204 = vmatprep.mubr.msk.bf16.mxu1 %vm821_vm2, %v775_v9 }
  0xc8   : > { %1156 = vmatmul.mubr.bf16.gmra.mxu0 %v847_v43 }
  0xc9   : > { %3258 = vmatprep.mubr.msk.bf16.mxu0 %vm821_vm2, %v3988_v24 }
  0xcc   : > { %1336 = vmatmul.mubr.bf16.vlgmr.msra.gmra.mxu1 %v823_v62 }
  0xcd   : > { %3205 = vmatprep.mubr.msk.bf16.mxu1 %vm821_vm2, %v3926_v41 }
  0xd0   : > { %1625 = vmatmul.mubr.bf16.vlgmr.msra.gmra.mxu0 %v4015_v11 }
  0xd1   : > { %3259 = vmatprep.mubr.msk.bf16.mxu0 %vm821_vm2, %v4030_v54 }
  0xd4   : > { %1344 = vmatmul.mubr.bf16.gmra.mxu1 %v3985_v28 }
  0xd5   : > { %3206 = vmatprep.mubr.msk.bf16.mxu1 %vm821_vm2, %v3988_v24 }
  0xd8   : > { %1633 = vmatmul.mubr.bf16.gmra.mxu0 %v4055_v2 }
  0xd9   : > { %3260 = vmatprep.mubr.msk.bf16.mxu0 %vm821_vm2, %v4064_v10 }
  0xdc   : > { %1352 = vmatmul.mubr.bf16.gmra.mxu1 %v4015_v11 }
  0xdd   : > { %3207 = vmatprep.mubr.msk.bf16.mxu1 %vm821_vm2, %v4030_v54 }
  0xe0   : > { %1641 = vmatmul.mubr.bf16.gmra.mxu0 %v4095_v26 }
  0xe1   : > { %3261 = vmatprep.mubr.msk.bf16.mxu0 %vm821_vm2, %v4103_v30 }
  0xe4   : > { %1360 = vmatmul.mubr.bf16.gmra.mxu1 %v4055_v2 }
  0xe5   : > { %3208 = vmatprep.mubr.msk.bf16.mxu1 %vm821_vm2, %v4064_v10 }
  0xe8   : > { %1649 = vmatmul.mubr.bf16.gmra.mxu0 %v4135_v49 }
  0xe9   : > { %3262 = vmatprep.mubr.msk.bf16.mxu0 %vm821_vm2, %v4143_v58 }
  0xec   : > { %1368 = vmatmul.mubr.bf16.gmra.mxu1 %v4095_v26 }
  0xed   : > { %3209 = vmatprep.mubr.msk.bf16.mxu1 %vm821_vm2, %v4103_v30 }
  0xf0   : > { %1657 = vmatmul.mubr.bf16.gmra.mxu0 %v4175_v12 }
  0xf1   : > { %3263 = vmatprep.mubr.msk.bf16.mxu0 %vm821_vm2, %v4183_v20 }
  0xf4   : > { %1376 = vmatmul.mubr.bf16.gmra.mxu1 %v4135_v49 }
  0xf5   : > { %3210 = vmatprep.mubr.msk.bf16.mxu1 %vm821_vm2, %v4143_v58 }
  0xf8   : > { %1665 = vmatmul.mubr.bf16.gmra.mxu0 %v844_v55 }
  0xf9   : > { %3264 = vmatprep.mubr.msk.bf16.mxu0 %vm821_vm2, %v799_v5 }
  0xfc   : > { %1384 = vmatmul.mubr.bf16.gmra.mxu1 %v4175_v12 }
  0xfd   : > { %3211 = vmatprep.mubr.msk.bf16.mxu1 %vm821_vm2, %v4183_v20 }
 0x100   : > { %1673 = vmatmul.mubr.bf16.gmra.mxu0 %v847_v43 }
 0x101   : > { %3265 = vmatprep.mubr.msk.bf16.mxu0 %vm821_vm2, %v3913_v34 }
 0x104   : > { %1392 = vmatmul.mubr.bf16.gmra.mxu1 %v844_v55 }
 0x105   : > { %3212 = vmatprep.mubr.msk.bf16.mxu1 %vm821_vm2, %v799_v5 }
 0x108   : > { %1681 = vmatmul.mubr.bf16.gmra.mxu0 %v3969_v14 }
 0x109   : > { %3266 = vmatprep.mubr.msk.bf16.mxu0 %vm821_vm2, %v3965_v13 }
 0x10c   : > { %1400 = vmatmul.mubr.bf16.gmra.mxu1 %v847_v43 }
 0x10d   : > { %3213 = vmatprep.mubr.msk.bf16.mxu1 %vm821_vm2, %v3913_v34  ;;  %v1485_v34 = vpop.permute.xlu1 %1484 }
 0x10e   : > { %v1490_v41 = vsel %vm821_vm2, %v3949_v46, %v1485_v34 }
 0x110   : > { %1689 = vmatmul.mubr.bf16.gmra.mxu0 %v3995_v36 }
 0x111   : > { %3267 = vmatprep.mubr.msk.bf16.mxu0 %vm821_vm2, %v4008_v17 }
 0x114   : > { %1408 = vmatmul.mubr.bf16.gmra.mxu1 %v3969_v14 }
 0x115   : > { %3214 = vmatprep.mubr.msk.bf16.mxu1 %vm821_vm2, %v3965_v13 }
 0x118   : > { %1697 = vmatmul.mubr.bf16.gmra.mxu0 %v4035_v57 }
 0x119   : > { %3268 = vmatprep.mubr.msk.bf16.mxu0 %vm821_vm2, %v4044_v59 }
 0x11c   : > { %1416 = vmatmul.mubr.bf16.gmra.mxu1 %v3995_v36 }
 0x11d   : > { %3215 = vmatprep.mubr.msk.bf16.mxu1 %vm821_vm2, %v4008_v17 }
 0x120   : > { %1705 = vmatmul.mubr.bf16.gmra.mxu0 %v4075_v19 }
 0x121   : > { %3269 = vmatprep.mubr.msk.bf16.mxu0 %vm821_vm2, %v4084_v18 }
 0x124   : > { %1424 = vmatmul.mubr.bf16.gmra.mxu1 %v4035_v57 }
 0x125   : > { %3216 = vmatprep.mubr.msk.bf16.mxu1 %vm821_vm2, %v4044_v59 }
 0x128   : > { %1713 = vmatmul.mubr.bf16.gmra.mxu0 %v4115_v40 }
 0x129   : > { %3270 = vmatprep.mubr.msk.bf16.mxu0 %vm821_vm2, %v4123_v42 }
 0x12c   : > { %1432 = vmatmul.mubr.bf16.gmra.mxu1 %v4075_v19 }
 0x12d   : > { %3217 = vmatprep.mubr.msk.bf16.mxu1 %vm821_vm2, %v4084_v18 }
 0x130   : > { %1721 = vmatmul.mubr.bf16.gmra.mxu0 %v4155_v33 }
 0x131   : > { %3271 = vmatprep.mubr.msk.bf16.mxu0 %vm821_vm2, %v4163_v3 }
 0x134   : > { %1440 = vmatmul.mubr.bf16.gmra.mxu1 %v4115_v40 }
 0x135   : > { %3218 = vmatprep.mubr.msk.bf16.mxu1 %vm821_vm2, %v4123_v42 }
 0x138   : > { %1729 = vmatmul.mubr.bf16.gmra.mxu0 %v4195_v4 }
 0x139   : > { %3272 = vmatprep.mubr.msk.bf16.mxu0 %vm821_vm2, %v4203_v32 }
 0x13c   : > { %1448 = vmatmul.mubr.bf16.gmra.mxu1 %v4155_v33 }
 0x13d   : > { %3219 = vmatprep.mubr.msk.bf16.mxu1 %vm821_vm2, %v4163_v3 }
 0x140   : > { %1737 = vmatmul.mubr.bf16.gmra.mxu0 %v4218_v1 }
 0x141   : > { %3273 = vmatprep.mubr.msk.bf16.mxu0 %vm821_vm2, %v1488_v48 }
 0x144   : > { %1456 = vmatmul.mubr.bf16.gmra.mxu1 %v4195_v4 }
 0x148   : > { %1745 = vmatmul.mubr.bf16.gmra.mxu0 %v1490_v41 }
 0x14c   : > { %v4318_v13 = vpop.f32.mrf.mxu1 }
 0x14e   : > { %v1167_v47 = vpop.f32.mrf.mxu1 }
 0x150   : > { %v4320_v14 = vpop.f32.mrf.mxu0  ;;  %v4322_v28 = vpop.f32.mrf.mxu1 }
 0x152   : > { %v1103_v24 = vpop.f32.mrf.mxu0  ;;  %v1170_v36 = vpop.f32.mrf.mxu1 }
 0x154   : > { %v4324_v17 = vpop.f32.mrf.mxu0  ;;  %v4326_v11 = vpop.f32.mrf.mxu1 }
 0x156   : > { %v1106_v54 = vpop.f32.mrf.mxu0  ;;  %v1175_v57 = vpop.f32.mrf.mxu1 }
 0x158   : > { %v4328_v59 = vpop.f32.mrf.mxu0  ;;  %v4330_v2 = vpop.f32.mrf.mxu1 }
 0x15a   : > { %v1111_v46 = vpop.f32.mrf.mxu0  ;;  %v1178_v10 = vpop.f32.mrf.mxu1 }
 0x15c   : > { %v4332_v19 = vpop.f32.mrf.mxu0  ;;  %v4334_v18 = vpop.f32.mrf.mxu1 }
 0x15e   : > { %v1114_v26 = vpop.f32.mrf.mxu0  ;;  %v1183_v30 = vpop.f32.mrf.mxu1 }
 0x160   : > { %v4336_v40 = vpop.f32.mrf.mxu0  ;;  %v4338_v42 = vpop.f32.mrf.mxu1 }
 0x162   : > { %v1119_v51 = vpop.f32.mrf.mxu0  ;;  %v1186_v49 = vpop.f32.mrf.mxu1 }
 0x163   : > { %v3625_v51 = vmov 1983009808  }
 0x164   : > { %v4340_v50 = vpop.f32.mrf.mxu0  ;;  %v4342_v25 = vpop.f32.mrf.mxu1  ;;  %v1890_v49 = vunpack.c.l.s4 %v3625_v51 }
 0x166   : > { %v1122_v58 = vpop.f32.mrf.mxu0  ;;  %v1191_v60 = vpop.f32.mrf.mxu1 }
 0x167   : > { %v1892_v58 = vlaneseq }
 0x168   : > { %v4344_v29 = vpop.f32.mrf.mxu0  ;;  %v4346_v61 = vpop.f32.mrf.mxu1 }
 0x16a   : > { %v1127_v33 = vpop.f32.mrf.mxu0  ;;  %v1194_v63 = vpop.f32.mrf.mxu1 }
 0x16b   : > { %v4386_v33 = vld [vmem:[%s4666_s3] ss:$0 sm:$0xff] }
 0x16c   : > { %v4348_v0 = vpop.f32.mrf.mxu0  ;;  %v4350_v3 = vpop.f32.mrf.mxu1 }
 0x16e   : > { %v1130_v6 = vpop.f32.mrf.mxu0  ;;  %v1199_v44 = vpop.f32.mrf.mxu1 }
 0x170   : > { %v4352_v31 = vpop.f32.mrf.mxu0  ;;  %v4354_v12 = vpop.f32.mrf.mxu1 }
 0x172   : > { %v1135_v16 = vpop.f32.mrf.mxu0  ;;  %v1202_v15 = vpop.f32.mrf.mxu1 }
 0x174   : > { %v4356_v20 = vpop.f32.mrf.mxu0  ;;  %v4358_v21 = vpop.f32.mrf.mxu1 }
 0x176   : > { %v1138_v52 = vpop.f32.mrf.mxu0  ;;  %v1207_v45 = vpop.f32.mrf.mxu1 }
 0x177   : > { %v1893_v45 = vshrl.u32 %v1892_v58, 7 }
 0x178   : > { %v4360_v4 = vpop.f32.mrf.mxu0  ;;  %v4362_v35 = vpop.f32.mrf.mxu1 }
 0x17a   : > { %v1143_v23 = vpop.f32.mrf.mxu0  ;;  %v1210_v32 = vpop.f32.mrf.mxu1 }
 0x17c   : > { %v4364_v7 = vpop.f32.mrf.mxu0  ;;  %v4366_v37 = vpop.f32.mrf.mxu1 }
 0x17e   : > { %v1146_v55 = vpop.f32.mrf.mxu0  ;;  %v1215_v56 = vpop.f32.mrf.mxu1 }
 0x180   : > { %v4368_v5 = vpop.f32.mrf.mxu0  ;;  %v4370_v39 = vpop.f32.mrf.mxu1 }
 0x182   : > { %v1151_v38 = vpop.f32.mrf.mxu0  ;;  %v1218_v1 = vpop.f32.mrf.mxu1 }
 0x184   : > { %v4372_v53 = vpop.f32.mrf.mxu0  ;;  %v4374_v9 = vpop.f32.mrf.mxu1 }
 0x186   : > { %v1154_v43 = vpop.f32.mrf.mxu0  ;;  %v1223_v8 = vpop.f32.mrf.mxu1 }
 0x188   : > { %v4376_v62 = vpop.f32.mrf.mxu0  ;;  %v4378_v22 = vpop.f32.mrf.mxu1 }
 0x18a   : > { %v1159_v27 = vpop.f32.mrf.mxu0  ;;  %v1226_v48 = vpop.f32.mrf.mxu1 }
 0x18c   : > { %v4380_v34 = vpop.f32.mrf.mxu0  ;;  %v1337_v41 = vpop.f32.mrf.mxu1 }
 0x18d   : > { %v1338_v10 = vadd.f32 %v1337_v41, %v4320_v14  ;;  %v1891_v14 = vunpack.c.0.s8 %v1890_v49 }
 0x18e   : > { %v1162_v47 = vpop.f32.mrf.mxu0  ;;  %v1339_v24 = vpop.f32.mrf.mxu1 }
 0x18f   : > { %v4393_v8 = vsub.s32 %v1891_v14, %v1893_v45 }
 0x190   : > { %v1340_v36 = vpop.f32.mrf.mxu1  ;;  %v1626_v54 = vpop.f32.mrf.mxu0 }
 0x191   : > { %v1753_v60 = vadd.f32 %v1626_v54, %v1338_v10  ;;  %v1341_v44 = vadd.f32 %v1340_v36, %v4324_v17 }
 0x192   : > { %v1342_v57 = vpop.f32.mrf.mxu1  ;;  %v1628_v46 = vpop.f32.mrf.mxu0 }
 0x193   : > { %v1792_v23 = vadd.f32 %v4386_v33, %v1753_v60 }
 0x194   : > { %v1345_v26 = vpop.f32.mrf.mxu1  ;;  %v1629_v30 = vpop.f32.mrf.mxu0 }
 0x195   : > { %v1346_v16 = vadd.f32 %v1345_v26, %v4328_v59  ;;  %v1754_v32 = vadd.f32 %v1629_v30, %v1341_v44  ;;  %v1824_v48 = vmax.f32 %v1792_v23, 0.0 }
 0x196   : > { %v1347_v63 = vpop.f32.mrf.mxu1  ;;  %v1631_v6 = vpop.f32.mrf.mxu0 }
 0x197   : > { %v1793_v59 = vadd.f32 %v4386_v33, %v1754_v32 }
 0x198   : > { %v1348_v15 = vpop.f32.mrf.mxu1  ;;  %v1634_v52 = vpop.f32.mrf.mxu0 }
 0x199   : > { %v1755_v55 = vadd.f32 %v1634_v52, %v1346_v16  ;;  %v1349_v1 = vadd.f32 %v1348_v15, %v4332_v19  ;;  %v1825_v26 = vmax.f32 %v1793_v59, 0.0 }
 0x19a   : > { %v1350_v56 = vpop.f32.mrf.mxu1  ;;  %v1636_v38 = vpop.f32.mrf.mxu0 }
 0x19b   : > { %v1794_v43 = vadd.f32 %v4386_v33, %v1755_v55 }
 0x19c   : > { %v1353_v27 = vpop.f32.mrf.mxu1  ;;  %v1637_v17 = vpop.f32.mrf.mxu0 }
 0x19d   : > { %v1826_v41 = vmax.f32 %v1794_v43, 0.0  ;;  %v1756_v47 = vadd.f32 %v1637_v17, %v1349_v1  ;;  %v1354_v46 = vadd.f32 %v1353_v27, %v4336_v40 }
 0x19e   : > { %v1355_v24 = vpop.f32.mrf.mxu1  ;;  %v1639_v36 = vpop.f32.mrf.mxu0 }
 0x19f   : > { %v1856_v54 = vmax.f32 %v1824_v48, %v1826_v41  ;;  %v1795_v57 = vadd.f32 %v4386_v33, %v1756_v47 }
 0x1a0   : > { %v1356_v10 = vpop.f32.mrf.mxu1  ;;  %v1642_v19 = vpop.f32.mrf.mxu0 }
 0x1a1   : > { %v1888_v30 = vcombine.high %v1856_v54, %v1856_v54  ;;  %v1895_v51 = vrot.slane %v1856_v54, %v4393_v8  ;;  %v1827_v49 = vmax.f32 %v1795_v57, 0.0  ;;  %v1757_v58 = vadd.f32 %v1642_v19, %v1354_v46 }
 0x1a2   : > { %v1358_v60 = vpop.f32.mrf.mxu1  ;;  %v1644_v63 = vpop.f32.mrf.mxu0  ;;  %v1357_v38 = vadd.f32 %v1356_v10, %v4340_v50 }
 0x1a3   : > { %v1902_v6 = vrot.slane %v1888_v30, %v4393_v8  ;;  %v1903_v44 = vcombine.high %v1895_v51, %v1895_v51  ;;  %v3275_v16 = vrot.slane %v1895_v51, 9  ;;  %v1857_v15 = vmax.f32 %v1825_v26, %v1827_v49 }
 0x1a4   : > { %v1361_v52 = vpop.f32.mrf.mxu1  ;;  %v1645_v14 = vpop.f32.mrf.mxu0  ;;  %v4403_v1 = vadd.f32 %v4386_v33, %v1757_v58 }
 0x1a5   : > { %v1904_v45 = vcombine.high %v1902_v6, %v1902_v6  ;;  %v3276_v40 = vrot.slane %v1903_v44, 9  ;;  %v3277_v23 = vrot.slane %v1902_v6, 9  ;;  %v2416_v32 = vmax.f32 %v1895_v51, %v3275_v16 }
 0x1a6   : > { %v1905_v55 = vcombine.high %v1857_v15, %v1857_v15  ;;  %v1912_v56 = vrot.slane %v1857_v15, %v4393_v8  ;;  %v1363_v43 = vpop.f32.mrf.mxu1  ;;  %v1647_v27 = vpop.f32.mrf.mxu0  ;;  %v1362_v54 = vadd.f32 %v1361_v52, %v4344_v29  ;;  %v1758_v26 = vadd.f32 %v1645_v14, %v1357_v38 }
 0x1a7   : > { %v3278_v17 = vrot.slane %v1904_v45, 9  ;;  %v2417_v48 = vmax.f32 %v1903_v44, %v3276_v40  ;;  %v2418_v59 = vmax.f32 %v1902_v6, %v3277_v23  ;;  %v3408_v41 = vpack.c.bf16 %v2416_v32, %v2416_v32 }
 0x1a8   : > { %v1919_v47 = vrot.slane %v1905_v55, %v4393_v8  ;;  %v1920_v24 = vcombine.high %v1912_v56, %v1912_v56  ;;  %v3279_v36 = vrot.slane %v1912_v56, 9  ;;  %v1364_v57 = vpop.f32.mrf.mxu1  ;;  %v1650_v46 = vpop.f32.mrf.mxu0  ;;  %v1797_v43 = vadd.f32 %v4386_v33, %v1758_v26 }
 0x1a9   : > { %v2419_v19 = vmax.f32 %v1904_v45, %v3278_v17  ;;  %v3409_v50 = vpack.c.bf16 %v2417_v48, %v2417_v48  ;;  %v3410_v10 = vpack.c.bf16 %v2418_v59, %v2418_v59  ;;  %v2736_v44 = vunpack.c.l.b16 %v3408_v41 }
 0x1aa   : > { %v1921_v30 = vcombine.high %v1919_v47, %v1919_v47  ;;  %v3280_v51 = vrot.slane %v1920_v24, 9  ;;  %v3281_v49 = vrot.slane %v1919_v47, 9  ;;  %v2420_v58 = vmax.f32 %v1912_v56, %v3279_v36  ;;  %v1366_v60 = vpop.f32.mrf.mxu1  ;;  %v1652_v63 = vpop.f32.mrf.mxu0 }
 0x1ab   : > { %v3411_v6 = vpack.c.bf16 %v2419_v19, %v2419_v19  ;;  %v2737_v16 = vunpack.c.l.b16 %v3409_v50  ;;  %v2738_v15 = vunpack.c.l.b16 %v3410_v10 }
 0x1ac   : > { %v3282_v29 = vrot.slane %v1921_v30, 9  ;;  %v2421_v52 = vmax.f32 %v1920_v24, %v3280_v51  ;;  %v2422_v40 = vmax.f32 %v1919_v47, %v3281_v49  ;;  %v3412_v45 = vpack.c.bf16 %v2420_v58, %v2420_v58  ;;  %v1369_v23 = vpop.f32.mrf.mxu1  ;;  %v1653_v32 = vpop.f32.mrf.mxu0 }
 0x1ad   : > { %v2739_v55 = vunpack.c.l.b16 %v3411_v6  ;;  %v2800_v14 = vrot.slane %v2737_v16, 7  ;;  %v2803_v38 = vrot.slane %v2738_v15, 6  ;;  %v1365_v24 = vadd.f32 %v1364_v57, %v4348_v0 }
 0x1ae   : > { %v2423_v56 = vmax.f32 %v1921_v30, %v3282_v29  ;;  %v3413_v27 = vpack.c.bf16 %v2421_v52, %v2421_v52  ;;  %v3414_v17 = vpack.c.bf16 %v2422_v40, %v2422_v40  ;;  %v2740_v48 = vunpack.c.l.b16 %v3412_v45  ;;  %v1371_v59 = vpop.f32.mrf.mxu1  ;;  %v1655_v41 = vpop.f32.mrf.mxu0 }
 0x1af   : > { %v2802_v36 = vsel %vm2801_vm3, %v2800_v14, %v2736_v44  ;;  %v2806_v19 = vrot.slane %v2739_v55, 5  ;;  %v1759_v47 = vadd.f32 %v1650_v46, %v1362_v54  ;;  %v1370_v6 = vadd.f32 %v1369_v23, %v4352_v31 }
 0x1b0   : > { %v2805_v50 = vsel %vm2804_vm4, %v2803_v38, %v2802_v36  ;;  %v3415_v10 = vpack.c.bf16 %v2423_v56, %v2423_v56  ;;  %v2741_v51 = vunpack.c.l.b16 %v3413_v27  ;;  %v2742_v49 = vunpack.c.l.b16 %v3414_v17  ;;  %v1372_v58 = vpop.f32.mrf.mxu1  ;;  %v1658_v26 = vpop.f32.mrf.mxu0 }
 0x1b1   : > { %v2808_v30 = vsel %vm2807_vm5, %v2806_v19, %v2805_v50  ;;  %v2809_v60 = vrot.slane %v2740_v48, 4  ;;  %v1798_v63 = vadd.f32 %v4386_v33, %v1759_v47  ;;  %v1760_v0 = vadd.f32 %v1653_v32, %v1365_v24 }
 0x1b2   : > { %v2743_v44 = vunpack.c.l.b16 %v3415_v10  ;;  %v2812_v16 = vrot.slane %v2741_v51, 3  ;;  %v2815_v15 = vrot.slane %v2742_v49, 2  ;;  %v1374_v54 = vpop.f32.mrf.mxu1  ;;  %v1660_v57 = vpop.f32.mrf.mxu0  ;;  %v1828_v29 = vmax.f32 %v4403_v1, 0.0 }
 0x1b3   : > { %v2811_v46 = vsel %vm2810_vm6, %v2809_v60, %v2808_v30  ;;  %v1830_v52 = vmax.f32 %v1798_v63, 0.0  ;;  %v1761_v40 = vadd.f32 %v1658_v26, %v1370_v6  ;;  %v1799_v14 = vadd.f32 %v4386_v33, %v1760_v0 }
 0x1b4   : > { %v2814_v45 = vsel %vm2813_vm7, %v2812_v16, %v2811_v46  ;;  %v2818_v55 = vrot.slane %v2743_v44, 1  ;;  %v1373_v31 = vadd.f32 %v1372_v58, %v4356_v20  ;;  %v1377_v23 = vpop.f32.mrf.mxu1  ;;  %v1661_v38 = vpop.f32.mrf.mxu0  ;;  %v1829_v17 = vmax.f32 %v1797_v43, 0.0 }
 0x1b5   : > { %v2817_v32 = vsel %vm2816_vm8, %v2815_v15, %v2814_v45  ;;  %v1858_v56 = vmax.f32 %v1828_v29, %v1830_v52  ;;  %v4422_v27 = vadd.f32 %v4386_v33, %v1761_v40  ;;  %v1831_v48 = vmax.f32 %v1799_v14, 0.0 }
 0x1b6   : > { %v2820_v1 = vsel %vm2819_vm9, %v2818_v55, %v2817_v32  ;;  %v1762_v20 = vadd.f32 %v1661_v38, %v1373_v31  ;;  %v1379_v59 = vpop.f32.mrf.mxu1  ;;  %v1663_v41 = vpop.f32.mrf.mxu0  ;;  %v1378_v10 = vadd.f32 %v1377_v23, %v4360_v4 }
 0x1b7   : > { %v2919_v36 = vpack.c.b16 %v2820_v1, %v2820_v1  ;;  %v1922_v19 = vcombine.high %v1858_v56, %v1858_v56  ;;  %v1929_v24 = vrot.slane %v1858_v56, %v4393_v8  ;;  %v1859_v47 = vmax.f32 %v1829_v17, %v1831_v48 }
 0x1b8   : > { %v1832_v50 = vmax.f32 %v4422_v27, 0.0  ;;  %v4434_v51 = vadd.f32 %v4386_v33, %v1762_v20  ;;  %v1380_v49 = vpop.f32.mrf.mxu1  ;;  %v1666_v58 = vpop.f32.mrf.mxu0 }
 0x1b9   : > { %2936 = vst.msk [vmem:[%s4427_s12] sm:$0xf] %vm2935_vm10, %v2919_v36  ;;  %v1936_v43 = vrot.slane %v1922_v19, %v4393_v8  ;;  %v1937_v26 = vcombine.high %v1929_v24, %v1929_v24  ;;  %v3283_v30 = vrot.slane %v1929_v24, 9  ;;  %v4440_v60 = vadd.f32 %v1380_v49, %v4364_v7 }
 0x1ba   : > { %v1939_v63 = vcombine.high %v1859_v47, %v1859_v47  ;;  %v1946_v6 = vrot.slane %v1859_v47, %v4393_v8  ;;  %v1833_v44 = vmax.f32 %v4434_v51, 0.0  ;;  %v1763_v4 = vadd.f32 %v1666_v58, %v1378_v10  ;;  %v1382_v16 = vpop.f32.mrf.mxu1  ;;  %v1668_v15 = vpop.f32.mrf.mxu0 }
 0x1bb   : > { %v1938_v0 = vcombine.high %v1936_v43, %v1936_v43  ;;  %v3284_v54 = vrot.slane %v1937_v26, 9  ;;  %v3285_v57 = vrot.slane %v1936_v43, 9  ;;  %v2424_v46 = vmax.f32 %v1929_v24, %v3283_v30 }
 0x1bc   : > { %v1953_v29 = vrot.slane %v1939_v63, %v4393_v8  ;;  %v1954_v52 = vcombine.high %v1946_v6, %v1946_v6  ;;  %v3287_v40 = vrot.slane %v1946_v6, 9  ;;  %v1802_v45 = vadd.f32 %v4386_v33, %v1763_v4  ;;  %v1385_v7 = vpop.f32.mrf.mxu1  ;;  %v1669_v55 = vpop.f32.mrf.mxu0 }
 0x1bd   : > { %v3286_v14 = vrot.slane %v1938_v0, 9  ;;  %v2425_v31 = vmax.f32 %v1937_v26, %v3284_v54  ;;  %v2426_v23 = vmax.f32 %v1936_v43, %v3285_v57  ;;  %v3416_v38 = vpack.c.bf16 %v2424_v46, %v2424_v46 }
 0x1be   : > { %v1955_v32 = vcombine.high %v1953_v29, %v1953_v29  ;;  %v3288_v56 = vrot.slane %v1954_v52, 9  ;;  %v3289_v27 = vrot.slane %v1953_v29, 9  ;;  %v2428_v1 = vmax.f32 %v1946_v6, %v3287_v40  ;;  %v1387_v17 = vpop.f32.mrf.mxu1  ;;  %v1671_v48 = vpop.f32.mrf.mxu0 }
 0x1bf   : > { %v2427_v20 = vmax.f32 %v1938_v0, %v3286_v14  ;;  %v3417_v59 = vpack.c.bf16 %v2425_v31, %v2425_v31  ;;  %v3418_v41 = vpack.c.bf16 %v2426_v23, %v2426_v23  ;;  %v2744_v36 = vunpack.c.l.b16 %v3416_v38 }
 0x1c0   : > { %v3290_v19 = vrot.slane %v1955_v32, 9  ;;  %v2429_v24 = vmax.f32 %v1954_v52, %v3288_v56  ;;  %v2430_v47 = vmax.f32 %v1953_v29, %v3289_v27  ;;  %v3420_v10 = vpack.c.bf16 %v2428_v1, %v2428_v1  ;;  %v1388_v49 = vpop.f32.mrf.mxu1  ;;  %v1674_v58 = vpop.f32.mrf.mxu0 }
 0x1c1   : > { %v3419_v30 = vpack.c.bf16 %v2427_v20, %v2427_v20  ;;  %v2745_v26 = vunpack.c.l.b16 %v3417_v59  ;;  %v2746_v43 = vunpack.c.l.b16 %v3418_v41  ;;  %v1834_v63 = vmax.f32 %v1802_v45, 0.0 }
 0x1c2   : > { %v2431_v4 = vmax.f32 %v1955_v32, %v3290_v19  ;;  %v3421_v16 = vpack.c.bf16 %v2429_v24, %v2429_v24  ;;  %v3422_v15 = vpack.c.bf16 %v2430_v47, %v2430_v47  ;;  %v2748_v6 = vunpack.c.l.b16 %v3420_v10  ;;  %v1390_v54 = vpop.f32.mrf.mxu1  ;;  %v1676_v57 = vpop.f32.mrf.mxu0 }
 0x1c3   : > { %v2747_v0 = vunpack.c.l.b16 %v3419_v30  ;;  %v2821_v46 = vrot.slane %v2745_v26, 7  ;;  %v2823_v40 = vrot.slane %v2746_v43, 6  ;;  %v1860_v14 = vmax.f32 %v1832_v50, %v1834_v63 }
 0x1c4   : > { %v3423_v31 = vpack.c.bf16 %v2431_v4, %v2431_v4  ;;  %v2749_v52 = vunpack.c.l.b16 %v3421_v16  ;;  %v2750_v29 = vunpack.c.l.b16 %v3422_v15  ;;  %v2827_v23 = vrot.slane %v2748_v6, 4  ;;  %v1393_v38 = vpop.f32.mrf.mxu1  ;;  %v1677_v56 = vpop.f32.mrf.mxu0 }
 0x1c5   : > { %v2822_v27 = vsel %vm2801_vm3, %v2821_v46, %v2744_v36  ;;  %v2825_v1 = vrot.slane %v2747_v0, 5  ;;  %v1956_v45 = vcombine.high %v1860_v14, %v1860_v14  ;;  %v1963_v32 = vrot.slane %v1860_v14, %v4393_v8 }
 0x1c6   : > { %v2824_v17 = vsel %vm2804_vm4, %v2823_v40, %v2822_v27  ;;  %v2751_v48 = vunpack.c.l.b16 %v3423_v31  ;;  %v2829_v20 = vrot.slane %v2749_v52, 3  ;;  %v2831_v59 = vrot.slane %v2750_v29, 2  ;;  %v1395_v41 = vpop.f32.mrf.mxu1  ;;  %v1679_v19 = vpop.f32.mrf.mxu0 }
 0x1c7   : > { %v2826_v50 = vsel %vm2807_vm5, %v2825_v1, %v2824_v17  ;;  %v1970_v24 = vrot.slane %v1956_v45, %v4393_v8  ;;  %v1971_v47 = vcombine.high %v1963_v32, %v1963_v32  ;;  %v3291_v10 = vrot.slane %v1963_v32, 9 }
 0x1c8   : > { %v2828_v30 = vsel %vm2810_vm6, %v2827_v23, %v2826_v50  ;;  %v2833_v36 = vrot.slane %v2751_v48, 1  ;;  %v1386_v26 = vadd.f32 %v1385_v7, %v4368_v5  ;;  %v1764_v43 = vadd.f32 %v1669_v55, %v4440_v60  ;;  %v1396_v63 = vpop.f32.mrf.mxu1  ;;  %v1682_v4 = vpop.f32.mrf.mxu0 }
 0x1c9   : > { %v2830_v16 = vsel %vm2813_vm7, %v2829_v20, %v2828_v30  ;;  %v1972_v15 = vcombine.high %v1970_v24, %v1970_v24  ;;  %v3292_v6 = vrot.slane %v1971_v47, 9  ;;  %v3293_v54 = vrot.slane %v1970_v24, 9 }
 0x1ca   : > { %v2832_v57 = vsel %vm2816_vm8, %v2831_v59, %v2830_v16  ;;  %v2432_v0 = vmax.f32 %v1963_v32, %v3291_v10  ;;  %v1803_v46 = vadd.f32 %v4386_v33, %v1764_v43  ;;  %v1389_v40 = vadd.f32 %v1388_v49, %v4372_v53  ;;  %v1398_v14 = vpop.f32.mrf.mxu1  ;;  %v1684_v31 = vpop.f32.mrf.mxu0 }
 0x1cb   : > { %v2834_v5 = vsel %vm2819_vm9, %v2833_v36, %v2832_v57  ;;  %v3294_v60 = vrot.slane %v1972_v15, 9  ;;  %v2433_v7 = vmax.f32 %v1971_v47, %v3292_v6  ;;  %v2434_v55 = vmax.f32 %v1970_v24, %v3293_v54 }
 0x1cc   : > { %v2920_v52 = vpack.c.b16 %v2834_v5, %v2834_v5  ;;  %v3424_v29 = vpack.c.bf16 %v2432_v0, %v2432_v0  ;;  %v1835_v23 = vmax.f32 %v1803_v46, 0.0  ;;  %v1765_v27 = vadd.f32 %v1674_v58, %v1386_v26  ;;  %v1401_v1 = vpop.f32.mrf.mxu1  ;;  %v1685_v45 = vpop.f32.mrf.mxu0 }
 0x1cd   : > { %v2435_v17 = vmax.f32 %v1972_v15, %v3294_v60  ;;  %v3425_v32 = vpack.c.bf16 %v2433_v7, %v2433_v7  ;;  %v3426_v48 = vpack.c.bf16 %v2434_v55, %v2434_v55  ;;  %v1394_v20 = vadd.f32 %v1393_v38, %v4376_v62 }
 0x1ce   : > { %2937 = vst.msk [vmem:[%s4427_s12 + $0x4] sm:$0xf] %vm2935_vm10, %v2920_v52  ;;  %v2752_v53 = vunpack.c.l.b16 %v3424_v29  ;;  %v1861_v49 = vmax.f32 %v1833_v44, %v1835_v23  ;;  %v1804_v59 = vadd.f32 %v4386_v33, %v1765_v27  ;;  %v1766_v41 = vadd.f32 %v1677_v56, %v1389_v40  ;;  %v1403_v19 = vpop.f32.mrf.mxu1  ;;  %v1687_v50 = vpop.f32.mrf.mxu0 }
 0x1cf   : > { %v3427_v24 = vpack.c.bf16 %v2435_v17, %v2435_v17  ;;  %v2753_v58 = vunpack.c.l.b16 %v3425_v32  ;;  %v2754_v47 = vunpack.c.l.b16 %v3426_v48  ;;  %v1397_v10 = vadd.f32 %v1396_v63, %v4380_v34 }
 0x1d0   : > { %v1973_v30 = vcombine.high %v1861_v49, %v1861_v49  ;;  %v1980_v36 = vrot.slane %v1861_v49, %v4393_v8  ;;  %v1836_v62 = vmax.f32 %v1804_v59, 0.0  ;;  %v1805_v38 = vadd.f32 %v4386_v33, %v1766_v41  ;;  %v1404_v26 = vpop.f32.mrf.mxu1  ;;  %v1690_v43 = vpop.f32.mrf.mxu0 }
 0x1d1   : > { %v2755_v51 = vunpack.c.l.b16 %v3427_v24  ;;  %v2835_v44 = vrot.slane %v2753_v58, 7  ;;  %v2837_v16 = vrot.slane %v2754_v47, 6  ;;  %v1767_v15 = vadd.f32 %v1682_v4, %v1394_v20 }
 0x1d2   : > { %v1987_v56 = vrot.slane %v1973_v30, %v4393_v8  ;;  %v1988_v6 = vcombine.high %v1980_v36, %v1980_v36  ;;  %v3295_v54 = vrot.slane %v1980_v36, 9  ;;  %v1837_v57 = vmax.f32 %v1805_v38, 0.0  ;;  %v1406_v0 = vpop.f32.mrf.mxu1  ;;  %v1692_v46 = vpop.f32.mrf.mxu0 }
 0x1d3   : > { %v2836_v34 = vsel %vm2801_vm3, %v2835_v44, %v2752_v53  ;;  %v2839_v63 = vrot.slane %v2755_v51, 5  ;;  %v1806_v40 = vadd.f32 %v4386_v33, %v1767_v15  ;;  %v1402_v14 = vadd.f32 %v1401_v1, %v4318_v13 }
 0x1d4   : > { %v2838_v31 = vsel %vm2804_vm4, %v2837_v16, %v2836_v34  ;;  %v1989_v5 = vcombine.high %v1987_v56, %v1987_v56  ;;  %v3296_v60 = vrot.slane %v1988_v6, 9  ;;  %v3297_v7 = vrot.slane %v1987_v56, 9  ;;  %v1409_v4 = vpop.f32.mrf.mxu1  ;;  %v4473_v55 = vpop.f32.mrf.mxu0 }
 0x1d5   : > { %v2436_v52 = vmax.f32 %v1980_v36, %v3295_v54  ;;  %v2840_v29 = vsel %vm2807_vm5, %v2839_v63, %v2838_v31  ;;  %v1838_v23 = vmax.f32 %v1806_v40, 0.0  ;;  %v1768_v27 = vadd.f32 %v1685_v45, %v1397_v10 }
 0x1d6   : > { %v3298_v17 = vrot.slane %v1989_v5, 9  ;;  %v2437_v32 = vmax.f32 %v1988_v6, %v3296_v60  ;;  %v2438_v48 = vmax.f32 %v1987_v56, %v3297_v7  ;;  %v4477_v20 = vadd.f32 %v1404_v26, %v4322_v28  ;;  %v1411_v13 = vpop.f32.mrf.mxu1  ;;  %v1695_v1 = vpop.f32.mrf.mxu0 }
 0x1d7   : > { %v3428_v53 = vpack.c.bf16 %v2436_v52, %v2436_v52  ;;  %v1862_v49 = vmax.f32 %v1836_v62, %v1838_v23  ;;  %v1807_v59 = vadd.f32 %v4386_v33, %v1768_v27  ;;  %v1769_v41 = vadd.f32 %v1690_v43, %v1402_v14 }
 0x1d8   : > { %v2439_v19 = vmax.f32 %v1989_v5, %v3298_v17  ;;  %v3429_v50 = vpack.c.bf16 %v2437_v32, %v2437_v32  ;;  %v3430_v24 = vpack.c.bf16 %v2438_v48, %v2438_v48  ;;  %v4481_v58 = vadd.f32 %v1409_v4, %v4326_v11  ;;  %v4483_v45 = vpop.f32.mrf.mxu1  ;;  %v4485_v47 = vpop.f32.mrf.mxu0 }
 0x1d9   : > { %v2756_v10 = vunpack.c.l.b16 %v3428_v53  ;;  %v1990_v28 = vcombine.high %v1862_v49, %v1862_v49  ;;  %v1997_v30 = vrot.slane %v1862_v49, %v4393_v8  ;;  %v1839_v36 = vmax.f32 %v1807_v59, 0.0 }
 0x1da   : > { %v3431_v38 = vpack.c.bf16 %v2439_v19, %v2439_v19  ;;  %v2757_v62 = vunpack.c.l.b16 %v3429_v50  ;;  %v2758_v26 = vunpack.c.l.b16 %v3430_v24  ;;  %v4489_v43 = vadd.f32 %v4386_v33, %v1769_v41  ;;  %v1414_v51 = vpop.f32.mrf.mxu1  ;;  %v1700_v44 = vpop.f32.mrf.mxu0 }
 0x1db   : > { %v2841_v16 = vrot.slane %v2756_v10, 4  ;;  %v2004_v11 = vrot.slane %v1990_v28, %v4393_v8  ;;  %v2005_v15 = vcombine.high %v1997_v30, %v1997_v30  ;;  %v3299_v56 = vrot.slane %v1997_v30, 9 }
 0x1dc   : > { %v2759_v6 = vunpack.c.l.b16 %v3431_v38  ;;  %v2843_v54 = vrot.slane %v2757_v62, 3  ;;  %v2845_v0 = vrot.slane %v2758_v26, 2  ;;  %v1863_v46 = vmax.f32 %v1837_v57, %v1839_v36  ;;  %v4492_v34 = vpop.f32.mrf.mxu1  ;;  %v4494_v63 = vpop.f32.mrf.mxu0 }
 0x1dd   : > { %v2842_v40 = vsel %vm2810_vm6, %v2841_v16, %v2840_v29  ;;  %v2006_v14 = vcombine.high %v2004_v11, %v2004_v11  ;;  %v3300_v31 = vrot.slane %v2005_v15, 9  ;;  %v3301_v5 = vrot.slane %v2004_v11, 9 }
 0x1de   : > { %v2844_v60 = vsel %vm2813_vm7, %v2843_v54, %v2842_v40  ;;  %v2847_v7 = vrot.slane %v2759_v6, 1  ;;  %v2440_v4 = vmax.f32 %v1997_v30, %v3299_v56  ;;  %v2007_v52 = vcombine.high %v1863_v46, %v1863_v46  ;;  %v1419_v23 = vpop.f32.mrf.mxu1  ;;  %v1703_v27 = vpop.f32.mrf.mxu0 }
 0x1df   : > { %v2846_v17 = vsel %vm2816_vm8, %v2845_v0, %v2844_v60  ;;  %v3302_v32 = vrot.slane %v2006_v14, 9  ;;  %v2441_v57 = vmax.f32 %v2005_v15, %v3300_v31  ;;  %v2442_v48 = vmax.f32 %v2004_v11, %v3301_v5 }
 0x1e0   : > { %v2848_v13 = vsel %vm2819_vm9, %v2847_v7, %v2846_v17  ;;  %v3432_v1 = vpack.c.bf16 %v2440_v4, %v2440_v4  ;;  %v2014_v29 = vrot.slane %v1863_v46, %v4393_v8  ;;  %v2021_v53 = vrot.slane %v2007_v52, %v4393_v8  ;;  %v1420_v49 = vpop.f32.mrf.mxu1  ;;  %v4502_v59 = vpop.f32.mrf.mxu0 }
 0x1e1   : > { %v2921_v41 = vpack.c.b16 %v2848_v13, %v2848_v13  ;;  %v2443_v19 = vmax.f32 %v2006_v14, %v3302_v32  ;;  %v3433_v50 = vpack.c.bf16 %v2441_v57, %v2441_v57  ;;  %v3434_v24 = vpack.c.bf16 %v2442_v48, %v2442_v48 }
 0x1e2   : > { %v2760_v10 = vunpack.c.l.b16 %v3432_v1  ;;  %v2022_v28 = vcombine.high %v2014_v29, %v2014_v29  ;;  %v2023_v30 = vcombine.high %v2021_v53, %v2021_v53  ;;  %v3303_v36 = vrot.slane %v2014_v29, 9  ;;  %v1422_v38 = vpop.f32.mrf.mxu1  ;;  %v1708_v62 = vpop.f32.mrf.mxu0 }
 0x1e3   : > { %2938 = vst.msk [vmem:[%s4427_s12 + $0x8] sm:$0xf] %vm2935_vm10, %v2921_v41  ;;  %v3435_v26 = vpack.c.bf16 %v2443_v19, %v2443_v19  ;;  %v2761_v51 = vunpack.c.l.b16 %v3433_v50  ;;  %v2762_v44 = vunpack.c.l.b16 %v3434_v24  ;;  %v3305_v16 = vrot.slane %v2021_v53, 9 }
 0x1e4   : > { %v3304_v11 = vrot.slane %v2022_v28, 9  ;;  %v3306_v15 = vrot.slane %v2023_v30, 9  ;;  %v2444_v56 = vmax.f32 %v2014_v29, %v3303_v36  ;;  %v1840_v6 = vmax.f32 %v4489_v43, 0.0  ;;  %v1425_v54 = vpop.f32.mrf.mxu1  ;;  %v1709_v0 = vpop.f32.mrf.mxu0 }
 0x1e5   : > { %v2763_v46 = vunpack.c.l.b16 %v3435_v26  ;;  %v2849_v40 = vrot.slane %v2761_v51, 7  ;;  %v2851_v14 = vrot.slane %v2762_v44, 6  ;;  %v2446_v31 = vmax.f32 %v2021_v53, %v3305_v16 }
 0x1e6   : > { %v2445_v5 = vmax.f32 %v2022_v28, %v3304_v11  ;;  %v2447_v60 = vmax.f32 %v2023_v30, %v3306_v15  ;;  %v3436_v7 = vpack.c.bf16 %v2444_v56, %v2444_v56  ;;  %v1770_v4 = vadd.f32 %v4473_v55, %v4477_v20  ;;  %v1427_v52 = vpop.f32.mrf.mxu1  ;;  %v1711_v23 = vpop.f32.mrf.mxu0 }
 0x1e7   : > { %v2850_v27 = vsel %vm2801_vm3, %v2849_v40, %v2760_v10  ;;  %v2853_v17 = vrot.slane %v2763_v46, 5  ;;  %v3438_v32 = vpack.c.bf16 %v2446_v31, %v2446_v31  ;;  %v1413_v43 = vadd.f32 %v4483_v45, %v4330_v2 }
 0x1e8   : > { %v2852_v57 = vsel %vm2804_vm4, %v2851_v14, %v2850_v27  ;;  %v3437_v48 = vpack.c.bf16 %v2445_v5, %v2445_v5  ;;  %v3439_v13 = vpack.c.bf16 %v2447_v60, %v2447_v60  ;;  %v2764_v1 = vunpack.c.l.b16 %v3436_v7  ;;  %v1428_v29 = vpop.f32.mrf.mxu1  ;;  %v1714_v53 = vpop.f32.mrf.mxu0 }
 0x1e9   : > { %v2766_v41 = vunpack.c.l.b16 %v3438_v32  ;;  %v2854_v19 = vsel %vm2807_vm5, %v2853_v17, %v2852_v57  ;;  %v1809_v55 = vadd.f32 %v4386_v33, %v1770_v4  ;;  %v1771_v20 = vadd.f32 %v4485_v47, %v4481_v58 }
 0x1ea   : > { %v2765_v50 = vunpack.c.l.b16 %v3437_v48  ;;  %v2767_v24 = vunpack.c.l.b16 %v3439_v13  ;;  %v2855_v10 = vrot.slane %v2764_v1, 4  ;;  %v1418_v2 = vadd.f32 %v4492_v34, %v4334_v18  ;;  %v1430_v45 = vpop.f32.mrf.mxu1  ;;  %v1716_v28 = vpop.f32.mrf.mxu0 }
 0x1eb   : > { %v2859_v30 = vrot.slane %v2766_v41, 2  ;;  %v1841_v36 = vmax.f32 %v1809_v55, 0.0  ;;  %v1810_v38 = vadd.f32 %v4386_v33, %v1771_v20  ;;  %v1772_v62 = vadd.f32 %v4494_v63, %v1413_v43 }
 0x1ec   : > { %v2856_v26 = vsel %vm2810_vm6, %v2855_v10, %v2854_v19  ;;  %v2857_v51 = vrot.slane %v2765_v50, 3  ;;  %v2861_v44 = vrot.slane %v2767_v24, 1  ;;  %v1421_v58 = vadd.f32 %v1420_v49, %v4338_v42  ;;  %v1433_v47 = vpop.f32.mrf.mxu1  ;;  %v1717_v16 = vpop.f32.mrf.mxu0 }
 0x1ed   : > { %v1842_v11 = vmax.f32 %v1810_v38, 0.0  ;;  %v1811_v15 = vadd.f32 %v4386_v33, %v1772_v62  ;;  %v1773_v18 = vadd.f32 %v4502_v59, %v1418_v2  ;;  %v1426_v34 = vadd.f32 %v1425_v54, %v4342_v25 }
 0x1ee   : > { %v2858_v56 = vsel %vm2813_vm7, %v2857_v51, %v2856_v26  ;;  %v1774_v46 = vadd.f32 %v1709_v0, %v1421_v58  ;;  %v1429_v63 = vadd.f32 %v1428_v29, %v4346_v61  ;;  %v4529_v40 = vadd.f32 %v1433_v47, %v4350_v3  ;;  %v1435_v14 = vpop.f32.mrf.mxu1  ;;  %v1719_v31 = vpop.f32.mrf.mxu0 }
 0x1ef   : > { %v2860_v42 = vsel %vm2816_vm8, %v2859_v30, %v2858_v56  ;;  %v1864_v49 = vmax.f32 %v1840_v6, %v1842_v11  ;;  %v1843_v5 = vmax.f32 %v1811_v15, 0.0  ;;  %v1812_v60 = vadd.f32 %v4386_v33, %v1773_v18 }
 0x1f0   : > { %v2862_v59 = vsel %vm2819_vm9, %v2861_v44, %v2860_v42  ;;  %v4535_v25 = vadd.f32 %v4386_v33, %v1774_v46  ;;  %v1775_v54 = vadd.f32 %v1714_v53, %v1426_v34  ;;  %v1776_v0 = vadd.f32 %v1717_v16, %v1429_v63  ;;  %v1436_v61 = vpop.f32.mrf.mxu1  ;;  %v4537_v7 = vpop.f32.mrf.mxu0 }
 0x1f1   : > { %v2922_v3 = vpack.c.b16 %v2862_v59, %v2862_v59  ;;  %v2024_v4 = vcombine.high %v1864_v49, %v1864_v49  ;;  %v2031_v52 = vrot.slane %v1864_v49, %v4393_v8  ;;  %v1865_v23 = vmax.f32 %v1841_v36, %v1843_v5 }
 0x1f2   : > { %v1844_v6 = vmax.f32 %v1812_v60, 0.0  ;;  %v1845_v27 = vmax.f32 %v4535_v25, 0.0  ;;  %v1814_v17 = vadd.f32 %v4386_v33, %v1775_v54  ;;  %v4543_v32 = vadd.f32 %v4386_v33, %v1776_v0  ;;  %v1438_v43 = vpop.f32.mrf.mxu1  ;;  %v1724_v57 = vpop.f32.mrf.mxu0 }
 0x1f3   : > { %2939 = vst.msk [vmem:[%s4427_s12 + $0xc] sm:$0xf] %vm2935_vm10, %v2922_v3  ;;  %v2038_v48 = vrot.slane %v2024_v4, %v4393_v8  ;;  %v2039_v13 = vcombine.high %v2031_v52, %v2031_v52  ;;  %v3307_v1 = vrot.slane %v2031_v52, 9  ;;  %v2041_v29 = vcombine.high %v1865_v23, %v1865_v23 }
 0x1f4   : > { %v2048_v53 = vrot.slane %v1865_v23, %v4393_v8  ;;  %v1846_v41 = vmax.f32 %v1814_v17, 0.0  ;;  %v1847_v19 = vmax.f32 %v4543_v32, 0.0  ;;  %v4551_v55 = vadd.f32 %v1436_v61, %v4354_v12  ;;  %v4553_v20 = vpop.f32.mrf.mxu1  ;;  %v4555_v33 = vpop.f32.mrf.mxu0 }
 0x1f5   : > { %v2040_v50 = vcombine.high %v2038_v48, %v2038_v48  ;;  %v3308_v24 = vrot.slane %v2039_v13, 9  ;;  %v3309_v10 = vrot.slane %v2038_v48, 9  ;;  %v2448_v2 = vmax.f32 %v2031_v52, %v3307_v1 }
 0x1f6   : > { %v2055_v45 = vrot.slane %v2041_v29, %v4393_v8  ;;  %v2056_v28 = vcombine.high %v2048_v53, %v2048_v53  ;;  %v3311_v30 = vrot.slane %v2048_v53, 9  ;;  %v1866_v36 = vmax.f32 %v1844_v6, %v1846_v41  ;;  %v1443_v38 = vpop.f32.mrf.mxu1  ;;  %v1727_v62 = vpop.f32.mrf.mxu0 }
 0x1f7   : > { %v3310_v26 = vrot.slane %v2040_v50, 9  ;;  %v2449_v51 = vmax.f32 %v2039_v13, %v3308_v24  ;;  %v2450_v44 = vmax.f32 %v2038_v48, %v3309_v10  ;;  %v3440_v12 = vpack.c.bf16 %v2448_v2, %v2448_v2 }
 0x1f8   : > { %v2057_v58 = vcombine.high %v2055_v45, %v2055_v45  ;;  %v3312_v47 = vrot.slane %v2056_v28, 9  ;;  %v3313_v16 = vrot.slane %v2055_v45, 9  ;;  %v2452_v11 = vmax.f32 %v2048_v53, %v3311_v30  ;;  %v4558_v15 = vpop.f32.mrf.mxu1  ;;  %v4560_v18 = vpop.f32.mrf.mxu0 }
 0x1f9   : > { %v2451_v34 = vmax.f32 %v2040_v50, %v3310_v26  ;;  %v3441_v56 = vpack.c.bf16 %v2449_v51, %v2449_v51  ;;  %v3442_v46 = vpack.c.bf16 %v2450_v44, %v2450_v44  ;;  %v2768_v63 = vunpack.c.l.b16 %v3440_v12 }
 0x1fa   : > { %v3314_v14 = vrot.slane %v2057_v58, 9  ;;  %v2453_v31 = vmax.f32 %v2056_v28, %v3312_v47  ;;  %v2454_v42 = vmax.f32 %v2055_v45, %v3313_v16  ;;  %v3444_v49 = vpack.c.bf16 %v2452_v11, %v2452_v11  ;;  %v1446_v5 = vpop.f32.mrf.mxu1  ;;  %v1732_v60 = vpop.f32.mrf.mxu0 }
 0x1fb   : > { %v3443_v59 = vpack.c.bf16 %v2451_v34, %v2451_v34  ;;  %v2769_v54 = vunpack.c.l.b16 %v3441_v56  ;;  %v2770_v0 = vunpack.c.l.b16 %v3442_v46  ;;  %v2058_v61 = vcombine.high %v1866_v36, %v1866_v36 }
 0x1fc   : > { %v2455_v3 = vmax.f32 %v2057_v58, %v3314_v14  ;;  %v3445_v4 = vpack.c.bf16 %v2453_v31, %v2453_v31  ;;  %v3446_v52 = vpack.c.bf16 %v2454_v42, %v2454_v42  ;;  %v2772_v23 = vunpack.c.l.b16 %v3444_v49  ;;  %v4562_v6 = vpop.f32.mrf.mxu1  ;;  %v4564_v17 = vpop.f32.mrf.mxu0 }
 0x1fd   : > { %v2771_v43 = vunpack.c.l.b16 %v3443_v59  ;;  %v2863_v57 = vrot.slane %v2769_v54, 7  ;;  %v2865_v48 = vrot.slane %v2770_v0, 6  ;;  %v2065_v13 = vrot.slane %v1866_v36, %v4393_v8 }
 0x1fe   : > { %v3447_v1 = vpack.c.bf16 %v2455_v3, %v2455_v3  ;;  %v2773_v29 = vunpack.c.l.b16 %v3445_v4  ;;  %v2774_v53 = vunpack.c.l.b16 %v3446_v52  ;;  %v2869_v41 = vrot.slane %v2772_v23, 4  ;;  %v1451_v50 = vpop.f32.mrf.mxu1  ;;  %v1735_v24 = vpop.f32.mrf.mxu0 }
 0x1ff   : > { %v2864_v10 = vsel %vm2801_vm3, %v2863_v57, %v2768_v63  ;;  %v2867_v2 = vrot.slane %v2771_v43, 5  ;;  %v2072_v45 = vrot.slane %v2058_v61, %v4393_v8  ;;  %v2073_v28 = vcombine.high %v2065_v13, %v2065_v13 }
 0x200   : > { %v2866_v30 = vsel %vm2804_vm4, %v2865_v48, %v2864_v10  ;;  %v2775_v38 = vunpack.c.l.b16 %v3447_v1  ;;  %v2871_v62 = vrot.slane %v2773_v29, 3  ;;  %v2873_v26 = vrot.slane %v2774_v53, 2  ;;  %v4570_v51 = vpop.f32.mrf.mxu1  ;;  %v4572_v36 = vpop.f32.mrf.mxu0 }
 0x201   : > { %v2868_v44 = vsel %vm2807_vm5, %v2867_v2, %v2866_v30  ;;  %v2074_v12 = vcombine.high %v2072_v45, %v2072_v45  ;;  %v3315_v58 = vrot.slane %v2065_v13, 9  ;;  %v3316_v47 = vrot.slane %v2073_v28, 9 }
 0x202   : > { %v2870_v16 = vsel %vm2810_vm6, %v2869_v41, %v2868_v44  ;;  %v2875_v11 = vrot.slane %v2775_v38, 1  ;;  %v3317_v34 = vrot.slane %v2072_v45, 9  ;;  %v1867_v56 = vmax.f32 %v1845_v27, %v1847_v19  ;;  %v1454_v46 = vpop.f32.mrf.mxu1  ;;  %v1740_v63 = vpop.f32.mrf.mxu0 }
 0x203   : > { %v2872_v14 = vsel %vm2813_vm7, %v2871_v62, %v2870_v16  ;;  %v3318_v31 = vrot.slane %v2074_v12, 9  ;;  %v2456_v42 = vmax.f32 %v2065_v13, %v3315_v58  ;;  %v2457_v49 = vmax.f32 %v2073_v28, %v3316_v47 }
 0x204   : > { %v2874_v5 = vsel %vm2816_vm8, %v2873_v26, %v2872_v14  ;;  %v2458_v60 = vmax.f32 %v2072_v45, %v3317_v34  ;;  %v2075_v59 = vcombine.high %v1867_v56, %v1867_v56  ;;  %v2082_v54 = vrot.slane %v1867_v56, %v4393_v8  ;;  %v4583_v0 = vpop.f32.mrf.mxu1  ;;  %v4585_v32 = vpop.f32.mrf.mxu0  ;;  %v3598_v56 = vld [vmem:[%s4666_s3] ss:$0 sm:$0xff] }
 0x205   : > { %v2876_v25 = vsel %vm2819_vm9, %v2875_v11, %v2874_v5  ;;  %v2459_v27 = vmax.f32 %v2074_v12, %v3318_v31  ;;  %v3448_v19 = vpack.c.bf16 %v2456_v42, %v2456_v42  ;;  %v3449_v61 = vpack.c.bf16 %v2457_v49, %v2457_v49 }
 0x206   : > { %v2923_v3 = vpack.c.b16 %v2876_v25, %v2876_v25  ;;  %v3450_v4 = vpack.c.bf16 %v2458_v60, %v2458_v60  ;;  %v2089_v52 = vrot.slane %v2075_v59, %v4393_v8  ;;  %v2090_v23 = vcombine.high %v2082_v54, %v2082_v54  ;;  %v1459_v43 = vpop.f32.mrf.mxu1  ;;  %v1743_v57 = vpop.f32.mrf.mxu0 }
 0x207   : > { %v3451_v48 = vpack.c.bf16 %v2459_v27, %v2459_v27  ;;  %v2776_v13 = vunpack.c.l.b16 %v3448_v19  ;;  %v2777_v1 = vunpack.c.l.b16 %v3449_v61  ;;  %v3319_v29 = vrot.slane %v2082_v54, 9 }
 0x208   : > { %2940 = vst.msk [vmem:[%s4427_s12 + $0x10] sm:$0xf] %vm2935_vm10, %v2923_v3  ;;  %v2778_v53 = vunpack.c.l.b16 %v3450_v4  ;;  %v2091_v41 = vcombine.high %v2089_v52, %v2089_v52  ;;  %v3320_v50 = vrot.slane %v2090_v23, 9  ;;  %v3321_v24 = vrot.slane %v2089_v52, 9  ;;  %v1460_v10 = vpop.f32.mrf.mxu1  ;;  %v1746_v2 = vpop.f32.mrf.mxu0 }
 0x209   : > { %v2779_v45 = vunpack.c.l.b16 %v3451_v48  ;;  %v2877_v28 = vrot.slane %v2777_v1, 7  ;;  %v2460_v30 = vmax.f32 %v2082_v54, %v3319_v29  ;;  %v1777_v38 = vadd.f32 %v4537_v7, %v4529_v40 }
 0x20a   : > { %v2879_v62 = vrot.slane %v2778_v53, 6  ;;  %v3322_v26 = vrot.slane %v2091_v41, 9  ;;  %v2461_v44 = vmax.f32 %v2090_v23, %v3320_v50  ;;  %v2462_v12 = vmax.f32 %v2089_v52, %v3321_v24  ;;  %v1462_v58 = vpop.f32.mrf.mxu1  ;;  %v1748_v47 = vpop.f32.mrf.mxu0 }
 0x20b   : > { %v2878_v16 = vsel %vm2801_vm3, %v2877_v28, %v2776_v13  ;;  %v2881_v11 = vrot.slane %v2779_v45, 5  ;;  %v3452_v34 = vpack.c.bf16 %v2460_v30, %v2460_v30  ;;  %v1816_v46 = vadd.f32 %v3598_v56, %v1777_v38 }
 0x20c   : > { %v2880_v63 = vsel %vm2804_vm4, %v2879_v62, %v2878_v16  ;;  %v2463_v14 = vmax.f32 %v2091_v41, %v3322_v26  ;;  %v3453_v31 = vpack.c.bf16 %v2461_v44, %v2461_v44  ;;  %v3454_v40 = vpack.c.bf16 %v2462_v12, %v2462_v12  ;;  %v1749_v7 = vpop.f32.mrf.mxu0 }
 0x20d   : > { %v2780_v42 = vunpack.c.l.b16 %v3452_v34  ;;  %v2882_v49 = vsel %vm2807_vm5, %v2881_v11, %v2880_v63  ;;  %v1848_v5 = vmax.f32 %v1816_v46, 0.0  ;;  %v1442_v60 = vadd.f32 %v4553_v20, %v4358_v21 }
 0x20e   : > { %v3455_v59 = vpack.c.bf16 %v2463_v14, %v2463_v14  ;;  %v2781_v54 = vunpack.c.l.b16 %v3453_v31  ;;  %v2782_v25 = vunpack.c.l.b16 %v3454_v40  ;;  %v1778_v27 = vadd.f32 %v4555_v33, %v4551_v55  ;;  %v1751_v19 = vpop.f32.mrf.mxu0 }
 0x20f   : > { %v2883_v61 = vrot.slane %v2780_v42, 4  ;;  %v1445_v3 = vadd.f32 %v4558_v15, %v4362_v35  ;;  %v1779_v4 = vadd.f32 %v4560_v18, %v1442_v60  ;;  %v1450_v52 = vadd.f32 %v4562_v6, %v4366_v37 }
 0x210   : > { %v2783_v23 = vunpack.c.l.b16 %v3455_v59  ;;  %v2885_v43 = vrot.slane %v2781_v54, 3  ;;  %v2887_v57 = vrot.slane %v2782_v25, 2  ;;  %v1817_v21 = vadd.f32 %v3598_v56, %v1778_v27 }
 0x211   : > { %v2884_v20 = vsel %vm2810_vm6, %v2883_v61, %v2882_v49  ;;  %v1818_v48 = vadd.f32 %v3598_v56, %v1779_v4  ;;  %v1780_v13 = vadd.f32 %v4564_v17, %v1445_v3  ;;  %v1453_v55 = vadd.f32 %v4570_v51, %v4370_v39 }
 0x212   : > { %v2886_v33 = vsel %vm2813_vm7, %v2885_v43, %v2884_v20  ;;  %v2889_v35 = vrot.slane %v2783_v23, 1  ;;  %v1849_v15 = vmax.f32 %v1817_v21, 0.0  ;;  %v1781_v18 = vadd.f32 %v4572_v36, %v1450_v52 }
 0x213   : > { %v2888_v37 = vsel %vm2816_vm8, %v2887_v57, %v2886_v33  ;;  %v1850_v6 = vmax.f32 %v1818_v48, 0.0  ;;  %v1819_v1 = vadd.f32 %v3598_v56, %v1780_v13  ;;  %v1458_v29 = vadd.f32 %v4583_v0, %v4374_v9 }
 0x214   : > { %v2890_v53 = vsel %vm2819_vm9, %v2889_v35, %v2888_v37  ;;  %v1820_v17 = vadd.f32 %v3598_v56, %v1781_v18  ;;  %v1782_v41 = vadd.f32 %v4585_v32, %v1453_v55  ;;  %v1461_v39 = vadd.f32 %v1460_v10, %v4378_v22 }
 0x215   : > { %v2924_v51 = vpack.c.b16 %v2890_v53, %v2890_v53  ;;  %v1868_v50 = vmax.f32 %v1848_v5, %v1850_v6  ;;  %v1851_v24 = vmax.f32 %v1819_v1, 0.0  ;;  %v1783_v45 = vadd.f32 %v1746_v2, %v1458_v29 }
 0x216   : > { %v4620_v28 = vadd.f32 %v3598_v56, %v1782_v41  ;;  %v1784_v36 = vadd.f32 %v1749_v7, %v1461_v39  ;;  %v1852_v62 = vmax.f32 %v1820_v17, 0.0 }
 0x217   : > { %2941 = vst.msk [vmem:[%s4427_s12 + $0x14] sm:$0xf] %vm2935_vm10, %v2924_v51  ;;  %v2092_v30 = vcombine.high %v1868_v50, %v1868_v50  ;;  %v2099_v38 = vrot.slane %v1868_v50, %v4393_v8  ;;  %v1869_v9 = vmax.f32 %v1849_v15, %v1851_v24  ;;  %v1822_v0 = vadd.f32 %v3598_v56, %v1783_v45 }
 0x218   : > { %v4625_v26 = vadd.f32 %v3598_v56, %v1784_v36  ;;  %v1853_v12 = vmax.f32 %v4620_v28, 0.0 }
 0x219   : > { %v2106_v32 = vrot.slane %v2092_v30, %v4393_v8  ;;  %v2107_v22 = vcombine.high %v2099_v38, %v2099_v38  ;;  %v3323_v10 = vrot.slane %v2099_v38, 9  ;;  %v2109_v44 = vcombine.high %v1869_v9, %v1869_v9 }
 0x21a   : > { %v2116_v2 = vrot.slane %v1869_v9, %v4393_v8  ;;  %v1854_v58 = vmax.f32 %v1822_v0, 0.0  ;;  %v1855_v47 = vmax.f32 %v4625_v26, 0.0 }
 0x21b   : > { %v2108_v16 = vcombine.high %v2106_v32, %v2106_v32  ;;  %v3324_v11 = vrot.slane %v2107_v22, 9  ;;  %v3325_v34 = vrot.slane %v2106_v32, 9  ;;  %v2464_v46 = vmax.f32 %v2099_v38, %v3323_v10 }
 0x21c   : > { %v2123_v63 = vrot.slane %v2109_v44, %v4393_v8  ;;  %v2124_v56 = vcombine.high %v2116_v2, %v2116_v2  ;;  %v3327_v14 = vrot.slane %v2116_v2, 9  ;;  %v1870_v31 = vmax.f32 %v1852_v62, %v1854_v58 }
 0x21d   : > { %v3326_v40 = vrot.slane %v2108_v16, 9  ;;  %v2465_v7 = vmax.f32 %v2107_v22, %v3324_v11  ;;  %v2466_v42 = vmax.f32 %v2106_v32, %v3325_v34  ;;  %v3456_v49 = vpack.c.bf16 %v2464_v46, %v2464_v46 }
 0x21e   : > { %v2125_v5 = vcombine.high %v2123_v63, %v2123_v63  ;;  %v3328_v60 = vrot.slane %v2124_v56, 9  ;;  %v3329_v59 = vrot.slane %v2123_v63, 9  ;;  %v2468_v54 = vmax.f32 %v2116_v2, %v3327_v14 }
 0x21f   : > { %v2467_v25 = vmax.f32 %v2108_v16, %v3326_v40  ;;  %v3457_v27 = vpack.c.bf16 %v2465_v7, %v2465_v7  ;;  %v3458_v19 = vpack.c.bf16 %v2466_v42, %v2466_v42  ;;  %v2784_v61 = vunpack.c.l.b16 %v3456_v49 }
 0x220   : > { %v3330_v3 = vrot.slane %v2125_v5, 9  ;;  %v2469_v4 = vmax.f32 %v2124_v56, %v3328_v60  ;;  %v2470_v52 = vmax.f32 %v2123_v63, %v3329_v59  ;;  %v3460_v23 = vpack.c.bf16 %v2468_v54, %v2468_v54 }
 0x221   : > { %v3459_v43 = vpack.c.bf16 %v2467_v25, %v2467_v25  ;;  %v2785_v57 = vunpack.c.l.b16 %v3457_v27  ;;  %v2786_v21 = vunpack.c.l.b16 %v3458_v19  ;;  %v2126_v20 = vcombine.high %v1870_v31, %v1870_v31 }
 0x222   : > { %v2471_v48 = vmax.f32 %v2125_v5, %v3330_v3  ;;  %v3461_v13 = vpack.c.bf16 %v2469_v4, %v2469_v4  ;;  %v3462_v55 = vpack.c.bf16 %v2470_v52, %v2470_v52  ;;  %v2788_v33 = vunpack.c.l.b16 %v3460_v23 }
 0x223   : > { %v2787_v35 = vunpack.c.l.b16 %v3459_v43  ;;  %v2891_v15 = vrot.slane %v2785_v57, 7  ;;  %v2893_v18 = vrot.slane %v2786_v21, 6  ;;  %v2133_v37 = vrot.slane %v1870_v31, %v4393_v8 }
 0x224   : > { %v3463_v6 = vpack.c.bf16 %v2471_v48, %v2471_v48  ;;  %v2789_v1 = vunpack.c.l.b16 %v3461_v13  ;;  %v2790_v29 = vunpack.c.l.b16 %v3462_v55  ;;  %v2897_v53 = vrot.slane %v2788_v33, 4 }
 0x225   : > { %v2892_v17 = vsel %vm2801_vm3, %v2891_v15, %v2784_v61  ;;  %v2895_v41 = vrot.slane %v2787_v35, 5  ;;  %v2140_v39 = vrot.slane %v2126_v20, %v4393_v8  ;;  %v2141_v51 = vcombine.high %v2133_v37, %v2133_v37 }
 0x226   : > { %v2894_v50 = vsel %vm2804_vm4, %v2893_v18, %v2892_v17  ;;  %v2791_v24 = vunpack.c.l.b16 %v3463_v6  ;;  %v2899_v45 = vrot.slane %v2789_v1, 3  ;;  %v2901_v28 = vrot.slane %v2790_v29, 2 }
 0x227   : > { %v2896_v36 = vsel %vm2807_vm5, %v2895_v41, %v2894_v50  ;;  %v2142_v30 = vcombine.high %v2140_v39, %v2140_v39  ;;  %v3331_v38 = vrot.slane %v2133_v37, 9  ;;  %v3332_v9 = vrot.slane %v2141_v51, 9 }
 0x228   : > { %v2898_v0 = vsel %vm2810_vm6, %v2897_v53, %v2896_v36  ;;  %v2903_v62 = vrot.slane %v2791_v24, 1  ;;  %v3333_v26 = vrot.slane %v2140_v39, 9  ;;  %v1871_v32 = vmax.f32 %v1853_v12, %v1855_v47 }
 0x229   : > { %v2900_v22 = vsel %vm2813_vm7, %v2899_v45, %v2898_v0  ;;  %v3334_v10 = vrot.slane %v2142_v30, 9  ;;  %v2472_v44 = vmax.f32 %v2133_v37, %v3331_v38  ;;  %v2473_v2 = vmax.f32 %v2141_v51, %v3332_v9 }
 0x22a   : > { %v2902_v58 = vsel %vm2816_vm8, %v2901_v28, %v2900_v22  ;;  %v2474_v16 = vmax.f32 %v2140_v39, %v3333_v26  ;;  %v2143_v11 = vcombine.high %v1871_v32, %v1871_v32  ;;  %v2150_v34 = vrot.slane %v1871_v32, %v4393_v8 }
 0x22b   : > { %v2904_v46 = vsel %vm2819_vm9, %v2903_v62, %v2902_v58  ;;  %v2475_v63 = vmax.f32 %v2142_v30, %v3334_v10  ;;  %v3464_v56 = vpack.c.bf16 %v2472_v44, %v2472_v44  ;;  %v3465_v14 = vpack.c.bf16 %v2473_v2, %v2473_v2 }
 0x22c   : > { %v2925_v31 = vpack.c.b16 %v2904_v46, %v2904_v46  ;;  %v3466_v40 = vpack.c.bf16 %v2474_v16, %v2474_v16  ;;  %v2157_v12 = vrot.slane %v2143_v11, %v4393_v8  ;;  %v2158_v47 = vcombine.high %v2150_v34, %v2150_v34 }
 0x22d   : > { %v3467_v7 = vpack.c.bf16 %v2475_v63, %v2475_v63  ;;  %v2793_v42 = vunpack.c.l.b16 %v3465_v14  ;;  %v3335_v49 = vrot.slane %v2150_v34, 9  ;;  %v2792_v25 = vunpack.c.l.b16 %v3464_v56 }
 0x22e   : > { %2942 = vst.msk [vmem:[%s4427_s12 + $0x18] sm:$0xf] %vm2935_vm10, %v2925_v31  ;;  %v2794_v5 = vunpack.c.l.b16 %v3466_v40  ;;  %v2159_v60 = vcombine.high %v2157_v12, %v2157_v12  ;;  %v3336_v59 = vrot.slane %v2158_v47, 9  ;;  %v3337_v54 = vrot.slane %v2157_v12, 9 }
 0x22f   : > { %v2795_v27 = vunpack.c.l.b16 %v3467_v7  ;;  %v2905_v19 = vrot.slane %v2793_v42, 7  ;;  %v2476_v61 = vmax.f32 %v2150_v34, %v3335_v49 }
 0x230   : > { %v2907_v3 = vrot.slane %v2794_v5, 6  ;;  %v3338_v4 = vrot.slane %v2159_v60, 9  ;;  %v2477_v52 = vmax.f32 %v2158_v47, %v3336_v59  ;;  %v2478_v23 = vmax.f32 %v2157_v12, %v3337_v54 }
 0x231   : > { %v2906_v8 = vsel %vm2801_vm3, %v2905_v19, %v2792_v25  ;;  %v2909_v43 = vrot.slane %v2795_v27, 5  ;;  %v3468_v57 = vpack.c.bf16 %v2476_v61, %v2476_v61 }
 0x232   : > { %v2908_v21 = vsel %vm2804_vm4, %v2907_v3, %v2906_v8  ;;  %v2479_v20 = vmax.f32 %v2159_v60, %v3338_v4  ;;  %v3469_v48 = vpack.c.bf16 %v2477_v52, %v2477_v52  ;;  %v3470_v13 = vpack.c.bf16 %v2478_v23, %v2478_v23 }
 0x233   : > { %v2796_v55 = vunpack.c.l.b16 %v3468_v57  ;;  %v2910_v18 = vsel %vm2807_vm5, %v2909_v43, %v2908_v21 }
 0x234   : > { %v3471_v33 = vpack.c.bf16 %v2479_v20, %v2479_v20  ;;  %v2797_v35 = vunpack.c.l.b16 %v3469_v48  ;;  %v2798_v15 = vunpack.c.l.b16 %v3470_v13 }
 0x235   : > { %v2911_v37 = vrot.slane %v2796_v55, 4 }
 0x236   : > { %v2799_v6 = vunpack.c.l.b16 %v3471_v33  ;;  %v2913_v1 = vrot.slane %v2797_v35, 3  ;;  %v2915_v29 = vrot.slane %v2798_v15, 2 }
 0x237   : > { %v2912_v53 = vsel %vm2810_vm6, %v2911_v37, %v2910_v18 }
 0x238   : > { %v2914_v17 = vsel %vm2813_vm7, %v2913_v1, %v2912_v53  ;;  %v2917_v41 = vrot.slane %v2799_v6, 1 }
 0x239   : > { %v2916_v39 = vsel %vm2816_vm8, %v2915_v29, %v2914_v17 }
 0x23a   : > { %v2918_v51 = vsel %vm2819_vm9, %v2917_v41, %v2916_v39 }
 0x23b   : > { %v2926_v50 = vpack.c.b16 %v2918_v51, %v2918_v51 }
 0x23d   : > { %2943 = vst.msk [vmem:[%s4427_s12 + $0x1c] sm:$0xf] %vm2935_vm10, %v2926_v50 }
 0x23e PF: > { %s14_s17 = sadd.s32 1, %s3621_s17   ;;  %s4668_s15 = smov %s3617_s16 }
 0x23f   : > { %p11_p5 = scmp.ge.s32.totalorder %s14_s17, 4   ;;  %s4669_s16 = smov %s4671_s18 }
 0x241   :  { %13 = sbr.rel (!%p11_p5) target bundleno = 2 (0x2), region = 77 }

// kernel: vgg19_slices_forward.8
= control target key start
LH: loop header
LB: loop body
LE: loop exit
PB: predicated region body
PF: predicated region fallthrough
CT: control target
= control target key end

     0   :  { %s2872_s15 = smov 0   ;;  %s2874_s16 = smov 0   ;;  %s3456_s0 = inlined_call_operand.vmem [shape: bf16[2,10,10,128], index: 0, kind: input, shape index: {}, may-alias: {0,1}]   ;;  %s3457_s1 = inlined_call_operand.vmem [shape: bf16[2,10,10,128], index: 1, kind: input, shape index: {}, may-alias: {0,1}]   ;;  %s3458_s2 = inlined_call_operand.vmem [shape: bf16[3,384,128], index: 2, kind: input, shape index: {}]   ;;  %s3459_s3 = inlined_call_operand.vmem [shape: f32[1,128], index: 3, kind: input, shape index: {}]   ;;  %s3460_s4 = inlined_call_operand.vmem [shape: bf16[2,4,4,128], index: 4, kind: output, shape index: {}]  }
   0x1   :  { %s2876_s17 = smov 0  }
   0x2 LB: > { %s33_s18 = sadd.s32 1, %s2840_s16  ;;  %p2240_p0 = scmp.ge.s32.totalorder %s2844_s17, 1  ;;  %s2844_s17 = sphi %s2876_s17, %s14_s17   ;;  %s2840_s16 = sphi %s2874_s16, %s3462_s16   ;;  %s2836_s15 = sphi %s2872_s15, %s3461_s15  }
   0x3   : > { %p35_p1 = scmp.ge.s32.totalorder %s33_s18, 2  ;;  %p246_p2 = scmp.lt.s32.totalorder %s2844_s17, 3 }
   0x5   : > { %s3464_s18 = smov (%p35_p1, %s33_s18), 0  ;;  %p247_p3 = pnand %p2240_p0, %p246_p2 }
   0x6   : > { %p314_p4 = scmp.lt.s32.totalorder (!%p247_p3), %s2836_s15, 1 }
   0x7   : > { %250 = sbr.rel (%p247_p3) target bundleno = 383 (0x17f), region = 36 }
   0xc   : > { %v2732_v0 = vld [vmem:[%s3458_s2 + $0x138] sm:$0xff]   ;;  %v2735_v3 = vld [vmem:[%s3458_s2 + $0x130] sm:$0xff]   ;;  %s3466_s15 = smov (!%p314_p4, %s2836_s15), 1  ;;  %v2738_v6 = vld [vmem:[%s3458_s2 + $0x128] sm:$0xff]   ;;  %vm2017_vm0 = vcmask 1041409   ;;  %vm2020_vm1 = vcmask 1042434  }
   0xd   : > { %v2733_v1 = vld [vmem:[%s3458_s2 + $0xf8] sm:$0xff]   ;;  %2476 = vmatprep.subr.bf16.mxu0 %v2732_v0  ;;  %v2736_v4 = vld [vmem:[%s3458_s2 + $0xf0] sm:$0xff]   ;;  %v2739_v7 = vld [vmem:[%s3458_s2 + $0xe8] sm:$0xff]   ;;  %s2704_s29 = smul.u32 80, %s3466_s15  ;;  %vm2023_vm2 = vcmask 1043459   ;;  %s2475_s24 = sshll.u32 %s3466_s15, 3 }
   0xe   : > { %v2734_v2 = vld [vmem:[%s3458_s2 + $0x178] sm:$0xff]   ;;  %2477 = vmatpush3.bf16.msra.mxu0 %v2733_v1  ;;  %v2737_v5 = vld [vmem:[%s3458_s2 + $0x170] sm:$0xff]   ;;  %v2740_v8 = vld [vmem:[%s3458_s2 + $0x168] sm:$0xff]  }
   0xf   : > { %2632 = vmatprep.subr.bf16.mxu1 %v2734_v2  ;;  %2478 = vmatprep.subr.bf16.mxu0 %v2735_v3  ;;  %v2741_v9 = vld [vmem:[%s3458_s2 + $0x120] sm:$0xff]   ;;  %v2744_v12 = vld [vmem:[%s3458_s2 + $0x118] sm:$0xff]   ;;  %v2747_v15 = vld [vmem:[%s3458_s2 + $0x110] sm:$0xff]   ;;  %s2958_s14 = scalar_lea.vmem %s3456_s0, %s2704_s29  ;;  %s2474_s23 = sadd.s32 64, %s2704_s29 }
  0x10   : > { %2633 = vmatpush3.bf16.msra.mxu1 %v2734_v2  ;;  %v2742_v10 = vld [vmem:[%s3458_s2 + $0xe0] sm:$0xff]   ;;  %v2746_v13 = vld [vmem:[%s3458_s2 + $0x158] sm:$0xff]   ;;  %v2749_v16 = vld [vmem:[%s3458_s2 + $0x150] sm:$0xff]   ;;  %s3085_s30 = scalar_lea.vmem %s3457_s1, %s2474_s23  ;;  %s3401_s29 = scalar_lea.vmem %s3460_s4, %s2475_s24 }
  0x11   : > { %2634 = vmatprep.subr.bf16.mxu1 %v2737_v5  ;;  %v2743_v11 = vld [vmem:[%s3458_s2 + $0x160] sm:$0xff]   ;;  %v2745_v14 = vld [vmem:[%s3458_s2 + $0xd8] sm:$0xff]   ;;  %v2748_v17 = vld [vmem:[%s3458_s2 + $0xd0] sm:$0xff]  }
  0x12   : > { %2479 = vmatpush3.bf16.msra.mxu0 %v2736_v4  ;;  %v2750_v18 = vld [vmem:[%s3458_s2 + $0x108] sm:$0xff]   ;;  %v2753_v21 = vld [vmem:[%s3458_s2 + $0x100] sm:$0xff]   ;;  %v2971_v24 = vld [vmem:[%s2958_s14 + $0x10] sm:$0xf] }
  0x13   : > { %2480 = vmatprep.subr.bf16.mxu0 %v2738_v6  ;;  %v2751_v19 = vld [vmem:[%s3458_s2 + $0xc8] sm:$0xff]   ;;  %v370_v25 = vld [vmem:[%s2958_s14 + $0x14] sm:$0x1]  ;;  %v2755_v27 = vld [vmem:[%s3458_s2 + $0x140] sm:$0xff]  }
  0x14   : > { %2635 = vmatpush3.bf16.msra.mxu1 %v2737_v5  ;;  %v2752_v20 = vld [vmem:[%s3458_s2 + $0x148] sm:$0xff]   ;;  %v2981_v28 = vcombine.low %v2971_v24, %v370_v25  ;;  %v2984_v29 = vld [vmem:[%s2958_s14 + $0x18] sm:$0xf]  ;;  %v372_v30 = vld [vmem:[%s2958_s14 + $0x1c] sm:$0x1] }
  0x15   : > { %2636 = vmatprep.subr.bf16.mxu1 %v2740_v8  ;;  %v2967_v22 = vld [vmem:[%s2958_s14 + $0x8] sm:$0xf]  ;;  %v368_v23 = vld [vmem:[%s2958_s14 + $0xc] sm:$0x1]  ;;  %v2754_v31 = vld [vmem:[%s3458_s2 + $0xc0] sm:$0xff]   ;;  %v2993_v34 = vcombine.low %v2984_v29, %v372_v30 }
  0x16   : > { %2481 = vmatpush3.bf16.msra.mxu0 %v2739_v7  ;;  %v2975_v26 = vcombine.low %v2967_v22, %v368_v23  ;;  %v440_v36 = vshrl.u32 %v2981_v28, 16  ;;  %v442_v37 = vshll.u32 %v2981_v28, 16  ;;  %v2759_v38 = vld [vmem:[%s3458_s2 + $0x78] sm:$0xff]   ;;  %v483_v39 = vrot.slane %v2981_v28, 1  ;;  %v3003_v41 = vld [vmem:[%s2958_s14 + $0x20] sm:$0xf] }
  0x17   : > { %2482 = vmatprep.subr.bf16.mxu0 %v2741_v9  ;;  %v374_v42 = vld [vmem:[%s2958_s14 + $0x24] sm:$0x1]  ;;  %v2763_v43 = vld [vmem:[%s3458_s2 + $0xb8] sm:$0xff]   ;;  %v484_v45 = vrot.slane %v2993_v34, 1  ;;  %v2302_v51 = vcombine.low %v2967_v22, %v2971_v24  ;;  %v2766_v53 = vld [vmem:[%s3458_s2 + $0xb0] sm:$0xff]   ;;  %v447_v54 = vshrl.u32 %v2993_v34, 16  ;;  %v2305_v9 = vcombine.low %v2984_v29, %v3003_v41 }
  0x18   : > { %2637 = vmatpush3.bf16.msra.mxu1 %v2740_v8  ;;  %v433_v32 = vshrl.u32 %v2975_v26, 16  ;;  %v435_v33 = vshll.u32 %v2975_v26, 16  ;;  %v482_v35 = vrot.slane %v2975_v26, 1  ;;  %v444_v44 = vrot.slane %v442_v37, 1  ;;  %v2761_v52 = vld [vmem:[%s3458_s2 + $0x38] sm:$0xff]   ;;  %v2764_v60 = vld [vmem:[%s3458_s2 + $0x70] sm:$0xff]  }
  0x19   : > { %2638 = vmatprep.subr.bf16.mxu1 %v2743_v11  ;;  %v3015_v47 = vcombine.low %v3003_v41, %v374_v42  ;;  %v449_v55 = vshll.u32 %v2993_v34, 16  ;;  %v2765_v63 = vld [vmem:[%s3458_s2 + $0x30] sm:$0xff]   ;;  %v2768_v2 = vld [vmem:[%s3458_s2 + $0x68] sm:$0xff]   ;;  %v380_v23 = vld [vmem:[%s2958_s14 + $0x3c] sm:$0x1] }
  0x1a   : > { %2483 = vmatpush3.bf16.msra.mxu0 %v2742_v10  ;;  %v437_v40 = vrot.slane %v435_v33, 1  ;;  %v2304_v46 = vcombine.low %v482_v35, %v483_v39  ;;  %v3019_v49 = vor.u32 %v444_v44, %v440_v36  ;;  %v2770_v3 = vld [vmem:[%s3458_s2 + $0xa8] sm:$0xff]   ;;  %v3068_v8 = vld [vmem:[%s2958_s14 + $0x30] sm:$0xf]  ;;  %v378_v10 = vld [vmem:[%s2958_s14 + $0x34] sm:$0x1] }
  0x1b   : > { %2484 = vmatprep.subr.bf16.mxu0 %v2744_v12  ;;  %v485_v50 = vrot.slane %v3015_v47, 1  ;;  %v454_v58 = vshrl.u32 %v3015_v47, 16  ;;  %v456_v59 = vshll.u32 %v3015_v47, 16  ;;  %v451_v61 = vrot.slane %v449_v55, 1  ;;  %v2769_v5 = vld [vmem:[%s3458_s2 + $0x28] sm:$0xff]   ;;  %v2773_v12 = vld [vmem:[%s3458_s2 + $0xa0] sm:$0xff]  }
  0x1c   : > { %2639 = vmatpush3.bf16.msra.mxu1 %v2743_v11  ;;  %v3017_v48 = vor.u32 %v437_v40, %v433_v32  ;;  %2648 = vmatprep.mubr.bf16.mxu1 %v2304_v46  ;;  %v3064_v6 = vld [vmem:[%s2958_s14 + $0x28] sm:$0xf]  ;;  %v376_v7 = vld [vmem:[%s2958_s14 + $0x2c] sm:$0x1]  ;;  %v2772_v25 = vld [vmem:[%s3458_s2 + $0x20] sm:$0xff]  }
  0x1d   : > { %2640 = vmatprep.subr.bf16.mxu1 %v2746_v13  ;;  %v2307_v57 = vcombine.low %v484_v45, %v485_v50  ;;  %v458_v62 = vrot.slane %v456_v59, 1  ;;  %v3046_v0 = vor.u32 %v451_v61, %v447_v54  ;;  %v3074_v11 = vcombine.low %v3064_v6, %v376_v7  ;;  %v3104_v30 = vld [vmem:[%s3085_s30] sm:$0xf]  ;;  %v2777_v42 = vld [vmem:[%s3458_s2 + $0x58] sm:$0xff]   ;;  %v2796_v28 = vld [vmem:[%s3458_s2 + $0x1f0] sm:$0xff]  }
  0x1e   : > { %2485 = vmatpush3.bf16.msra.mxu0 %v2745_v14  ;;  %v2303_v56 = vcombine.low %v3017_v48, %v3019_v49  ;;  %v2771_v14 = vld [vmem:[%s3458_s2 + $0x60] sm:$0xff]   ;;  %v2778_v46 = vld [vmem:[%s3458_s2 + $0x18] sm:$0xff]   ;;  %v2800_v47 = vld [vmem:[%s3458_s2 + $0x1e8] sm:$0xff]  }
  0x1f   : > { %2486 = vmatprep.subr.bf16.mxu0 %v2747_v15  ;;  %v3048_v1 = vor.u32 %v458_v62, %v454_v58  ;;  %v461_v15 = vshrl.u32 %v3074_v11, 16  ;;  %v3206_v34 = vcombine.low %v3019_v49, %v3046_v0  ;;  %v2341_v49 = vcombine.low %v2971_v24, %v2984_v29  ;;  %v2804_v24 = vld [vmem:[%s3458_s2 + $0x1a0] sm:$0xff]   ;;  %v2809_v29 = vld [vmem:[%s3458_s2 + $0x218] sm:$0xff]  }
  0x20   : > { %2641 = vmatpush3.bf16.msra.mxu1 %v2746_v13  ;;  %817 = vmatprep.mubr.bf16.mxu0 %v2303_v56  ;;  %v3080_v13 = vcombine.low %v3068_v8, %v378_v10  ;;  %v366_v10 = vld [vmem:[%s2958_s14 + $0x4] sm:$0x1] }
  0x21   : > { %2642 = vmatprep.subr.bf16.mxu1 %v2749_v16  ;;  %v2306_v4 = vcombine.low %v3046_v0, %v3048_v1  ;;  %v2805_v0 = vld [vmem:[%s3458_s2 + $0x220] sm:$0xff]  }
  0x22   : > { %2487 = vmatpush3.bf16.msra.mxu0 %v2748_v17  ;;  %v486_v17 = vrot.slane %v3074_v11, 1 }
  0x23   : > { %2488 = vmatprep.subr.bf16.mxu0 %v2750_v18  ;;  %v3094_v18 = vld [vmem:[%s2958_s14 + $0x38] sm:$0xf] }
  0x24   : > { %2643 = vmatpush3.bf16.msra.mxu1 %v2749_v16  ;;  %v463_v16 = vshll.u32 %v3074_v11, 16  ;;  %v3108_v32 = vcombine.low %v3094_v18, %v380_v23  ;;  %v2803_v11 = vld [vmem:[%s3458_s2 + $0x1e0] sm:$0xff]  }
  0x25   : > { %2644 = vmatprep.subr.bf16.mxu1 %v2752_v20 }
  0x26   : > { %2489 = vmatpush3.bf16.msra.mxu0 %v2751_v19  ;;  %v468_v19 = vshrl.u32 %v3080_v13, 16  ;;  %v475_v54 = vshrl.u32 %v3108_v32, 16  ;;  %v477_v55 = vshll.u32 %v3108_v32, 16 }
  0x27   : > { %2490 = vmatprep.subr.bf16.mxu0 %v2753_v21  ;;  %v487_v21 = vrot.slane %v3080_v13, 1 }
  0x28   : > { %2645 = vmatpush3.bf16.msra.mxu1 %v2752_v20  ;;  %v470_v20 = vshll.u32 %v3080_v13, 16  ;;  %v479_v61 = vrot.slane %v477_v55, 1  ;;  %v2815_v55 = vld [vmem:[%s3458_s2 + $0x188] sm:$0xff]  }
  0x29   : > { %2646 = vmatprep.subr.bf16.mxu1 %v2755_v27  ;;  %v2310_v36 = vcombine.low %v486_v17, %v487_v21 }
  0x2a   : > { %2491 = vmatpush3.bf16.msra.mxu0 %v2754_v31  ;;  %v382_v31 = vld [vmem:[%s3085_s30 + $0x4] sm:$0x1]  ;;  %v472_v33 = vrot.slane %v470_v20, 1 }
  0x2b   : > { %2528 = vmatprep.subr.bf16.mxu0 %v2759_v38  ;;  %v3115_v37 = vcombine.low %v3104_v30, %v382_v31  ;;  %v2781_v38 = vld [vmem:[%s3458_s2 + $0x98] sm:$0xff]  }
  0x2c   : > { %2647 = vmatpush3.bf16.msra.mxu1 %v2755_v27  ;;  %v465_v27 = vrot.slane %v463_v16, 1  ;;  %v3126_v44 = vor.u32 %v472_v33, %v468_v19  ;;  %v2790_v16 = vld [vmem:[%s3458_s2 + $0x80] sm:$0xff]  }
  0x2d   : > { %2656 = vmatprep.subr.bf16.mxu1 %v2763_v43  ;;  %818 = vmatmul.mubr.bf16.vlgmr.msra.gmra.mxu0 %v2302_v51  ;;  %v565_v51 = vrot.slane %v3115_v37, 1  ;;  %v559_v58 = vshrl.u32 %v3115_v37, 16  ;;  %v561_v59 = vshll.u32 %v3115_v37, 16  ;;  %v2788_v19 = vld [vmem:[%s3458_s2 + $0x40] sm:$0xff]  }
  0x2e   : > { %2529 = vmatpush3.bf16.msra.mxu0 %v2761_v52  ;;  %825 = vmatprep.mubr.bf16.mxu0 %v2306_v4  ;;  %v3120_v40 = vor.u32 %v465_v27, %v461_v15  ;;  %v2784_v52 = vld [vmem:[%s3458_s2 + $0x90] sm:$0xff]   ;;  %v2785_v4 = vld [vmem:[%s3458_s2 + $0x48] sm:$0xff]   ;;  %v2789_v27 = vld [vmem:[%s3458_s2] sm:$0xff]  }
  0x2f   : > { %2649 = vmatmul.mubr.bf16.vlgmr.msra.gmra.mxu1 %v2307_v57  ;;  %2530 = vmatprep.subr.bf16.mxu0 %v2764_v60  ;;  %v2782_v60 = vld [vmem:[%s3458_s2 + $0x50] sm:$0xff]   ;;  %v563_v62 = vrot.slane %v561_v59, 1  ;;  %v384_v59 = vld [vmem:[%s3085_s30 + $0xc] sm:$0x1] }
  0x30   : > { %2657 = vmatpush3.bf16.msra.mxu1 %v2763_v43  ;;  %v488_v43 = vrot.slane %v3108_v32, 1  ;;  %2652 = vmatprep.mubr.bf16.mxu1 %v2310_v36  ;;  %v2309_v56 = vcombine.low %v3120_v40, %v3126_v44  ;;  %v2795_v36 = vld [vmem:[%s3458_s2 + $0x238] sm:$0xff]   ;;  %v2345_v13 = vcombine.low %v3048_v1, %v3120_v40  ;;  %v2344_v1 = vcombine.low %v3003_v41, %v3064_v6  ;;  %v2812_v32 = vld [vmem:[%s3458_s2 + $0x210] sm:$0xff]  }
  0x31   : > { %2658 = vmatprep.subr.bf16.mxu1 %v2766_v53  ;;  %v2810_v40 = vld [vmem:[%s3458_s2 + $0x1d0] sm:$0xff]  }
  0x32   : > { %2531 = vmatpush3.bf16.msra.mxu0 %v2765_v63  ;;  %v2313_v57 = vcombine.low %v488_v43, %v565_v51  ;;  %v2783_v63 = vld [vmem:[%s3458_s2 + $0x10] sm:$0xff]  }
  0x33   : > { %2532 = vmatprep.subr.bf16.mxu0 %v2768_v2  ;;  %v3153_v2 = vor.u32 %v479_v61, %v475_v54  ;;  %v2811_v41 = vld [vmem:[%s3458_s2 + $0x190] sm:$0xff]   ;;  %v2347_v54 = vcombine.low %v3068_v8, %v3094_v18 }
  0x34   : > { %2659 = vmatpush3.bf16.msra.mxu1 %v2766_v53  ;;  %v2308_v53 = vcombine.low %v3064_v6, %v3068_v8  ;;  %v2816_v6 = vld [vmem:[%s3458_s2 + $0x208] sm:$0xff]   ;;  %v2818_v8 = vld [vmem:[%s3458_s2 + $0x180] sm:$0xff]  }
  0x35   : > { %2660 = vmatprep.subr.bf16.mxu1 %v2770_v3  ;;  %826 = vmatmul.mubr.bf16.gmra.mxu0 %v2305_v9  ;;  %v365_v9 = vld [vmem:[%s2958_s14] sm:$0xf] }
  0x36   : > { %2533 = vmatpush3.bf16.msra.mxu0 %v2769_v5  ;;  %833 = vmatprep.mubr.bf16.mxu0 %v2309_v56  ;;  %v2787_v5 = vld [vmem:[%s3458_s2 + $0x88] sm:$0xff]   ;;  %v2245_v15 = vcombine.low %v365_v9, %v366_v10  ;;  %v2819_v56 = vld [vmem:[%s3458_s2 + $0x200] sm:$0xff]  }
  0x37   : > { %2534 = vmatprep.subr.bf16.mxu0 %v2771_v14  ;;  %2653 = vmatmul.mubr.bf16.gmra.mxu1 %v2313_v57  ;;  %v2786_v14 = vld [vmem:[%s3458_s2 + $0x8] sm:$0xff]   ;;  %v2817_v57 = vld [vmem:[%s3458_s2 + $0x1c0] sm:$0xff]  }
  0x38   : > { %2661 = vmatpush3.bf16.msra.mxu1 %v2770_v3  ;;  %v3155_v3 = vor.u32 %v563_v62, %v559_v58  ;;  %v426_v20 = vshrl.u32 %v2245_v15, 16  ;;  %v428_v23 = vshll.u32 %v2245_v15, 16  ;;  %v383_v58 = vld [vmem:[%s3085_s30 + $0x8] sm:$0xf] }
  0x39   : > { %2662 = vmatprep.subr.bf16.mxu1 %v2773_v12 }
  0x3a   : > { %2535 = vmatpush3.bf16.msra.mxu0 %v2772_v25  ;;  %v2312_v7 = vcombine.low %v3153_v2, %v3155_v3  ;;  %v481_v25 = vrot.slane %v2245_v15, 1  ;;  %v430_v31 = vrot.slane %v428_v23, 1 }
  0x3b   : > { %2536 = vmatprep.subr.bf16.mxu0 %v2777_v42  ;;  %v2793_v42 = vld [vmem:[%s3458_s2 + $0x1f8] sm:$0xff]  }
  0x3c   : > { %2663 = vmatpush3.bf16.msra.mxu1 %v2773_v12  ;;  %v2311_v12 = vcombine.low %v3094_v18, %v3104_v30  ;;  %v2340_v33 = vcombine.low %v481_v25, %v482_v35  ;;  %v2338_v35 = vcombine.low %v365_v9, %v2967_v22  ;;  %v3212_v22 = vcombine.low %v485_v50, %v486_v17  ;;  %v2801_v50 = vld [vmem:[%s3458_s2 + $0x1a8] sm:$0xff]   ;;  %v2807_v17 = vld [vmem:[%s3458_s2 + $0x1d8] sm:$0xff]  }
  0x3d   : > { %2664 = vmatprep.subr.bf16.mxu1 %v2781_v38  ;;  %834 = vmatmul.mubr.bf16.gmra.mxu0 %v2308_v53  ;;  %v2798_v53 = vld [vmem:[%s3458_s2 + $0x230] sm:$0xff]   ;;  %v2374_v18 = vcombine.low %v383_v58, %v384_v59 }
  0x3e   : > { %2537 = vmatpush3.bf16.msra.mxu0 %v2778_v46  ;;  %841 = vmatprep.mubr.bf16.mxu0 %v2312_v7  ;;  %v2343_v46 = vcombine.low %v483_v39, %v484_v45  ;;  %v2797_v39 = vld [vmem:[%s3458_s2 + $0x1b0] sm:$0xff]   ;;  %v2802_v45 = vld [vmem:[%s3458_s2 + $0x228] sm:$0xff]   ;;  %v2423_v7 = vcombine.low %v3104_v30, %v383_v58 }
  0x3f   : > { %2538 = vmatprep.subr.bf16.mxu0 %v2782_v60  ;;  %2672 = vmatprep.mubr.bf16.mxu1 %v2340_v33  ;;  %v1225_v60 = vrot.slane %v2374_v18, 1  ;;  %v1221_v61 = vshll.u32 %v2374_v18, 16 }
  0x40   : > { %2665 = vmatpush3.bf16.msra.mxu1 %v2781_v38  ;;  %v431_v38 = vor.u32 %v430_v31, %v426_v20 }
  0x41   : > { %2666 = vmatprep.subr.bf16.mxu1 %v2784_v52  ;;  %v2425_v62 = vcombine.low %v565_v51, %v1225_v60 }
  0x42   : > { %2539 = vmatpush3.bf16.msra.mxu0 %v2783_v63  ;;  %v2339_v26 = vcombine.low %v431_v38, %v3017_v48  ;;  %v2349_v48 = vcombine.low %v487_v21, %v488_v43  ;;  %v2808_v21 = vld [vmem:[%s3458_s2 + $0x198] sm:$0xff]   ;;  %v2348_v43 = vcombine.low %v3126_v44, %v3153_v2  ;;  %v2814_v44 = vld [vmem:[%s3458_s2 + $0x1c8] sm:$0xff]   ;;  %v1219_v63 = vshrl.u32 %v2374_v18, 16 }
  0x43   : > { %2540 = vmatprep.subr.bf16.mxu0 %v2785_v4  ;;  %v1223_v2 = vrot.slane %v1221_v61, 1 }
  0x44   : > { %2667 = vmatpush3.bf16.msra.mxu1 %v2784_v52  ;;  %v2794_v52 = vld [vmem:[%s3458_s2 + $0x1b8] sm:$0xff]  }
  0x45   : > { %2668 = vmatprep.subr.bf16.mxu1 %v2787_v5  ;;  %842 = vmatmul.mubr.bf16.gmra.mxu0 %v2311_v12  ;;  %v1224_v4 = vor.u32 %v1223_v2, %v1219_v63 }
  0x46   : > { %2541 = vmatpush3.bf16.msra.mxu0 %v2786_v14  ;;  %1115 = vmatprep.mubr.bf16.mxu0 %v2339_v26 }
  0x47   : > { %2542 = vmatprep.subr.bf16.mxu0 %v2788_v19 }
  0x48   : > { %2669 = vmatpush3.bf16.msra.mxu1 %v2787_v5  ;;  %v2424_v5 = vcombine.low %v3155_v3, %v1224_v4 }
  0x49   : > { %2670 = vmatprep.subr.bf16.mxu1 %v2790_v16 }
  0x4a   : > { %2543 = vmatpush3.bf16.msra.mxu0 %v2789_v27 }
  0x4b   : > { %2580 = vmatprep.subr.bf16.mxu0 %v2793_v42 }
  0x4c   : > { %2671 = vmatpush3.bf16.msra.mxu1 %v2790_v16 }
  0x4d   : > { %2680 = vmatprep.subr.bf16.mxu1 %v2795_v36  ;;  %1116 = vmatmul.mubr.bf16.vlgmr.msra.gmra.mxu0 %v2338_v35 }
  0x4e   : > { %2581 = vmatpush3.bf16.msra.mxu0 %v2794_v52  ;;  %1123 = vmatprep.mubr.bf16.mxu0 %v3206_v34 }
  0x4f   : > { %2673 = vmatmul.mubr.bf16.vlgmr.msra.gmra.mxu1 %v2343_v46  ;;  %2582 = vmatprep.subr.bf16.mxu0 %v2796_v28 }
  0x50   : > { %2681 = vmatpush3.bf16.msra.mxu1 %v2795_v36  ;;  %2676 = vmatprep.mubr.bf16.mxu1 %v3212_v22 }
  0x51   : > { %2682 = vmatprep.subr.bf16.mxu1 %v2798_v53 }
  0x52   : > { %2583 = vmatpush3.bf16.msra.mxu0 %v2797_v39 }
  0x53   : > { %2584 = vmatprep.subr.bf16.mxu0 %v2800_v47 }
  0x54   : > { %2683 = vmatpush3.bf16.msra.mxu1 %v2798_v53 }
  0x55   : > { %2684 = vmatprep.subr.bf16.mxu1 %v2802_v45  ;;  %1124 = vmatmul.mubr.bf16.gmra.mxu0 %v2341_v49 }
  0x56   : > { %2585 = vmatpush3.bf16.msra.mxu0 %v2801_v50  ;;  %1131 = vmatprep.mubr.bf16.mxu0 %v2345_v13 }
  0x57   : > { %2677 = vmatmul.mubr.bf16.gmra.mxu1 %v2349_v48  ;;  %2586 = vmatprep.subr.bf16.mxu0 %v2803_v11 }
  0x58   : > { %2685 = vmatpush3.bf16.msra.mxu1 %v2802_v45  ;;  %2696 = vmatprep.mubr.bf16.mxu1 %v2343_v46 }
  0x59   : > { %2686 = vmatprep.subr.bf16.mxu1 %v2805_v0 }
  0x5a   : > { %2587 = vmatpush3.bf16.msra.mxu0 %v2804_v24 }
  0x5b   : > { %2588 = vmatprep.subr.bf16.mxu0 %v2807_v17 }
  0x5c   : > { %2687 = vmatpush3.bf16.msra.mxu1 %v2805_v0 }
  0x5d   : > { %2688 = vmatprep.subr.bf16.mxu1 %v2809_v29  ;;  %1132 = vmatmul.mubr.bf16.gmra.mxu0 %v2344_v1 }
  0x5e   : > { %2589 = vmatpush3.bf16.msra.mxu0 %v2808_v21  ;;  %1139 = vmatprep.mubr.bf16.mxu0 %v2348_v43 }
  0x5f   : > { %2590 = vmatprep.subr.bf16.mxu0 %v2810_v40 }
  0x60   : > { %2689 = vmatpush3.bf16.msra.mxu1 %v2809_v29 }
  0x61   : > { %2690 = vmatprep.subr.bf16.mxu1 %v2812_v32 }
  0x62   : > { %2591 = vmatpush3.bf16.msra.mxu0 %v2811_v41 }
  0x63   : > { %2592 = vmatprep.subr.bf16.mxu0 %v2814_v44 }
  0x64   : > { %2691 = vmatpush3.bf16.msra.mxu1 %v2812_v32 }
  0x65   : > { %2692 = vmatprep.subr.bf16.mxu1 %v2816_v6  ;;  %1140 = vmatmul.mubr.bf16.gmra.mxu0 %v2347_v54 }
  0x66   : > { %2593 = vmatpush3.bf16.msra.mxu0 %v2815_v55  ;;  %1459 = vmatprep.mubr.bf16.mxu0 %v3206_v34 }
  0x67   : > { %2594 = vmatprep.subr.bf16.mxu0 %v2817_v57 }
  0x68   : > { %2693 = vmatpush3.bf16.msra.mxu1 %v2816_v6 }
  0x69   : > { %2694 = vmatprep.subr.bf16.mxu1 %v2819_v56 }
  0x6a   : > { %2595 = vmatpush3.bf16.msra.mxu0 %v2818_v8 }
  0x6c   : > { %2695 = vmatpush3.bf16.msra.mxu1 %v2819_v56 }
  0x6d   : > { %1460 = vmatmul.mubr.bf16.vlgmr.msra.gmra.mxu0 %v2341_v49 }
  0x6e   : > { %1467 = vmatprep.mubr.bf16.mxu0 %v2345_v13 }
  0x6f   : > { %2697 = vmatmul.mubr.bf16.vlgmr.msra.gmra.mxu1 %v3212_v22 }
  0x70   : > { %2700 = vmatprep.mubr.bf16.mxu1 %v2349_v48 }
  0x75   : > { %1468 = vmatmul.mubr.bf16.gmra.mxu0 %v2344_v1 }
  0x76   : > { %1475 = vmatprep.mubr.bf16.mxu0 %v2348_v43 }
  0x77   : > { %2701 = vmatmul.mubr.bf16.gmra.mxu1 %v2425_v62 }
  0x7d   : > { %1476 = vmatmul.mubr.bf16.gmra.mxu0 %v2347_v54 }
  0x7e   : > { %1483 = vmatprep.mubr.bf16.mxu0 %v2424_v5 }
  0x85   : > { %1484 = vmatmul.mubr.bf16.gmra.mxu0 %v2423_v7 }
  0xed   : > { %v2492_v9 = vpop.f32.mrf.mxu0 }
  0xef   : > { %v2493_v10 = vpop.f32.mrf.mxu0  ;;  %v3295_v37 = vpop.f32.mrf.mxu1 }
  0xf0   : > { %v2494_v12 = vadd.f32 %v2493_v10, %v2492_v9 }
  0xf1   : > { %v2495_v14 = vpop.f32.mrf.mxu0  ;;  %v884_v19 = vpop.f32.mrf.mxu1 }
  0xf2   : > { %v885_v18 = vadd.f32 %v2494_v12, %v884_v19  ;;  %v1600_v12 = vlaneseq }
  0xf3   : > { %v2496_v15 = vpop.f32.mrf.mxu0  ;;  %v3303_v25 = vpop.f32.mrf.mxu1 }
  0xf4   : > { %v2497_v60 = vadd.f32 %v2496_v15, %v2495_v14 }
  0xf5   : > { %v2498_v51 = vpop.f32.mrf.mxu0  ;;  %v887_v31 = vpop.f32.mrf.mxu1 }
  0xf6   : > { %v888_v7 = vadd.f32 %v2497_v60, %v887_v31 }
  0xf7   : > { %v2499_v16 = vpop.f32.mrf.mxu0  ;;  %v2654_v38 = vpop.f32.mrf.mxu1 }
  0xf8   : > { %v3297_v20 = vadd.f32 %v2499_v16, %v2498_v51 }
  0xf9   : > { %v3299_v23 = vpop.f32.mrf.mxu0  ;;  %v3311_v26 = vpop.f32.mrf.mxu1 }
  0xfa   : > { %v893_v31 = vadd.f32 %v3295_v37, %v3297_v20 }
  0xfb   : > { %v3301_v3 = vpop.f32.mrf.mxu0  ;;  %v3313_v28 = vpop.f32.mrf.mxu1 }
  0xfc   : > { %v2503_v14 = vadd.f32 %v3301_v3, %v3299_v23 }
  0xfd   : > { %v2504_v30 = vpop.f32.mrf.mxu0  ;;  %v3319_v47 = vpop.f32.mrf.mxu1 }
  0xfe   : > { %v896_v23 = vadd.f32 %v3303_v25, %v2503_v14 }
  0xff   : > { %v2505_v27 = vpop.f32.mrf.mxu0 }
 0x100   : > { %v3305_v33 = vadd.f32 %v2505_v27, %v2504_v30 }
 0x101   : > { %v3307_v36 = vpop.f32.mrf.mxu0 }
 0x103   : > { %v3309_v42 = vpop.f32.mrf.mxu0 }
 0x104   : > { %v2509_v20 = vadd.f32 %v3309_v42, %v3307_v36 }
 0x105   : > { %v2510_v46 = vpop.f32.mrf.mxu0 }
 0x106   : > { %v904_v42 = vadd.f32 %v2509_v20, %v3319_v47 }
 0x107   : > { %v2511_v35 = vpop.f32.mrf.mxu0 }
 0x108   : > { %v2512_v52 = vadd.f32 %v2511_v35, %v2510_v46 }
 0x109   : > { %v2513_v53 = vpop.f32.mrf.mxu0 }
 0x10a   : > { %v3315_v34 = vadd.f32 %v2654_v38, %v2512_v52  ;;  %v2846_v52 = vmov 1983009808  }
 0x10b   : > { %v2514_v22 = vpop.f32.mrf.mxu0 }
 0x10c   : > { %v3317_v39 = vadd.f32 %v2514_v22, %v2513_v53  ;;  %v1598_v53 = vunpack.c.l.s4 %v2846_v52  ;;  %v3344_v22 = vld [vmem:[%s3459_s3] ss:$0 sm:$0xff] }
 0x10d   : > { %v2544_v45 = vpop.f32.mrf.mxu0 }
 0x10e   : > { %v912_v47 = vadd.f32 %v3313_v28, %v3317_v39 }
 0x10f   : > { %v2545_v48 = vpop.f32.mrf.mxu0  ;;  %v3321_v49 = vpop.f32.mrf.mxu1 }
 0x110   : > { %v2546_v58 = vadd.f32 %v2545_v48, %v2544_v45 }
 0x111   : > { %v2547_v50 = vpop.f32.mrf.mxu0  ;;  %v1182_v11 = vpop.f32.mrf.mxu1 }
 0x112   : > { %v1118_v2 = vadd.f32 %v2546_v58, %v885_v18 }
 0x113   : > { %v2548_v0 = vpop.f32.mrf.mxu0  ;;  %v3323_v29 = vpop.f32.mrf.mxu1 }
 0x114   : > { %v2549_v63 = vadd.f32 %v2548_v0, %v2547_v50  ;;  %v1183_v16 = vadd.f32 %v1182_v11, %v1118_v2  ;;  %v901_v2 = vadd.f32 %v3305_v33, %v3311_v26 }
 0x115   : > { %v2550_v13 = vpop.f32.mrf.mxu0  ;;  %v1185_v21 = vpop.f32.mrf.mxu1 }
 0x116   : > { %v1121_v30 = vadd.f32 %v2549_v63, %v888_v7 }
 0x117   : > { %v2551_v24 = vpop.f32.mrf.mxu0  ;;  %v3325_v40 = vpop.f32.mrf.mxu1 }
 0x118   : > { %v2552_v38 = vadd.f32 %v2551_v24, %v2550_v13  ;;  %v1186_v48 = vadd.f32 %v1185_v21, %v1121_v30  ;;  %v1599_v13 = vunpack.c.0.s8 %v1598_v53  ;;  %v1601_v24 = vshrl.u32 %v1600_v12, 7 }
 0x119   : > { %v2553_v17 = vpop.f32.mrf.mxu0  ;;  %v3327_v6 = vpop.f32.mrf.mxu1 }
 0x11a   : > { %v1126_v11 = vadd.f32 %v2552_v38, %v893_v31 }
 0x11b   : > { %v2554_v1 = vpop.f32.mrf.mxu0  ;;  %v3329_v55 = vpop.f32.mrf.mxu1 }
 0x11c   : > { %v2555_v50 = vadd.f32 %v2554_v1, %v2553_v17  ;;  %v1191_v25 = vadd.f32 %v3321_v49, %v1126_v11 }
 0x11d   : > { %v2556_v32 = vpop.f32.mrf.mxu0  ;;  %v3333_v59 = vpop.f32.mrf.mxu1 }
 0x11e   : > { %v1129_v21 = vadd.f32 %v2555_v50, %v896_v23 }
 0x11f   : > { %v2557_v43 = vpop.f32.mrf.mxu0 }
 0x121   : > { %v2559_v41 = vpop.f32.mrf.mxu0 }
 0x123   : > { %v2560_v44 = vpop.f32.mrf.mxu0 }
 0x125   : > { %v2562_v54 = vpop.f32.mrf.mxu0 }
 0x127   : > { %v2563_v56 = vpop.f32.mrf.mxu0 }
 0x129   : > { %v3331_v57 = vpop.f32.mrf.mxu0 }
 0x12b   : > { %v3335_v8 = vpop.f32.mrf.mxu0 }
 0x12d   : > { %v2596_v62 = vpop.f32.mrf.mxu0 }
 0x12f   : > { %v2698_v61 = vpop.f32.mrf.mxu1  ;;  %v2597_v5 = vpop.f32.mrf.mxu0 }
 0x130   : > { %v2598_v9 = vadd.f32 %v2597_v5, %v2596_v62  ;;  %v2558_v62 = vadd.f32 %v2557_v43, %v2556_v32  ;;  %v2564_v5 = vadd.f32 %v2563_v56, %v2562_v54 }
 0x131   : > { %v1526_v4 = vpop.f32.mrf.mxu1  ;;  %v2599_v51 = vpop.f32.mrf.mxu0 }
 0x132   : > { %v1527_v27 = vadd.f32 %v2598_v9, %v1526_v4  ;;  %v2561_v4 = vadd.f32 %v2560_v44, %v2559_v41  ;;  %v1134_v32 = vadd.f32 %v2558_v62, %v901_v2  ;;  %v1142_v26 = vadd.f32 %v2564_v5, %v3315_v34 }
 0x133   : > { %v2699_v10 = vpop.f32.mrf.mxu1  ;;  %v2600_v46 = vpop.f32.mrf.mxu0  ;;  %v2567_v41 = vadd.f32 %v3335_v8, %v3331_v57 }
 0x134   : > { %v1557_v15 = vadd.f32 %v1527_v27, %v1183_v16  ;;  %v2601_v19 = vadd.f32 %v2600_v46, %v2599_v51  ;;  %v3356_v16 = vsub.s32 %v1599_v13, %v1601_v24  ;;  %v1137_v49 = vadd.f32 %v2561_v4, %v904_v42 }
 0x135   : > { %v1529_v35 = vpop.f32.mrf.mxu1  ;;  %v2602_v45 = vpop.f32.mrf.mxu0  ;;  %v3373_v14 = vadd.f32 %v3325_v40, %v1142_v26 }
 0x136   : > { %v1530_v0 = vadd.f32 %v2601_v19, %v1529_v35  ;;  %v1572_v3 = vadd.f32 %v3344_v22, %v1557_v15  ;;  %v1202_v15 = vadd.f32 %v3333_v59, %v1137_v49  ;;  %v1145_v19 = vadd.f32 %v2567_v41, %v912_v47 }
 0x137   : > { %v2603_v58 = vpop.f32.mrf.mxu0  ;;  %v3348_v37 = vpop.f32.mrf.mxu1 }
 0x138   : > { %v1558_v18 = vadd.f32 %v1530_v0, %v1186_v48  ;;  %v2604_v60 = vadd.f32 %v2603_v58, %v2602_v45  ;;  %v1580_v9 = vmax.f32 %v1572_v3, 0.0  ;;  %v3377_v40 = vadd.f32 %v3329_v55, %v1145_v19 }
 0x139   : > { %v2605_v63 = vpop.f32.mrf.mxu0  ;;  %v1542_v36 = vpop.f32.mrf.mxu1 }
 0x13a   : > { %v1573_v17 = vadd.f32 %v3344_v22, %v1558_v18  ;;  %v1535_v1 = vadd.f32 %v2698_v61, %v2604_v60  ;;  %v1194_v61 = vadd.f32 %v3323_v29, %v1129_v21  ;;  %v1199_v29 = vadd.f32 %v3327_v6, %v1134_v32 }
 0x13b   : > { %v2606_v7 = vpop.f32.mrf.mxu0  ;;  %v3364_v35 = vpop.f32.mrf.mxu1 }
 0x13c   : > { %v1581_v51 = vmax.f32 %v1573_v17, 0.0  ;;  %v2607_v30 = vadd.f32 %v2606_v7, %v2605_v63  ;;  %v1559_v43 = vadd.f32 %v1535_v1, %v1191_v25 }
 0x13d   : > { %v2608_v27 = vpop.f32.mrf.mxu0  ;;  %v1545_v50 = vpop.f32.mrf.mxu1 }
 0x13e   : > { %v1588_v38 = vmax.f32 %v1580_v9, %v1581_v51  ;;  %v1538_v33 = vadd.f32 %v2699_v10, %v2607_v30  ;;  %v1574_v10 = vadd.f32 %v3344_v22, %v1559_v43 }
 0x13f   : > { %v2609_v44 = vpop.f32.mrf.mxu0 }
 0x140   : > { %v1596_v54 = vcombine.high %v1588_v38, %v1588_v38  ;;  %v1603_v56 = vrot.slane %v1588_v38, %v3356_v16  ;;  %v1560_v46 = vadd.f32 %v1538_v33, %v1194_v61  ;;  %v2610_v52 = vadd.f32 %v2609_v44, %v2608_v27 }
 0x141   : > { %v2611_v34 = vpop.f32.mrf.mxu0  ;;  %v1582_v0 = vmax.f32 %v1574_v10, 0.0 }
 0x142   : > { %v1610_v53 = vrot.slane %v1596_v54, %v3356_v16  ;;  %v1611_v12 = vcombine.high %v1603_v56, %v1603_v56  ;;  %v2451_v57 = vrot.slane %v1603_v56, 9  ;;  %v1575_v8 = vadd.f32 %v3344_v22, %v1560_v46 }
 0x143   : > { %v1543_v31 = vadd.f32 %v2610_v52, %v1542_v36  ;;  %v2612_v28 = vpop.f32.mrf.mxu0 }
 0x144   : > { %v1612_v39 = vcombine.high %v1610_v53, %v1610_v53  ;;  %v2452_v6 = vrot.slane %v1611_v12, 9  ;;  %v2453_v45 = vrot.slane %v1610_v53, 9  ;;  %v1728_v48 = vmax.f32 %v1603_v56, %v2451_v57 }
 0x145   : > { %v1583_v11 = vmax.f32 %v1575_v8, 0.0  ;;  %v1561_v13 = vadd.f32 %v1543_v31, %v1199_v29  ;;  %v2613_v24 = vadd.f32 %v2612_v28, %v2611_v34  ;;  %v2614_v38 = vpop.f32.mrf.mxu0 }
 0x146   : > { %v2454_v58 = vrot.slane %v1612_v39, 9  ;;  %v1729_v23 = vmax.f32 %v1611_v12, %v2452_v6  ;;  %v1730_v3 = vmax.f32 %v1610_v53, %v2453_v45  ;;  %v1744_v18 = vpack.c.bf16 %v1728_v48, %v1728_v48 }
 0x147   : > { %v1589_v59 = vmax.f32 %v1582_v0, %v1583_v11  ;;  %v1576_v60 = vadd.f32 %v3344_v22, %v1561_v13  ;;  %v1546_v20 = vadd.f32 %v2613_v24, %v1545_v50  ;;  %v2615_v8 = vpop.f32.mrf.mxu0 }
 0x148   : > { %v1731_v62 = vmax.f32 %v1612_v39, %v2454_v58  ;;  %v1745_v63 = vpack.c.bf16 %v1729_v23, %v1729_v23  ;;  %v1746_v21 = vpack.c.bf16 %v1730_v3, %v1730_v3  ;;  %v1782_v17 = vrot.slane %v1744_v18, %v3356_v16 }
 0x149   : > { %v1613_v1 = vcombine.high %v1589_v59, %v1589_v59  ;;  %v1620_v2 = vrot.slane %v1589_v59, %v3356_v16  ;;  %v1584_v25 = vmax.f32 %v1576_v60, 0.0  ;;  %v1562_v4 = vadd.f32 %v1546_v20, %v1202_v15  ;;  %v2617_v18 = vpop.f32.mrf.mxu0 }
 0x14a   : > { %v1747_v5 = vpack.c.bf16 %v1731_v62, %v1731_v62  ;;  %v1789_v55 = vrot.slane %v1745_v63, %v3356_v16  ;;  %v1796_v7 = vrot.slane %v1746_v21, %v3356_v16  ;;  %v1894_v9 = vrot.slane %v1782_v17, %v3356_v16 }
 0x14b   : > { %v1627_v51 = vrot.slane %v1613_v1, %v3356_v16  ;;  %v1628_v30 = vcombine.high %v1620_v2, %v1620_v2  ;;  %v2455_v36 = vrot.slane %v1620_v2, 9  ;;  %v1577_v42 = vadd.f32 %v3344_v22, %v1562_v4 }
 0x14c   : > { %v1803_v32 = vrot.slane %v1747_v5, %v3356_v16  ;;  %v1901_v43 = vrot.slane %v1789_v55, %v3356_v16  ;;  %v1908_v27 = vrot.slane %v1796_v7, %v3356_v16  ;;  %v2000_v61 = vunpack.c.l.b16 %v1894_v9 }
 0x14d   : > { %v1629_v33 = vcombine.high %v1627_v51, %v1627_v51  ;;  %v2456_v26 = vrot.slane %v1628_v30, 9  ;;  %v2457_v49 = vrot.slane %v1627_v51, 9  ;;  %v1732_v41 = vmax.f32 %v1620_v2, %v2455_v36 }
 0x14e   : > { %v1915_v44 = vrot.slane %v1803_v32, %v3356_v16  ;;  %v2001_v54 = vunpack.c.l.b16 %v1901_v43  ;;  %v2002_v56 = vunpack.c.l.b16 %v1908_v27  ;;  %v1585_v46 = vmax.f32 %v1577_v42, 0.0 }
 0x14f   : > { %v2458_v47 = vrot.slane %v1629_v33, 9  ;;  %v1733_v29 = vmax.f32 %v1628_v30, %v2456_v26  ;;  %v1734_v10 = vmax.f32 %v1627_v51, %v2457_v49  ;;  %v1748_v52 = vpack.c.bf16 %v1732_v41, %v1732_v41  ;;  %v2618_v30 = vpop.f32.mrf.mxu0 }
 0x150   : > { %v2003_v34 = vunpack.c.l.b16 %v1915_v44  ;;  %v2016_v53 = vrot.slane %v2001_v54, 7  ;;  %v2019_v12 = vrot.slane %v2002_v56, 6  ;;  %v1590_v57 = vmax.f32 %v1584_v25, %v1585_v46 }
 0x151   : > { %v1735_v15 = vmax.f32 %v1629_v33, %v2458_v47  ;;  %v1749_v19 = vpack.c.bf16 %v1733_v29, %v1733_v29  ;;  %v1750_v31 = vpack.c.bf16 %v1734_v10, %v1734_v10  ;;  %v1810_v28 = vrot.slane %v1748_v52, %v3356_v16 }
 0x152   : > { %v2018_v39 = vsel %vm2017_vm0, %v2016_v53, %v2000_v61  ;;  %v2022_v6 = vrot.slane %v2003_v34, 5  ;;  %v1630_v45 = vcombine.high %v1590_v57, %v1590_v57  ;;  %v1637_v48 = vrot.slane %v1590_v57, %v3356_v16 }
 0x153   : > { %v2021_v50 = vsel %vm2020_vm1, %v2019_v12, %v2018_v39  ;;  %v1751_v0 = vpack.c.bf16 %v1735_v15, %v1735_v15  ;;  %v1817_v11 = vrot.slane %v1749_v19, %v3356_v16  ;;  %v1824_v13 = vrot.slane %v1750_v31, %v3356_v16 }
 0x154   : > { %v2024_v24 = vsel %vm2023_vm2, %v2022_v6, %v2021_v50  ;;  %v1922_v58 = vrot.slane %v1810_v28, %v3356_v16  ;;  %v1644_v23 = vrot.slane %v1630_v45, %v3356_v16  ;;  %v1645_v3 = vcombine.high %v1637_v48, %v1637_v48 }
 0x155   : > { %v2043_v59 = vpack.c.b16 %v2024_v24, %v2024_v24  ;;  %v1831_v60 = vrot.slane %v1751_v0, %v3356_v16  ;;  %v1929_v20 = vrot.slane %v1817_v11, %v3356_v16  ;;  %v1936_v62 = vrot.slane %v1824_v13, %v3356_v16 }
 0x156   : > { %v2004_v63 = vunpack.c.l.b16 %v1922_v58  ;;  %v1646_v21 = vcombine.high %v1644_v23, %v1644_v23  ;;  %v2459_v17 = vrot.slane %v1637_v48, 9  ;;  %v2460_v1 = vrot.slane %v1645_v3, 9 }
 0x157   : > { %2467 = vst.sshfl [vmem:[%s3401_s29] sm:$0x3 pattern:$0x76325410] %v2043_v59  ;;  %v1943_v2 = vrot.slane %v1831_v60, %v3356_v16  ;;  %v2005_v25 = vunpack.c.l.b16 %v1929_v20  ;;  %v2006_v4 = vunpack.c.l.b16 %v1936_v62  ;;  %v2461_v5 = vrot.slane %v1644_v23, 9 }
 0x158   : > { %v2462_v55 = vrot.slane %v1646_v21, 9  ;;  %v1736_v7 = vmax.f32 %v1637_v48, %v2459_v17  ;;  %v1737_v9 = vmax.f32 %v1645_v3, %v2460_v1  ;;  %v2616_v51 = vadd.f32 %v2615_v8, %v2614_v38 }
 0x159   : > { %v2007_v36 = vunpack.c.l.b16 %v1943_v2  ;;  %v2025_v42 = vrot.slane %v2005_v25, 7  ;;  %v2027_v32 = vrot.slane %v2006_v4, 6  ;;  %v1738_v43 = vmax.f32 %v1644_v23, %v2461_v5 }
 0x15a   : > { %v1739_v27 = vmax.f32 %v1646_v21, %v2462_v55  ;;  %v1752_v61 = vpack.c.bf16 %v1736_v7, %v1736_v7  ;;  %v1753_v33 = vpack.c.bf16 %v1737_v9, %v1737_v9  ;;  %v1551_v26 = vadd.f32 %v3348_v37, %v2616_v51 }
 0x15b   : > { %v2026_v49 = vsel %vm2017_vm0, %v2025_v42, %v2004_v63  ;;  %v2029_v41 = vrot.slane %v2007_v36, 5  ;;  %v1754_v44 = vpack.c.bf16 %v1738_v43, %v1738_v43  ;;  %v2619_v54 = vadd.f32 %v2618_v30, %v2617_v18 }
 0x15c   : > { %v2028_v56 = vsel %vm2020_vm1, %v2027_v32, %v2026_v49  ;;  %v1755_v46 = vpack.c.bf16 %v1739_v27, %v1739_v27  ;;  %v1838_v38 = vrot.slane %v1752_v61, %v3356_v16  ;;  %v1845_v47 = vrot.slane %v1753_v33, %v3356_v16 }
 0x15d   : > { %v2030_v29 = vsel %vm2023_vm2, %v2029_v41, %v2028_v56  ;;  %v1852_v10 = vrot.slane %v1754_v44, %v3356_v16  ;;  %v1563_v52 = vadd.f32 %v1551_v26, %v3373_v14  ;;  %v1554_v37 = vadd.f32 %v3364_v35, %v2619_v54 }
 0x15e   : > { %v2044_v34 = vpack.c.b16 %v2030_v29, %v2030_v29  ;;  %v1859_v53 = vrot.slane %v1755_v46, %v3356_v16  ;;  %v1950_v12 = vrot.slane %v1838_v38, %v3356_v16  ;;  %v1957_v57 = vrot.slane %v1845_v47, %v3356_v16 }
 0x15f   : > { %v1964_v8 = vrot.slane %v1852_v10, %v3356_v16  ;;  %v1578_v15 = vadd.f32 %v3344_v22, %v1563_v52  ;;  %v1564_v19 = vadd.f32 %v1554_v37, %v3377_v40 }
 0x160   : > { %2468 = vst.sshfl [vmem:[%s3401_s29 + $0x2] sm:$0x3 pattern:$0x76325410] %v2044_v34  ;;  %v1971_v31 = vrot.slane %v1859_v53, %v3356_v16  ;;  %v2009_v28 = vunpack.c.l.b16 %v1957_v57  ;;  %v2008_v39 = vunpack.c.l.b16 %v1950_v12 }
 0x161   : > { %v2010_v14 = vunpack.c.l.b16 %v1964_v8  ;;  %v1579_v35 = vadd.f32 %v3344_v22, %v1564_v19  ;;  %v1586_v50 = vmax.f32 %v1578_v15, 0.0 }
 0x162   : > { %v2011_v6 = vunpack.c.l.b16 %v1971_v31  ;;  %v2031_v45 = vrot.slane %v2009_v28, 7 }
 0x163   : > { %v2033_v48 = vrot.slane %v2010_v14, 6  ;;  %v1587_v0 = vmax.f32 %v1579_v35, 0.0 }
 0x164   : > { %v2032_v11 = vsel %vm2017_vm0, %v2031_v45, %v2008_v39  ;;  %v2035_v13 = vrot.slane %v2011_v6, 5 }
 0x165   : > { %v2034_v24 = vsel %vm2020_vm1, %v2033_v48, %v2032_v11  ;;  %v1591_v40 = vmax.f32 %v1586_v50, %v1587_v0 }
 0x166   : > { %v2036_v58 = vsel %vm2023_vm2, %v2035_v13, %v2034_v24 }
 0x167   : > { %v2045_v23 = vpack.c.b16 %v2036_v58, %v2036_v58  ;;  %v1647_v3 = vcombine.high %v1591_v40, %v1591_v40  ;;  %v1654_v18 = vrot.slane %v1591_v40, %v3356_v16 }
 0x169   : > { %2469 = vst.sshfl [vmem:[%s3401_s29 + $0x4] sm:$0x3 pattern:$0x76325410] %v2045_v23  ;;  %v1661_v22 = vrot.slane %v1647_v3, %v3356_v16  ;;  %v1662_v59 = vcombine.high %v1654_v18, %v1654_v18  ;;  %v2463_v60 = vrot.slane %v1654_v18, 9 }
 0x16b   : > { %v1663_v20 = vcombine.high %v1661_v22, %v1661_v22  ;;  %v2464_v62 = vrot.slane %v1662_v59, 9  ;;  %v2465_v63 = vrot.slane %v1661_v22, 9  ;;  %v1740_v21 = vmax.f32 %v1654_v18, %v2463_v60 }
 0x16d   : > { %v2466_v17 = vrot.slane %v1663_v20, 9  ;;  %v1741_v1 = vmax.f32 %v1662_v59, %v2464_v62  ;;  %v1742_v2 = vmax.f32 %v1661_v22, %v2465_v63  ;;  %v1756_v25 = vpack.c.bf16 %v1740_v21, %v1740_v21 }
 0x16f   : > { %v1743_v4 = vmax.f32 %v1663_v20, %v2466_v17  ;;  %v1757_v5 = vpack.c.bf16 %v1741_v1, %v1741_v1  ;;  %v1758_v55 = vpack.c.bf16 %v1742_v2, %v1742_v2  ;;  %v1866_v7 = vrot.slane %v1756_v25, %v3356_v16 }
 0x171   : > { %v1759_v9 = vpack.c.bf16 %v1743_v4, %v1743_v4  ;;  %v1873_v51 = vrot.slane %v1757_v5, %v3356_v16  ;;  %v1880_v30 = vrot.slane %v1758_v55, %v3356_v16  ;;  %v1978_v42 = vrot.slane %v1866_v7, %v3356_v16 }
 0x173   : > { %v1887_v36 = vrot.slane %v1759_v9, %v3356_v16  ;;  %v1985_v32 = vrot.slane %v1873_v51, %v3356_v16  ;;  %v1992_v43 = vrot.slane %v1880_v30, %v3356_v16  ;;  %v2012_v26 = vunpack.c.l.b16 %v1978_v42 }
 0x175   : > { %v1999_v27 = vrot.slane %v1887_v36, %v3356_v16  ;;  %v2013_v61 = vunpack.c.l.b16 %v1985_v32  ;;  %v2014_v33 = vunpack.c.l.b16 %v1992_v43 }
 0x177   : > { %v2015_v49 = vunpack.c.l.b16 %v1999_v27  ;;  %v2037_v41 = vrot.slane %v2013_v61, 7  ;;  %v2039_v44 = vrot.slane %v2014_v33, 6 }
 0x179   : > { %v2038_v54 = vsel %vm2017_vm0, %v2037_v41, %v2012_v26  ;;  %v2041_v56 = vrot.slane %v2015_v49, 5 }
 0x17a   : > { %v2040_v46 = vsel %vm2020_vm1, %v2039_v44, %v2038_v54 }
 0x17b   : > { %v2042_v38 = vsel %vm2023_vm2, %v2041_v56, %v2040_v46 }
 0x17c   : > { %v2046_v47 = vpack.c.b16 %v2042_v38, %v2042_v38 }
 0x17e   : > { %2470 = vst.sshfl [vmem:[%s3401_s29 + $0x6] sm:$0x3 pattern:$0x76325410] %v2046_v47 }
 0x17f PF: > { %s14_s17 = sadd.s32 1, %s2844_s17   ;;  %s3461_s15 = smov %s2840_s16 }
 0x180   : > { %p11_p5 = scmp.ge.s32.totalorder %s14_s17, 4   ;;  %s3462_s16 = smov %s3464_s18 }
 0x182   :  { %13 = sbr.rel (!%p11_p5) target bundleno = 2 (0x2), region = 77 }

// kernel: vgg19_slices_forward.9
= control target key start
LH: loop header
LB: loop body
LE: loop exit
PB: predicated region body
PF: predicated region fallthrough
CT: control target
= control target key end

     0   :  { %s2868_s15 = smov 0   ;;  %s2870_s16 = smov 0   ;;  %s3482_s0 = inlined_call_operand.vmem [shape: bf16[2,6,6,128], index: 0, kind: input, shape index: {}, may-alias: {0,1}]   ;;  %s3483_s1 = inlined_call_operand.vmem [shape: bf16[2,6,6,128], index: 1, kind: input, shape index: {}, may-alias: {0,1}]   ;;  %s3484_s2 = inlined_call_operand.vmem [shape: bf16[3,384,256], index: 2, kind: input, shape index: {}]   ;;  %s3485_s3 = inlined_call_operand.vmem [shape: f32[1,256], index: 3, kind: input, shape index: {}]   ;;  %s3486_s4 = inlined_call_operand.vmem [shape: bf16[2,4,4,256], index: 4, kind: output, shape index: {}]  }
   0x1   :  { %s2872_s17 = smov 0   ;;  %s2874_s18 = smov 0  }
   0x2   :  { %s2876_s19 = smov 0   ;;  %s2878_s20 = smov 0  }
   0x3   :  { %s2880_s21 = smov 0   ;;  %s2882_s22 = smov 0  }
   0x4   :  { %s2884_s23 = smov 0  }
   0x5 LB: > { %s2256_s24 = sadd.s32 4294967295, %s2838_s23   ;;  %s26_s25 = sadd.s32 1, %s2830_s21  ;;  %s2838_s23 = sphi %s2884_s23, %s14_s23   ;;  %s2834_s22 = sphi %s2882_s22, %s3495_s22   ;;  %s2830_s21 = sphi %s2880_s21, %s3494_s21   ;;  %s2826_s20 = sphi %s2878_s20, %s3493_s20   ;;  %s2822_s19 = sphi %s2876_s19, %s3492_s19   ;;  %s2818_s18 = sphi %s2874_s18, %s3491_s18   ;;  %s2814_s17 = sphi %s2872_s17, %s3490_s17   ;;  %s2810_s16 = sphi %s2870_s16, %s3489_s16   ;;  %s2806_s15 = sphi %s2868_s15, %s3488_s15  }
   0x6   : > { %p27_p0 = scmp.ge.s32.totalorder %s26_s25, 2  ;;  %s33_s26 = sadd.s32 1, %s2834_s22 }
   0x7   : > { %s100_s27 = sadd.s32 1, %s2818_s18  ;;  %p107_p1 = scmp.ne.s32.totalorder %s2818_s18, %s2814_s17 }
   0x8   : > { %s3497_s25 = smov (%p27_p0, %s26_s25), 0  ;;  %s3499_s26 = smov (!%p27_p0, %s33_s26), %s2834_s22 }
   0x9   : > { %s97_s28 = ssub.s32 %s2830_s21, %s3497_s25  ;;  %p108_p2 = scmp.eq.s32.totalorder %s2838_s23, 0 }
   0xa   : > { %p35_p3 = scmp.ge.s32.totalorder %s3499_s26, 2  ;;  %p98_p4 = scmp.eq.s32.totalorder %s97_s28, 0 }
   0xb   : > { %p109_p5 = por %p108_p2, %p107_p1  ;;  %s156_s29 = sadd.s32 1, %s2810_s16 }
   0xc   : > { %s3501_s26 = smov (%p35_p3, %s3499_s26), 0  ;;  %p166_p6 = scmp.ne.s32.totalorder %s2810_s16, %s2806_s15 }
   0xd   : > { %s2929_s30 = scalar_select %p98_p4, %s2818_s18, %s100_s27  }
   0xe   : > { %s149_s5 = ssub.s32 %s2834_s22, %s3501_s26  ;;  %p167_p7 = scmp.eq.s32.totalorder %s2256_s24, 3 }
   0xf   : > { %s153_s6 = sor.u32 %s149_s5, %s97_s28  ;;  %p2259_p10 = scmp.ge.s32.totalorder %s2838_s23, 4 }
  0x10   : > { %p154_p8 = scmp.eq.s32.totalorder %s153_s6, 0  ;;  %p2935_p9 = por %p167_p7, %p166_p6 }
  0x11   : > { %189 = sbr.rel (%p2259_p10) target bundleno = 122 (0x7a), region = 16 }
  0x12   : > { %s2940_s8 = scalar_select %p154_p8, %s2810_s16, %s156_s29  }
  0x16   : > { %230 = sbr.rel (!%p109_p5) target bundleno = 122 (0x7a), region = 28  ;;  %s232_s9 = sand.u32 (%p109_p5), 1, %s2818_s18  }
  0x17   : > { %s2260_s10 = sshll.u32 (%p109_p5), %s2830_s21, 2  ;;  %s2610_s11 = smul.u32 (%p109_p5), 576, %s232_s9 }
  0x18   : > { %s2948_s14 = scalar_lea.vmem (%p109_p5), %s3484_s2, %s2260_s10 }
  0x19   : > { %v253_v0 = vld [vmem:[%s2948_s14] sm:$0xf] (%p109_p5)  ;;  %v255_v1 = vld [vmem:[%s2948_s14 + $0x8] sm:$0xf] (%p109_p5)  ;;  %v257_v2 = vld [vmem:[%s2948_s14 + $0x10] sm:$0xf] (%p109_p5) }
  0x1a   : > { %v259_v3 = vld [vmem:[%s2948_s14 + $0x18] sm:$0xf] (%p109_p5)  ;;  %v261_v4 = vld [vmem:[%s2948_s14 + $0x20] sm:$0xf] (%p109_p5)  ;;  %s2955_s24 = scalar_lea.vmem (%p109_p5), [#allocation2], %s2610_s11 }
  0x1b   : > { %254 = vst [vmem:[%s2955_s24] sm:$0xf] %v253_v0  ;;  %256 = vst [vmem:[%s2955_s24 + $0x4] sm:$0xf] %v255_v1  ;;  %v263_v5 = vld [vmem:[%s2948_s14 + $0x28] sm:$0xf] }
  0x1c   : > { %258 = vst [vmem:[%s2955_s24 + $0x8] sm:$0xf] %v257_v2  ;;  %260 = vst [vmem:[%s2955_s24 + $0xc] sm:$0xf] %v259_v3  ;;  %v265_v6 = vld [vmem:[%s2948_s14 + $0x30] sm:$0xf] }
  0x1d   : > { %262 = vst [vmem:[%s2955_s24 + $0x10] sm:$0xf] %v261_v4  ;;  %v267_v7 = vld [vmem:[%s2948_s14 + $0x38] sm:$0xf]  ;;  %264 = vst [vmem:[%s2955_s24 + $0x14] sm:$0xf] %v263_v5 }
  0x1e   : > { %266 = vst [vmem:[%s2955_s24 + $0x18] sm:$0xf] %v265_v6  ;;  %268 = vst [vmem:[%s2955_s24 + $0x1c] sm:$0xf] %v267_v7  ;;  %v269_v8 = vld [vmem:[%s2948_s14 + $0x40] sm:$0xf] }
  0x1f   : > { %v271_v9 = vld [vmem:[%s2948_s14 + $0x48] sm:$0xf]  ;;  %v273_v10 = vld [vmem:[%s2948_s14 + $0x50] sm:$0xf]  ;;  %270 = vst [vmem:[%s2955_s24 + $0x20] sm:$0xf] %v269_v8 }
  0x20   : > { %272 = vst [vmem:[%s2955_s24 + $0x24] sm:$0xf] %v271_v9  ;;  %274 = vst [vmem:[%s2955_s24 + $0x28] sm:$0xf] %v273_v10  ;;  %v275_v11 = vld [vmem:[%s2948_s14 + $0x58] sm:$0xf] }
  0x21   : > { %v277_v12 = vld [vmem:[%s2948_s14 + $0x60] sm:$0xf]  ;;  %v279_v13 = vld [vmem:[%s2948_s14 + $0x68] sm:$0xf]  ;;  %276 = vst [vmem:[%s2955_s24 + $0x2c] sm:$0xf] %v275_v11 }
  0x22   : > { %278 = vst [vmem:[%s2955_s24 + $0x30] sm:$0xf] %v277_v12  ;;  %280 = vst [vmem:[%s2955_s24 + $0x34] sm:$0xf] %v279_v13  ;;  %v281_v14 = vld [vmem:[%s2948_s14 + $0x70] sm:$0xf] }
  0x23   : > { %v283_v15 = vld [vmem:[%s2948_s14 + $0x78] sm:$0xf]  ;;  %v285_v16 = vld [vmem:[%s2948_s14 + $0x80] sm:$0xf]  ;;  %282 = vst [vmem:[%s2955_s24 + $0x38] sm:$0xf] %v281_v14 }
  0x24   : > { %284 = vst [vmem:[%s2955_s24 + $0x3c] sm:$0xf] %v283_v15  ;;  %286 = vst [vmem:[%s2955_s24 + $0x40] sm:$0xf] %v285_v16  ;;  %v287_v17 = vld [vmem:[%s2948_s14 + $0x88] sm:$0xf] }
  0x25   : > { %v289_v18 = vld [vmem:[%s2948_s14 + $0x90] sm:$0xf]  ;;  %v291_v19 = vld [vmem:[%s2948_s14 + $0x98] sm:$0xf]  ;;  %288 = vst [vmem:[%s2955_s24 + $0x44] sm:$0xf] %v287_v17 }
  0x26   : > { %290 = vst [vmem:[%s2955_s24 + $0x48] sm:$0xf] %v289_v18  ;;  %292 = vst [vmem:[%s2955_s24 + $0x4c] sm:$0xf] %v291_v19  ;;  %v293_v20 = vld [vmem:[%s2948_s14 + $0xa0] sm:$0xf] }
  0x27   : > { %v295_v21 = vld [vmem:[%s2948_s14 + $0xa8] sm:$0xf]  ;;  %v297_v22 = vld [vmem:[%s2948_s14 + $0xb0] sm:$0xf]  ;;  %294 = vst [vmem:[%s2955_s24 + $0x50] sm:$0xf] %v293_v20 }
  0x28   : > { %296 = vst [vmem:[%s2955_s24 + $0x54] sm:$0xf] %v295_v21  ;;  %298 = vst [vmem:[%s2955_s24 + $0x58] sm:$0xf] %v297_v22  ;;  %v299_v23 = vld [vmem:[%s2948_s14 + $0xb8] sm:$0xf] }
  0x29   : > { %v301_v24 = vld [vmem:[%s2948_s14 + $0xc0] sm:$0xf]  ;;  %v303_v25 = vld [vmem:[%s2948_s14 + $0xc8] sm:$0xf]  ;;  %300 = vst [vmem:[%s2955_s24 + $0x5c] sm:$0xf] %v299_v23 }
  0x2a   : > { %302 = vst [vmem:[%s2955_s24 + $0x60] sm:$0xf] %v301_v24  ;;  %304 = vst [vmem:[%s2955_s24 + $0x64] sm:$0xf] %v303_v25  ;;  %v305_v26 = vld [vmem:[%s2948_s14 + $0xd0] sm:$0xf] }
  0x2b   : > { %v307_v27 = vld [vmem:[%s2948_s14 + $0xd8] sm:$0xf]  ;;  %v309_v28 = vld [vmem:[%s2948_s14 + $0xe0] sm:$0xf]  ;;  %306 = vst [vmem:[%s2955_s24 + $0x68] sm:$0xf] %v305_v26 }
  0x2c   : > { %308 = vst [vmem:[%s2955_s24 + $0x6c] sm:$0xf] %v307_v27  ;;  %310 = vst [vmem:[%s2955_s24 + $0x70] sm:$0xf] %v309_v28  ;;  %v311_v29 = vld [vmem:[%s2948_s14 + $0xe8] sm:$0xf] }
  0x2d   : > { %v313_v30 = vld [vmem:[%s2948_s14 + $0xf0] sm:$0xf]  ;;  %v315_v31 = vld [vmem:[%s2948_s14 + $0xf8] sm:$0xf]  ;;  %312 = vst [vmem:[%s2955_s24 + $0x74] sm:$0xf] %v311_v29 }
  0x2e   : > { %314 = vst [vmem:[%s2955_s24 + $0x78] sm:$0xf] %v313_v30  ;;  %316 = vst [vmem:[%s2955_s24 + $0x7c] sm:$0xf] %v315_v31  ;;  %v317_v32 = vld [vmem:[%s2948_s14 + $0x100] sm:$0xf] }
  0x2f   : > { %v319_v33 = vld [vmem:[%s2948_s14 + $0x108] sm:$0xf]  ;;  %v321_v34 = vld [vmem:[%s2948_s14 + $0x110] sm:$0xf]  ;;  %318 = vst [vmem:[%s2955_s24 + $0x80] sm:$0xf] %v317_v32 }
  0x30   : > { %320 = vst [vmem:[%s2955_s24 + $0x84] sm:$0xf] %v319_v33  ;;  %322 = vst [vmem:[%s2955_s24 + $0x88] sm:$0xf] %v321_v34  ;;  %v323_v35 = vld [vmem:[%s2948_s14 + $0x118] sm:$0xf] }
  0x31   : > { %v325_v36 = vld [vmem:[%s2948_s14 + $0x120] sm:$0xf]  ;;  %v327_v37 = vld [vmem:[%s2948_s14 + $0x128] sm:$0xf]  ;;  %324 = vst [vmem:[%s2955_s24 + $0x8c] sm:$0xf] %v323_v35 }
  0x32   : > { %326 = vst [vmem:[%s2955_s24 + $0x90] sm:$0xf] %v325_v36  ;;  %328 = vst [vmem:[%s2955_s24 + $0x94] sm:$0xf] %v327_v37  ;;  %v329_v38 = vld [vmem:[%s2948_s14 + $0x130] sm:$0xf] }
  0x33   : > { %v331_v39 = vld [vmem:[%s2948_s14 + $0x138] sm:$0xf]  ;;  %v333_v40 = vld [vmem:[%s2948_s14 + $0x140] sm:$0xf]  ;;  %330 = vst [vmem:[%s2955_s24 + $0x98] sm:$0xf] %v329_v38 }
  0x34   : > { %332 = vst [vmem:[%s2955_s24 + $0x9c] sm:$0xf] %v331_v39  ;;  %334 = vst [vmem:[%s2955_s24 + $0xa0] sm:$0xf] %v333_v40  ;;  %v335_v41 = vld [vmem:[%s2948_s14 + $0x148] sm:$0xf] }
  0x35   : > { %v337_v42 = vld [vmem:[%s2948_s14 + $0x150] sm:$0xf]  ;;  %v339_v43 = vld [vmem:[%s2948_s14 + $0x158] sm:$0xf]  ;;  %336 = vst [vmem:[%s2955_s24 + $0xa4] sm:$0xf] %v335_v41 }
  0x36   : > { %338 = vst [vmem:[%s2955_s24 + $0xa8] sm:$0xf] %v337_v42  ;;  %340 = vst [vmem:[%s2955_s24 + $0xac] sm:$0xf] %v339_v43  ;;  %v341_v44 = vld [vmem:[%s2948_s14 + $0x160] sm:$0xf] }
  0x37   : > { %v343_v45 = vld [vmem:[%s2948_s14 + $0x168] sm:$0xf]  ;;  %v345_v46 = vld [vmem:[%s2948_s14 + $0x170] sm:$0xf]  ;;  %342 = vst [vmem:[%s2955_s24 + $0xb0] sm:$0xf] %v341_v44 }
  0x38   : > { %344 = vst [vmem:[%s2955_s24 + $0xb4] sm:$0xf] %v343_v45  ;;  %346 = vst [vmem:[%s2955_s24 + $0xb8] sm:$0xf] %v345_v46  ;;  %v347_v47 = vld [vmem:[%s2948_s14 + $0x178] sm:$0xf] }
  0x39   : > { %v349_v48 = vld [vmem:[%s2948_s14 + $0x180] sm:$0xf]  ;;  %v351_v49 = vld [vmem:[%s2948_s14 + $0x188] sm:$0xf]  ;;  %348 = vst [vmem:[%s2955_s24 + $0xbc] sm:$0xf] %v347_v47 }
  0x3a   : > { %350 = vst [vmem:[%s2955_s24 + $0xc0] sm:$0xf] %v349_v48  ;;  %352 = vst [vmem:[%s2955_s24 + $0xc4] sm:$0xf] %v351_v49  ;;  %v353_v50 = vld [vmem:[%s2948_s14 + $0x190] sm:$0xf] }
  0x3b   : > { %v355_v51 = vld [vmem:[%s2948_s14 + $0x198] sm:$0xf]  ;;  %v357_v52 = vld [vmem:[%s2948_s14 + $0x1a0] sm:$0xf]  ;;  %354 = vst [vmem:[%s2955_s24 + $0xc8] sm:$0xf] %v353_v50 }
  0x3c   : > { %356 = vst [vmem:[%s2955_s24 + $0xcc] sm:$0xf] %v355_v51  ;;  %358 = vst [vmem:[%s2955_s24 + $0xd0] sm:$0xf] %v357_v52  ;;  %v359_v53 = vld [vmem:[%s2948_s14 + $0x1a8] sm:$0xf] }
  0x3d   : > { %v361_v54 = vld [vmem:[%s2948_s14 + $0x1b0] sm:$0xf]  ;;  %v363_v55 = vld [vmem:[%s2948_s14 + $0x1b8] sm:$0xf]  ;;  %360 = vst [vmem:[%s2955_s24 + $0xd4] sm:$0xf] %v359_v53 }
  0x3e   : > { %362 = vst [vmem:[%s2955_s24 + $0xd8] sm:$0xf] %v361_v54  ;;  %364 = vst [vmem:[%s2955_s24 + $0xdc] sm:$0xf] %v363_v55  ;;  %v365_v56 = vld [vmem:[%s2948_s14 + $0x1c0] sm:$0xf] }
  0x3f   : > { %v367_v57 = vld [vmem:[%s2948_s14 + $0x1c8] sm:$0xf]  ;;  %v369_v58 = vld [vmem:[%s2948_s14 + $0x1d0] sm:$0xf]  ;;  %366 = vst [vmem:[%s2955_s24 + $0xe0] sm:$0xf] %v365_v56 }
  0x40   : > { %368 = vst [vmem:[%s2955_s24 + $0xe4] sm:$0xf] %v367_v57  ;;  %370 = vst [vmem:[%s2955_s24 + $0xe8] sm:$0xf] %v369_v58  ;;  %v371_v59 = vld [vmem:[%s2948_s14 + $0x1d8] sm:$0xf] }
  0x41   : > { %v373_v60 = vld [vmem:[%s2948_s14 + $0x1e0] sm:$0xf]  ;;  %v375_v61 = vld [vmem:[%s2948_s14 + $0x1e8] sm:$0xf]  ;;  %372 = vst [vmem:[%s2955_s24 + $0xec] sm:$0xf] %v371_v59 }
  0x42   : > { %374 = vst [vmem:[%s2955_s24 + $0xf0] sm:$0xf] %v373_v60  ;;  %376 = vst [vmem:[%s2955_s24 + $0xf4] sm:$0xf] %v375_v61  ;;  %v377_v62 = vld [vmem:[%s2948_s14 + $0x1f0] sm:$0xf] }
  0x43   : > { %v379_v63 = vld [vmem:[%s2948_s14 + $0x1f8] sm:$0xf]  ;;  %v381_v0 = vld [vmem:[%s2948_s14 + $0x200] sm:$0xf]  ;;  %378 = vst [vmem:[%s2955_s24 + $0xf8] sm:$0xf] %v377_v62 }
  0x44   : > { %380 = vst [vmem:[%s2955_s24 + $0xfc] sm:$0xf] %v379_v63  ;;  %382 = vst [vmem:[%s2955_s24 + $0x100] sm:$0xf] %v381_v0  ;;  %v383_v1 = vld [vmem:[%s2948_s14 + $0x208] sm:$0xf] }
  0x45   : > { %v385_v2 = vld [vmem:[%s2948_s14 + $0x210] sm:$0xf]  ;;  %v387_v3 = vld [vmem:[%s2948_s14 + $0x218] sm:$0xf]  ;;  %384 = vst [vmem:[%s2955_s24 + $0x104] sm:$0xf] %v383_v1 }
  0x46   : > { %386 = vst [vmem:[%s2955_s24 + $0x108] sm:$0xf] %v385_v2  ;;  %388 = vst [vmem:[%s2955_s24 + $0x10c] sm:$0xf] %v387_v3  ;;  %v389_v4 = vld [vmem:[%s2948_s14 + $0x220] sm:$0xf] }
  0x47   : > { %v391_v5 = vld [vmem:[%s2948_s14 + $0x228] sm:$0xf]  ;;  %v393_v6 = vld [vmem:[%s2948_s14 + $0x230] sm:$0xf]  ;;  %390 = vst [vmem:[%s2955_s24 + $0x110] sm:$0xf] %v389_v4 }
  0x48   : > { %392 = vst [vmem:[%s2955_s24 + $0x114] sm:$0xf] %v391_v5  ;;  %394 = vst [vmem:[%s2955_s24 + $0x118] sm:$0xf] %v393_v6  ;;  %v395_v7 = vld [vmem:[%s2948_s14 + $0x238] sm:$0xf] }
  0x49   : > { %v397_v8 = vld [vmem:[%s2948_s14 + $0x240] sm:$0xf]  ;;  %v399_v9 = vld [vmem:[%s2948_s14 + $0x248] sm:$0xf]  ;;  %396 = vst [vmem:[%s2955_s24 + $0x11c] sm:$0xf] %v395_v7 }
  0x4a   : > { %398 = vst [vmem:[%s2955_s24 + $0x120] sm:$0xf] %v397_v8  ;;  %400 = vst [vmem:[%s2955_s24 + $0x124] sm:$0xf] %v399_v9  ;;  %v401_v10 = vld [vmem:[%s2948_s14 + $0x250] sm:$0xf] }
  0x4b   : > { %v403_v11 = vld [vmem:[%s2948_s14 + $0x258] sm:$0xf]  ;;  %v405_v12 = vld [vmem:[%s2948_s14 + $0x260] sm:$0xf]  ;;  %402 = vst [vmem:[%s2955_s24 + $0x128] sm:$0xf] %v401_v10 }
  0x4c   : > { %404 = vst [vmem:[%s2955_s24 + $0x12c] sm:$0xf] %v403_v11  ;;  %406 = vst [vmem:[%s2955_s24 + $0x130] sm:$0xf] %v405_v12  ;;  %v407_v13 = vld [vmem:[%s2948_s14 + $0x268] sm:$0xf] }
  0x4d   : > { %v409_v14 = vld [vmem:[%s2948_s14 + $0x270] sm:$0xf]  ;;  %v411_v15 = vld [vmem:[%s2948_s14 + $0x278] sm:$0xf]  ;;  %408 = vst [vmem:[%s2955_s24 + $0x134] sm:$0xf] %v407_v13 }
  0x4e   : > { %410 = vst [vmem:[%s2955_s24 + $0x138] sm:$0xf] %v409_v14  ;;  %412 = vst [vmem:[%s2955_s24 + $0x13c] sm:$0xf] %v411_v15  ;;  %v413_v16 = vld [vmem:[%s2948_s14 + $0x280] sm:$0xf] }
  0x4f   : > { %v415_v17 = vld [vmem:[%s2948_s14 + $0x288] sm:$0xf]  ;;  %v417_v18 = vld [vmem:[%s2948_s14 + $0x290] sm:$0xf]  ;;  %414 = vst [vmem:[%s2955_s24 + $0x140] sm:$0xf] %v413_v16 }
  0x50   : > { %416 = vst [vmem:[%s2955_s24 + $0x144] sm:$0xf] %v415_v17  ;;  %418 = vst [vmem:[%s2955_s24 + $0x148] sm:$0xf] %v417_v18  ;;  %v419_v19 = vld [vmem:[%s2948_s14 + $0x298] sm:$0xf] }
  0x51   : > { %v421_v20 = vld [vmem:[%s2948_s14 + $0x2a0] sm:$0xf]  ;;  %v423_v21 = vld [vmem:[%s2948_s14 + $0x2a8] sm:$0xf]  ;;  %420 = vst [vmem:[%s2955_s24 + $0x14c] sm:$0xf] %v419_v19 }
  0x52   : > { %422 = vst [vmem:[%s2955_s24 + $0x150] sm:$0xf] %v421_v20  ;;  %424 = vst [vmem:[%s2955_s24 + $0x154] sm:$0xf] %v423_v21  ;;  %v425_v22 = vld [vmem:[%s2948_s14 + $0x2b0] sm:$0xf] }
  0x53   : > { %v427_v23 = vld [vmem:[%s2948_s14 + $0x2b8] sm:$0xf]  ;;  %v429_v24 = vld [vmem:[%s2948_s14 + $0x2c0] sm:$0xf]  ;;  %426 = vst [vmem:[%s2955_s24 + $0x158] sm:$0xf] %v425_v22 }
  0x54   : > { %428 = vst [vmem:[%s2955_s24 + $0x15c] sm:$0xf] %v427_v23  ;;  %430 = vst [vmem:[%s2955_s24 + $0x160] sm:$0xf] %v429_v24  ;;  %v431_v25 = vld [vmem:[%s2948_s14 + $0x2c8] sm:$0xf] }
  0x55   : > { %v433_v26 = vld [vmem:[%s2948_s14 + $0x2d0] sm:$0xf]  ;;  %v435_v27 = vld [vmem:[%s2948_s14 + $0x2d8] sm:$0xf]  ;;  %432 = vst [vmem:[%s2955_s24 + $0x164] sm:$0xf] %v431_v25 }
  0x56   : > { %434 = vst [vmem:[%s2955_s24 + $0x168] sm:$0xf] %v433_v26  ;;  %436 = vst [vmem:[%s2955_s24 + $0x16c] sm:$0xf] %v435_v27  ;;  %v437_v28 = vld [vmem:[%s2948_s14 + $0x2e0] sm:$0xf] }
  0x57   : > { %v439_v29 = vld [vmem:[%s2948_s14 + $0x2e8] sm:$0xf]  ;;  %v441_v30 = vld [vmem:[%s2948_s14 + $0x2f0] sm:$0xf]  ;;  %438 = vst [vmem:[%s2955_s24 + $0x170] sm:$0xf] %v437_v28 }
  0x58   : > { %440 = vst [vmem:[%s2955_s24 + $0x174] sm:$0xf] %v439_v29  ;;  %442 = vst [vmem:[%s2955_s24 + $0x178] sm:$0xf] %v441_v30  ;;  %v443_v31 = vld [vmem:[%s2948_s14 + $0x2f8] sm:$0xf] }
  0x59   : > { %v445_v32 = vld [vmem:[%s2948_s14 + $0x300] sm:$0xf]  ;;  %v447_v33 = vld [vmem:[%s2948_s14 + $0x308] sm:$0xf]  ;;  %444 = vst [vmem:[%s2955_s24 + $0x17c] sm:$0xf] %v443_v31 }
  0x5a   : > { %446 = vst [vmem:[%s2955_s24 + $0x180] sm:$0xf] %v445_v32  ;;  %448 = vst [vmem:[%s2955_s24 + $0x184] sm:$0xf] %v447_v33  ;;  %v449_v34 = vld [vmem:[%s2948_s14 + $0x310] sm:$0xf] }
  0x5b   : > { %v451_v35 = vld [vmem:[%s2948_s14 + $0x318] sm:$0xf]  ;;  %v453_v36 = vld [vmem:[%s2948_s14 + $0x320] sm:$0xf]  ;;  %450 = vst [vmem:[%s2955_s24 + $0x188] sm:$0xf] %v449_v34 }
  0x5c   : > { %452 = vst [vmem:[%s2955_s24 + $0x18c] sm:$0xf] %v451_v35  ;;  %454 = vst [vmem:[%s2955_s24 + $0x190] sm:$0xf] %v453_v36  ;;  %v455_v37 = vld [vmem:[%s2948_s14 + $0x328] sm:$0xf] }
  0x5d   : > { %v457_v38 = vld [vmem:[%s2948_s14 + $0x330] sm:$0xf]  ;;  %v459_v39 = vld [vmem:[%s2948_s14 + $0x338] sm:$0xf]  ;;  %456 = vst [vmem:[%s2955_s24 + $0x194] sm:$0xf] %v455_v37 }
  0x5e   : > { %458 = vst [vmem:[%s2955_s24 + $0x198] sm:$0xf] %v457_v38  ;;  %460 = vst [vmem:[%s2955_s24 + $0x19c] sm:$0xf] %v459_v39  ;;  %v461_v40 = vld [vmem:[%s2948_s14 + $0x340] sm:$0xf] }
  0x5f   : > { %v463_v41 = vld [vmem:[%s2948_s14 + $0x348] sm:$0xf]  ;;  %v465_v42 = vld [vmem:[%s2948_s14 + $0x350] sm:$0xf]  ;;  %462 = vst [vmem:[%s2955_s24 + $0x1a0] sm:$0xf] %v461_v40 }
  0x60   : > { %464 = vst [vmem:[%s2955_s24 + $0x1a4] sm:$0xf] %v463_v41  ;;  %466 = vst [vmem:[%s2955_s24 + $0x1a8] sm:$0xf] %v465_v42  ;;  %v467_v43 = vld [vmem:[%s2948_s14 + $0x358] sm:$0xf] }
  0x61   : > { %v469_v44 = vld [vmem:[%s2948_s14 + $0x360] sm:$0xf]  ;;  %v471_v45 = vld [vmem:[%s2948_s14 + $0x368] sm:$0xf]  ;;  %468 = vst [vmem:[%s2955_s24 + $0x1ac] sm:$0xf] %v467_v43 }
  0x62   : > { %470 = vst [vmem:[%s2955_s24 + $0x1b0] sm:$0xf] %v469_v44  ;;  %472 = vst [vmem:[%s2955_s24 + $0x1b4] sm:$0xf] %v471_v45  ;;  %v473_v46 = vld [vmem:[%s2948_s14 + $0x370] sm:$0xf] }
  0x63   : > { %v475_v47 = vld [vmem:[%s2948_s14 + $0x378] sm:$0xf]  ;;  %v477_v48 = vld [vmem:[%s2948_s14 + $0x380] sm:$0xf]  ;;  %474 = vst [vmem:[%s2955_s24 + $0x1b8] sm:$0xf] %v473_v46 }
  0x64   : > { %476 = vst [vmem:[%s2955_s24 + $0x1bc] sm:$0xf] %v475_v47  ;;  %478 = vst [vmem:[%s2955_s24 + $0x1c0] sm:$0xf] %v477_v48  ;;  %v479_v49 = vld [vmem:[%s2948_s14 + $0x388] sm:$0xf] }
  0x65   : > { %v481_v50 = vld [vmem:[%s2948_s14 + $0x390] sm:$0xf]  ;;  %v483_v51 = vld [vmem:[%s2948_s14 + $0x398] sm:$0xf]  ;;  %480 = vst [vmem:[%s2955_s24 + $0x1c4] sm:$0xf] %v479_v49 }
  0x66   : > { %482 = vst [vmem:[%s2955_s24 + $0x1c8] sm:$0xf] %v481_v50  ;;  %484 = vst [vmem:[%s2955_s24 + $0x1cc] sm:$0xf] %v483_v51  ;;  %v485_v52 = vld [vmem:[%s2948_s14 + $0x3a0] sm:$0xf] }
  0x67   : > { %v487_v53 = vld [vmem:[%s2948_s14 + $0x3a8] sm:$0xf]  ;;  %v489_v54 = vld [vmem:[%s2948_s14 + $0x3b0] sm:$0xf]  ;;  %486 = vst [vmem:[%s2955_s24 + $0x1d0] sm:$0xf] %v485_v52 }
  0x68   : > { %488 = vst [vmem:[%s2955_s24 + $0x1d4] sm:$0xf] %v487_v53  ;;  %490 = vst [vmem:[%s2955_s24 + $0x1d8] sm:$0xf] %v489_v54  ;;  %v491_v55 = vld [vmem:[%s2948_s14 + $0x3b8] sm:$0xf] }
  0x69   : > { %v493_v56 = vld [vmem:[%s2948_s14 + $0x3c0] sm:$0xf]  ;;  %v495_v57 = vld [vmem:[%s2948_s14 + $0x3c8] sm:$0xf]  ;;  %492 = vst [vmem:[%s2955_s24 + $0x1dc] sm:$0xf] %v491_v55 }
  0x6a   : > { %494 = vst [vmem:[%s2955_s24 + $0x1e0] sm:$0xf] %v493_v56  ;;  %496 = vst [vmem:[%s2955_s24 + $0x1e4] sm:$0xf] %v495_v57  ;;  %v497_v58 = vld [vmem:[%s2948_s14 + $0x3d0] sm:$0xf] }
  0x6b   : > { %v499_v59 = vld [vmem:[%s2948_s14 + $0x3d8] sm:$0xf]  ;;  %v501_v60 = vld [vmem:[%s2948_s14 + $0x3e0] sm:$0xf]  ;;  %498 = vst [vmem:[%s2955_s24 + $0x1e8] sm:$0xf] %v497_v58 }
  0x6c   : > { %500 = vst [vmem:[%s2955_s24 + $0x1ec] sm:$0xf] %v499_v59  ;;  %502 = vst [vmem:[%s2955_s24 + $0x1f0] sm:$0xf] %v501_v60  ;;  %v503_v61 = vld [vmem:[%s2948_s14 + $0x3e8] sm:$0xf] }
  0x6d   : > { %v505_v62 = vld [vmem:[%s2948_s14 + $0x3f0] sm:$0xf]  ;;  %v507_v63 = vld [vmem:[%s2948_s14 + $0x3f8] sm:$0xf]  ;;  %504 = vst [vmem:[%s2955_s24 + $0x1f4] sm:$0xf] %v503_v61 }
  0x6e   : > { %506 = vst [vmem:[%s2955_s24 + $0x1f8] sm:$0xf] %v505_v62  ;;  %508 = vst [vmem:[%s2955_s24 + $0x1fc] sm:$0xf] %v507_v63  ;;  %v509_v0 = vld [vmem:[%s2948_s14 + $0x400] sm:$0xf] }
  0x6f   : > { %v511_v1 = vld [vmem:[%s2948_s14 + $0x408] sm:$0xf]  ;;  %v513_v2 = vld [vmem:[%s2948_s14 + $0x410] sm:$0xf]  ;;  %510 = vst [vmem:[%s2955_s24 + $0x200] sm:$0xf] %v509_v0 }
  0x70   : > { %512 = vst [vmem:[%s2955_s24 + $0x204] sm:$0xf] %v511_v1  ;;  %514 = vst [vmem:[%s2955_s24 + $0x208] sm:$0xf] %v513_v2  ;;  %v515_v3 = vld [vmem:[%s2948_s14 + $0x418] sm:$0xf] }
  0x71   : > { %v517_v4 = vld [vmem:[%s2948_s14 + $0x420] sm:$0xf]  ;;  %v519_v5 = vld [vmem:[%s2948_s14 + $0x428] sm:$0xf]  ;;  %516 = vst [vmem:[%s2955_s24 + $0x20c] sm:$0xf] %v515_v3 }
  0x72   : > { %518 = vst [vmem:[%s2955_s24 + $0x210] sm:$0xf] %v517_v4  ;;  %520 = vst [vmem:[%s2955_s24 + $0x214] sm:$0xf] %v519_v5  ;;  %v521_v6 = vld [vmem:[%s2948_s14 + $0x430] sm:$0xf] }
  0x73   : > { %v523_v7 = vld [vmem:[%s2948_s14 + $0x438] sm:$0xf]  ;;  %v525_v8 = vld [vmem:[%s2948_s14 + $0x440] sm:$0xf]  ;;  %522 = vst [vmem:[%s2955_s24 + $0x218] sm:$0xf] %v521_v6 }
  0x74   : > { %524 = vst [vmem:[%s2955_s24 + $0x21c] sm:$0xf] %v523_v7  ;;  %526 = vst [vmem:[%s2955_s24 + $0x220] sm:$0xf] %v525_v8  ;;  %v527_v9 = vld [vmem:[%s2948_s14 + $0x448] sm:$0xf] }
  0x75   : > { %v529_v10 = vld [vmem:[%s2948_s14 + $0x450] sm:$0xf]  ;;  %v531_v11 = vld [vmem:[%s2948_s14 + $0x458] sm:$0xf]  ;;  %528 = vst [vmem:[%s2955_s24 + $0x224] sm:$0xf] %v527_v9 }
  0x76   : > { %530 = vst [vmem:[%s2955_s24 + $0x228] sm:$0xf] %v529_v10  ;;  %532 = vst [vmem:[%s2955_s24 + $0x22c] sm:$0xf] %v531_v11  ;;  %v533_v12 = vld [vmem:[%s2948_s14 + $0x460] sm:$0xf] }
  0x77   : > { %v535_v13 = vld [vmem:[%s2948_s14 + $0x468] sm:$0xf]  ;;  %v537_v14 = vld [vmem:[%s2948_s14 + $0x470] sm:$0xf]  ;;  %534 = vst [vmem:[%s2955_s24 + $0x230] sm:$0xf] %v533_v12 }
  0x78   : > { %536 = vst [vmem:[%s2955_s24 + $0x234] sm:$0xf] %v535_v13  ;;  %538 = vst [vmem:[%s2955_s24 + $0x238] sm:$0xf] %v537_v14  ;;  %v539_v15 = vld [vmem:[%s2948_s14 + $0x478] sm:$0xf] }
  0x79   : > { %540 = vst [vmem:[%s2955_s24 + $0x23c] sm:$0xf] %v539_v15 }
  0x7a PF: > { %p2261_p11 = scmp.ge.s32.totalorder %s2838_s23, 1  ;;  %p857_p12 = scmp.lt.s32.totalorder %s2838_s23, 5 }
  0x7c   : > { %p858_p13 = pnand %p2261_p11, %p857_p12 }
  0x7d   : > { %s864_s27 = sand.u32 (!%p858_p13), 1, %s2814_s17   ;;  %p920_p0 = scmp.lt.s32.totalorder (!%p858_p13), %s2826_s20, 1 }
  0x7e   : > { %861 = sbr.rel (%p858_p13) target bundleno = 452 (0x1c4), region = 73  ;;  %p947_p1 = scmp.lt.s32.totalorder (!%p858_p13), %s2822_s19, 1 }
  0x7f   : > { %s2611_s28 = smul.u32 (!%p858_p13), 576, %s864_s27 }
  0x81   : > { %s3250_s5 = scalar_lea.vmem (!%p858_p13), [#allocation2], %s2611_s28 }
  0x83   : > { %v2840_v16 = vmov 0.0   ;;  %vm2841_vm0 = vmmov 0   ;;  %s3248_s29 = scalar_select %p920_p0, %s2826_s20, 1  ;;  %v2690_v17 = vld [vmem:[%s3250_s5 + $0x138] sm:$0xff]   ;;  %v2693_v20 = vld [vmem:[%s3250_s5 + $0x130] sm:$0xff]   ;;  %v2696_v23 = vld [vmem:[%s3250_s5 + $0x128] sm:$0xff]   ;;  %v1006_v35 = vlaneseq }
  0x84   : > { %2550 = vmatprep.subr.bf16.mxu1 %v2840_v16  ;;  %2566 = vmatprep.mubr.msk.bf16.mxu1 %vm2841_vm0, %v2840_v16  ;;  %v2691_v18 = vld [vmem:[%s3250_s5 + $0x178] sm:$0xff]   ;;  %v2694_v21 = vld [vmem:[%s3250_s5 + $0x170] sm:$0xff]   ;;  %v2697_v24 = vld [vmem:[%s3250_s5 + $0x168] sm:$0xff]   ;;  %v2842_v33 = vmov 1983009808   ;;  %s948_s24 = scalar_select %p947_p1, %s2822_s19, 1 }
  0x85   : > { %2457 = vmatprep.subr.bf16.mxu0 %v2690_v17  ;;  %v2692_v19 = vld [vmem:[%s3250_s5 + $0xf8] sm:$0xff]   ;;  %2551 = vmatpush3.bf16.msra.mxu1 %v2691_v18  ;;  %v2695_v22 = vld [vmem:[%s3250_s5 + $0xf0] sm:$0xff]   ;;  %v2698_v25 = vld [vmem:[%s3250_s5 + $0xe8] sm:$0xff]   ;;  %s2612_s17 = smul.u32 24, %s3248_s29  ;;  %v1004_v34 = vunpack.c.l.s4 %v2842_v33  ;;  %v1007_v41 = vshrl.u32 %v1006_v35, 7 }
  0x86   : > { %2458 = vmatpush3.bf16.msra.mxu0 %v2692_v19  ;;  %2552 = vmatprep.subr.bf16.mxu1 %v2840_v16  ;;  %v2699_v26 = vld [vmem:[%s3250_s5 + $0x120] sm:$0xff]   ;;  %v2702_v29 = vld [vmem:[%s3250_s5 + $0x118] sm:$0xff]   ;;  %v2705_v32 = vld [vmem:[%s3250_s5 + $0x110] sm:$0xff]   ;;  %s949_s29 = scalar_lea.vmem %s3485_s3, %s948_s24 }
  0x87   : > { %2459 = vmatprep.subr.bf16.mxu0 %v2693_v20  ;;  %v2700_v27 = vld [vmem:[%s3250_s5 + $0x160] sm:$0xff]   ;;  %v2703_v30 = vld [vmem:[%s3250_s5 + $0x158] sm:$0xff]   ;;  %v2706_v36 = vld [vmem:[%s3250_s5 + $0x150] sm:$0xff]   ;;  %s2456_s6 = sadd.s32 16, %s2612_s17  ;;  %s3280_s11 = scalar_lea.vmem %s3482_s0, %s2612_s17  ;;  %v1005_v40 = vunpack.c.0.s8 %v1004_v34 }
  0x88   : > { %v2701_v28 = vld [vmem:[%s3250_s5 + $0xe0] sm:$0xff]   ;;  %v2704_v31 = vld [vmem:[%s3250_s5 + $0xd8] sm:$0xff]   ;;  %v2707_v37 = vld [vmem:[%s3250_s5 + $0xd0] sm:$0xff]   ;;  %s3286_s14 = scalar_lea.vmem %s3483_s1, %s2456_s6 }
  0x89   : > { %2553 = vmatpush3.bf16.msra.mxu1 %v2694_v21  ;;  %v2708_v38 = vld [vmem:[%s3250_s5 + $0x108] sm:$0xff]   ;;  %v953_v43 = vld [vmem:[%s3280_s11 + $0x4] sm:$0x7]  ;;  %v956_v47 = vld [vmem:[%s3286_s14] sm:$0x7]  ;;  %v3296_v52 = vsub.s32 %v1005_v40, %v1007_v41 }
  0x8a   : > { %2460 = vmatpush3.bf16.msra.mxu0 %v2695_v22  ;;  %2554 = vmatprep.subr.bf16.mxu1 %v2840_v16  ;;  %v2709_v39 = vld [vmem:[%s3250_s5 + $0x148] sm:$0xff]   ;;  %v2711_v46 = vld [vmem:[%s3250_s5 + $0x100] sm:$0xff]   ;;  %v2266_v48 = vcombine.low %v953_v43, %v953_v43  ;;  %v2269_v53 = vcombine.low %v956_v47, %v956_v47  ;;  %v2719_v63 = vld [vmem:[%s3250_s5 + $0x78] sm:$0xff]  }
  0x8b   : > { %2461 = vmatprep.subr.bf16.mxu0 %v2696_v23  ;;  %v2710_v42 = vld [vmem:[%s3250_s5 + $0xc8] sm:$0xff]   ;;  %v2712_v51 = vld [vmem:[%s3250_s5 + $0x140] sm:$0xff]  }
  0x8c   : > { %v954_v44 = vld [vmem:[%s3280_s11 + $0x8] sm:$0x7]  ;;  %v955_v45 = vld [vmem:[%s3280_s11 + $0xc] sm:$0x7]  ;;  %v978_v54 = vshrl.u32 %v2266_v48, 16  ;;  %v980_v55 = vshll.u32 %v2266_v48, 16 }
  0x8d   : > { %2555 = vmatpush3.bf16.msra.mxu1 %v2697_v24  ;;  %v2267_v49 = vcombine.low %v954_v44, %v954_v44  ;;  %v2268_v50 = vcombine.low %v955_v45, %v955_v45  ;;  %v2713_v58 = vld [vmem:[%s3250_s5 + $0xc0] sm:$0xff]   ;;  %v1118_v61 = vshrl.u32 %v2269_v53, 16  ;;  %v1120_v62 = vshll.u32 %v2269_v53, 16 }
  0x8e   : > { %2462 = vmatpush3.bf16.msra.mxu0 %v2698_v25  ;;  %2556 = vmatprep.subr.bf16.mxu1 %v2840_v16  ;;  %v982_v0 = vrot.slane %v980_v55, 1  ;;  %v999_v2 = vrot.slane %v2266_v48, 1  ;;  %v1124_v7 = vrot.slane %v2269_v53, 1  ;;  %v3312_v17 = vld [vmem:[%s3286_s14 + $0x4] sm:$0x7]  ;;  %v2725_v48 = vld [vmem:[%s3250_s5 + $0x68] sm:$0xff]  }
  0x8f   : > { %2463 = vmatprep.subr.bf16.mxu0 %v2699_v26  ;;  %v985_v56 = vshrl.u32 %v2267_v49, 16  ;;  %v987_v57 = vshll.u32 %v2267_v49, 16  ;;  %v992_v59 = vshrl.u32 %v2268_v50, 16  ;;  %v994_v60 = vshll.u32 %v2268_v50, 16 }
  0x90   : > { %v1000_v3 = vrot.slane %v2267_v49, 1  ;;  %v1122_v5 = vrot.slane %v1120_v62, 1  ;;  %v1001_v6 = vrot.slane %v2268_v50, 1  ;;  %v983_v8 = vor.u32 %v982_v0, %v978_v54  ;;  %v2729_v50 = vld [vmem:[%s3250_s5 + $0xa0] sm:$0xff]  }
  0x91   : > { %2557 = vmatpush3.bf16.msra.mxu1 %v2700_v27  ;;  %v989_v1 = vrot.slane %v987_v57, 1  ;;  %v996_v4 = vrot.slane %v994_v60, 1  ;;  %v3302_v10 = vrot.slane %v999_v2, %v3296_v52  ;;  %v1139_v15 = vrot.slane %v1124_v7, %v3296_v52  ;;  %v2728_v54 = vld [vmem:[%s3250_s5 + $0x60] sm:$0xff]   ;;  %v2732_v57 = vld [vmem:[%s3250_s5 + $0x98] sm:$0xff]  }
  0x92   : > { %2464 = vmatpush3.bf16.msra.mxu0 %v2701_v28  ;;  %2558 = vmatprep.subr.bf16.mxu1 %v2840_v16  ;;  %v3305_v11 = vrot.slane %v1000_v3, %v3296_v52  ;;  %v1123_v13 = vor.u32 %v1122_v5, %v1118_v61  ;;  %v3308_v14 = vrot.slane %v1001_v6, %v3296_v52  ;;  %v2731_v60 = vld [vmem:[%s3250_s5 + $0x58] sm:$0xff]   ;;  %v2734_v5 = vld [vmem:[%s3250_s5 + $0x50] sm:$0xff]  }
  0x93   : > { %2465 = vmatprep.subr.bf16.mxu0 %v2702_v29  ;;  %v990_v9 = vor.u32 %v989_v1, %v985_v56  ;;  %v997_v12 = vor.u32 %v996_v4, %v992_v59  ;;  %v1018_v18 = vcombine.low %v953_v43, %v983_v8  ;;  %v2374_v29 = vcombine.low %v3312_v17, %v3312_v17  ;;  %v952_v56 = vld [vmem:[%s3280_s11] sm:$0x7]  ;;  %v2735_v1 = vld [vmem:[%s3250_s5 + $0x90] sm:$0xff]   ;;  %v2733_v4 = vld [vmem:[%s3250_s5 + $0x18] sm:$0xff]  }
  0x94   : > { %v2319_v20 = vcombine.low %v3302_v10, %v3305_v11  ;;  %v1125_v22 = vcombine.low %v956_v47, %v1123_v13  ;;  %v2321_v23 = vcombine.low %v3308_v14, %v1139_v15  ;;  %v2724_v47 = vld [vmem:[%s3250_s5 + $0x30] sm:$0xff]   ;;  %v2730_v59 = vld [vmem:[%s3250_s5 + $0x20] sm:$0xff]   ;;  %v2738_v13 = vld [vmem:[%s3250_s5 + $0x88] sm:$0xff]  }
  0x95   : > { %2559 = vmatpush3.bf16.msra.mxu1 %v2703_v30  ;;  %v1034_v19 = vcombine.low %v954_v44, %v990_v9  ;;  %v1050_v21 = vcombine.low %v955_v45, %v997_v12  ;;  %v3319_v24 = vrot.slane %v1018_v18, %v3296_v52  ;;  %v1728_v35 = vrot.slane %v2374_v29, 1  ;;  %v2722_v44 = vld [vmem:[%s3250_s5 + $0x70] sm:$0xff]  }
  0x96   : > { %2466 = vmatpush3.bf16.msra.mxu0 %v2704_v31  ;;  %2560 = vmatprep.subr.bf16.mxu1 %v2840_v16  ;;  %v1207_v26 = vrot.slane %v2319_v20, %v3296_v52  ;;  %v3329_v28 = vrot.slane %v1125_v22, %v3296_v52  ;;  %v1221_v30 = vrot.slane %v2321_v23, %v3296_v52  ;;  %v1724_v49 = vshll.u32 %v2374_v29, 16  ;;  %v2736_v18 = vld [vmem:[%s3250_s5 + $0x10] sm:$0xff]   ;;  %v2739_v23 = vld [vmem:[%s3250_s5 + $0x8] sm:$0xff]  }
  0x97   : > { %2467 = vmatprep.subr.bf16.mxu0 %v2705_v32  ;;  %v3322_v25 = vrot.slane %v1034_v19, %v3296_v52  ;;  %v3326_v27 = vrot.slane %v1050_v21, %v3296_v52  ;;  %v2720_v32 = vld [vmem:[%s3250_s5 + $0xb8] sm:$0xff]   ;;  %v1722_v53 = vshrl.u32 %v2374_v29, 16  ;;  %v2349_v9 = vcombine.low %v3305_v11, %v3308_v14  ;;  %v2741_v21 = vld [vmem:[%s3250_s5 + $0x80] sm:$0xff]  }
  0x98   : > { %v1224_v34 = vcombine.low %v1207_v26, %v1221_v30  ;;  %v1726_v55 = vrot.slane %v1724_v49, 1  ;;  %v2759_v49 = vld [vmem:[%s3250_s5 + $0x1d0] sm:$0xff]  }
  0x99   : > { %2561 = vmatpush3.bf16.msra.mxu1 %v2706_v36  ;;  %v2318_v31 = vcombine.low %v3319_v24, %v3322_v25  ;;  %v2320_v33 = vcombine.low %v3326_v27, %v3329_v28  ;;  %v2348_v12 = vcombine.low %v3322_v25, %v3326_v27  ;;  %v3383_v14 = vrot.slane %v2349_v9, %v3296_v52  ;;  %v2740_v25 = vld [vmem:[%s3250_s5 + $0x40] sm:$0xff]  }
  0x9a   : > { %2468 = vmatpush3.bf16.msra.mxu0 %v2707_v37  ;;  %2562 = vmatprep.subr.bf16.mxu1 %v2840_v16  ;;  %v1727_v0 = vor.u32 %v1726_v55, %v1722_v53  ;;  %v2762_v53 = vld [vmem:[%s3250_s5 + $0x1c8] sm:$0xff]  }
  0x9b   : > { %2469 = vmatprep.subr.bf16.mxu0 %v2708_v38  ;;  %v1200_v36 = vrot.slane %v2318_v31, %v3296_v52  ;;  %v1214_v37 = vrot.slane %v2320_v33, %v3296_v52  ;;  %v1743_v38 = vrot.slane %v1728_v35, %v3296_v52  ;;  %v3386_v20 = vrot.slane %v2348_v12, %v3296_v52  ;;  %v2745_v31 = vld [vmem:[%s3250_s5 + $0x238] sm:$0xff]   ;;  %v2764_v55 = vld [vmem:[%s3250_s5 + $0x188] sm:$0xff]  }
  0x9c   : > { %v1729_v7 = vcombine.low %v3312_v17, %v1727_v0  ;;  %v2737_v17 = vld [vmem:[%s3250_s5 + $0x48] sm:$0xff]   ;;  %v2746_v35 = vld [vmem:[%s3250_s5 + $0x1b8] sm:$0xff]  }
  0x9d   : > { %2563 = vmatpush3.bf16.msra.mxu1 %v2709_v39  ;;  %v2723_v39 = vld [vmem:[%s3250_s5 + $0xb0] sm:$0xff]   ;;  %v1223_v40 = vcombine.high %v1200_v36, %v1214_v37  ;;  %v1222_v41 = vcombine.low %v1200_v36, %v1214_v37  ;;  %v2424_v43 = vcombine.low %v1139_v15, %v1743_v38  ;;  %v2751_v37 = vld [vmem:[%s3250_s5 + $0x228] sm:$0xff]  }
  0x9e   : > { %2470 = vmatpush3.bf16.msra.mxu0 %v2710_v42  ;;  %2564 = vmatprep.subr.bf16.mxu1 %v2840_v16  ;;  %v2721_v42 = vld [vmem:[%s3250_s5 + $0x38] sm:$0xff]   ;;  %v1736_v19 = vrot.slane %v1729_v7, %v3296_v52  ;;  %v2747_v36 = vld [vmem:[%s3250_s5 + $0x1f0] sm:$0xff]  }
  0x9f   : > { %2471 = vmatprep.subr.bf16.mxu0 %v2711_v46  ;;  %1404 = vmatprep.mubr.bf16.mxu0 %v1223_v40  ;;  %v3349_v45 = vrot.slane %v2424_v43, %v3296_v52  ;;  %v2726_v46 = vld [vmem:[%s3250_s5 + $0xa8] sm:$0xff]   ;;  %v2749_v38 = vld [vmem:[%s3250_s5 + $0x1b0] sm:$0xff]   ;;  %v2754_v40 = vld [vmem:[%s3250_s5 + $0x220] sm:$0xff]  }
  0xa0   : > { %v2423_v27 = vcombine.low %v3329_v28, %v1736_v19  ;;  %v2757_v43 = vld [vmem:[%s3250_s5 + $0x218] sm:$0xff]  }
  0xa1   : > { %2565 = vmatpush3.bf16.msra.mxu1 %v2712_v51  ;;  %v2727_v51 = vld [vmem:[%s3250_s5 + $0x28] sm:$0xff]  }
  0xa2   : > { %2472 = vmatpush3.bf16.msra.mxu0 %v2713_v58  ;;  %2570 = vmatprep.subr.bf16.mxu1 %v2840_v16  ;;  %v2265_v58 = vcombine.low %v952_v56, %v952_v56  ;;  %v3402_v33 = vrot.slane %v2423_v27, %v3296_v52 }
  0xa3   : > { %2488 = vmatprep.subr.bf16.mxu0 %v2719_v63 }
  0xa4   : > { %2567 = vmatmul.mubr.bf16.vlgmr.msra.gmra.mxu1 %v1224_v34  ;;  %v971_v61 = vshrl.u32 %v2265_v58, 16  ;;  %v973_v62 = vshll.u32 %v2265_v58, 16  ;;  %v998_v63 = vrot.slane %v2265_v58, 1  ;;  %v2748_v34 = vld [vmem:[%s3250_s5 + $0x230] sm:$0xff]   ;;  %v2767_v58 = vld [vmem:[%s3250_s5 + $0x180] sm:$0xff]  }
  0xa5   : > { %2571 = vmatpush3.bf16.msra.mxu1 %v2720_v32  ;;  %2586 = vmatprep.mubr.msk.bf16.mxu1 %vm2841_vm0, %v2840_v16  ;;  %v2744_v32 = vld [vmem:[%s3250_s5 + $0x1f8] sm:$0xff]  }
  0xa6   : > { %2572 = vmatprep.subr.bf16.mxu1 %v2840_v16  ;;  %1405 = vmatmul.mubr.bf16.vlgmr.msra.gmra.mxu0 %v1222_v41  ;;  %v975_v2 = vrot.slane %v973_v62, 1  ;;  %v1016_v3 = vrot.slane %v998_v63, %v3296_v52  ;;  %v2752_v41 = vld [vmem:[%s3250_s5 + $0x1a8] sm:$0xff]  }
  0xa7   : > { %2489 = vmatpush3.bf16.msra.mxu0 %v2721_v42  ;;  %v2753_v42 = vld [vmem:[%s3250_s5 + $0x1e0] sm:$0xff]  }
  0xa8   : > { %2490 = vmatprep.subr.bf16.mxu0 %v2722_v44  ;;  %v976_v6 = vor.u32 %v975_v2, %v971_v61  ;;  %v2347_v8 = vcombine.low %v1016_v3, %v3302_v10  ;;  %v2755_v44 = vld [vmem:[%s3250_s5 + $0x1a0] sm:$0xff]  }
  0xa9   : > { %2573 = vmatpush3.bf16.msra.mxu1 %v2723_v39  ;;  %v2750_v39 = vld [vmem:[%s3250_s5 + $0x1e8] sm:$0xff]  }
  0xaa   : > { %2574 = vmatprep.subr.bf16.mxu1 %v2840_v16  ;;  %v1002_v15 = vcombine.low %v952_v56, %v976_v6  ;;  %v1471_v11 = vrot.slane %v2347_v8, %v3296_v52  ;;  %v2765_v56 = vld [vmem:[%s3250_s5 + $0x1c0] sm:$0xff]  }
  0xab   : > { %2491 = vmatpush3.bf16.msra.mxu0 %v2724_v47  ;;  %v2760_v47 = vld [vmem:[%s3250_s5 + $0x210] sm:$0xff]  }
  0xac   : > { %2492 = vmatprep.subr.bf16.mxu0 %v2725_v48  ;;  %v1009_v10 = vrot.slane %v1002_v15, %v3296_v52  ;;  %v1488_v29 = vcombine.low %v1471_v11, %v3383_v14  ;;  %v2758_v48 = vld [vmem:[%s3250_s5 + $0x198] sm:$0xff]  }
  0xad   : > { %2575 = vmatpush3.bf16.msra.mxu1 %v2726_v46  ;;  %v2756_v46 = vld [vmem:[%s3250_s5 + $0x1d8] sm:$0xff]  }
  0xae   : > { %2576 = vmatprep.subr.bf16.mxu1 %v2840_v16  ;;  %v2346_v22 = vcombine.low %v1009_v10, %v3319_v24  ;;  %v2742_v24 = vld [vmem:[%s3250_s5] sm:$0xff]  }
  0xaf   : > { %2493 = vmatpush3.bf16.msra.mxu0 %v2727_v51  ;;  %v2761_v51 = vld [vmem:[%s3250_s5 + $0x190] sm:$0xff]  }
  0xb0   : > { %2494 = vmatprep.subr.bf16.mxu0 %v2728_v54  ;;  %v1464_v26 = vrot.slane %v2346_v22, %v3296_v52  ;;  %v1811_v52 = vcombine.high %v3386_v20, %v3402_v33  ;;  %v2766_v54 = vld [vmem:[%s3250_s5 + $0x200] sm:$0xff]  }
  0xb1   : > { %2577 = vmatpush3.bf16.msra.mxu1 %v2729_v50  ;;  %v2763_v50 = vld [vmem:[%s3250_s5 + $0x208] sm:$0xff]   ;;  %s912_s5 = sand.u32 1, %s2806_s15   ;;  %s2451_s15 = sshll.u32 (%p2935_p9), %s2826_s20, 3 }
  0xb2   : > { %2578 = vmatprep.subr.bf16.mxu1 %v2840_v16  ;;  %v1487_v30 = vcombine.high %v1464_v26, %v3386_v20  ;;  %v1486_v28 = vcombine.low %v1464_v26, %v3386_v20  ;;  %s2262_s17 = sshll.u32 %s912_s5, 3  ;;  %s2080_s9 = sadd.s32 (%p2935_p9), %s2822_s19, %s2451_s15 }
  0xb3   : > { %2495 = vmatpush3.bf16.msra.mxu0 %v2730_v59  ;;  %v1810_v59 = vcombine.low %v3386_v20, %v3402_v33  ;;  %s914_s6 = scalar_lea.vmem [#allocation3], %s2262_s17  ;;  %s2452_s10 = sshll.u32 (%p2935_p9), %s2080_s9, 1 }
  0xb4   : > { %2496 = vmatprep.subr.bf16.mxu0 %v2731_v60  ;;  %1668 = vmatprep.mubr.bf16.mxu0 %v1487_v30  ;;  %s2082_s13 = scalar_lea.vmem (%p2935_p9), %s3486_s4, %s2452_s10 }
  0xb5   : > { %2579 = vmatpush3.bf16.msra.mxu1 %v2732_v57  ;;  %v1812_v57 = vcombine.low %v3383_v14, %v3349_v45 }
  0xb6   : > { %2580 = vmatprep.subr.bf16.mxu1 %v2840_v16 }
  0xb7   : > { %2497 = vmatpush3.bf16.msra.mxu0 %v2733_v4 }
  0xb8   : > { %2498 = vmatprep.subr.bf16.mxu0 %v2734_v5 }
  0xb9   : > { %2581 = vmatpush3.bf16.msra.mxu1 %v2735_v1 }
  0xba   : > { %2582 = vmatprep.subr.bf16.mxu1 %v2840_v16 }
  0xbb   : > { %2499 = vmatpush3.bf16.msra.mxu0 %v2736_v18 }
  0xbc   : > { %2500 = vmatprep.subr.bf16.mxu0 %v2737_v17 }
  0xbd   : > { %2583 = vmatpush3.bf16.msra.mxu1 %v2738_v13 }
  0xbe   : > { %2584 = vmatprep.subr.bf16.mxu1 %v2840_v16 }
  0xbf   : > { %2501 = vmatpush3.bf16.msra.mxu0 %v2739_v23 }
  0xc0   : > { %2502 = vmatprep.subr.bf16.mxu0 %v2740_v25 }
  0xc1   : > { %2585 = vmatpush3.bf16.msra.mxu1 %v2741_v21 }
  0xc2   : > { %2590 = vmatprep.subr.bf16.mxu1 %v2840_v16 }
  0xc3   : > { %2503 = vmatpush3.bf16.msra.mxu0 %v2742_v24 }
  0xc4   : > { %2587 = vmatmul.mubr.bf16.vlgmr.msra.gmra.mxu1 %v1488_v29  ;;  %2519 = vmatprep.subr.bf16.mxu0 %v2744_v32 }
  0xc5   : > { %2591 = vmatpush3.bf16.msra.mxu1 %v2745_v31  ;;  %2606 = vmatprep.mubr.msk.bf16.mxu1 %vm2841_vm0, %v2840_v16  ;;  %v2449_v31 = vld [vmem:[%s949_s29] ss:$0 sm:$0xff] }
  0xc6   : > { %2592 = vmatprep.subr.bf16.mxu1 %v2840_v16  ;;  %1669 = vmatmul.mubr.bf16.vlgmr.msra.gmra.mxu0 %v1486_v28 }
  0xc7   : > { %2520 = vmatpush3.bf16.msra.mxu0 %v2746_v35  ;;  %1992 = vmatprep.mubr.bf16.mxu0 %v1811_v52 }
  0xc8   : > { %2521 = vmatprep.subr.bf16.mxu0 %v2747_v36 }
  0xc9   : > { %2593 = vmatpush3.bf16.msra.mxu1 %v2748_v34 }
  0xca   : > { %2594 = vmatprep.subr.bf16.mxu1 %v2840_v16 }
  0xcb   : > { %2522 = vmatpush3.bf16.msra.mxu0 %v2749_v38 }
  0xcc   : > { %2523 = vmatprep.subr.bf16.mxu0 %v2750_v39 }
  0xcd   : > { %2595 = vmatpush3.bf16.msra.mxu1 %v2751_v37 }
  0xce   : > { %2596 = vmatprep.subr.bf16.mxu1 %v2840_v16 }
  0xcf   : > { %2524 = vmatpush3.bf16.msra.mxu0 %v2752_v41 }
  0xd0   : > { %2525 = vmatprep.subr.bf16.mxu0 %v2753_v42 }
  0xd1   : > { %2597 = vmatpush3.bf16.msra.mxu1 %v2754_v40 }
  0xd2   : > { %2598 = vmatprep.subr.bf16.mxu1 %v2840_v16 }
  0xd3   : > { %2526 = vmatpush3.bf16.msra.mxu0 %v2755_v44 }
  0xd4   : > { %2527 = vmatprep.subr.bf16.mxu0 %v2756_v46 }
  0xd5   : > { %2599 = vmatpush3.bf16.msra.mxu1 %v2757_v43 }
  0xd6   : > { %2600 = vmatprep.subr.bf16.mxu1 %v2840_v16 }
  0xd7   : > { %2528 = vmatpush3.bf16.msra.mxu0 %v2758_v48 }
  0xd8   : > { %2529 = vmatprep.subr.bf16.mxu0 %v2759_v49 }
  0xd9   : > { %2601 = vmatpush3.bf16.msra.mxu1 %v2760_v47 }
  0xda   : > { %2602 = vmatprep.subr.bf16.mxu1 %v2840_v16 }
  0xdb   : > { %2530 = vmatpush3.bf16.msra.mxu0 %v2761_v51 }
  0xdc   : > { %2531 = vmatprep.subr.bf16.mxu0 %v2762_v53 }
  0xdd   : > { %2603 = vmatpush3.bf16.msra.mxu1 %v2763_v50 }
  0xde   : > { %2604 = vmatprep.subr.bf16.mxu1 %v2840_v16 }
  0xdf   : > { %2532 = vmatpush3.bf16.msra.mxu0 %v2764_v55 }
  0xe0   : > { %2533 = vmatprep.subr.bf16.mxu0 %v2765_v56 }
  0xe1   : > { %2605 = vmatpush3.bf16.msra.mxu1 %v2766_v54 }
  0xe3   : > { %2534 = vmatpush3.bf16.msra.mxu0 %v2767_v58 }
  0xe4   : > { %2607 = vmatmul.mubr.bf16.vlgmr.msra.gmra.mxu1 %v1812_v57 }
  0xe6   : > { %1993 = vmatmul.mubr.bf16.vlgmr.msra.gmra.mxu0 %v1810_v59 }
 0x164   : > { %v1447_v60 = vpop.f32.mrf.mxu1 }
 0x166   : > { %v2568_v61 = vpop.f32.mrf.mxu1  ;;  %v2473_v45 = vpop.f32.mrf.mxu0 }
 0x168   : > { %v1450_v62 = vpop.f32.mrf.mxu1  ;;  %v2474_v3 = vpop.f32.mrf.mxu0 }
 0x169   : > { %v2475_v9 = vadd.f32 %v2474_v3, %v2473_v45 }
 0x16a   : > { %v2569_v16 = vpop.f32.mrf.mxu1  ;;  %v2476_v4 = vpop.f32.mrf.mxu0 }
 0x16b   : > { %v1448_v17 = vadd.f32 %v2475_v9, %v1447_v60 }
 0x16c   : > { %v2477_v5 = vpop.f32.mrf.mxu0 }
 0x16d   : > { %v2478_v10 = vadd.f32 %v2477_v5, %v2476_v4 }
 0x16f   : > { %v1451_v23 = vadd.f32 %v2478_v10, %v1450_v62 }
 0x184   : > { %v1711_v63 = vpop.f32.mrf.mxu1 }
 0x186   : > { %v2588_v0 = vpop.f32.mrf.mxu1  ;;  %v2504_v6 = vpop.f32.mrf.mxu0 }
 0x188   : > { %v1714_v1 = vpop.f32.mrf.mxu1  ;;  %v2505_v7 = vpop.f32.mrf.mxu0 }
 0x189   : > { %v2506_v13 = vadd.f32 %v2505_v7, %v2504_v6 }
 0x18a   : > { %v2589_v2 = vpop.f32.mrf.mxu1  ;;  %v2507_v8 = vpop.f32.mrf.mxu0 }
 0x18b   : > { %v1671_v14 = vadd.f32 %v2506_v13, %v1448_v17 }
 0x18c   : > { %v2508_v18 = vpop.f32.mrf.mxu0 }
 0x18d   : > { %v2509_v20 = vadd.f32 %v2508_v18, %v2507_v8  ;;  %v1712_v27 = vadd.f32 %v1711_v63, %v1671_v14 }
 0x18f   : > { %v1674_v29 = vadd.f32 %v2509_v20, %v1451_v23 }
 0x191   : > { %v1715_v28 = vadd.f32 %v1714_v1, %v1674_v29 }
 0x1a4   : > { %v2035_v12 = vpop.f32.mrf.mxu1 }
 0x1a6   : > { %v2608_v15 = vpop.f32.mrf.mxu1  ;;  %v2535_v11 = vpop.f32.mrf.mxu0 }
 0x1a8   : > { %v2038_v19 = vpop.f32.mrf.mxu1  ;;  %v2536_v22 = vpop.f32.mrf.mxu0 }
 0x1a9   : > { %v2537_v25 = vadd.f32 %v2536_v22, %v2535_v11 }
 0x1aa   : > { %v2609_v21 = vpop.f32.mrf.mxu1  ;;  %v2538_v26 = vpop.f32.mrf.mxu0 }
 0x1ab   : > { %v2036_v30 = vadd.f32 %v2537_v25, %v2035_v12 }
 0x1ac   : > { %v2539_v24 = vpop.f32.mrf.mxu0 }
 0x1ad   : > { %v2042_v32 = vadd.f32 %v2036_v30, %v1712_v27  ;;  %v2540_v33 = vadd.f32 %v2539_v24, %v2538_v26 }
 0x1af   : > { %v2051_v34 = vadd.f32 %v2449_v31, %v2042_v32  ;;  %v2039_v35 = vadd.f32 %v2540_v33, %v2038_v19 }
 0x1b1   : > { %v2053_v36 = vmax.f32 %v2051_v34, 0.0  ;;  %v2043_v52 = vadd.f32 %v2039_v35, %v1715_v28 }
 0x1b3   : > { %v2057_v37 = vcombine.high %v2053_v36, %v2053_v36  ;;  %v2061_v38 = vpack.c.bf16 %v2053_v36, %v2053_v36  ;;  %v2052_v39 = vadd.f32 %v2449_v31, %v2043_v52 }
 0x1b5   : > { %v2062_v40 = vpack.c.bf16 %v2057_v37, %v2057_v37  ;;  %2065 = vst [vmem:[%s914_s6] sm:$0x3] %v2061_v38  ;;  %v2054_v41 = vmax.f32 %v2052_v39, 0.0 }
 0x1b7   : > { %2066 = vst [vmem:[%s914_s6 + $0x2] sm:$0x3] %v2062_v40  ;;  %v2058_v42 = vcombine.high %v2054_v41, %v2054_v41  ;;  %v2063_v43 = vpack.c.bf16 %v2054_v41, %v2054_v41  ;;  %2075 = sbr.rel (!%p2935_p9) target bundleno = 452 (0x1c4), region = 81 }
 0x1b9   : > { %v2064_v44 = vpack.c.bf16 %v2058_v42, %v2058_v42  ;;  %2067 = vst [vmem:[%s914_s6 + $0x4] sm:$0x3] %v2063_v43 }
 0x1bb   : > { %2068 = vst [vmem:[%s914_s6 + $0x6] sm:$0x3] %v2064_v44 }
 0x1bc   : > { %v2099_v46 = vld [vmem:[%s914_s6] sm:$0x3] }
 0x1bd   : > { %2100 = vst [vmem:[%s2082_s13] sm:$0x3] %v2099_v46 }
 0x1be   : > { %v2101_v47 = vld [vmem:[%s914_s6 + $0x2] sm:$0x3] }
 0x1bf   : > { %2102 = vst [vmem:[%s2082_s13 + $0x4] sm:$0x3] %v2101_v47 }
 0x1c0   : > { %v2103_v48 = vld [vmem:[%s914_s6 + $0x4] sm:$0x3] }
 0x1c1   : > { %2104 = vst [vmem:[%s2082_s13 + $0x8] sm:$0x3] %v2103_v48 }
 0x1c2   : > { %v2105_v49 = vld [vmem:[%s914_s6 + $0x6] sm:$0x3] }
 0x1c3   : > { %2106 = vst [vmem:[%s2082_s13 + $0xc] sm:$0x3] %v2105_v49 }
 0x1c4 PF: > { %s14_s23 = sadd.s32 1, %s2838_s23   ;;  %s3488_s15 = smov %s2810_s16 }
 0x1c5   : > { %p11_p2 = scmp.ge.s32.totalorder %s14_s23, 6   ;;  %s3489_s16 = smov %s2940_s8 }
 0x1c6   : > { %s3490_s17 = smov %s2818_s18  ;;  %s3491_s18 = smov %s2929_s30 }
 0x1c7   : > { %s3492_s19 = smov %s2830_s21  ;;  %s3493_s20 = smov %s2834_s22 }
 0x1c8   : > { %s3494_s21 = smov %s3497_s25  ;;  %s3495_s22 = smov %s3501_s26 }
 0x1c9   :  { %13 = sbr.rel (!%p11_p2) target bundleno = 5 (0x5), region = 164 }

</bundles_post_ra>
